<compile_context>
chip_gen: v6e
topology: v6e:2x2x1
jax: 0.10.0
libtpu: 0.0.40
codegen_flags: <defaults>
</compile_context>

<pallas_src>
import functools

import jax
import jax.numpy as jnp
from jax import lax
from jax.experimental import pallas as pl
from jax.experimental.pallas import tpu as pltpu


def _zero_border(ref, TB, S, C):
    """Zero only the 1-wide padding frame (interior is rewritten every step)."""
    z_row = jnp.zeros((TB, 1, S + 2, C), ref.dtype)
    z_col = jnp.zeros((TB, S + 2, 1, C), ref.dtype)
    ref[:, 0:1, :, :] = z_row
    ref[:, S + 1:S + 2, :, :] = z_row
    ref[:, :, 0:1, :] = z_col
    ref[:, :, S + 1:S + 2, :] = z_col


def _im2col(pad_ref, col_ref, TB, S, C):
    """(TB, S+2, S+2, C) padded slab -> (TB*S*S, 9*C) im2col slab (tap-major).

    One row-band load per kh (3 loads) instead of 9 window loads; channel
    offsets t*C stay lane-aligned for the main path (C = k)."""
    M = TB * S * S
    for kh in range(3):                                    # static 9-tap unroll
        band = pad_ref[:, kh:kh + S, :, :]                 # (TB, S, S+2, C)
        for kw in range(3):
            t = kh * 3 + kw
            win = band[:, :, kw:kw + S, :]                 # (TB, S, S, C)
            col_ref[:, t * C:(t + 1) * C] = win.reshape(M, C)


def _tower_kernel(x_ref, v_ref, mask_ref, w1_ref, b1_ref, w56m_ref, wv_ref,
                  b56_ref, w7_ref, b7_ref, w8_ref, b8_ref, out_ref,
                  padc_ref, pad7_ref, colm_ref, col7_ref,
                  *, S, TB, k, v_dim, pool):
    M = TB * S * S
    C56 = k + k // 2
    bf16 = jnp.bfloat16
    f32 = jnp.float32
    dn = (((1,), (0,)), ((), ()))

    # Re-zero only the padding borders each step (interiors fully overwritten;
    # done every step so "parallel" megacore sharding stays correct).
    _zero_border(padc_ref, TB, S, k)
    _zero_border(pad7_ref, TB, S, k // 2)

    # ---- conv1 (2x2 / stride 2): pre-extracted patches -> one MXU matmul ----
    xp = x_ref[...].reshape(M, x_ref.shape[-1])                        # bf16
    c1 = lax.dot_general(xp, w1_ref[...], dn, preferred_element_type=f32)
    c1 = jnp.maximum(c1 + b1_ref[...], 0.0)                            # (M, k)
    padc_ref[:, 1:S + 1, 1:S + 1, :] = c1.astype(bf16).reshape(TB, S, S, k)

    # ---- conv5 & conv6 fused: one lane-aligned K = 9*k contraction ----
    _im2col(padc_ref, colm_ref, TB, S, k)
    y56 = lax.dot_general(colm_ref[...], w56m_ref[...], dn,
                          preferred_element_type=f32)                  # (M, C56)

    # ---- viewpoint contribution (spatially constant input channels) ----
    # u[b, t, c] = v[b] . Wv[tap t, :, c];  vterm[b, p, c] = sum_t mask[p,t]*u[b,t,c]
    u = lax.dot_general(v_ref[...], wv_ref[...], dn,
                        preferred_element_type=f32)                    # (TB, 9*C56)
    u3 = u.reshape(TB, 9, C56)
    m3 = jnp.broadcast_to(mask_ref[...][None], (TB, S * S, 9))
    vterm = jnp.einsum('bpt,btc->bpc', m3, u3,
                       preferred_element_type=f32)                     # (TB, S*S, C56)
    y56 = jnp.maximum(y56 + vterm.reshape(M, C56) + b56_ref[...], 0.0)
    skip_out = y56[:, :k]                                              # relu(conv5)
    x6 = y56[:, k:]                                                    # relu(conv6)

    # ---- conv7 (3x3) ----
    pad7_ref[:, 1:S + 1, 1:S + 1, :] = x6.astype(bf16).reshape(TB, S, S, k // 2)
    _im2col(pad7_ref, col7_ref, TB, S, k // 2)
    x7 = lax.dot_general(col7_ref[...], w7_ref[...], dn,
                         preferred_element_type=f32)
    x7 = jnp.maximum(x7 + b7_ref[...], 0.0) + skip_out                 # (M, k)

    # ---- conv8 (1x1) + relu ----
    r = lax.dot_general(x7.astype(bf16), w8_ref[...], dn,
                        preferred_element_type=f32)
    r = jnp.maximum(r + b8_ref[...], 0.0)                              # (M, k)

    if pool:
        # AvgPool2d(S) over the full S x S map -> one vector per image.
        out_ref[...] = jnp.mean(r.reshape(TB, S * S, k), axis=1)
    else:
        out_ref[...] = r.reshape(TB, S * S, k)


def tower_representation(x_nchw, v, params, *, r_dim, pool=True, batch_tile=None):
    B, c_in, H, W = x_nchw.shape
    k = r_dim
    S = k // 16
    assert H == 2 * S and W == 2 * S, "spatial size must be 2 * (r_dim // 16)"
    v_dim = v.shape[1]
    C56 = k + k // 2
    w1, b1, w5, b5, w6, b6, w7, b7, w8, b8 = params
    bf16 = jnp.bfloat16

    TB = batch_tile if batch_tile is not None else min(B, 8)
    Bp = ((B + TB - 1) // TB) * TB                       # pad batch to TB multiple

    # glue: im2col of the non-overlapping 2x2 / stride-2 conv1 (pure reshapes).
    xh = jnp.transpose(x_nchw, (0, 2, 3, 1))                           # NHWC
    xh = xh.reshape(B, S, 2, S, 2, c_in)
    xh = jnp.transpose(xh, (0, 1, 3, 2, 4, 5)).reshape(B, S * S, 4 * c_in)
    xh = xh.astype(bf16)
    v_in = v.astype(jnp.float32)
    if Bp != B:
        xh = jnp.concatenate([xh, jnp.zeros((Bp - B, S * S, 4 * c_in), bf16)], 0)
        v_in = jnp.concatenate([v_in, jnp.zeros((Bp - B, v_dim), jnp.float32)], 0)

    # weight repacking: HWIO -> tap-major im2col matrices, bf16 for the MXU.
    w1f = w1.reshape(4 * c_in, k).astype(bf16)
    w56m = jnp.concatenate(
        [w5[:, :, :k, :].reshape(9 * k, k),
         w6[:, :, :k, :].reshape(9 * k, k // 2)], axis=1).astype(bf16)
    b56 = jnp.concatenate([b5, b6], axis=1).astype(jnp.float32)

    # viewpoint weights: per-tap projection matrix (v_dim, 9*C56), tap-major.
    wv = jnp.concatenate(
        [w5[:, :, k:, :].reshape(9, v_dim, k),
         w6[:, :, k:, :].reshape(9, v_dim, k // 2)], axis=-1)          # (9, v_dim, C56)
    wv = jnp.transpose(wv, (1, 0, 2)).reshape(v_dim, 9 * C56).astype(jnp.float32)

    # tap-validity mask for the zero-padded 3x3 convs on the S x S grid:
    # mask[i*S+j, kh*3+kw] = 1 iff (i+kh-1, j+kw-1) is inside the image.
    idx = jnp.arange(S)[:, None] + (jnp.arange(3)[None, :] - 1)        # (S, 3)
    vh = (idx >= 0) & (idx < S)
    mask = (vh[:, None, :, None] & vh[None, :, None, :]).reshape(S * S, 9)
    mask = mask.astype(jnp.float32)

    w7f = w7.reshape(9 * (k // 2), k).astype(bf16)
    w8f = w8.astype(bf16)

    kern = functools.partial(_tower_kernel, S=S, TB=TB, k=k, v_dim=v_dim, pool=pool)

    def full(a):
        nd = a.ndim
        return pl.BlockSpec(a.shape, lambda b, nd=nd: (0,) * nd)

    in_specs = [
        pl.BlockSpec((TB, S * S, 4 * c_in), lambda b: (b, 0, 0)),      # conv1 patches
        pl.BlockSpec((TB, v_dim), lambda b: (b, 0)),                   # viewpoints
        full(mask), full(w1f), full(b1), full(w56m), full(wv), full(b56),
        full(w7f), full(b7), full(w8f), full(b8),
    ]
    if pool:
        out_shape = jax.ShapeDtypeStruct((Bp, k), jnp.float32)
        out_spec = pl.BlockSpec((TB, k), lambda b: (b, 0))
    else:
        out_shape = jax.ShapeDtypeStruct((Bp, S * S, k), jnp.float32)
        out_spec = pl.BlockSpec((TB, S * S, k), lambda b: (b, 0, 0))

    out = pl.pallas_call(
        kern,
        out_shape=out_shape,
        grid_spec=pltpu.PrefetchScalarGridSpec(
            num_scalar_prefetch=0,
            grid=(Bp // TB,),
            in_specs=in_specs,
            out_specs=out_spec,
            scratch_shapes=[
                pltpu.VMEM((TB, S + 2, S + 2, k), bf16),          # padded conv1 out
                pltpu.VMEM((TB, S + 2, S + 2, k // 2), bf16),     # padded conv6 out
                pltpu.VMEM((TB * S * S, 9 * k), bf16),            # im2col conv5/6
                pltpu.VMEM((TB * S * S, 9 * (k // 2)), bf16),     # im2col conv7
            ]),
        compiler_params=pltpu.CompilerParams(
            dimension_semantics=("parallel",)),
    )(xh, v_in, mask, w1f, b1, w56m, wv, b56, w7f, b7, w8f, b8)

    out = out[:B]
    if pool:
        return out.reshape(B, k, 1, 1)                               # NCHW
    return jnp.transpose(out.reshape(B, S, S, k), (0, 3, 1, 2))      # NCHW


def init_params(key, n_channels, v_dim, r_dim):
    """Deterministic synthetic weights (HWIO), same shapes as the nn.Module."""
    k = r_dim
    keys = jax.random.split(key, 10)

    def wgt(kk, shape, fan_in):
        return jax.random.normal(kk, shape, jnp.float32) / jnp.sqrt(float(fan_in))

    w1 = wgt(keys[0], (2, 2, n_channels, k), 4 * n_channels)
    b1 = 0.01 * jax.random.normal(keys[1], (1, k), jnp.float32)
    w5 = wgt(keys[2], (3, 3, k + v_dim, k), 9 * (k + v_dim))
    b5 = 0.01 * jax.random.normal(keys[3], (1, k), jnp.float32)
    w6 = wgt(keys[4], (3, 3, k + v_dim, k // 2), 9 * (k + v_dim))
    b6 = 0.01 * jax.random.normal(keys[5], (1, k // 2), jnp.float32)
    w7 = wgt(keys[6], (3, 3, k // 2, k), 9 * (k // 2))
    b7 = 0.01 * jax.random.normal(keys[7], (1, k), jnp.float32)
    w8 = wgt(keys[8], (k, k), k)
    b8 = 0.01 * jax.random.normal(keys[9], (1, k), jnp.float32)
    return (w1, b1, w5, b5, w6, b6, w7, b7, w8, b8)


def tower_reference(x_nchw, v, params, *, r_dim, pool=True):
    """Pure-JAX reference (lax.conv) for correctness checking."""
    w1, b1, w5, b5, w6, b6, w7, b7, w8, b8 = params
    S = r_dim // 16
    hi = lax.Precision.HIGHEST
    dn = ('NHWC', 'HWIO', 'NHWC')

    def conv(inp, wt, stride, pad):
        return lax.conv_general_dilated(inp, wt, (stride, stride), pad,
                                        dimension_numbers=dn, precision=hi)

    x = jnp.transpose(x_nchw, (0, 2, 3, 1))
    c1 = jax.nn.relu(conv(x, w1, 2, 'VALID') + b1.reshape(1, 1, 1, -1))
    vb = jnp.broadcast_to(v[:, None, None, :], (x.shape[0], S, S, v.shape[1]))
    skip_in = jnp.concatenate([c1, vb], axis=-1)
    skip_out = jax.nn.relu(conv(skip_in, w5, 1, 'SAME') + b5.reshape(1, 1, 1, -1))
    x6 = jax.nn.relu(conv(skip_in, w6, 1, 'SAME') + b6.reshape(1, 1, 1, -1))
    x7 = jax.nn.relu(conv(x6, w7, 1, 'SAME') + b7.reshape(1, 1, 1, -1)) + skip_out
    r = jax.nn.relu(jnp.einsum('bhwc,co->bhwo', x7, w8, precision=hi)
                    + b8.reshape(1, 1, 1, -1))
    if pool:
        r = jnp.mean(r, axis=(1, 2), keepdims=True)
    return jnp.transpose(r, (0, 3, 1, 2))                            # NCHW


if __name__ == "__main__":
    B, n_channels, v_dim, r_dim = 2, 4, 7, 128
    S = r_dim // 16                      # 8
    H = W = 2 * S                        # 16 (conv1 halves it to S x S)

    key = jax.random.PRNGKey(0)
    kx, kv, kp = jax.random.split(key, 3)
    x = jax.random.normal(kx, (B, n_channels, H, W), jnp.float32)    # NCHW image
    v = jax.random.normal(kv, (B, v_dim), jnp.float32)               # viewpoint
    params = init_params(kp, n_channels, v_dim, r_dim)

    # pooled (module default) path
    out = tower_representation(x, v, params, r_dim=r_dim, pool=True)
    out = jax.block_until_ready(out)
    ref = tower_reference(x, v, params, r_dim=r_dim, pool=True)
    assert out.shape == (B, r_dim, 1, 1), out.shape
    assert jnp.allclose(out, ref, atol=2e-2, rtol=2e-2), \
        float(jnp.max(jnp.abs(out - ref)))

    # non-pooled path (different output spec / final reshape); norm-relative
    # check since bf16 MXU error is not averaged by the pool here.
    out_np = tower_representation(x, v, params, r_dim=r_dim, pool=False)
    out_np = jax.block_until_ready(out_np)
    ref_np = tower_reference(x, v, params, r_dim=r_dim, pool=False)
    assert out_np.shape == (B, r_dim, S, S), out_np.shape
    rel = float(jnp.linalg.norm(out_np - ref_np) / jnp.linalg.norm(ref_np))
    assert rel < 2e-2, rel

    print("KERNEL_OK")
</pallas_src>

<mosaic_0001>
module attributes {stable_mosaic.version = 11 : i64} {
  func.func @_tower_kernel(%arg0: i32, %arg1: memref<2x64x16xbf16, #tpu.memory_space<vmem>>, %arg2: memref<2x7xf32, #tpu.memory_space<vmem>>, %arg3: memref<64x9xf32, #tpu.memory_space<vmem>>, %arg4: memref<16x128xbf16, #tpu.memory_space<vmem>>, %arg5: memref<1x128xf32, #tpu.memory_space<vmem>>, %arg6: memref<1152x192xbf16, #tpu.memory_space<vmem>>, %arg7: memref<7x1728xf32, #tpu.memory_space<vmem>>, %arg8: memref<1x192xf32, #tpu.memory_space<vmem>>, %arg9: memref<576x128xbf16, #tpu.memory_space<vmem>>, %arg10: memref<1x128xf32, #tpu.memory_space<vmem>>, %arg11: memref<128x128xbf16, #tpu.memory_space<vmem>>, %arg12: memref<1x128xf32, #tpu.memory_space<vmem>>, %arg13: memref<2x128xf32, #tpu.memory_space<vmem>>, %arg14: memref<2x10x10x128xbf16, #tpu.memory_space<vmem>>, %arg15: memref<2x10x10x64xbf16, #tpu.memory_space<vmem>>, %arg16: memref<128x1152xbf16, #tpu.memory_space<vmem>>, %arg17: memref<128x576xbf16, #tpu.memory_space<vmem>>) attributes {dimension_semantics = [#tpu.dimension_semantics<parallel>], iteration_bounds = array<i64: 1>, scalar_prefetch = 0 : i64, scratch_operands = 4 : i64, tpu.core_type = #tpu.core_type<tc>, window_params = [{transform_indices = @transform_0, window_bounds = array<i64: 2, 64, 16>}, {transform_indices = @transform_1, window_bounds = array<i64: 2, 7>}, {pipeline_mode = #tpu.pipeline_mode<synchronous>, transform_indices = @transform_2, window_bounds = array<i64: 64, 9>}, {pipeline_mode = #tpu.pipeline_mode<synchronous>, transform_indices = @transform_3, window_bounds = array<i64: 16, 128>}, {pipeline_mode = #tpu.pipeline_mode<synchronous>, transform_indices = @transform_4, window_bounds = array<i64: 1, 128>}, {pipeline_mode = #tpu.pipeline_mode<synchronous>, transform_indices = @transform_5, window_bounds = array<i64: 1152, 192>}, {pipeline_mode = #tpu.pipeline_mode<synchronous>, transform_indices = @transform_6, window_bounds = array<i64: 7, 1728>}, {pipeline_mode = #tpu.pipeline_mode<synchronous>, transform_indices = @transform_7, window_bounds = array<i64: 1, 192>}, {pipeline_mode = #tpu.pipeline_mode<synchronous>, transform_indices = @transform_8, window_bounds = array<i64: 576, 128>}, {pipeline_mode = #tpu.pipeline_mode<synchronous>, transform_indices = @transform_9, window_bounds = array<i64: 1, 128>}, {pipeline_mode = #tpu.pipeline_mode<synchronous>, transform_indices = @transform_10, window_bounds = array<i64: 128, 128>}, {pipeline_mode = #tpu.pipeline_mode<synchronous>, transform_indices = @transform_11, window_bounds = array<i64: 1, 128>}, {transform_indices = @transform_12, window_bounds = array<i64: 2, 128>}]} {
    %cst = arith.constant 0.000000e+00 : bf16
    %0 = vector.broadcast %cst : bf16 to vector<2x1x10x128xbf16>
    %cst_0 = arith.constant 0.000000e+00 : bf16
    %1 = vector.broadcast %cst_0 : bf16 to vector<2x10x1x128xbf16>
    %c0 = arith.constant 0 : index
    %c0_1 = arith.constant 0 : index
    %c0_2 = arith.constant 0 : index
    %c0_3 = arith.constant 0 : index
    %2 = vector.load %arg14[%c0, %c0_1, %c0_2, %c0_3] : memref<2x10x10x128xbf16, #tpu.memory_space<vmem>>, vector<2x1x10x128xbf16>
    tpu.vector_store %arg14[%c0, %c0_1, %c0_2, %c0_3], %0 {strides = array<i32>} : memref<2x10x10x128xbf16, #tpu.memory_space<vmem>>, vector<2x1x10x128xbf16>,
    %c0_4 = arith.constant 0 : index
    %c9 = arith.constant 9 : index
    %c0_5 = arith.constant 0 : index
    %c0_6 = arith.constant 0 : index
    %3 = vector.load %arg14[%c0_4, %c9, %c0_5, %c0_6] : memref<2x10x10x128xbf16, #tpu.memory_space<vmem>>, vector<2x1x10x128xbf16>
    tpu.vector_store %arg14[%c0_4, %c9, %c0_5, %c0_6], %0 {strides = array<i32>} : memref<2x10x10x128xbf16, #tpu.memory_space<vmem>>, vector<2x1x10x128xbf16>,
    %c0_7 = arith.constant 0 : index
    %c0_8 = arith.constant 0 : index
    %c0_9 = arith.constant 0 : index
    %c0_10 = arith.constant 0 : index
    %4 = vector.load %arg14[%c0_7, %c0_8, %c0_9, %c0_10] : memref<2x10x10x128xbf16, #tpu.memory_space<vmem>>, vector<2x10x1x128xbf16>
    tpu.vector_store %arg14[%c0_7, %c0_8, %c0_9, %c0_10], %1 {strides = array<i32>} : memref<2x10x10x128xbf16, #tpu.memory_space<vmem>>, vector<2x10x1x128xbf16>,
    %c0_11 = arith.constant 0 : index
    %c0_12 = arith.constant 0 : index
    %c9_13 = arith.constant 9 : index
    %c0_14 = arith.constant 0 : index
    %5 = vector.load %arg14[%c0_11, %c0_12, %c9_13, %c0_14] : memref<2x10x10x128xbf16, #tpu.memory_space<vmem>>, vector<2x10x1x128xbf16>
    tpu.vector_store %arg14[%c0_11, %c0_12, %c9_13, %c0_14], %1 {strides = array<i32>} : memref<2x10x10x128xbf16, #tpu.memory_space<vmem>>, vector<2x10x1x128xbf16>,
    %cst_15 = arith.constant 0.000000e+00 : bf16
    %6 = vector.broadcast %cst_15 : bf16 to vector<2x1x10x64xbf16>
    %cst_16 = arith.constant 0.000000e+00 : bf16
    %7 = vector.broadcast %cst_16 : bf16 to vector<2x10x1x64xbf16>
    %c0_17 = arith.constant 0 : index
    %c0_18 = arith.constant 0 : index
    %c0_19 = arith.constant 0 : index
    %c0_20 = arith.constant 0 : index
    %8 = vector.load %arg15[%c0_17, %c0_18, %c0_19, %c0_20] : memref<2x10x10x64xbf16, #tpu.memory_space<vmem>>, vector<2x1x10x64xbf16>
    tpu.vector_store %arg15[%c0_17, %c0_18, %c0_19, %c0_20], %6 {strides = array<i32>} : memref<2x10x10x64xbf16, #tpu.memory_space<vmem>>, vector<2x1x10x64xbf16>,
    %c0_21 = arith.constant 0 : index
    %c9_22 = arith.constant 9 : index
    %c0_23 = arith.constant 0 : index
    %c0_24 = arith.constant 0 : index
    %9 = vector.load %arg15[%c0_21, %c9_22, %c0_23, %c0_24] : memref<2x10x10x64xbf16, #tpu.memory_space<vmem>>, vector<2x1x10x64xbf16>
    tpu.vector_store %arg15[%c0_21, %c9_22, %c0_23, %c0_24], %6 {strides = array<i32>} : memref<2x10x10x64xbf16, #tpu.memory_space<vmem>>, vector<2x1x10x64xbf16>,
    %c0_25 = arith.constant 0 : index
    %c0_26 = arith.constant 0 : index
    %c0_27 = arith.constant 0 : index
    %c0_28 = arith.constant 0 : index
    %10 = vector.load %arg15[%c0_25, %c0_26, %c0_27, %c0_28] : memref<2x10x10x64xbf16, #tpu.memory_space<vmem>>, vector<2x10x1x64xbf16>
    tpu.vector_store %arg15[%c0_25, %c0_26, %c0_27, %c0_28], %7 {strides = array<i32>} : memref<2x10x10x64xbf16, #tpu.memory_space<vmem>>, vector<2x10x1x64xbf16>,
    %c0_29 = arith.constant 0 : index
    %c0_30 = arith.constant 0 : index
    %c9_31 = arith.constant 9 : index
    %c0_32 = arith.constant 0 : index
    %11 = vector.load %arg15[%c0_29, %c0_30, %c9_31, %c0_32] : memref<2x10x10x64xbf16, #tpu.memory_space<vmem>>, vector<2x10x1x64xbf16>
    tpu.vector_store %arg15[%c0_29, %c0_30, %c9_31, %c0_32], %7 {strides = array<i32>} : memref<2x10x10x64xbf16, #tpu.memory_space<vmem>>, vector<2x10x1x64xbf16>,
    %c0_33 = arith.constant 0 : index
    %c0_34 = arith.constant 0 : index
    %c0_35 = arith.constant 0 : index
    %12 = vector.load %arg1[%c0_33, %c0_34, %c0_35] : memref<2x64x16xbf16, #tpu.memory_space<vmem>>, vector<2x64x16xbf16>
    %13 = vector.shape_cast %12 : vector<2x64x16xbf16> to vector<128x16xbf16>
    %c0_36 = arith.constant 0 : index
    %c0_37 = arith.constant 0 : index
    %14 = vector.load %arg4[%c0_36, %c0_37] : memref<16x128xbf16, #tpu.memory_space<vmem>>, vector<16x128xbf16>
    %cst_38 = arith.constant dense<0.000000e+00> : vector<128x128xf32>
    %15 = tpu.matmul %13, %14, %cst_38 {dimension_numbers = #tpu.dot_dimension_numbers<[1], [0], [0], [1], [0, 0, 1, 1], [], []>} : vector<128x16xbf16>, vector<16x128xbf16>, vector<128x128xf32> -> vector<128x128xf32>
    %c0_39 = arith.constant 0 : index
    %c0_40 = arith.constant 0 : index
    %16 = vector.load %arg5[%c0_39, %c0_40] : memref<1x128xf32, #tpu.memory_space<vmem>>, vector<1x128xf32>
    %17 = vector.broadcast %16 : vector<1x128xf32> to vector<128x128xf32>
    %18 = arith.addf %15, %17 : vector<128x128xf32>
    %cst_41 = arith.constant 0.000000e+00 : f32
    %19 = vector.broadcast %cst_41 : f32 to vector<128x128xf32>
    %20 = arith.maximumf %18, %19 : vector<128x128xf32>
    %21 = arith.truncf %20 : vector<128x128xf32> to vector<128x128xbf16>
    %22 = vector.shape_cast %21 : vector<128x128xbf16> to vector<2x8x8x128xbf16>
    %c0_42 = arith.constant 0 : index
    %c1 = arith.constant 1 : index
    %c1_43 = arith.constant 1 : index
    %c0_44 = arith.constant 0 : index
    %23 = vector.load %arg14[%c0_42, %c1, %c1_43, %c0_44] : memref<2x10x10x128xbf16, #tpu.memory_space<vmem>>, vector<2x8x8x128xbf16>
    tpu.vector_store %arg14[%c0_42, %c1, %c1_43, %c0_44], %22 {strides = array<i32>} : memref<2x10x10x128xbf16, #tpu.memory_space<vmem>>, vector<2x8x8x128xbf16>,
    %c0_45 = arith.constant 0 : index
    %c0_46 = arith.constant 0 : index
    %c0_47 = arith.constant 0 : index
    %c0_48 = arith.constant 0 : index
    %24 = vector.load %arg14[%c0_45, %c0_46, %c0_47, %c0_48] : memref<2x10x10x128xbf16, #tpu.memory_space<vmem>>, vector<2x8x10x128xbf16>
    %25 = vector.extract_strided_slice %24 {offsets = [0, 0, 0, 0], sizes = [2, 8, 8, 128], strides = [1, 1, 1, 1]} : vector<2x8x10x128xbf16> to vector<2x8x8x128xbf16>
    %26 = vector.shape_cast %25 : vector<2x8x8x128xbf16> to vector<128x128xbf16>
    %c0_49 = arith.constant 0 : index
    %c0_50 = arith.constant 0 : index
    %27 = vector.load %arg16[%c0_49, %c0_50] : memref<128x1152xbf16, #tpu.memory_space<vmem>>, vector<128x128xbf16>
    tpu.vector_store %arg16[%c0_49, %c0_50], %26 {strides = array<i32>} : memref<128x1152xbf16, #tpu.memory_space<vmem>>, vector<128x128xbf16>,
    %28 = vector.extract_strided_slice %24 {offsets = [0, 0, 1, 0], sizes = [2, 8, 8, 128], strides = [1, 1, 1, 1]} : vector<2x8x10x128xbf16> to vector<2x8x8x128xbf16>
    %29 = vector.shape_cast %28 : vector<2x8x8x128xbf16> to vector<128x128xbf16>
    %c0_51 = arith.constant 0 : index
    %c128 = arith.constant 128 : index
    %30 = vector.load %arg16[%c0_51, %c128] : memref<128x1152xbf16, #tpu.memory_space<vmem>>, vector<128x128xbf16>
    tpu.vector_store %arg16[%c0_51, %c128], %29 {strides = array<i32>} : memref<128x1152xbf16, #tpu.memory_space<vmem>>, vector<128x128xbf16>,
    %31 = vector.extract_strided_slice %24 {offsets = [0, 0, 2, 0], sizes = [2, 8, 8, 128], strides = [1, 1, 1, 1]} : vector<2x8x10x128xbf16> to vector<2x8x8x128xbf16>
    %32 = vector.shape_cast %31 : vector<2x8x8x128xbf16> to vector<128x128xbf16>
    %c0_52 = arith.constant 0 : index
    %c256 = arith.constant 256 : index
    %33 = vector.load %arg16[%c0_52, %c256] : memref<128x1152xbf16, #tpu.memory_space<vmem>>, vector<128x128xbf16>
    tpu.vector_store %arg16[%c0_52, %c256], %32 {strides = array<i32>} : memref<128x1152xbf16, #tpu.memory_space<vmem>>, vector<128x128xbf16>,
    %c0_53 = arith.constant 0 : index
    %c1_54 = arith.constant 1 : index
    %c0_55 = arith.constant 0 : index
    %c0_56 = arith.constant 0 : index
    %34 = vector.load %arg14[%c0_53, %c1_54, %c0_55, %c0_56] : memref<2x10x10x128xbf16, #tpu.memory_space<vmem>>, vector<2x8x10x128xbf16>
    %35 = vector.extract_strided_slice %34 {offsets = [0, 0, 0, 0], sizes = [2, 8, 8, 128], strides = [1, 1, 1, 1]} : vector<2x8x10x128xbf16> to vector<2x8x8x128xbf16>
    %36 = vector.shape_cast %35 : vector<2x8x8x128xbf16> to vector<128x128xbf16>
    %c0_57 = arith.constant 0 : index
    %c384 = arith.constant 384 : index
    %37 = vector.load %arg16[%c0_57, %c384] : memref<128x1152xbf16, #tpu.memory_space<vmem>>, vector<128x128xbf16>
    tpu.vector_store %arg16[%c0_57, %c384], %36 {strides = array<i32>} : memref<128x1152xbf16, #tpu.memory_space<vmem>>, vector<128x128xbf16>,
    %38 = vector.extract_strided_slice %34 {offsets = [0, 0, 1, 0], sizes = [2, 8, 8, 128], strides = [1, 1, 1, 1]} : vector<2x8x10x128xbf16> to vector<2x8x8x128xbf16>
    %39 = vector.shape_cast %38 : vector<2x8x8x128xbf16> to vector<128x128xbf16>
    %c0_58 = arith.constant 0 : index
    %c512 = arith.constant 512 : index
    %40 = vector.load %arg16[%c0_58, %c512] : memref<128x1152xbf16, #tpu.memory_space<vmem>>, vector<128x128xbf16>
    tpu.vector_store %arg16[%c0_58, %c512], %39 {strides = array<i32>} : memref<128x1152xbf16, #tpu.memory_space<vmem>>, vector<128x128xbf16>,
    %41 = vector.extract_strided_slice %34 {offsets = [0, 0, 2, 0], sizes = [2, 8, 8, 128], strides = [1, 1, 1, 1]} : vector<2x8x10x128xbf16> to vector<2x8x8x128xbf16>
    %42 = vector.shape_cast %41 : vector<2x8x8x128xbf16> to vector<128x128xbf16>
    %c0_59 = arith.constant 0 : index
    %c640 = arith.constant 640 : index
    %43 = vector.load %arg16[%c0_59, %c640] : memref<128x1152xbf16, #tpu.memory_space<vmem>>, vector<128x128xbf16>
    tpu.vector_store %arg16[%c0_59, %c640], %42 {strides = array<i32>} : memref<128x1152xbf16, #tpu.memory_space<vmem>>, vector<128x128xbf16>,
    %c0_60 = arith.constant 0 : index
    %c2 = arith.constant 2 : index
    %c0_61 = arith.constant 0 : index
    %c0_62 = arith.constant 0 : index
    %44 = vector.load %arg14[%c0_60, %c2, %c0_61, %c0_62] : memref<2x10x10x128xbf16, #tpu.memory_space<vmem>>, vector<2x8x10x128xbf16>
    %45 = vector.extract_strided_slice %44 {offsets = [0, 0, 0, 0], sizes = [2, 8, 8, 128], strides = [1, 1, 1, 1]} : vector<2x8x10x128xbf16> to vector<2x8x8x128xbf16>
    %46 = vector.shape_cast %45 : vector<2x8x8x128xbf16> to vector<128x128xbf16>
    %c0_63 = arith.constant 0 : index
    %c768 = arith.constant 768 : index
    %47 = vector.load %arg16[%c0_63, %c768] : memref<128x1152xbf16, #tpu.memory_space<vmem>>, vector<128x128xbf16>
    tpu.vector_store %arg16[%c0_63, %c768], %46 {strides = array<i32>} : memref<128x1152xbf16, #tpu.memory_space<vmem>>, vector<128x128xbf16>,
    %48 = vector.extract_strided_slice %44 {offsets = [0, 0, 1, 0], sizes = [2, 8, 8, 128], strides = [1, 1, 1, 1]} : vector<2x8x10x128xbf16> to vector<2x8x8x128xbf16>
    %49 = vector.shape_cast %48 : vector<2x8x8x128xbf16> to vector<128x128xbf16>
    %c0_64 = arith.constant 0 : index
    %c896 = arith.constant 896 : index
    %50 = vector.load %arg16[%c0_64, %c896] : memref<128x1152xbf16, #tpu.memory_space<vmem>>, vector<128x128xbf16>
    tpu.vector_store %arg16[%c0_64, %c896], %49 {strides = array<i32>} : memref<128x1152xbf16, #tpu.memory_space<vmem>>, vector<128x128xbf16>,
    %51 = vector.extract_strided_slice %44 {offsets = [0, 0, 2, 0], sizes = [2, 8, 8, 128], strides = [1, 1, 1, 1]} : vector<2x8x10x128xbf16> to vector<2x8x8x128xbf16>
    %52 = vector.shape_cast %51 : vector<2x8x8x128xbf16> to vector<128x128xbf16>
    %c0_65 = arith.constant 0 : index
    %c1024 = arith.constant 1024 : index
    %53 = vector.load %arg16[%c0_65, %c1024] : memref<128x1152xbf16, #tpu.memory_space<vmem>>, vector<128x128xbf16>
    tpu.vector_store %arg16[%c0_65, %c1024], %52 {strides = array<i32>} : memref<128x1152xbf16, #tpu.memory_space<vmem>>, vector<128x128xbf16>,
    %c0_66 = arith.constant 0 : index
    %c0_67 = arith.constant 0 : index
    %54 = vector.load %arg16[%c0_66, %c0_67] : memref<128x1152xbf16, #tpu.memory_space<vmem>>, vector<128x1152xbf16>
    %c0_68 = arith.constant 0 : index
    %c0_69 = arith.constant 0 : index
    %55 = vector.load %arg6[%c0_68, %c0_69] : memref<1152x192xbf16, #tpu.memory_space<vmem>>, vector<1152x192xbf16>
    %cst_70 = arith.constant dense<0.000000e+00> : vector<128x192xf32>
    %56 = tpu.matmul %54, %55, %cst_70 {dimension_numbers = #tpu.dot_dimension_numbers<[1], [0], [0], [1], [0, 0, 1, 1], [], []>} : vector<128x1152xbf16>, vector<1152x192xbf16>, vector<128x192xf32> -> vector<128x192xf32>
    %c0_71 = arith.constant 0 : index
    %c0_72 = arith.constant 0 : index
    %57 = vector.load %arg2[%c0_71, %c0_72] : memref<2x7xf32, #tpu.memory_space<vmem>>, vector<2x7xf32>
    %c0_73 = arith.constant 0 : index
    %c0_74 = arith.constant 0 : index
    %58 = vector.load %arg7[%c0_73, %c0_74] : memref<7x1728xf32, #tpu.memory_space<vmem>>, vector<7x1728xf32>
    %cst_75 = arith.constant dense<0.000000e+00> : vector<2x1728xf32>
    %59 = tpu.matmul %57, %58, %cst_75 {dimension_numbers = #tpu.dot_dimension_numbers<[1], [0], [0], [1], [0, 0, 1, 1], [], []>} : vector<2x7xf32>, vector<7x1728xf32>, vector<2x1728xf32> -> vector<2x1728xf32>
    %60 = vector.shape_cast %59 : vector<2x1728xf32> to vector<2x9x192xf32>
    %c0_76 = arith.constant 0 : index
    %c0_77 = arith.constant 0 : index
    %61 = vector.load %arg3[%c0_76, %c0_77] : memref<64x9xf32, #tpu.memory_space<vmem>>, vector<64x9xf32>
    %62 = vector.shape_cast %61 : vector<64x9xf32> to vector<1x64x9xf32>
    %63 = vector.shape_cast %62 : vector<1x64x9xf32> to vector<1x64x9xf32>
    %64 = vector.broadcast %63 : vector<1x64x9xf32> to vector<2x64x9xf32>
    "tpu.trace_start"() <{level = 10 : i32, message = "bpt,btc->bpc"}> : () -> ()
    %cst_78 = arith.constant dense<0.000000e+00> : vector<2x64x192xf32>
    %65 = tpu.matmul %64, %60, %cst_78 {dimension_numbers = #tpu.dot_dimension_numbers<[2], [1], [1], [2], [0, 0, 0, 1, 1, 2], [0], [0]>} : vector<2x64x9xf32>, vector<2x9x192xf32>, vector<2x64x192xf32> -> vector<2x64x192xf32>
    "tpu.trace_stop"() : () -> ()
    %66 = vector.shape_cast %65 : vector<2x64x192xf32> to vector<128x192xf32>
    %67 = arith.addf %56, %66 : vector<128x192xf32>
    %c0_79 = arith.constant 0 : index
    %c0_80 = arith.constant 0 : index
    %68 = vector.load %arg8[%c0_79, %c0_80] : memref<1x192xf32, #tpu.memory_space<vmem>>, vector<1x192xf32>
    %69 = vector.broadcast %68 : vector<1x192xf32> to vector<128x192xf32>
    %70 = arith.addf %67, %69 : vector<128x192xf32>
    %cst_81 = arith.constant 0.000000e+00 : f32
    %71 = vector.broadcast %cst_81 : f32 to vector<128x192xf32>
    %72 = arith.maximumf %70, %71 : vector<128x192xf32>
    %73 = vector.extract_strided_slice %72 {offsets = [0, 0], sizes = [128, 128], strides = [1, 1]} : vector<128x192xf32> to vector<128x128xf32>
    %74 = vector.extract_strided_slice %72 {offsets = [0, 128], sizes = [128, 64], strides = [1, 1]} : vector<128x192xf32> to vector<128x64xf32>
    %75 = arith.truncf %74 : vector<128x64xf32> to vector<128x64xbf16>
    %76 = vector.shape_cast %75 : vector<128x64xbf16> to vector<2x8x8x64xbf16>
    %c0_82 = arith.constant 0 : index
    %c1_83 = arith.constant 1 : index
    %c1_84 = arith.constant 1 : index
    %c0_85 = arith.constant 0 : index
    %77 = vector.load %arg15[%c0_82, %c1_83, %c1_84, %c0_85] : memref<2x10x10x64xbf16, #tpu.memory_space<vmem>>, vector<2x8x8x64xbf16>
    tpu.vector_store %arg15[%c0_82, %c1_83, %c1_84, %c0_85], %76 {strides = array<i32>} : memref<2x10x10x64xbf16, #tpu.memory_space<vmem>>, vector<2x8x8x64xbf16>,
    %c0_86 = arith.constant 0 : index
    %c0_87 = arith.constant 0 : index
    %c0_88 = arith.constant 0 : index
    %c0_89 = arith.constant 0 : index
    %78 = vector.load %arg15[%c0_86, %c0_87, %c0_88, %c0_89] : memref<2x10x10x64xbf16, #tpu.memory_space<vmem>>, vector<2x8x10x64xbf16>
    %79 = vector.extract_strided_slice %78 {offsets = [0, 0, 0, 0], sizes = [2, 8, 8, 64], strides = [1, 1, 1, 1]} : vector<2x8x10x64xbf16> to vector<2x8x8x64xbf16>
    %80 = vector.shape_cast %79 : vector<2x8x8x64xbf16> to vector<128x64xbf16>
    %c0_90 = arith.constant 0 : index
    %c0_91 = arith.constant 0 : index
    %81 = vector.load %arg17[%c0_90, %c0_91] : memref<128x576xbf16, #tpu.memory_space<vmem>>, vector<128x64xbf16>
    tpu.vector_store %arg17[%c0_90, %c0_91], %80 {strides = array<i32>} : memref<128x576xbf16, #tpu.memory_space<vmem>>, vector<128x64xbf16>,
    %82 = vector.extract_strided_slice %78 {offsets = [0, 0, 1, 0], sizes = [2, 8, 8, 64], strides = [1, 1, 1, 1]} : vector<2x8x10x64xbf16> to vector<2x8x8x64xbf16>
    %83 = vector.shape_cast %82 : vector<2x8x8x64xbf16> to vector<128x64xbf16>
    %c0_92 = arith.constant 0 : index
    %c64 = arith.constant 64 : index
    %84 = vector.load %arg17[%c0_92, %c64] : memref<128x576xbf16, #tpu.memory_space<vmem>>, vector<128x64xbf16>
    tpu.vector_store %arg17[%c0_92, %c64], %83 {strides = array<i32>} : memref<128x576xbf16, #tpu.memory_space<vmem>>, vector<128x64xbf16>,
    %85 = vector.extract_strided_slice %78 {offsets = [0, 0, 2, 0], sizes = [2, 8, 8, 64], strides = [1, 1, 1, 1]} : vector<2x8x10x64xbf16> to vector<2x8x8x64xbf16>
    %86 = vector.shape_cast %85 : vector<2x8x8x64xbf16> to vector<128x64xbf16>
    %c0_93 = arith.constant 0 : index
    %c128_94 = arith.constant 128 : index
    %87 = vector.load %arg17[%c0_93, %c128_94] : memref<128x576xbf16, #tpu.memory_space<vmem>>, vector<128x64xbf16>
    tpu.vector_store %arg17[%c0_93, %c128_94], %86 {strides = array<i32>} : memref<128x576xbf16, #tpu.memory_space<vmem>>, vector<128x64xbf16>,
    %c0_95 = arith.constant 0 : index
    %c1_96 = arith.constant 1 : index
    %c0_97 = arith.constant 0 : index
    %c0_98 = arith.constant 0 : index
    %88 = vector.load %arg15[%c0_95, %c1_96, %c0_97, %c0_98] : memref<2x10x10x64xbf16, #tpu.memory_space<vmem>>, vector<2x8x10x64xbf16>
    %89 = vector.extract_strided_slice %88 {offsets = [0, 0, 0, 0], sizes = [2, 8, 8, 64], strides = [1, 1, 1, 1]} : vector<2x8x10x64xbf16> to vector<2x8x8x64xbf16>
    %90 = vector.shape_cast %89 : vector<2x8x8x64xbf16> to vector<128x64xbf16>
    %c0_99 = arith.constant 0 : index
    %c192 = arith.constant 192 : index
    %91 = vector.load %arg17[%c0_99, %c192] : memref<128x576xbf16, #tpu.memory_space<vmem>>, vector<128x64xbf16>
    tpu.vector_store %arg17[%c0_99, %c192], %90 {strides = array<i32>} : memref<128x576xbf16, #tpu.memory_space<vmem>>, vector<128x64xbf16>,
    %92 = vector.extract_strided_slice %88 {offsets = [0, 0, 1, 0], sizes = [2, 8, 8, 64], strides = [1, 1, 1, 1]} : vector<2x8x10x64xbf16> to vector<2x8x8x64xbf16>
    %93 = vector.shape_cast %92 : vector<2x8x8x64xbf16> to vector<128x64xbf16>
    %c0_100 = arith.constant 0 : index
    %c256_101 = arith.constant 256 : index
    %94 = vector.load %arg17[%c0_100, %c256_101] : memref<128x576xbf16, #tpu.memory_space<vmem>>, vector<128x64xbf16>
    tpu.vector_store %arg17[%c0_100, %c256_101], %93 {strides = array<i32>} : memref<128x576xbf16, #tpu.memory_space<vmem>>, vector<128x64xbf16>,
    %95 = vector.extract_strided_slice %88 {offsets = [0, 0, 2, 0], sizes = [2, 8, 8, 64], strides = [1, 1, 1, 1]} : vector<2x8x10x64xbf16> to vector<2x8x8x64xbf16>
    %96 = vector.shape_cast %95 : vector<2x8x8x64xbf16> to vector<128x64xbf16>
    %c0_102 = arith.constant 0 : index
    %c320 = arith.constant 320 : index
    %97 = vector.load %arg17[%c0_102, %c320] : memref<128x576xbf16, #tpu.memory_space<vmem>>, vector<128x64xbf16>
    tpu.vector_store %arg17[%c0_102, %c320], %96 {strides = array<i32>} : memref<128x576xbf16, #tpu.memory_space<vmem>>, vector<128x64xbf16>,
    %c0_103 = arith.constant 0 : index
    %c2_104 = arith.constant 2 : index
    %c0_105 = arith.constant 0 : index
    %c0_106 = arith.constant 0 : index
    %98 = vector.load %arg15[%c0_103, %c2_104, %c0_105, %c0_106] : memref<2x10x10x64xbf16, #tpu.memory_space<vmem>>, vector<2x8x10x64xbf16>
    %99 = vector.extract_strided_slice %98 {offsets = [0, 0, 0, 0], sizes = [2, 8, 8, 64], strides = [1, 1, 1, 1]} : vector<2x8x10x64xbf16> to vector<2x8x8x64xbf16>
    %100 = vector.shape_cast %99 : vector<2x8x8x64xbf16> to vector<128x64xbf16>
    %c0_107 = arith.constant 0 : index
    %c384_108 = arith.constant 384 : index
    %101 = vector.load %arg17[%c0_107, %c384_108] : memref<128x576xbf16, #tpu.memory_space<vmem>>, vector<128x64xbf16>
    tpu.vector_store %arg17[%c0_107, %c384_108], %100 {strides = array<i32>} : memref<128x576xbf16, #tpu.memory_space<vmem>>, vector<128x64xbf16>,
    %102 = vector.extract_strided_slice %98 {offsets = [0, 0, 1, 0], sizes = [2, 8, 8, 64], strides = [1, 1, 1, 1]} : vector<2x8x10x64xbf16> to vector<2x8x8x64xbf16>
    %103 = vector.shape_cast %102 : vector<2x8x8x64xbf16> to vector<128x64xbf16>
    %c0_109 = arith.constant 0 : index
    %c448 = arith.constant 448 : index
    %104 = vector.load %arg17[%c0_109, %c448] : memref<128x576xbf16, #tpu.memory_space<vmem>>, vector<128x64xbf16>
    tpu.vector_store %arg17[%c0_109, %c448], %103 {strides = array<i32>} : memref<128x576xbf16, #tpu.memory_space<vmem>>, vector<128x64xbf16>,
    %105 = vector.extract_strided_slice %98 {offsets = [0, 0, 2, 0], sizes = [2, 8, 8, 64], strides = [1, 1, 1, 1]} : vector<2x8x10x64xbf16> to vector<2x8x8x64xbf16>
    %106 = vector.shape_cast %105 : vector<2x8x8x64xbf16> to vector<128x64xbf16>
    %c0_110 = arith.constant 0 : index
    %c512_111 = arith.constant 512 : index
    %107 = vector.load %arg17[%c0_110, %c512_111] : memref<128x576xbf16, #tpu.memory_space<vmem>>, vector<128x64xbf16>
    tpu.vector_store %arg17[%c0_110, %c512_111], %106 {strides = array<i32>} : memref<128x576xbf16, #tpu.memory_space<vmem>>, vector<128x64xbf16>,
    %c0_112 = arith.constant 0 : index
    %c0_113 = arith.constant 0 : index
    %108 = vector.load %arg17[%c0_112, %c0_113] : memref<128x576xbf16, #tpu.memory_space<vmem>>, vector<128x576xbf16>
    %c0_114 = arith.constant 0 : index
    %c0_115 = arith.constant 0 : index
    %109 = vector.load %arg9[%c0_114, %c0_115] : memref<576x128xbf16, #tpu.memory_space<vmem>>, vector<576x128xbf16>
    %cst_116 = arith.constant dense<0.000000e+00> : vector<128x128xf32>
    %110 = tpu.matmul %108, %109, %cst_116 {dimension_numbers = #tpu.dot_dimension_numbers<[1], [0], [0], [1], [0, 0, 1, 1], [], []>} : vector<128x576xbf16>, vector<576x128xbf16>, vector<128x128xf32> -> vector<128x128xf32>
    %c0_117 = arith.constant 0 : index
    %c0_118 = arith.constant 0 : index
    %111 = vector.load %arg10[%c0_117, %c0_118] : memref<1x128xf32, #tpu.memory_space<vmem>>, vector<1x128xf32>
    %112 = vector.broadcast %111 : vector<1x128xf32> to vector<128x128xf32>
    %113 = arith.addf %110, %112 : vector<128x128xf32>
    %cst_119 = arith.constant 0.000000e+00 : f32
    %114 = vector.broadcast %cst_119 : f32 to vector<128x128xf32>
    %115 = arith.maximumf %113, %114 : vector<128x128xf32>
    %116 = arith.addf %115, %73 : vector<128x128xf32>
    %117 = arith.truncf %116 : vector<128x128xf32> to vector<128x128xbf16>
    %c0_120 = arith.constant 0 : index
    %c0_121 = arith.constant 0 : index
    %118 = vector.load %arg11[%c0_120, %c0_121] : memref<128x128xbf16, #tpu.memory_space<vmem>>, vector<128x128xbf16>
    %cst_122 = arith.constant dense<0.000000e+00> : vector<128x128xf32>
    %119 = tpu.matmul %117, %118, %cst_122 {dimension_numbers = #tpu.dot_dimension_numbers<[1], [0], [0], [1], [0, 0, 1, 1], [], []>} : vector<128x128xbf16>, vector<128x128xbf16>, vector<128x128xf32> -> vector<128x128xf32>
    %c0_123 = arith.constant 0 : index
    %c0_124 = arith.constant 0 : index
    %120 = vector.load %arg12[%c0_123, %c0_124] : memref<1x128xf32, #tpu.memory_space<vmem>>, vector<1x128xf32>
    %121 = vector.broadcast %120 : vector<1x128xf32> to vector<128x128xf32>
    %122 = arith.addf %119, %121 : vector<128x128xf32>
    %cst_125 = arith.constant 0.000000e+00 : f32
    %123 = vector.broadcast %cst_125 : f32 to vector<128x128xf32>
    %124 = arith.maximumf %122, %123 : vector<128x128xf32>
    %125 = vector.shape_cast %124 : vector<128x128xf32> to vector<2x64x128xf32>
    %cst_126 = arith.constant dense<0.000000e+00> : vector<2x128xf32>
    %126 = vector.multi_reduction <add>, %125, %cst_126 [1] : vector<2x64x128xf32> to vector<2x128xf32>
    %cst_127 = arith.constant 6.400000e+01 : f32
    %127 = vector.broadcast %cst_127 : f32 to vector<2x128xf32>
    %128 = arith.divf %126, %127 : vector<2x128xf32>
    %c0_128 = arith.constant 0 : index
    %c0_129 = arith.constant 0 : index
    %129 = vector.load %arg13[%c0_128, %c0_129] : memref<2x128xf32, #tpu.memory_space<vmem>>, vector<2x128xf32>
    tpu.vector_store %arg13[%c0_128, %c0_129], %128 {strides = array<i32>} : memref<2x128xf32, #tpu.memory_space<vmem>>, vector<2x128xf32>,
    return
  }
  func.func @transform_0(%arg0: i32) -> (i32, i32, i32) {
    %c0_i32 = arith.constant 0 : i32
    %c0_i32_0 = arith.constant 0 : i32
    %c0_i32_1 = arith.constant 0 : i32
    return %arg0, %c0_i32, %c0_i32_0 : i32, i32, i32
  }
  func.func @transform_1(%arg0: i32) -> (i32, i32) {
    %c0_i32 = arith.constant 0 : i32
    %c0_i32_0 = arith.constant 0 : i32
    return %arg0, %c0_i32 : i32, i32
  }
  func.func @transform_2(%arg0: i32) -> (i32, i32) {
    %c0_i32 = arith.constant 0 : i32
    %c0_i32_0 = arith.constant 0 : i32
    %c0_i32_1 = arith.constant 0 : i32
    return %c0_i32, %c0_i32_0 : i32, i32
  }
  func.func @transform_3(%arg0: i32) -> (i32, i32) {
    %c0_i32 = arith.constant 0 : i32
    %c0_i32_0 = arith.constant 0 : i32
    %c0_i32_1 = arith.constant 0 : i32
    return %c0_i32, %c0_i32_0 : i32, i32
  }
  func.func @transform_4(%arg0: i32) -> (i32, i32) {
    %c0_i32 = arith.constant 0 : i32
    %c0_i32_0 = arith.constant 0 : i32
    %c0_i32_1 = arith.constant 0 : i32
    return %c0_i32, %c0_i32_0 : i32, i32
  }
  func.func @transform_5(%arg0: i32) -> (i32, i32) {
    %c0_i32 = arith.constant 0 : i32
    %c0_i32_0 = arith.constant 0 : i32
    %c0_i32_1 = arith.constant 0 : i32
    return %c0_i32, %c0_i32_0 : i32, i32
  }
  func.func @transform_6(%arg0: i32) -> (i32, i32) {
    %c0_i32 = arith.constant 0 : i32
    %c0_i32_0 = arith.constant 0 : i32
    %c0_i32_1 = arith.constant 0 : i32
    return %c0_i32, %c0_i32_0 : i32, i32
  }
  func.func @transform_7(%arg0: i32) -> (i32, i32) {
    %c0_i32 = arith.constant 0 : i32
    %c0_i32_0 = arith.constant 0 : i32
    %c0_i32_1 = arith.constant 0 : i32
    return %c0_i32, %c0_i32_0 : i32, i32
  }
  func.func @transform_8(%arg0: i32) -> (i32, i32) {
    %c0_i32 = arith.constant 0 : i32
    %c0_i32_0 = arith.constant 0 : i32
    %c0_i32_1 = arith.constant 0 : i32
    return %c0_i32, %c0_i32_0 : i32, i32
  }
  func.func @transform_9(%arg0: i32) -> (i32, i32) {
    %c0_i32 = arith.constant 0 : i32
    %c0_i32_0 = arith.constant 0 : i32
    %c0_i32_1 = arith.constant 0 : i32
    return %c0_i32, %c0_i32_0 : i32, i32
  }
  func.func @transform_10(%arg0: i32) -> (i32, i32) {
    %c0_i32 = arith.constant 0 : i32
    %c0_i32_0 = arith.constant 0 : i32
    %c0_i32_1 = arith.constant 0 : i32
    return %c0_i32, %c0_i32_0 : i32, i32
  }
  func.func @transform_11(%arg0: i32) -> (i32, i32) {
    %c0_i32 = arith.constant 0 : i32
    %c0_i32_0 = arith.constant 0 : i32
    %c0_i32_1 = arith.constant 0 : i32
    return %c0_i32, %c0_i32_0 : i32, i32
  }
  func.func @transform_12(%arg0: i32) -> (i32, i32) {
    %c0_i32 = arith.constant 0 : i32
    %c0_i32_0 = arith.constant 0 : i32
    return %arg0, %c0_i32 : i32, i32
  }
}

</mosaic_0001>

<bundles_post_ra>
// kernel: tpu_custom_call.1
= control target key start
LH: loop header
LB: loop body
LE: loop exit
PB: predicated region body
PF: predicated region fallthrough
CT: control target
= control target key end

     0   :  { %vm2373_vm0 = vcmask 1046528   ;;  %v9160_v2 = vmov 0.0   ;;  %vm2369_vm1 = vcmask 56320   ;;  %vm382_vm2 = vcmask 130048   ;;  %s12539_s0 = inlined_call_operand.vmem [shape: bf16[2,64,16], index: 0, kind: input, shape index: {}]   ;;  %s12540_s1 = inlined_call_operand.vmem [shape: f32[2,7], index: 1, kind: input, shape index: {}]   ;;  %s12541_s2 = inlined_call_operand.vmem [shape: f32[64,9], index: 2, kind: input, shape index: {}]   ;;  %s12542_s3 = inlined_call_operand.vmem [shape: bf16[16,128], index: 3, kind: input, shape index: {}]   ;;  %s12543_s4 = inlined_call_operand.vmem [shape: f32[1,128], index: 4, kind: input, shape index: {}]   ;;  %s12544_s5 = inlined_call_operand.vmem [shape: bf16[1152,192], index: 5, kind: input, shape index: {}]   ;;  %s12545_s6 = inlined_call_operand.vmem [shape: f32[7,1728], index: 6, kind: input, shape index: {}]   ;;  %s12546_s7 = inlined_call_operand.vmem [shape: f32[1,192], index: 7, kind: input, shape index: {}]   ;;  %s12547_s8 = inlined_call_operand.vmem [shape: bf16[576,128], index: 8, kind: input, shape index: {}]   ;;  %s12548_s9 = inlined_call_operand.vmem [shape: f32[1,128], index: 9, kind: input, shape index: {}]   ;;  %s12549_s10 = inlined_call_operand.vmem [shape: bf16[128,128], index: 10, kind: input, shape index: {}]   ;;  %s12550_s11 = inlined_call_operand.vmem [shape: f32[1,128], index: 11, kind: input, shape index: {}]   ;;  %s12551_s12 = inlined_call_operand.hbm [shape: f32[2,128], index: 12, kind: output, shape index: {}]  }
   0x1   :  { %v2356_v0 = vld [vmem:[%s12545_s6 + $0x8] sm:$0x7f]  ;;  %v2355_v1 = vld [vmem:[%s12545_s6] sm:$0x7f]  ;;  %2480 = vmatprep.mubr.f32.mxu1 %v9160_v2  ;;  %v2358_v4 = vld [vmem:[%s12545_s6 + $0x18] sm:$0x7f] }
   0x2   :  { %8029 = vmatprep.subr.msk.mxu1 %vm2373_vm0, %v2356_v0  ;;  %v2354_v3 = vld [vmem:[%s12540_s1] sm:$0x3]  ;;  %v2357_v6 = vld [vmem:[%s12545_s6 + $0x10] sm:$0x7f]  ;;  %v2360_v7 = vld [vmem:[%s12545_s6 + $0x28] sm:$0x7f] }
   0x3   :  { %v8721_v5 = vld [vmem:[%s12542_s3] sm:$0xff]   ;;  %8030 = vmatpush1.msk.msra.mxu1 %vm2373_vm0, %v2355_v1  ;;  %v2362_v9 = vld [vmem:[%s12545_s6 + $0x38] sm:$0x7f]  ;;  %v2361_v10 = vld [vmem:[%s12545_s6 + $0x30] sm:$0x7f] }
   0x4   :  { %8031 = vmatmul.mubr.msk.f32.vlgmr.msra.gmra.mxu1 %vm2369_vm1, %v2354_v3  ;;  %8032 = vmatprep.subr.msk.mxu1 %vm2373_vm0, %v2358_v4  ;;  %v2359_v8 = vld [vmem:[%s12545_s6 + $0x20] sm:$0x7f]  ;;  %v8723_v12 = vld [vmem:[%s12539_s0 + $0x8] sm:$0xff]   ;;  %v8724_v13 = vld [vmem:[%s12539_s0 + $0x10] sm:$0xff]  }
   0x5   :  { %8033 = vmatpush1.msk.msra.mxu1 %vm2373_vm0, %v2357_v6  ;;  %2551 = vmatprep.mubr.f32.mxu1 %v9160_v2  ;;  %v8722_v11 = vld [vmem:[%s12539_s0] sm:$0xff]   ;;  %v2364_v14 = vld [vmem:[%s12545_s6 + $0x48] sm:$0x7f]  ;;  %v2366_v16 = vld [vmem:[%s12545_s6 + $0x58] sm:$0x7f] }
   0x6   :  { %8035 = vmatprep.subr.msk.mxu1 %vm2373_vm0, %v2360_v7  ;;  %8641 = vmatprep.subr.bf16.mxu0 %v8721_v5  ;;  %v2363_v15 = vld [vmem:[%s12545_s6 + $0x40] sm:$0x7f]  ;;  %v8725_v17 = vld [vmem:[%s12539_s0 + $0x18] sm:$0xff]   ;;  %v2365_v19 = vld [vmem:[%s12545_s6 + $0x50] sm:$0x7f] }
   0x7   :  { %8642 = vmatpush3.bf16.msra.mxu0 %v8721_v5  ;;  %8643 = vmatprep.mubr.msk.bf16.mxu0 %vm382_vm2, %v8722_v11  ;;  %v8726_v18 = vld [vmem:[%s12539_s0 + $0x20] sm:$0xff]   ;;  %v2368_v20 = vld [vmem:[%s12545_s6 + $0x68] sm:$0x7f]  ;;  %v8728_v23 = vld [vmem:[%s12539_s0 + $0x30] sm:$0xff]  }
   0x8   :  { %8034 = vmatmul.mubr.msk.f32.vlgmr.msra.gmra.mxu1 %vm2369_vm1, %v2354_v3  ;;  %v2367_v21 = vld [vmem:[%s12545_s6 + $0x60] sm:$0x7f]  ;;  %v8727_v22 = vld [vmem:[%s12539_s0 + $0x28] sm:$0xff]   ;;  %v8729_v24 = vld [vmem:[%s12539_s0 + $0x38] sm:$0xff]  }
   0x9   :  { %8036 = vmatpush1.msk.msra.mxu1 %vm2373_vm0, %v2359_v8  ;;  %2622 = vmatprep.mubr.f32.mxu1 %v9160_v2 }
   0xa   :  { %8038 = vmatprep.subr.msk.mxu1 %vm2373_vm0, %v2362_v9  ;;  %8644 = vmatmul.mubr.msk.bf16.vlgmr.msra.gmra.mxu0 %vm382_vm2, %v8723_v12 }
   0xb   :  { %8647 = vmatprep.mubr.msk.bf16.mxu0 %vm382_vm2, %v8724_v13 }
   0xc   :  { %8037 = vmatmul.mubr.msk.f32.vlgmr.msra.gmra.mxu1 %vm2369_vm1, %v2354_v3 }
   0xd   :  { %8039 = vmatpush1.msk.msra.mxu1 %vm2373_vm0, %v2361_v10  ;;  %2693 = vmatprep.mubr.f32.mxu1 %v9160_v2 }
   0xe   :  { %8041 = vmatprep.subr.msk.mxu1 %vm2373_vm0, %v2364_v14 }
  0x10   :  { %8040 = vmatmul.mubr.msk.f32.vlgmr.msra.gmra.mxu1 %vm2369_vm1, %v2354_v3 }
  0x11   :  { %8042 = vmatpush1.msk.msra.mxu1 %vm2373_vm0, %v2363_v15  ;;  %2764 = vmatprep.mubr.f32.mxu1 %v9160_v2 }
  0x12   :  { %8044 = vmatprep.subr.msk.mxu1 %vm2373_vm0, %v2366_v16  ;;  %8648 = vmatmul.mubr.msk.bf16.gmra.mxu0 %vm382_vm2, %v8725_v17 }
  0x13   :  { %8651 = vmatprep.mubr.msk.bf16.mxu0 %vm382_vm2, %v8726_v18 }
  0x14   :  { %8043 = vmatmul.mubr.msk.f32.vlgmr.msra.gmra.mxu1 %vm2369_vm1, %v2354_v3 }
  0x15   :  { %8045 = vmatpush1.msk.msra.mxu1 %vm2373_vm0, %v2365_v19  ;;  %2835 = vmatprep.mubr.f32.mxu1 %v9160_v2 }
  0x16   :  { %8047 = vmatprep.subr.msk.mxu1 %vm2373_vm0, %v2368_v20 }
  0x18   :  { %8046 = vmatmul.mubr.msk.f32.vlgmr.msra.gmra.mxu1 %vm2369_vm1, %v2354_v3 }
  0x19   :  { %8048 = vmatpush1.msk.msra.mxu1 %vm2373_vm0, %v2367_v21  ;;  %2906 = vmatprep.mubr.f32.mxu1 %v9160_v2 }
  0x1a   :  { %8652 = vmatmul.mubr.msk.bf16.gmra.mxu0 %vm382_vm2, %v8727_v22 }
  0x1b   :  { %8655 = vmatprep.mubr.msk.bf16.mxu0 %vm382_vm2, %v8728_v23 }
  0x1c   :  { %8049 = vmatmul.mubr.msk.f32.vlgmr.msra.gmra.mxu1 %vm2369_vm1, %v2354_v3 }
  0x1d   :  { %3170 = vmatprep.mubr.f32.mxu1 %v9160_v2 }
  0x22   :  { %8656 = vmatmul.mubr.msk.bf16.gmra.mxu0 %vm382_vm2, %v8729_v24 }
  0x23   :  { %3289 = vmatprep.mubr.f32.mxu0 %v9160_v2 }
  0x24   :  { %17 = vsyncpa [#allocation7], 0  ;;  %s9161_s28 = smov 64   ;;  %v9162_v34 = vmov 1934713408   ;;  %v2954_v36 = vlaneseq  ;;  %vm52_vm3 = vcmask 1040384  }
  0x25   :  { %v2984_v35 = vunpack.c.l.s4 %v9162_v34  ;;  %vm53_vm4 = vsmask.f32 256  ;;  %vm115_vm5 = vsmask.f32 7938  ;;  %v64_v45 = vld [vmem:[#allocation2 + $0x18] sm:$0x1] }
  0x26   :  { %vm9368_vm6 = vmand %vm52_vm3, %vm53_vm4  ;;  %v9378_v42 = vshrl.u32 %v2954_v36, 7  ;;  %v126_v46 = vld [vmem:[#allocation2 + $0x1c] sm:$0x1]  ;;  %v9389_v48 = vld [vmem:[%s12543_s4] ss:$0 sm:$0xff]  ;;  %vm729_vm8 = vcmask 1043456  }
  0x27   :  { %v2985_v40 = vunpack.c.0.s8 %v2984_v35  ;;  %vm9374_vm7 = vmand %vm52_vm3, %vm115_vm5  ;;  %v65_v50 = vsel %vm9368_vm6, 0, %v64_v45  ;;  %v58_v56 = vld [vmem:[#allocation2 + $0x8] sm:$0x1]  ;;  %v120_v57 = vld [vmem:[#allocation2 + $0xc] sm:$0x1]  ;;  %vm1166_vm10 = vcmask 1042432  }
  0x28   :  { %v127_v51 = vsel %vm9374_vm7, 0, %v126_v46  ;;  %66 = vst [vmem:[#allocation2 + $0x18] sm:$0x1] %v65_v50  ;;  %v59_v60 = vsel %vm9368_vm6, 0, %v58_v56  ;;  %v121_v61 = vsel %vm9374_vm7, 0, %v120_v57  ;;  %vm9424_vm9 = vmand %vm729_vm8, %vm115_vm5  ;;  %vm1167_vm13 = vcmask 1046532  }
  0x29   :  { %v9398_v53 = vsub.s32 %v2985_v40, %v9378_v42  ;;  %128 = vst [vmem:[#allocation2 + $0x1c] sm:$0x1] %v127_v51  ;;  %v67_v63 = vld [vmem:[#allocation2 + $0x20] sm:$0x1]  ;;  %v129_v0 = vld [vmem:[#allocation2 + $0x24] sm:$0x1]  ;;  %vm9550_vm14 = vmor %vm1166_vm10, %vm1167_vm13 }
  0x2a   :  { %60 = vst [vmem:[#allocation2 + $0x8] sm:$0x1] %v59_v60  ;;  %122 = vst [vmem:[#allocation2 + $0xc] sm:$0x1] %v121_v61  ;;  %v68_v4 = vsel %vm9368_vm6, 0, %v67_v63  ;;  %v130_v5 = vsel %vm9374_vm7, 0, %v129_v0 }
  0x2b   :  { %69 = vst [vmem:[#allocation2 + $0x20] sm:$0x1] %v68_v4  ;;  %131 = vst [vmem:[#allocation2 + $0x24] sm:$0x1] %v130_v5  ;;  %v61_v13 = vld [vmem:[#allocation2 + $0x10] sm:$0x1] }
  0x2c   :  { %v123_v14 = vld [vmem:[#allocation2 + $0x14] sm:$0x1]  ;;  %v62_v19 = vsel %vm9368_vm6, 0, %v61_v13  ;;  %v76_v20 = vld [vmem:[#allocation2 + $0x38] sm:$0x1]  ;;  %vm2919_vm0 = vcmask 523264  }
  0x2d   :  { %v138_v21 = vld [vmem:[#allocation2 + $0x3c] sm:$0x1]  ;;  %63 = vst [vmem:[#allocation2 + $0x10] sm:$0x1] %v62_v19  ;;  %v124_v24 = vsel %vm9374_vm7, 0, %v123_v14  ;;  %v77_v45 = vsel %vm9368_vm6, 0, %v76_v20 }
  0x2e   :  { %125 = vst [vmem:[#allocation2 + $0x14] sm:$0x1] %v124_v24  ;;  %78 = vst [vmem:[#allocation2 + $0x38] sm:$0x1] %v77_v45  ;;  %v139_v50 = vsel %vm9374_vm7, 0, %v138_v21  ;;  %vm3074_vm1 = vcmask 72704  }
  0x2f   :  { %v743_v23 = vld [vmem:[#allocation2 + $0x18] sm:$0xf]  ;;  %140 = vst [vmem:[#allocation2 + $0x3c] sm:$0x1] %v139_v50  ;;  %v132_v13 = vld [vmem:[#allocation2 + $0x2c] sm:$0x1] }
  0x30   :  { %v746_v35 = vld [vmem:[#allocation2 + $0x1c] sm:$0x1]  ;;  %vm875_vm11 = vsmask.f32 3328  ;;  %vm876_vm12 = vsmask.f32 7440 }
  0x31   :  { %v734_v60 = vld [vmem:[#allocation2 + $0xc] sm:$0x1]  ;;  %vm9568_vm15 = vmor %vm875_vm11, %vm876_vm12  ;;  %v8927_v39 = vld [vmem:[%s12544_s5 + $0x2c0] ss:$8 sps:$4 sm:$0xff]   ;;  %vm177_vm2 = vcmask 519168   ;;  %vm7929_vm8 = vcmask 1041409  }
  0x32   :  { %v752_v5 = vld [vmem:[#allocation2 + $0x24] sm:$0x1] }
  0x34   :  { %v737_v20 = vld [vmem:[#allocation2 + $0x10] sm:$0xf] }
  0x35   :  { %v740_v21 = vld [vmem:[#allocation2 + $0x14] sm:$0x1] }
  0x36   :  { %v770_v50 = vld [vmem:[#allocation2 + $0x3c] sm:$0x1] }
  0xc4   :  { %v9341_v25 = vpop.f32.mrf.mxu1 }
  0xc6   :  { %v9343_v26 = vpop.f32.mrf.mxu1 }
  0xc7   :  { %2915 = vrot.lane.b32.xlu0 %v9343_v26, %s9161_s28 }
  0xc8   :  { %v2553_v27 = vpop.f32.mrf.mxu1 }
  0xca   :  { %v9347_v28 = vpop.f32.mrf.mxu1  ;;  %v8645_v47 = vpop.f32.mrf.mxu0 }
  0xcb   :  { %v2950_v29 = vcombine.low %v9341_v25, %v9347_v28  ;;  %2917 = vrot.lane.b32.xlu0 %v2553_v27, %s9161_s28  ;;  %v450_v52 = vadd.f32 %v8645_v47, %v9389_v48 }
  0xcc   :  { %v9352_v30 = vpop.f32.mrf.mxu1  ;;  %v441_v58 = vpop.f32.mrf.mxu0 }
  0xcd   :  { %2925 = vrot.lane.b32.xlu1 %v9352_v30, %s9161_s28  ;;  %v506_v55 = vmax.f32 %v450_v52, 0.0  ;;  %v442_v62 = vadd.f32 %v9389_v48, %v441_v58 }
  0xce   :  { %v2626_v31 = vpop.f32.mrf.mxu1  ;;  %v8646_v6 = vpop.f32.mrf.mxu0 }
  0xcf   :  { %v8446_v3 = vpack.c.bf16 %v506_v55, %v506_v55  ;;  %v504_v8 = vmax.f32 %v442_v62, 0.0  ;;  %v453_v9 = vadd.f32 %v8646_v6, %v9389_v48 }
  0xd0   :  { %v9356_v32 = vpop.f32.mrf.mxu1  ;;  %v444_v15 = vpop.f32.mrf.mxu0 }
  0xd1   :  { %2927 = vrot.lane.b32.xlu1 %v2626_v31, %s9161_s28  ;;  %v585_v11 = vshrl.u32 %v8446_v3, 16  ;;  %v588_v12 = vshll.u32 %v8446_v3, 16  ;;  %v8444_v17 = vpack.c.bf16 %v504_v8, %v504_v8  ;;  %v507_v18 = vmax.f32 %v453_v9, 0.0  ;;  %v749_v3 = vld [vmem:[#allocation2 + $0x20] sm:$0xf] }
  0xd2   :  { %v9359_v33 = vpop.f32.mrf.mxu1  ;;  %v445_v27 = vadd.f32 %v9389_v48, %v444_v15  ;;  %v8649_v31 = vpop.f32.mrf.mxu0  ;;  %v70_v8 = vld [vmem:[#allocation2 + $0x28] sm:$0x1] }
  0xd3   :  { %2934 = vrot.lane.b32.xlu0 %v9359_v33, %s9161_s28  ;;  %v587_v22 = vrot.slane %v585_v11, 7  ;;  %v569_v36 = vshrl.u32 %v8444_v17, 16  ;;  %v8447_v40 = vpack.c.bf16 %v507_v18, %v507_v18  ;;  %v466_v55 = vadd.f32 %v8649_v31, %v9389_v48 }
  0xd4   :  { %v2766_v37 = vpop.f32.mrf.mxu1  ;;  %v457_v51 = vpop.f32.mrf.mxu0 }
  0xd5   :  { %2936 = vrot.lane.b32.xlu1 %v2766_v37, %s9161_s28  ;;  %v572_v37 = vshll.u32 %v8444_v17, 16  ;;  %v590_v46 = vor.u32 %v588_v12, %v587_v22  ;;  %v591_v47 = vrot.slane %v587_v22, 4  ;;  %v571_v52 = vrot.slane %v569_v36, 7 }
  0xd6   :  { %v9364_v38 = vpop.f32.mrf.mxu1  ;;  %v458_v56 = vadd.f32 %v9389_v48, %v457_v51  ;;  %v596_v61 = vshll.u32 %v8447_v40, 16  ;;  %v510_v4 = vmax.f32 %v466_v55, 0.0  ;;  %v133_v17 = vsel %vm9374_vm7, 0, %v132_v13 }
  0xd7   :  { %v744_v57 = vsel %vm9424_vm9, %v590_v46, %v743_v23  ;;  %v747_v58 = vsel %vm9368_vm6, %v591_v47, %v746_v35  ;;  %v574_v63 = vor.u32 %v572_v37, %v571_v52  ;;  %v575_v0 = vrot.slane %v571_v52, 4  ;;  %134 = vst [vmem:[#allocation2 + $0x2c] sm:$0x1] %v133_v17  ;;  %v8650_v35 = vpop.f32.mrf.mxu0 }
  0xd8   :  { %v9380_v43 = vpop.f32.mrf.mxu1  ;;  %745 = vst [vmem:[#allocation2 + $0x18] sm:$0xf] %v744_v57  ;;  %748 = vst [vmem:[#allocation2 + $0x1c] sm:$0x1] %v747_v58  ;;  %v8450_v15 = vpack.c.bf16 %v510_v4, %v510_v4  ;;  %v508_v22 = vmax.f32 %v458_v56, 0.0  ;;  %v9163_v36 = vmov 0  }
  0xd9   :  { %v3024_v44 = vcombine.low %v9359_v33, %v9380_v43  ;;  %2943 = vrot.lane.b32.xlu0 %v9380_v43, %s9161_s28  ;;  %43 = vst [vmem:[#allocation2] sm:$0xf] %v9163_v36  ;;  %44 = vst [vmem:[#allocation2 + $0x4] sm:$0x1] %v9163_v36  ;;  %v79_v56 = vld [vmem:[#allocation2 + $0x40] sm:$0x1] }
  0xda   :  { %v2839_v49 = vpop.f32.mrf.mxu1  ;;  %v620_v31 = vshll.u32 %v8450_v15, 16  ;;  %45 = vst [vmem:[#allocation2 + $0x50] sm:$0xf] %v9163_v36  ;;  %46 = vst [vmem:[#allocation2 + $0x54] sm:$0x1] %v9163_v36  ;;  %v8448_v37 = vpack.c.bf16 %v508_v22, %v508_v22 }
  0xdb   :  { %2945 = vrot.lane.b32.xlu1 %v2839_v49, %s9161_s28  ;;  %v505_v49 = vmax.f32 %v445_v27, 0.0  ;;  %v617_v27 = vshrl.u32 %v8450_v15, 16  ;;  %48 = vst [vmem:[#allocation2 + $0x48] sm:$0xf] %v9163_v36  ;;  %49 = vst [vmem:[#allocation2 + $0x4c] sm:$0x1] %v9163_v36 }
  0xdc   :  { %v2908_v54 = vpop.f32.mrf.mxu1  ;;  %50 = vst [vmem:[#allocation2 + $0x98] sm:$0xf] %v9163_v36  ;;  %51 = vst [vmem:[#allocation2 + $0x9c] sm:$0x1] %v9163_v36  ;;  %v601_v51 = vshrl.u32 %v8448_v37, 16  ;;  %v604_v52 = vshll.u32 %v8448_v37, 16 }
  0xdd   :  { %v3006_v59 = vrot.slane %v2908_v54, %v9398_v53  ;;  %v593_v54 = vshrl.u32 %v8447_v40, 16  ;;  %v8445_v62 = vpack.c.bf16 %v505_v49, %v505_v49  ;;  %v469_v40 = vadd.f32 %v8650_v35, %v9389_v48  ;;  %v767_v49 = vld [vmem:[#allocation2 + $0x38] sm:$0xf]  ;;  %v141_v57 = vld [vmem:[#allocation2 + $0x44] sm:$0x1] }
  0xde   :  { %v2910_v1 = vpop.f32.mrf.mxu1  ;;  %v619_v47 = vrot.slane %v617_v27, 7  ;;  %v758_v4 = vld [vmem:[#allocation2 + $0x2c] sm:$0x1]  ;;  %178 = vst.msk [vmem:[#allocation3] sm:$0xf] %vm177_vm2, %v9163_v36 }
  0xdf   :  { %v3064_v7 = vrot.slane %v2910_v1, %v9398_v53  ;;  %v3007_v10 = vcombine.high %v3006_v59, %v9160_v2  ;;  %v595_v1 = vrot.slane %v593_v54, 7  ;;  %v577_v6 = vshrl.u32 %v8445_v62, 16  ;;  %181 = vst.msk [vmem:[#allocation3 + $0x50] sm:$0xf] %vm177_vm2, %v9163_v36  ;;  %184 = vst.msk [vmem:[#allocation3 + $0x48] sm:$0xf] %vm177_vm2, %v9163_v36 }
  0xe0   :  { %v622_v54 = vor.u32 %v620_v31, %v619_v47  ;;  %v623_v55 = vrot.slane %v619_v47, 4  ;;  %v511_v58 = vmax.f32 %v469_v40, 0.0  ;;  %v94_v31 = vld [vmem:[#allocation2 + $0x68] sm:$0x1]  ;;  %v156_v47 = vld [vmem:[#allocation2 + $0x6c] sm:$0x1] }
  0xe1   :  { %v3065_v16 = vcombine.high %v3064_v7, %v9160_v2  ;;  %8050 = vmatprep.subr.msk.mxu1 %vm52_vm3, %v3064_v7  ;;  %v580_v7 = vshll.u32 %v8445_v62, 16  ;;  %v598_v11 = vor.u32 %v596_v61, %v595_v1  ;;  %v599_v12 = vrot.slane %v595_v1, 4  ;;  %186 = vst.msk [vmem:[#allocation3 + $0x98] sm:$0xf] %vm177_vm2, %v9163_v36 }
  0xe2   :  { %8051 = vmatpush1.msk.msra.mxu1 %vm52_vm3, %v3006_v59  ;;  %v731_v59 = vld [vmem:[#allocation2 + $0x8] sm:$0xf]  ;;  %v579_v14 = vrot.slane %v577_v6, 7  ;;  %v80_v61 = vsel %vm9368_vm6, 0, %v79_v56  ;;  %v142_v62 = vsel %vm9374_vm7, 0, %v141_v57  ;;  %v771_v1 = vsel %vm9368_vm6, %v623_v55, %v770_v50 }
  0xe3   :  { %8060 = vmatprep.subr.msk.mxu0 %vm52_vm3, %v3065_v16  ;;  %v732_v9 = vsel %vm9424_vm9, %v574_v63, %v731_v59  ;;  %v71_v16 = vsel %vm9368_vm6, 0, %v70_v8  ;;  %v750_v18 = vsel %vm9424_vm9, %v598_v11, %v749_v3  ;;  %v753_v19 = vsel %vm9368_vm6, %v599_v12, %v752_v5  ;;  %v460_v59 = vpop.f32.mrf.mxu0  ;;  %81 = vst [vmem:[#allocation2 + $0x40] sm:$0x1] %v80_v61  ;;  %v73_v11 = vld [vmem:[#allocation2 + $0x30] sm:$0x1] }
  0xe4   :  { %8061 = vmatpush1.msk.msra.mxu0 %vm52_vm3, %v3007_v10  ;;  %v735_v10 = vsel %vm9368_vm6, %v575_v0, %v734_v60  ;;  %733 = vst [vmem:[#allocation2 + $0x8] sm:$0xf] %v732_v9  ;;  %72 = vst [vmem:[#allocation2 + $0x28] sm:$0x1] %v71_v16  ;;  %v582_v23 = vor.u32 %v580_v7, %v579_v14  ;;  %v583_v24 = vrot.slane %v579_v14, 4  ;;  %v603_v60 = vrot.slane %v601_v51, 7 }
  0xe5   :  { %736 = vst [vmem:[#allocation2 + $0xc] sm:$0x1] %v735_v10  ;;  %751 = vst [vmem:[#allocation2 + $0x20] sm:$0xf] %v750_v18  ;;  %v461_v63 = vadd.f32 %v9389_v48, %v460_v59  ;;  %v768_v0 = vsel %vm9424_vm9, %v622_v54, %v767_v49  ;;  %v8451_v5 = vpack.c.bf16 %v511_v58, %v511_v58  ;;  %v135_v12 = vld [vmem:[#allocation2 + $0x34] sm:$0x1] }
  0xe6   :  { %754 = vst [vmem:[#allocation2 + $0x24] sm:$0x1] %v753_v19  ;;  %v738_v45 = vsel %vm9424_vm9, %v582_v23, %v737_v20  ;;  %v741_v46 = vsel %vm9368_vm6, %v583_v24, %v740_v21  ;;  %143 = vst [vmem:[#allocation2 + $0x44] sm:$0x1] %v142_v62  ;;  %v606_v6 = vor.u32 %v604_v52, %v603_v60  ;;  %v607_v7 = vrot.slane %v603_v60, 4  ;;  %v8653_v23 = vpop.f32.mrf.mxu0 }
  0xe7   :  { %739 = vst [vmem:[#allocation2 + $0x10] sm:$0xf] %v738_v45  ;;  %742 = vst [vmem:[#allocation2 + $0x14] sm:$0x1] %v741_v46  ;;  %v509_v8 = vmax.f32 %v461_v63, 0.0  ;;  %v625_v9 = vshrl.u32 %v8451_v5, 16  ;;  %v482_v35 = vadd.f32 %v8653_v23, %v9389_v48 }
  0xe8   :  { %769 = vst [vmem:[#allocation2 + $0x38] sm:$0xf] %v768_v0  ;;  %772 = vst [vmem:[#allocation2 + $0x3c] sm:$0x1] %v771_v1  ;;  %v628_v10 = vshll.u32 %v8451_v5, 16  ;;  %v759_v14 = vsel %vm9368_vm6, %v607_v7, %v758_v4  ;;  %v74_v15 = vsel %vm9368_vm6, 0, %v73_v11  ;;  %v473_v55 = vpop.f32.mrf.mxu0 }
  0xe9   :  { %v136_v16 = vsel %vm9374_vm7, 0, %v135_v12  ;;  %760 = vst [vmem:[#allocation2 + $0x2c] sm:$0x1] %v759_v14  ;;  %v627_v17 = vrot.slane %v625_v9, 7  ;;  %75 = vst [vmem:[#allocation2 + $0x30] sm:$0x1] %v74_v15  ;;  %v8449_v18 = vpack.c.bf16 %v509_v8, %v509_v8  ;;  %v474_v60 = vadd.f32 %v9389_v48, %v473_v55 }
  0xea   :  { %137 = vst [vmem:[#allocation2 + $0x34] sm:$0x1] %v136_v16  ;;  %v773_v24 = vld [vmem:[#allocation2 + $0x40] sm:$0xf]  ;;  %v95_v46 = vsel %vm9368_vm6, 0, %v94_v31  ;;  %v157_v49 = vsel %vm9374_vm7, 0, %v156_v47 }
  0xeb   :  { %v755_v3 = vld [vmem:[#allocation2 + $0x28] sm:$0xf]  ;;  %v630_v19 = vor.u32 %v628_v10, %v627_v17  ;;  %v631_v20 = vrot.slane %v627_v17, 4  ;;  %v609_v21 = vshrl.u32 %v8449_v18, 16  ;;  %v612_v22 = vshll.u32 %v8449_v18, 16 }
  0xec   :  { %v756_v13 = vsel %vm9424_vm9, %v606_v6, %v755_v3  ;;  %96 = vst [vmem:[#allocation2 + $0x68] sm:$0x1] %v95_v46  ;;  %v514_v50 = vmax.f32 %v482_v35, 0.0  ;;  %158 = vst [vmem:[#allocation2 + $0x6c] sm:$0x1] %v157_v49  ;;  %v8654_v3 = vpop.f32.mrf.mxu0  ;;  %v512_v7 = vmax.f32 %v474_v60, 0.0 }
  0xed   :  { %757 = vst [vmem:[#allocation2 + $0x28] sm:$0xf] %v756_v13  ;;  %v776_v27 = vld [vmem:[#allocation2 + $0x44] sm:$0x1]  ;;  %v774_v37 = vsel %vm9424_vm9, %v630_v19, %v773_v24  ;;  %v611_v45 = vrot.slane %v609_v21, 7  ;;  %v485_v10 = vadd.f32 %v8654_v3, %v9389_v48  ;;  %vm179_vm3 = vcmask 516096  }
  0xee   :  { %v777_v40 = vsel %vm9368_vm6, %v631_v20, %v776_v27  ;;  %775 = vst [vmem:[#allocation2 + $0x40] sm:$0xf] %v774_v37  ;;  %v88_v54 = vld [vmem:[#allocation2 + $0x58] sm:$0x1]  ;;  %v8454_v58 = vpack.c.bf16 %v514_v50, %v514_v50  ;;  %v150_v63 = vld [vmem:[#allocation2 + $0x5c] sm:$0x1]  ;;  %v476_v11 = vpop.f32.mrf.mxu0  ;;  %v8452_v13 = vpack.c.bf16 %v512_v7, %v512_v7 }
  0xef   :  { %778 = vst [vmem:[#allocation2 + $0x44] sm:$0x1] %v777_v40  ;;  %v614_v51 = vor.u32 %v612_v22, %v611_v45  ;;  %v615_v52 = vrot.slane %v611_v45, 4  ;;  %v89_v59 = vsel %vm9368_vm6, 0, %v88_v54  ;;  %v97_v0 = vld [vmem:[#allocation2 + $0x70] sm:$0x1]  ;;  %v477_v15 = vadd.f32 %v9389_v48, %v476_v11 }
  0xf0   :  { %v761_v56 = vld [vmem:[#allocation2 + $0x30] sm:$0xf]  ;;  %90 = vst [vmem:[#allocation2 + $0x58] sm:$0x1] %v89_v59  ;;  %v159_v1 = vld [vmem:[#allocation2 + $0x74] sm:$0x1]  ;;  %v8657_v20 = vpop.f32.mrf.mxu0 }
  0xf1   :  { %v764_v57 = vld [vmem:[#allocation2 + $0x34] sm:$0x1]  ;;  %v762_v61 = vsel %vm9424_vm9, %v614_v51, %v761_v56  ;;  %v649_v4 = vshrl.u32 %v8454_v58, 16  ;;  %v652_v5 = vshll.u32 %v8454_v58, 16  ;;  %v151_v6 = vsel %vm9374_vm7, 0, %v150_v63 }
  0xf2   :  { %v765_v62 = vsel %vm9368_vm6, %v615_v52, %v764_v57  ;;  %763 = vst [vmem:[#allocation2 + $0x30] sm:$0xf] %v762_v61  ;;  %152 = vst [vmem:[#allocation2 + $0x5c] sm:$0x1] %v151_v6  ;;  %v98_v8 = vsel %vm9368_vm6, 0, %v97_v0  ;;  %v160_v9 = vsel %vm9374_vm7, 0, %v159_v1  ;;  %v498_v46 = vadd.f32 %v8657_v20, %v9389_v48  ;;  %v489_v47 = vpop.f32.mrf.mxu0 }
  0xf3   :  { %766 = vst [vmem:[#allocation2 + $0x34] sm:$0x1] %v765_v62  ;;  %v651_v12 = vrot.slane %v649_v4, 7  ;;  %99 = vst [vmem:[#allocation2 + $0x70] sm:$0x1] %v98_v8  ;;  %v515_v17 = vmax.f32 %v485_v10, 0.0  ;;  %v490_v63 = vadd.f32 %v9389_v48, %v489_v47 }
  0xf4   :  { %161 = vst [vmem:[#allocation2 + $0x74] sm:$0x1] %v160_v9  ;;  %v91_v14 = vld [vmem:[#allocation2 + $0x60] sm:$0x1]  ;;  %v791_v16 = vld [vmem:[#allocation2 + $0x68] sm:$0xf] }
  0xf5   :  { %v92_v18 = vsel %vm9368_vm6, 0, %v91_v14  ;;  %v153_v19 = vld [vmem:[#allocation2 + $0x64] sm:$0x1]  ;;  %v654_v21 = vor.u32 %v652_v5, %v651_v12  ;;  %v655_v22 = vrot.slane %v651_v12, 4  ;;  %v794_v23 = vld [vmem:[#allocation2 + $0x6c] sm:$0x1]  ;;  %v8455_v31 = vpack.c.bf16 %v515_v17, %v515_v17 }
  0xf6   :  { %v633_v24 = vshrl.u32 %v8452_v13, 16  ;;  %v636_v27 = vshll.u32 %v8452_v13, 16  ;;  %93 = vst [vmem:[#allocation2 + $0x60] sm:$0x1] %v92_v18  ;;  %v154_v35 = vsel %vm9374_vm7, 0, %v153_v19  ;;  %v513_v37 = vmax.f32 %v477_v15, 0.0 }
  0xf7   :  { %v106_v40 = vld [vmem:[#allocation2 + $0x88] sm:$0x1]  ;;  %v168_v45 = vld [vmem:[#allocation2 + $0x8c] sm:$0x1]  ;;  %v792_v49 = vsel %vm9424_vm9, %v654_v21, %v791_v16  ;;  %v795_v50 = vsel %vm9368_vm6, %v655_v22, %v794_v23  ;;  %155 = vst [vmem:[#allocation2 + $0x64] sm:$0x1] %v154_v35 }
  0xf8   :  { %v635_v51 = vrot.slane %v633_v24, 7  ;;  %v107_v52 = vsel %vm9368_vm6, 0, %v106_v40  ;;  %793 = vst [vmem:[#allocation2 + $0x68] sm:$0xf] %v792_v49  ;;  %796 = vst [vmem:[#allocation2 + $0x6c] sm:$0x1] %v795_v50  ;;  %v8453_v57 = vpack.c.bf16 %v513_v37, %v513_v37  ;;  %v8658_v24 = vpop.f32.mrf.mxu0 }
  0xf9   :  { %v779_v54 = vld [vmem:[#allocation2 + $0x58] sm:$0xf]  ;;  %v657_v55 = vshrl.u32 %v8455_v31, 16  ;;  %v660_v56 = vshll.u32 %v8455_v31, 16  ;;  %108 = vst [vmem:[#allocation2 + $0x88] sm:$0x1] %v107_v52 }
  0xfa   :  { %v169_v58 = vsel %vm9374_vm7, 0, %v168_v45  ;;  %v638_v59 = vor.u32 %v636_v27, %v635_v51  ;;  %v639_v60 = vrot.slane %v635_v51, 4  ;;  %v782_v61 = vld [vmem:[#allocation2 + $0x5c] sm:$0x1]  ;;  %v518_v62 = vmax.f32 %v498_v46, 0.0  ;;  %v492_v52 = vpop.f32.mrf.mxu0 }
  0xfb   :  { %170 = vst [vmem:[#allocation2 + $0x8c] sm:$0x1] %v169_v58  ;;  %v659_v0 = vrot.slane %v657_v55, 7  ;;  %v797_v1 = vld [vmem:[#allocation2 + $0x70] sm:$0xf]  ;;  %v641_v3 = vshrl.u32 %v8453_v57, 16 }
  0xfc   :  { %v780_v4 = vsel %vm9424_vm9, %v638_v59, %v779_v54  ;;  %v783_v5 = vsel %vm9368_vm6, %v639_v60, %v782_v61  ;;  %v800_v6 = vld [vmem:[#allocation2 + $0x74] sm:$0x1]  ;;  %v644_v7 = vshll.u32 %v8453_v57, 16  ;;  %v8458_v8 = vpack.c.bf16 %v518_v62, %v518_v62  ;;  %v100_v9 = vld [vmem:[#allocation2 + $0x78] sm:$0x1] }
  0xfd   :  { %781 = vst [vmem:[#allocation2 + $0x58] sm:$0xf] %v780_v4  ;;  %784 = vst [vmem:[#allocation2 + $0x5c] sm:$0x1] %v783_v5  ;;  %v662_v10 = vor.u32 %v660_v56, %v659_v0  ;;  %v663_v11 = vrot.slane %v659_v0, 4  ;;  %v643_v12 = vrot.slane %v641_v3, 7  ;;  %v493_v0 = vadd.f32 %v9389_v48, %v492_v52 }
  0xfe   :  { %v785_v13 = vld [vmem:[#allocation2 + $0x60] sm:$0xf]  ;;  %v101_v14 = vsel %vm9368_vm6, 0, %v100_v9  ;;  %v681_v15 = vshrl.u32 %v8458_v8, 16  ;;  %v684_v16 = vshll.u32 %v8458_v8, 16  ;;  %v516_v18 = vmax.f32 %v490_v63, 0.0 }
  0xff   :  { %102 = vst [vmem:[#allocation2 + $0x78] sm:$0x1] %v101_v14  ;;  %v162_v17 = vld [vmem:[#allocation2 + $0x7c] sm:$0x1]  ;;  %v798_v19 = vsel %vm9424_vm9, %v662_v10, %v797_v1  ;;  %v801_v20 = vsel %vm9368_vm6, %v663_v11, %v800_v6  ;;  %v646_v21 = vor.u32 %v644_v7, %v643_v12  ;;  %v647_v22 = vrot.slane %v643_v12, 4 }
 0x100   :  { %v788_v23 = vld [vmem:[#allocation2 + $0x64] sm:$0x1]  ;;  %799 = vst [vmem:[#allocation2 + $0x70] sm:$0xf] %v798_v19  ;;  %802 = vst [vmem:[#allocation2 + $0x74] sm:$0x1] %v801_v20  ;;  %v8456_v35 = vpack.c.bf16 %v516_v18, %v516_v18  ;;  %v501_v63 = vadd.f32 %v8658_v24, %v9389_v48 }
 0x101   :  { %v683_v27 = vrot.slane %v681_v15, 7  ;;  %v163_v31 = vsel %vm9374_vm7, 0, %v162_v17  ;;  %v786_v37 = vsel %vm9424_vm9, %v646_v21, %v785_v13  ;;  %v789_v40 = vsel %vm9368_vm6, %v647_v22, %v788_v23  ;;  %v815_v45 = vld [vmem:[#allocation2 + $0x88] sm:$0xf]  ;;  %v55_v57 = vld [vmem:[#allocation2] sm:$0x1] }
 0x102   :  { %v818_v46 = vld [vmem:[#allocation2 + $0x8c] sm:$0x1]  ;;  %164 = vst [vmem:[#allocation2 + $0x7c] sm:$0x1] %v163_v31  ;;  %787 = vst [vmem:[#allocation2 + $0x60] sm:$0xf] %v786_v37 }
 0x103   :  { %790 = vst [vmem:[#allocation2 + $0x64] sm:$0x1] %v789_v40  ;;  %v686_v47 = vor.u32 %v684_v16, %v683_v27  ;;  %v687_v49 = vrot.slane %v683_v27, 4  ;;  %v665_v50 = vshrl.u32 %v8456_v35, 16  ;;  %v668_v51 = vshll.u32 %v8456_v35, 16 }
 0x104   :  { %v117_v58 = vld [vmem:[#allocation2 + $0x4] sm:$0x1]  ;;  %v56_v60 = vsel %vm9368_vm6, 0, %v55_v57  ;;  %v829_v62 = vld [vmem:[#allocation2 + $0x8] sm:$0xf]  ;;  %v12588_v14 = vmov 0 }
 0x105   :  { %v816_v54 = vsel %vm9424_vm9, %v686_v47, %v815_v45  ;;  %v819_v55 = vsel %vm9368_vm6, %v687_v49, %v818_v46  ;;  %v667_v56 = vrot.slane %v665_v50, 7  ;;  %v118_v61 = vsel %vm9374_vm7, 0, %v117_v58  ;;  %57 = vst [vmem:[#allocation2] sm:$0x1] %v56_v60  ;;  %v830_v4 = vld [vmem:[#allocation2 + $0xc] sm:$0x1] }
 0x106   :  { %817 = vst [vmem:[#allocation2 + $0x88] sm:$0xf] %v816_v54  ;;  %820 = vst [vmem:[#allocation2 + $0x8c] sm:$0x1] %v819_v55  ;;  %v803_v59 = vld [vmem:[#allocation2 + $0x78] sm:$0xf] }
 0x107   :  { %v670_v1 = vor.u32 %v668_v51, %v667_v56  ;;  %v671_v3 = vrot.slane %v667_v56, 4  ;;  %119 = vst [vmem:[#allocation2 + $0x4] sm:$0x1] %v118_v61  ;;  %860 = vst [vmem:[#allocation4 + $0x24] sm:$0xf] %v829_v62  ;;  %v893_v5 = vshrl.u32 %v829_v62, 16 }
 0x108   :  { %v896_v6 = vshll.u32 %v829_v62, 16  ;;  %v902_v7 = vshll.u32 %v830_v4, 16  ;;  %v7982_v11 = vrot.slane %v829_v62, 9  ;;  %v1175_v12 = vrot.slane %v830_v4, 5  ;;  %v9554_v15 = vld [vmem:[#allocation2 + $0x8] sm:$0xf] }
 0x109   :  { %v804_v8 = vsel %vm9424_vm9, %v670_v1, %v803_v59  ;;  %v806_v9 = vld [vmem:[#allocation2 + $0x7c] sm:$0x1]  ;;  %v895_v10 = vrot.slane %v893_v5, 4  ;;  %v12589_v14 = vsel %vm9550_vm14, 4294967295, %v12588_v14  ;;  %v9556_v16 = vld [vmem:[#allocation2 + $0x10] sm:$0xf] }
 0x10a   :  { %805 = vst [vmem:[#allocation2 + $0x78] sm:$0xf] %v804_v8  ;;  %v807_v48 = vsel %vm9368_vm6, %v671_v3, %v806_v9  ;;  %v898_v13 = vrot.slane %v896_v6, 5  ;;  %12590 = vst [vmem:[#allocation9_spill] sm:$0xff] %v12589_v14  ;;  %v1176_v17 = vsel %vm9550_vm14, %v7982_v11, %v1175_v12  ;;  %v109_v18 = vld [vmem:[#allocation2 + $0x90] sm:$0x1] }
 0x10b   :  { %808 = vst [vmem:[#allocation2 + $0x7c] sm:$0x1] %v807_v48  ;;  %1297 = vst [vmem:[#allocation4 + $0xc] sm:$0xf] %v9554_v15  ;;  %v171_v19 = vld [vmem:[#allocation2 + $0x94] sm:$0x1] }
 0x10c   :  { %1298 = vst [vmem:[#allocation4 + $0x30] sm:$0xf] %v9556_v16  ;;  %v519_v20 = vmax.f32 %v501_v63, 0.0  ;;  %v517_v21 = vmax.f32 %v493_v0, 0.0  ;;  %v899_v22 = vor.u32 %v898_v13, %v895_v10  ;;  %v904_v23 = vrot.slane %v902_v7, 5 }
 0x10d   :  { %1250 = vst [vmem:[#allocation4 + $0x2c] sm:$0xf] %v1176_v17  ;;  %v110_v24 = vsel %vm9368_vm6, 0, %v109_v18  ;;  %v172_v27 = vsel %vm9374_vm7, 0, %v171_v19  ;;  %v12591_v31 = vmov 0 }
 0x10e   :  { %v12592_v31 = vsel %vm9568_vm15, 4294967295, %v12591_v31  ;;  %111 = vst [vmem:[#allocation2 + $0x90] sm:$0x1] %v110_v24  ;;  %173 = vst [vmem:[#allocation2 + $0x94] sm:$0x1] %v172_v27  ;;  %v8459_v35 = vpack.c.bf16 %v519_v20, %v519_v20  ;;  %v900_v46 = vrot.slane %v899_v22, 4  ;;  %v8457_v49 = vpack.c.bf16 %v517_v21, %v517_v21 }
 0x10f   :  { %12593 = vst [vmem:[#allocation10_spill] sm:$0xff] %v12592_v31  ;;  %v103_v37 = vld [vmem:[#allocation2 + $0x80] sm:$0x1]  ;;  %v828_v45 = vld [vmem:[#allocation2 + $0x4] sm:$0x1] }
 0x110   :  { %v827_v40 = vld [vmem:[#allocation2] sm:$0xf]  ;;  %v104_v47 = vsel %vm9368_vm6, 0, %v103_v37  ;;  %v888_v52 = vshll.u32 %v828_v45, 16  ;;  %v165_v55 = vld [vmem:[#allocation2 + $0x84] sm:$0x1]  ;;  %v905_v56 = vsel %vm9568_vm15, %v900_v46, %v904_v23 }
 0x111   :  { %859 = vst [vmem:[#allocation4] sm:$0xf] %v827_v40  ;;  %v879_v50 = vshrl.u32 %v827_v40, 16  ;;  %v882_v51 = vshll.u32 %v827_v40, 16  ;;  %v7981_v54 = vrot.slane %v827_v40, 9  ;;  %v1171_v57 = vrot.slane %v828_v45, 5 }
 0x112   :  { %105 = vst [vmem:[#allocation2 + $0x80] sm:$0x1] %v104_v47  ;;  %v689_v58 = vshrl.u32 %v8459_v35, 16  ;;  %v692_v59 = vshll.u32 %v8459_v35, 16  ;;  %1119 = vst [vmem:[#allocation4 + $0x28] sm:$0xf] %v905_v56 }
 0x113   :  { %v881_v60 = vrot.slane %v879_v50, 4  ;;  %v884_v61 = vrot.slane %v882_v51, 5  ;;  %v166_v62 = vsel %vm9374_vm7, 0, %v165_v55  ;;  %v1172_v63 = vsel %vm9550_vm14, %v7981_v54, %v1171_v57  ;;  %v831_v21 = vld [vmem:[#allocation2 + $0x10] sm:$0xf] }
 0x114   :  { %v691_v0 = vrot.slane %v689_v58, 7  ;;  %167 = vst [vmem:[#allocation2 + $0x84] sm:$0x1] %v166_v62  ;;  %v673_v1 = vshrl.u32 %v8457_v49, 16  ;;  %v676_v3 = vshll.u32 %v8457_v49, 16  ;;  %v890_v5 = vrot.slane %v888_v52, 5 }
 0x115   :  { %v885_v4 = vor.u32 %v884_v61, %v881_v60  ;;  %1249 = vst [vmem:[#allocation4 + $0x8] sm:$0xf] %v1172_v63  ;;  %v821_v8 = vld [vmem:[#allocation2 + $0x90] sm:$0xf]  ;;  %v824_v9 = vld [vmem:[#allocation2 + $0x94] sm:$0x1] }
 0x116   :  { %v694_v6 = vor.u32 %v692_v59, %v691_v0  ;;  %v695_v7 = vrot.slane %v691_v0, 4  ;;  %v675_v10 = vrot.slane %v673_v1, 7  ;;  %v832_v23 = vld [vmem:[#allocation2 + $0x14] sm:$0x1]  ;;  %v833_v24 = vld [vmem:[#allocation2 + $0x18] sm:$0xf] }
 0x117   :  { %v886_v11 = vrot.slane %v885_v4, 4  ;;  %861 = vst [vmem:[#allocation4 + $0x48] sm:$0xf] %v831_v21  ;;  %862 = vst [vmem:[#allocation4 + $0x6c] sm:$0xf] %v833_v24  ;;  %v907_v35 = vshrl.u32 %v831_v21, 16 }
 0x118   :  { %v822_v12 = vsel %vm9424_vm9, %v694_v6, %v821_v8  ;;  %v825_v48 = vsel %vm9368_vm6, %v695_v7, %v824_v9  ;;  %v678_v13 = vor.u32 %v676_v3, %v675_v10  ;;  %v679_v17 = vrot.slane %v675_v10, 4  ;;  %v834_v37 = vld [vmem:[#allocation2 + $0x1c] sm:$0x1]  ;;  %v9590_v52 = vld [vmem:[#allocation2 + $0x18] sm:$0xf] }
 0x119   :  { %v809_v18 = vld [vmem:[#allocation2 + $0x80] sm:$0xf]  ;;  %v891_v19 = vsel %vm9568_vm15, %v886_v11, %v890_v5  ;;  %823 = vst [vmem:[#allocation2 + $0x90] sm:$0xf] %v822_v12  ;;  %826 = vst [vmem:[#allocation2 + $0x94] sm:$0x1] %v825_v48 }
 0x11a   :  { %1118 = vst [vmem:[#allocation4 + $0x4] sm:$0xf] %v891_v19  ;;  %v810_v20 = vsel %vm9424_vm9, %v678_v13, %v809_v18  ;;  %v910_v40 = vshll.u32 %v831_v21, 16  ;;  %v916_v45 = vshll.u32 %v832_v23, 16  ;;  %v921_v46 = vshrl.u32 %v833_v24, 16 }
 0x11b   :  { %811 = vst [vmem:[#allocation2 + $0x80] sm:$0xf] %v810_v20  ;;  %v812_v22 = vld [vmem:[#allocation2 + $0x84] sm:$0x1]  ;;  %v924_v47 = vshll.u32 %v833_v24, 16  ;;  %v909_v49 = vrot.slane %v907_v35, 4 }
 0x11c   :  { %v813_v27 = vsel %vm9368_vm6, %v679_v17, %v812_v22  ;;  %v930_v34 = vshll.u32 %v834_v37, 16  ;;  %v7983_v50 = vrot.slane %v831_v21, 9  ;;  %v1179_v51 = vrot.slane %v832_v23, 5  ;;  %v9592_v57 = vld [vmem:[#allocation2 + $0x20] sm:$0xf] }
 0x11d   :  { %814 = vst [vmem:[#allocation2 + $0x84] sm:$0x1] %v813_v27  ;;  %v912_v54 = vrot.slane %v910_v40, 5  ;;  %v923_v55 = vrot.slane %v921_v46, 4  ;;  %v926_v56 = vrot.slane %v924_v47, 5  ;;  %v7984_v59 = vrot.slane %v833_v24, 9 }
 0x11e   :  { %1299 = vst [vmem:[#allocation4 + $0x54] sm:$0xf] %v9590_v52  ;;  %v1180_v58 = vsel %vm9550_vm14, %v7983_v50, %v1179_v51  ;;  %v1183_v60 = vrot.slane %v834_v37, 5  ;;  %1300 = vst [vmem:[#allocation4 + $0x78] sm:$0xf] %v9592_v57  ;;  %v918_v62 = vrot.slane %v916_v45, 5 }
 0x11f   :  { %v913_v61 = vor.u32 %v912_v54, %v909_v49  ;;  %v927_v63 = vor.u32 %v926_v56, %v923_v55  ;;  %v932_v0 = vrot.slane %v930_v34, 5  ;;  %1251 = vst [vmem:[#allocation4 + $0x50] sm:$0xf] %v1180_v58  ;;  %v835_v5 = vld [vmem:[#allocation2 + $0x20] sm:$0xf] }
 0x120   :  { %v1184_v1 = vsel %vm9550_vm14, %v7984_v59, %v1183_v60  ;;  %v836_v8 = vld [vmem:[#allocation2 + $0x24] sm:$0x1]  ;;  %v837_v9 = vld [vmem:[#allocation2 + $0x28] sm:$0xf]  ;;  %v838_v10 = vld [vmem:[#allocation2 + $0x2c] sm:$0x1] }
 0x121   :  { %v914_v3 = vrot.slane %v913_v61, 4  ;;  %v928_v4 = vrot.slane %v927_v63, 4  ;;  %1252 = vst [vmem:[#allocation4 + $0x74] sm:$0xf] %v1184_v1  ;;  %863 = vst [vmem:[#allocation4 + $0x90] sm:$0xf] %v835_v5 }
 0x122   :  { %864 = vst [vmem:[#allocation4 + $0xb4] sm:$0xf] %v837_v9  ;;  %v935_v11 = vshrl.u32 %v835_v5, 16  ;;  %v938_v12 = vshll.u32 %v835_v5, 16  ;;  %v944_v48 = vshll.u32 %v836_v8, 16  ;;  %v949_v13 = vshrl.u32 %v837_v9, 16 }
 0x123   :  { %v919_v6 = vsel %vm9568_vm15, %v914_v3, %v918_v62  ;;  %v933_v7 = vsel %vm9568_vm15, %v928_v4, %v932_v0  ;;  %v9604_v17 = vld [vmem:[#allocation2 + $0x28] sm:$0xf]  ;;  %v952_v18 = vshll.u32 %v837_v9, 16  ;;  %v958_v19 = vshll.u32 %v838_v10, 16  ;;  %v9606_v22 = vld [vmem:[#allocation2 + $0x30] sm:$0xf] }
 0x124   :  { %1120 = vst [vmem:[#allocation4 + $0x4c] sm:$0xf] %v919_v6  ;;  %1121 = vst [vmem:[#allocation4 + $0x70] sm:$0xf] %v933_v7  ;;  %v7985_v20 = vrot.slane %v835_v5, 9  ;;  %v1187_v21 = vrot.slane %v836_v8, 5 }
 0x125   :  { %1301 = vst [vmem:[#allocation4 + $0x9c] sm:$0xf] %v9604_v17  ;;  %v937_v23 = vrot.slane %v935_v11, 4  ;;  %v940_v24 = vrot.slane %v938_v12, 5  ;;  %v951_v27 = vrot.slane %v949_v13, 4  ;;  %v954_v35 = vrot.slane %v952_v18, 5 }
 0x126   :  { %1302 = vst [vmem:[#allocation4 + $0xc0] sm:$0xf] %v9606_v22  ;;  %v1188_v37 = vsel %vm9550_vm14, %v7985_v20, %v1187_v21  ;;  %v7986_v40 = vrot.slane %v837_v9, 9  ;;  %v946_v46 = vrot.slane %v944_v48, 5  ;;  %v1191_v47 = vrot.slane %v838_v10, 5 }
 0x127   :  { %v941_v45 = vor.u32 %v940_v24, %v937_v23  ;;  %1253 = vst [vmem:[#allocation4 + $0x98] sm:$0xf] %v1188_v37  ;;  %v955_v49 = vor.u32 %v954_v35, %v951_v27  ;;  %v960_v34 = vrot.slane %v958_v19, 5  ;;  %v9164_v55 = vmov 1983009808  }
 0x128   :  { %v1192_v51 = vsel %vm9550_vm14, %v7986_v40, %v1191_v47  ;;  %v2952_v56 = vunpack.c.l.s4 %v9164_v55  ;;  %v839_v59 = vld [vmem:[#allocation2 + $0x30] sm:$0xf]  ;;  %v840_v61 = vld [vmem:[#allocation2 + $0x34] sm:$0x1]  ;;  %v841_v62 = vld [vmem:[#allocation2 + $0x38] sm:$0xf]  ;;  %v3008_v23 = vcombine.low %v9343_v26, %v9352_v30 }
 0x129   :  { %v942_v50 = vrot.slane %v941_v45, 4  ;;  %v956_v54 = vrot.slane %v955_v49, 4  ;;  %1254 = vst [vmem:[#allocation4 + $0xbc] sm:$0xf] %v1192_v51  ;;  %v842_v63 = vld [vmem:[#allocation2 + $0x3c] sm:$0x1] }
 0x12a   :  { %865 = vst [vmem:[#allocation4 + $0xd8] sm:$0xf] %v839_v59  ;;  %866 = vst [vmem:[#allocation4 + $0xfc] sm:$0xf] %v841_v62  ;;  %v963_v1 = vshrl.u32 %v839_v59, 16  ;;  %v966_v3 = vshll.u32 %v839_v59, 16  ;;  %v2953_v11 = vunpack.c.0.s8 %v2952_v56 }
 0x12b   :  { %v947_v58 = vsel %vm9568_vm15, %v942_v50, %v946_v46  ;;  %v961_v60 = vsel %vm9568_vm15, %v956_v54, %v960_v34  ;;  %v972_v4 = vshll.u32 %v840_v61, 16  ;;  %v977_v5 = vshrl.u32 %v841_v62, 16  ;;  %v9618_v6 = vld [vmem:[#allocation2 + $0x38] sm:$0xf]  ;;  %v9621_v18 = vld [vmem:[#allocation2 + $0x40] sm:$0xf] }
 0x12c   :  { %1122 = vst [vmem:[#allocation4 + $0x94] sm:$0xf] %v947_v58  ;;  %1123 = vst [vmem:[#allocation4 + $0xb8] sm:$0xf] %v961_v60  ;;  %v980_v7 = vshll.u32 %v841_v62, 16  ;;  %v986_v8 = vshll.u32 %v842_v63, 16  ;;  %v9629_v46 = vsub.s32 %v2953_v11, %v9378_v42  ;;  %v2966_v11 = vcombine.low %v9356_v32, %v9364_v38 }
 0x12d   :  { %v7987_v9 = vrot.slane %v839_v59, 9  ;;  %v1195_v10 = vrot.slane %v840_v61, 5  ;;  %1303 = vst [vmem:[#allocation4 + $0xe4] sm:$0xf] %v9618_v6  ;;  %v965_v12 = vrot.slane %v963_v1, 4  ;;  %v968_v48 = vrot.slane %v966_v3, 5 }
 0x12e   :  { %v979_v13 = vrot.slane %v977_v5, 4  ;;  %v982_v19 = vrot.slane %v980_v7, 5  ;;  %v7988_v21 = vrot.slane %v841_v62, 9  ;;  %1304 = vst [vmem:[#allocation4 + $0x108] sm:$0xf] %v9621_v18  ;;  %v974_v27 = vrot.slane %v972_v4, 5 }
 0x12f   :  { %v1196_v20 = vsel %vm9550_vm14, %v7987_v9, %v1195_v10  ;;  %v969_v24 = vor.u32 %v968_v48, %v965_v12  ;;  %v1199_v35 = vrot.slane %v842_v63, 5  ;;  %v988_v45 = vrot.slane %v986_v8, 5  ;;  %v85_v51 = vld [vmem:[#allocation2 + $0x50] sm:$0x1]  ;;  %v147_v54 = vld [vmem:[#allocation2 + $0x54] sm:$0x1] }
 0x130   :  { %1255 = vst [vmem:[#allocation4 + $0xe0] sm:$0xf] %v1196_v20  ;;  %v983_v40 = vor.u32 %v982_v19, %v979_v13  ;;  %v3015_v26 = vrot.slane %v3008_v23, %v9629_v46  ;;  %v86_v59 = vsel %vm9368_vm6, 0, %v85_v51  ;;  %v148_v60 = vsel %vm9374_vm7, 0, %v147_v54  ;;  %v845_v61 = vld [vmem:[#allocation2 + $0x58] sm:$0xf] }
 0x131   :  { %v970_v49 = vrot.slane %v969_v24, 4  ;;  %v1200_v34 = vsel %vm9550_vm14, %v7988_v21, %v1199_v35  ;;  %v846_v62 = vld [vmem:[#allocation2 + $0x5c] sm:$0x1]  ;;  %87 = vst [vmem:[#allocation2 + $0x50] sm:$0x1] %v86_v59  ;;  %v1008_v3 = vshll.u32 %v845_v61, 16  ;;  %v2957_v19 = vrot.slane %v2950_v29, %v9629_v46 }
 0x132   :  { %v984_v50 = vrot.slane %v983_v40, 4  ;;  %1256 = vst [vmem:[#allocation4 + $0x104] sm:$0xf] %v1200_v34  ;;  %149 = vst [vmem:[#allocation2 + $0x54] sm:$0x1] %v148_v60  ;;  %v1014_v8 = vshll.u32 %v846_v62, 16  ;;  %v3031_v25 = vrot.slane %v3024_v44, %v9629_v46 }
 0x133   :  { %v975_v30 = vsel %vm9568_vm15, %v970_v49, %v974_v27  ;;  %868 = vst [vmem:[#allocation4 + $0x144] sm:$0xf] %v845_v61  ;;  %v9644_v4 = vld [vmem:[#allocation2 + $0x58] sm:$0xf]  ;;  %v9646_v5 = vld [vmem:[#allocation2 + $0x60] sm:$0xf] }
 0x134   :  { %v989_v58 = vsel %vm9568_vm15, %v984_v50, %v988_v45  ;;  %1124 = vst [vmem:[#allocation4 + $0xdc] sm:$0xf] %v975_v30  ;;  %v7990_v9 = vrot.slane %v845_v61, 9  ;;  %v1207_v10 = vrot.slane %v846_v62, 5  ;;  %1305 = vst [vmem:[#allocation4 + $0x12c] sm:$0xf] %v9644_v4 }
 0x135   :  { %1125 = vst [vmem:[#allocation4 + $0x100] sm:$0xf] %v989_v58  ;;  %1306 = vst [vmem:[#allocation4 + $0x150] sm:$0xf] %v9646_v5  ;;  %v1010_v13 = vrot.slane %v1008_v3, 5  ;;  %v1016_v35 = vrot.slane %v1014_v8, 5 }
 0x136   :  { %v1208_v21 = vsel %vm9550_vm14, %v7990_v9, %v1207_v10  ;;  %v9667_v29 = vld [vmem:[#allocation2 + $0x60] sm:$0xf]  ;;  %v9673_v49 = vld [vmem:[#allocation2 + $0x64] sm:$0x1]  ;;  %v1314_v50 = vshrl.u32 %v9554_v15, 16 }
 0x137   :  { %1258 = vst [vmem:[#allocation4 + $0x14c] sm:$0xf] %v1208_v21  ;;  %869 = vst [vmem:[#allocation4 + $0x168] sm:$0xf] %v9667_v29  ;;  %v1019_v34 = vshrl.u32 %v9667_v29, 16 }
 0x138   :  { %v9683_v51 = vld [vmem:[#allocation2 + $0x68] sm:$0xf]  ;;  %v9685_v60 = vld [vmem:[#allocation2 + $0x6c] sm:$0x1]  ;;  %180 = vst.msk [vmem:[#allocation3 + $0x4] sm:$0x1] %vm179_vm3, %v9163_v36 }
 0x139   :  { %v2916_v0 = vpop.permute.xlu0 %2915  ;;  %v844_v43 = vld [vmem:[#allocation2 + $0x54] sm:$0x1]  ;;  %870 = vst [vmem:[#allocation4 + $0x18c] sm:$0xf] %v9683_v51  ;;  %v9689_v3 = vld [vmem:[#allocation2 + $0x68] sm:$0xf] }
 0x13a   :  { %v1203_v59 = vrot.slane %v844_v43, 5  ;;  %1307 = vst [vmem:[#allocation4 + $0x174] sm:$0xf] %v9689_v3  ;;  %182 = vst.msk [vmem:[#allocation3 + $0x54] sm:$0x1] %vm179_vm3, %v9163_v36 }
 0x13b   :  { %185 = vst.msk [vmem:[#allocation3 + $0x4c] sm:$0x1] %vm179_vm3, %v9163_v36  ;;  %187 = vst.msk [vmem:[#allocation3 + $0x9c] sm:$0x1] %vm179_vm3, %v9163_v36 }
 0x13d   :  { %v2918_v47 = vpop.permute.xlu0 %2917 }
 0x13e   :  { %v2920_v55 = vsel %vm2919_vm0, %v2916_v0, %v2918_v47  ;;  %v1005_v0 = vshrl.u32 %v845_v61, 16  ;;  %v1021_v61 = vrot.slane %v1019_v34, 4 }
 0x13f   :  { %v2926_v37 = vpop.permute.xlu1 %2925 }
 0x140   :  { %v1007_v48 = vrot.slane %v1005_v0, 4 }
 0x142   :  { %v1011_v27 = vor.u32 %v1010_v13, %v1007_v48  ;;  %v1028_v13 = vshll.u32 %v9673_v49, 16 }
 0x143   :  { %v2928_v56 = vpop.permute.xlu1 %2927 }
 0x144   :  { %v2929_v63 = vsel %vm2919_vm0, %v2926_v37, %v2928_v56  ;;  %v3016_v1 = vcombine.low %v2918_v47, %v2928_v56  ;;  %v9661_v37 = vrot.slane %v2966_v11, %v9629_v46  ;;  %v1012_v28 = vrot.slane %v1011_v27, 4  ;;  %v843_v47 = vld [vmem:[#allocation2 + $0x50] sm:$0xf] }
 0x145   :  { %v2958_v7 = vcombine.low %v2920_v55, %v2929_v63  ;;  %v2935_v38 = vpop.permute.xlu0 %2934  ;;  %867 = vst [vmem:[#allocation4 + $0x120] sm:$0xf] %v843_v47  ;;  %v991_v44 = vshrl.u32 %v843_v47, 16  ;;  %v1000_v56 = vshll.u32 %v844_v43, 16  ;;  %v7989_v58 = vrot.slane %v843_v47, 9 }
 0x146   :  { %v3023_v12 = vrot.slane %v3016_v1, %v9629_v46  ;;  %v1017_v30 = vsel %vm9568_vm15, %v1012_v28, %v1016_v35  ;;  %v1022_v11 = vshll.u32 %v9667_v29, 16 }
 0x147   :  { %v2965_v20 = vrot.slane %v2958_v7, %v9629_v46  ;;  %v2937_v24 = vpop.permute.xlu1 %2936  ;;  %1127 = vst [vmem:[#allocation4 + $0x148] sm:$0xf] %v1017_v30  ;;  %v993_v1 = vrot.slane %v991_v44, 4  ;;  %v9691_v7 = vld [vmem:[#allocation2 + $0x70] sm:$0xf]  ;;  %v1002_v9 = vrot.slane %v1000_v56, 5  ;;  %v1204_v10 = vsel %vm9550_vm14, %v7989_v58, %v1203_v59 }
 0x148   :  { %v3040_v23 = vcombine.low %v3015_v26, %v3023_v12  ;;  %v2938_v40 = vsel %vm2919_vm0, %v2935_v38, %v2937_v24  ;;  %v994_v26 = vshll.u32 %v843_v47, 16  ;;  %1308 = vst [vmem:[#allocation4 + $0x198] sm:$0xf] %v9691_v7  ;;  %1257 = vst [vmem:[#allocation4 + $0x128] sm:$0xf] %v1204_v10  ;;  %v1024_v21 = vrot.slane %v1022_v11, 5 }
 0x149   :  { %v2982_v32 = vcombine.low %v2957_v19, %v2965_v20  ;;  %v1033_v19 = vshrl.u32 %v9683_v51, 16  ;;  %v7992_v56 = vrot.slane %v9683_v51, 9  ;;  %v9718_v58 = vld [vmem:[#allocation2 + $0x70] sm:$0xf]  ;;  %v9720_v59 = vld [vmem:[#allocation2 + $0x74] sm:$0x1] }
 0x14a   :  { %v9671_v45 = vrot.slane %v3040_v23, %v9398_v53  ;;  %v996_v0 = vrot.slane %v994_v26, 5  ;;  %v1036_v23 = vshll.u32 %v9683_v51, 16  ;;  %v7991_v26 = vrot.slane %v9667_v29, 9  ;;  %v8733_v51 = vld [vmem:[%s12544_s5 + $0x170] ss:$8 sps:$4 sm:$0xff]  }
 0x14b   :  { %v9679_v33 = vrot.slane %v2982_v32, %v9398_v53  ;;  %v2944_v54 = vpop.permute.xlu0 %2943  ;;  %v1030_v32 = vrot.slane %v1028_v13, 5  ;;  %v1035_v38 = vrot.slane %v1033_v19, 4  ;;  %871 = vst [vmem:[#allocation4 + $0x1b0] sm:$0xf] %v9718_v58  ;;  %v8741_v10 = vld [vmem:[%s12544_s5 + $0x164] ss:$8 sps:$4 sm:$0xff]  }
 0x14c   :  { %v997_v48 = vor.u32 %v996_v0, %v993_v1  ;;  %v1038_v47 = vrot.slane %v1036_v23, 5  ;;  %v9736_v1 = vld [vmem:[#allocation2 + $0x78] sm:$0xf]  ;;  %v1056_v13 = vshll.u32 %v9720_v59, 16 }
 0x14d   :  { %v2946_v55 = vpop.permute.xlu1 %2945  ;;  %872 = vst [vmem:[#allocation4 + $0x1d4] sm:$0xf] %v9736_v1  ;;  %v9757_v19 = vld [vmem:[#allocation2 + $0x78] sm:$0xf]  ;;  %v1064_v23 = vshll.u32 %v9736_v1, 16 }
 0x14e   :  { %v2947_v62 = vsel %vm2919_vm0, %v2944_v54, %v2946_v55  ;;  %v3032_v63 = vcombine.low %v2937_v24, %v2946_v55  ;;  %v1042_v24 = vshll.u32 %v9685_v60, 16  ;;  %v998_v35 = vrot.slane %v997_v48, 4  ;;  %1309 = vst [vmem:[#allocation4 + $0x1bc] sm:$0xf] %v9757_v19 }
 0x14f   :  { %v2974_v8 = vcombine.low %v2938_v40, %v2947_v62  ;;  %v1025_v40 = vor.u32 %v1024_v21, %v1021_v61  ;;  %v1039_v55 = vor.u32 %v1038_v47, %v1035_v38  ;;  %v1050_v48 = vshll.u32 %v9718_v58, 16 }
 0x150   :  { %v3039_v12 = vrot.slane %v3032_v63, %v9629_v46  ;;  %v1044_v34 = vrot.slane %v1042_v24, 5  ;;  %v1003_v44 = vsel %vm9568_vm15, %v998_v35, %v1002_v9  ;;  %v1215_v63 = vrot.slane %v9685_v60, 5  ;;  %v8738_v9 = vld [vmem:[%s12544_s5 + $0x64] ss:$8 sps:$4 sm:$0xff]  }
 0x151   :  { %v2981_v20 = vrot.slane %v2974_v8, %v9629_v46  ;;  %v8732_v46 = vld [vmem:[%s12544_s5 + $0x74] ss:$8 sps:$4 sm:$0xff]   ;;  %1126 = vst [vmem:[#allocation4 + $0x124] sm:$0xf] %v1003_v44  ;;  %v1026_v54 = vrot.slane %v1025_v40, 4  ;;  %v1040_v11 = vrot.slane %v1039_v55, 4 }
 0x152   :  { %v3048_v27 = vcombine.low %v3031_v25, %v3039_v12  ;;  %v1211_v25 = vrot.slane %v9673_v49, 5  ;;  %v8730_v49 = vld [vmem:[%s12544_s5 + $0x70] ss:$8 sps:$4 sm:$0xff]   ;;  %v1047_v12 = vshrl.u32 %v9718_v58, 16  ;;  %v1061_v21 = vshrl.u32 %v9736_v1, 16 }
 0x153   :  { %v2990_v28 = vcombine.low %v9661_v37, %v2981_v20  ;;  %v8735_v37 = vld [vmem:[%s12544_s5 + $0x174] ss:$8 sps:$4 sm:$0xff]   ;;  %v1031_v60 = vsel %vm9568_vm15, %v1026_v54, %v1030_v32  ;;  %v1045_v20 = vsel %vm9568_vm15, %v1040_v11, %v1044_v34  ;;  %v1052_v32 = vrot.slane %v1050_v48, 5  ;;  %v8736_v40 = vld [vmem:[%s12544_s5 + $0x60] ss:$8 sps:$4 sm:$0xff]  }
 0x154   :  { %v3055_v43 = vrot.slane %v3048_v27, %v9398_v53  ;;  %v1212_v62 = vsel %vm9550_vm14, %v7991_v26, %v1211_v25  ;;  %1128 = vst [vmem:[#allocation4 + $0x16c] sm:$0xf] %v1031_v60  ;;  %v9764_v27 = vld [vmem:[#allocation2 + $0x80] sm:$0xf]  ;;  %1129 = vst [vmem:[#allocation4 + $0x190] sm:$0xf] %v1045_v20 }
 0x155   :  { %v2997_v30 = vrot.slane %v2990_v28, %v9398_v53  ;;  %v3066_v53 = vld [vmem:[%s12541_s2] sm:$0xff]  ;;  %1259 = vst [vmem:[#allocation4 + $0x170] sm:$0xf] %v1212_v62  ;;  %v1049_v35 = vrot.slane %v1047_v12, 4  ;;  %v7993_v38 = vrot.slane %v9718_v58, 9  ;;  %v1317_v28 = vshll.u32 %v9554_v15, 16 }
 0x156   :  { %v3056_v61 = vcombine.low %v9671_v45, %v3055_v43  ;;  %v3057_v29 = vcombine.high %v9671_v45, %v3055_v43  ;;  %v9738_v45 = vld [vmem:[#allocation2 + $0x7c] sm:$0x1]  ;;  %1310 = vst [vmem:[#allocation4 + $0x1e0] sm:$0xf] %v9764_v27  ;;  %v1063_v47 = vrot.slane %v1061_v21, 4  ;;  %v1066_v34 = vrot.slane %v1064_v23, 5 }
 0x157   :  { %v2998_v0 = vcombine.low %v9679_v33, %v2997_v30  ;;  %v2999_v8 = vcombine.high %v9679_v33, %v2997_v30  ;;  %v1216_v33 = vsel %vm9550_vm14, %v7992_v56, %v1215_v63  ;;  %v1070_v24 = vshll.u32 %v9738_v45, 16  ;;  %v8739_v44 = vld [vmem:[%s12544_s5 + $0x160] ss:$8 sps:$4 sm:$0xff]   ;;  %v8744_v55 = vld [vmem:[%s12544_s5 + $0x54] ss:$8 sps:$4 sm:$0xff]  }
 0x158   :  { %3136 = vmatprep.subr.mxu1 %v3056_v61  ;;  %3255 = vmatprep.subr.mxu0 %v3057_v29  ;;  %1260 = vst [vmem:[#allocation4 + $0x194] sm:$0xf] %v1216_v33  ;;  %v1219_v43 = vrot.slane %v9720_v59, 5  ;;  %v3067_v26 = vld [vmem:[%s12541_s2 + $0x8] sm:$0xff]  ;;  %v1053_v25 = vor.u32 %v1052_v32, %v1049_v35  ;;  %v1058_v30 = vrot.slane %v1056_v13, 5  ;;  %v1223_v54 = vrot.slane %v9738_v45, 5 }
 0x159   :  { %3137 = vmatpush1.msra.mxu1 %v2998_v0  ;;  %3256 = vmatpush1.msra.mxu0 %v2999_v8  ;;  %v8747_v56 = vld [vmem:[%s12544_s5 + $0x154] ss:$8 sps:$4 sm:$0xff]   ;;  %v1067_v58 = vor.u32 %v1066_v34, %v1063_v47  ;;  %v1072_v59 = vrot.slane %v1070_v24, 5  ;;  %v1331_v29 = vshll.u32 %v9556_v16, 16  ;;  %v8750_v63 = vld [vmem:[%s12544_s5 + $0x44] ss:$8 sps:$4 sm:$0xff]  }
 0x15a   :  { %8052 = vmatmul.mubr.msk.f32.vlgmr.msra.gmra.mxu1 %vm3074_vm1, %v3066_v53  ;;  %4426 = vmatprep.subr.bf16.mxu1 %v8732_v46  ;;  %v1328_v46 = vshrl.u32 %v9556_v16, 16  ;;  %v1220_v61 = vsel %vm9550_vm14, %v7993_v38, %v1219_v43  ;;  %v855_v0 = vld [vmem:[#allocation2 + $0x80] sm:$0xf]  ;;  %v3068_v8 = vld [vmem:[%s12541_s2 + $0x10] sm:$0xff]  ;;  %v9819_v60 = vrot.slane %v1314_v50, 4  ;;  %v9821_v11 = vrot.slane %v1317_v28, 5 }
 0x15b   :  { %4539 = vmatprep.subr.bf16.mxu0 %v8735_v37  ;;  %8062 = vmatmul.mubr.msk.f32.vlgmr.msra.gmra.mxu0 %vm3074_vm1, %v3066_v53  ;;  %v7994_v37 = vrot.slane %v9736_v1, 9  ;;  %v8742_v53 = vld [vmem:[%s12544_s5 + $0x50] ss:$8 sps:$4 sm:$0xff]   ;;  %1261 = vst [vmem:[#allocation4 + $0x1b8] sm:$0xf] %v1220_v61  ;;  %v1068_v45 = vrot.slane %v1067_v58, 4 }
 0x15c   :  { %4427 = vmatpush1.bf16.msra.mxu1 %v8730_v49  ;;  %4540 = vmatpush1.bf16.msra.mxu0 %v8733_v51  ;;  %v8745_v49 = vld [vmem:[%s12544_s5 + $0x150] ss:$8 sps:$4 sm:$0xff]   ;;  %v1054_v51 = vrot.slane %v1053_v25, 4  ;;  %v8753_v1 = vld [vmem:[%s12544_s5 + $0x144] ss:$8 sps:$4 sm:$0xff]   ;;  %v1078_v48 = vshll.u32 %v855_v0, 16 }
 0x15d   :  { %4428 = vmatprep.subr.bf16.mxu1 %v8738_v9  ;;  %4541 = vmatprep.subr.bf16.mxu0 %v8741_v10  ;;  %v1224_v62 = vsel %vm9550_vm14, %v7994_v37, %v1223_v54  ;;  %873 = vst [vmem:[#allocation4 + $0x1f8] sm:$0xf] %v855_v0  ;;  %v1075_v10 = vshrl.u32 %v855_v0, 16  ;;  %v1073_v33 = vsel %vm9568_vm15, %v1068_v45, %v1072_v59  ;;  %v856_v12 = vld [vmem:[#allocation2 + $0x84] sm:$0x1]  ;;  %v9825_v13 = vrot.slane %v1328_v46, 4 }
 0x15e   :  { %3176 = vmatprep.mubr.f32.mxu1 %v9160_v2  ;;  %3295 = vmatprep.mubr.f32.mxu0 %v9160_v2  ;;  %1262 = vst [vmem:[#allocation4 + $0x1dc] sm:$0xf] %v1224_v62  ;;  %v1059_v9 = vsel %vm9568_vm15, %v1054_v51, %v1058_v30  ;;  %v9827_v20 = vrot.slane %v1331_v29, 5  ;;  %v8748_v21 = vld [vmem:[%s12544_s5 + $0x40] ss:$8 sps:$4 sm:$0xff]   ;;  %v1084_v32 = vshll.u32 %v856_v12, 16  ;;  %v1320_v29 = vor.u32 %v9821_v11, %v9819_v60 }
 0x15f   :  { %8053 = vmatmul.mubr.msk.f32.gmra.mxu1 %vm3074_vm1, %v3067_v26  ;;  %8063 = vmatmul.mubr.msk.f32.gmra.mxu0 %vm3074_vm1, %v3067_v26  ;;  %1130 = vst [vmem:[#allocation4 + $0x1b4] sm:$0xf] %v1059_v9  ;;  %v8751_v50 = vld [vmem:[%s12544_s5 + $0x140] ss:$8 sps:$4 sm:$0xff]   ;;  %1131 = vst [vmem:[#allocation4 + $0x1d8] sm:$0xf] %v1073_v33 }
 0x160   :  { %4429 = vmatpush1.bf16.msra.mxu1 %v8736_v40  ;;  %4542 = vmatpush1.bf16.msra.mxu0 %v8739_v44  ;;  %v857_v23 = vld [vmem:[#allocation2 + $0x88] sm:$0xf]  ;;  %v858_v24 = vld [vmem:[#allocation2 + $0x8c] sm:$0x1]  ;;  %v1077_v35 = vrot.slane %v1075_v10, 4  ;;  %v1080_v28 = vrot.slane %v1078_v48, 5 }
 0x161   :  { %4430 = vmatprep.subr.bf16.mxu1 %v8744_v55  ;;  %4543 = vmatprep.subr.bf16.mxu0 %v8747_v56  ;;  %v8756_v38 = vld [vmem:[%s12544_s5 + $0x34] ss:$8 sps:$4 sm:$0xff]   ;;  %874 = vst [vmem:[#allocation4 + $0x21c] sm:$0xf] %v857_v23  ;;  %v1089_v40 = vshrl.u32 %v857_v23, 16  ;;  %v1092_v47 = vshll.u32 %v857_v23, 16 }
 0x162   :  { %3182 = vmatprep.mubr.f32.mxu1 %v9160_v2  ;;  %3301 = vmatprep.mubr.f32.mxu0 %v9160_v2  ;;  %v1098_v34 = vshll.u32 %v858_v24, 16  ;;  %v9842_v43 = vld [vmem:[#allocation2 + $0x88] sm:$0xf]  ;;  %v3069_v46 = vld [vmem:[%s12541_s2 + $0x18] sm:$0xff]  ;;  %v7995_v44 = vrot.slane %v855_v0, 9  ;;  %v1227_v26 = vrot.slane %v856_v12, 5  ;;  %v1081_v54 = vor.u32 %v1080_v28, %v1077_v35 }
 0x163   :  { %8054 = vmatmul.mubr.msk.f32.gmra.mxu1 %vm3074_vm1, %v3068_v8  ;;  %8064 = vmatmul.mubr.msk.f32.gmra.mxu0 %vm3074_vm1, %v3068_v8  ;;  %v7996_v25 = vrot.slane %v857_v23, 9  ;;  %v9847_v30 = vld [vmem:[#allocation2 + $0x90] sm:$0xf]  ;;  %1311 = vst [vmem:[#allocation4 + $0x204] sm:$0xf] %v9842_v43  ;;  %v1086_v55 = vrot.slane %v1084_v32, 5 }
 0x164   :  { %4431 = vmatpush1.bf16.msra.mxu1 %v8742_v53  ;;  %4544 = vmatpush1.bf16.msra.mxu0 %v8745_v49  ;;  %v8759_v37 = vld [vmem:[%s12544_s5 + $0x134] ss:$8 sps:$4 sm:$0xff]   ;;  %v1091_v56 = vrot.slane %v1089_v40, 4  ;;  %v1094_v58 = vrot.slane %v1092_v47, 5  ;;  %1312 = vst [vmem:[#allocation4 + $0x228] sm:$0xf] %v9847_v30  ;;  %v1228_v59 = vsel %vm9550_vm14, %v7995_v44, %v1227_v26  ;;  %v1334_v53 = vor.u32 %v9827_v20, %v9825_v13 }
 0x165   :  { %4432 = vmatprep.subr.bf16.mxu1 %v8750_v63  ;;  %4545 = vmatprep.subr.bf16.mxu0 %v8753_v1  ;;  %v1231_v61 = vrot.slane %v858_v24, 5  ;;  %v1082_v49 = vrot.slane %v1081_v54, 4  ;;  %v1100_v62 = vrot.slane %v1098_v34, 5  ;;  %1263 = vst [vmem:[#allocation4 + $0x200] sm:$0xf] %v1228_v59  ;;  %v3070_v45 = vld [vmem:[%s12541_s2 + $0x20] sm:$0xff] }
 0x166   :  { %3188 = vmatprep.mubr.f32.mxu1 %v9160_v2  ;;  %3307 = vmatprep.mubr.f32.mxu0 %v9160_v2  ;;  %v1095_v51 = vor.u32 %v1094_v58, %v1091_v56  ;;  %v8754_v63 = vld [vmem:[%s12544_s5 + $0x30] ss:$8 sps:$4 sm:$0xff]   ;;  %v8762_v8 = vld [vmem:[%s12544_s5 + $0x24] ss:$8 sps:$4 sm:$0xff]   ;;  %v7997_v11 = vrot.slane %v9554_v15, 9  ;;  %v1321_v13 = vrot.slane %v1320_v29, 4 }
 0x167   :  { %8055 = vmatmul.mubr.msk.f32.gmra.mxu1 %vm3074_vm1, %v3069_v46  ;;  %8065 = vmatmul.mubr.msk.f32.gmra.mxu0 %vm3074_vm1, %v3069_v46  ;;  %v8757_v1 = vld [vmem:[%s12544_s5 + $0x130] ss:$8 sps:$4 sm:$0xff]   ;;  %v1232_v0 = vsel %vm9550_vm14, %v7996_v25, %v1231_v61  ;;  %v8765_v9 = vld [vmem:[%s12544_s5 + $0x124] ss:$8 sps:$4 sm:$0xff]   ;;  %v1087_v10 = vsel %vm9568_vm15, %v1082_v49, %v1086_v55  ;;  %v8760_v33 = vld [vmem:[%s12544_s5 + $0x20] ss:$8 sps:$4 sm:$0xff]  }
 0x168   :  { %4433 = vmatpush1.bf16.msra.mxu1 %v8748_v21  ;;  %4546 = vmatpush1.bf16.msra.mxu0 %v8751_v50  ;;  %v1096_v60 = vrot.slane %v1095_v51, 4  ;;  %1264 = vst [vmem:[#allocation4 + $0x224] sm:$0xf] %v1232_v0  ;;  %v8763_v12 = vld [vmem:[%s12544_s5 + $0x120] ss:$8 sps:$4 sm:$0xff]   ;;  %v1335_v20 = vrot.slane %v1334_v53, 4 }
 0x169   :  { %4434 = vmatprep.subr.bf16.mxu1 %v8756_v38  ;;  %4547 = vmatprep.subr.bf16.mxu0 %v8759_v37  ;;  %1132 = vst [vmem:[#allocation4 + $0x1fc] sm:$0xf] %v1087_v10  ;;  %v1266_v48 = vld [vmem:[#allocation2 + $0xc] sm:$0x1]  ;;  %v8768_v15 = vld [vmem:[%s12544_s5 + $0x14] ss:$8 sps:$4 sm:$0xff]  }
 0x16a   :  { %3194 = vmatprep.mubr.f32.mxu1 %v9160_v2  ;;  %3313 = vmatprep.mubr.f32.mxu0 %v9160_v2  ;;  %v3071_v21 = vld [vmem:[%s12541_s2 + $0x28] sm:$0xff]  ;;  %v1101_v50 = vsel %vm9568_vm15, %v1096_v60, %v1100_v62  ;;  %v1268_v23 = vld [vmem:[#allocation2 + $0x14] sm:$0x1]  ;;  %v1323_v24 = vshll.u32 %v1266_v48, 16  ;;  %v1603_v35 = vrot.slane %v1266_v48, 5  ;;  %v7998_v32 = vrot.slane %v9556_v16, 9 }
 0x16b   :  { %8056 = vmatmul.mubr.msk.f32.gmra.mxu1 %vm3074_vm1, %v3070_v45  ;;  %8066 = vmatmul.mubr.msk.f32.gmra.mxu0 %vm3074_vm1, %v3070_v45  ;;  %1133 = vst [vmem:[#allocation4 + $0x220] sm:$0xf] %v1101_v50  ;;  %v1337_v38 = vshll.u32 %v1268_v23, 16  ;;  %v1607_v28 = vrot.slane %v1268_v23, 5  ;;  %v9903_v40 = vld [vmem:[#allocation2 + $0x10] sm:$0xf] }
 0x16c   :  { %4435 = vmatpush1.bf16.msra.mxu1 %v8754_v63  ;;  %4548 = vmatpush1.bf16.msra.mxu0 %v8757_v1  ;;  %v9905_v47 = vld [vmem:[#allocation2 + $0x14] sm:$0x1]  ;;  %v1325_v46 = vrot.slane %v1323_v24, 5  ;;  %v1604_v44 = vsel %vm9550_vm14, %v7997_v11, %v1603_v35  ;;  %v9912_v16 = vld [vmem:[#allocation2 + $0x18] sm:$0xf]  ;;  %v1747_v26 = vshrl.u32 %v9903_v40, 16 }
 0x16d   :  { %4436 = vmatprep.subr.bf16.mxu1 %v8762_v8  ;;  %4549 = vmatprep.subr.bf16.mxu0 %v8765_v9  ;;  %v8771_v34 = vld [vmem:[%s12544_s5 + $0x114] ss:$8 sps:$4 sm:$0xff]   ;;  %1730 = vst [vmem:[#allocation4 + $0x18] sm:$0xf] %v9903_v40  ;;  %v8766_v25 = vld [vmem:[%s12544_s5 + $0x10] ss:$8 sps:$4 sm:$0xff]   ;;  %v1608_v54 = vsel %vm9550_vm14, %v7998_v32, %v1607_v28 }
 0x16e   :  { %3200 = vmatprep.mubr.f32.mxu1 %v9160_v2  ;;  %3319 = vmatprep.mubr.f32.mxu0 %v9160_v2  ;;  %v1339_v37 = vrot.slane %v1337_v38, 5  ;;  %1681 = vst [vmem:[#allocation4 + $0x14] sm:$0xf] %v1604_v44  ;;  %v1701_v55 = vld [vmem:[#allocation2 + $0x1c] sm:$0x1]  ;;  %v1750_v56 = vshll.u32 %v9903_v40, 16  ;;  %v1326_v61 = vsel %vm9568_vm15, %v1321_v13, %v1325_v46 }
 0x16f   :  { %1731 = vst [vmem:[#allocation4 + $0x3c] sm:$0xf] %v9912_v16  ;;  %v1756_v58 = vshll.u32 %v9905_v47, 16  ;;  %v8769_v59 = vld [vmem:[%s12544_s5 + $0x110] ss:$8 sps:$4 sm:$0xff]   ;;  %8057 = vmatmul.mubr.msk.f32.gmra.mxu1 %vm3074_vm1, %v3071_v21  ;;  %8067 = vmatmul.mubr.msk.f32.gmra.mxu0 %vm3074_vm1, %v3071_v21  ;;  %v1749_v29 = vrot.slane %v1747_v26, 4 }
 0x170   :  { %1682 = vst [vmem:[#allocation4 + $0x38] sm:$0xf] %v1608_v54  ;;  %v1761_v53 = vshrl.u32 %v9912_v16, 16  ;;  %v1764_v49 = vshll.u32 %v9912_v16, 16  ;;  %4437 = vmatpush1.bf16.msra.mxu1 %v8760_v33  ;;  %4550 = vmatpush1.bf16.msra.mxu0 %v8763_v12  ;;  %v8774_v51 = vld [vmem:[%s12544_s5 + $0x4] ss:$8 sps:$4 sm:$0xff]   ;;  %v1340_v63 = vsel %vm9568_vm15, %v1335_v20, %v1339_v37 }
 0x171   :  { %v3072_v62 = vld [vmem:[%s12541_s2 + $0x30] sm:$0xff]  ;;  %1553 = vst [vmem:[#allocation4 + $0x10] sm:$0xf] %v1326_v61  ;;  %v1752_v1 = vrot.slane %v1750_v56, 5  ;;  %4438 = vmatprep.subr.bf16.mxu1 %v8768_v15  ;;  %4551 = vmatprep.subr.bf16.mxu0 %v8771_v34  ;;  %v8777_v45 = vld [vmem:[%s12544_s5 + $0x104] ss:$8 sps:$4 sm:$0xff]  }
 0x172   :  { %1554 = vst [vmem:[#allocation4 + $0x34] sm:$0xf] %v1340_v63  ;;  %v1758_v0 = vrot.slane %v1756_v58, 5  ;;  %v1763_v8 = vrot.slane %v1761_v53, 4  ;;  %v1766_v9 = vrot.slane %v1764_v49, 5  ;;  %v1770_v10 = vshll.u32 %v1701_v55, 16  ;;  %3206 = vmatprep.mubr.f32.mxu1 %v9160_v2  ;;  %3325 = vmatprep.mubr.f32.mxu0 %v9160_v2 }
 0x173   :  { %v8772_v60 = vld [vmem:[%s12544_s5] ss:$8 sps:$4 sm:$0xff]   ;;  %v1753_v33 = vor.u32 %v1752_v1, %v1749_v29  ;;  %v8013_v12 = vrot.slane %v9903_v40, 9  ;;  %v2036_v48 = vrot.slane %v9905_v47, 5  ;;  %v8014_v13 = vrot.slane %v9912_v16, 9  ;;  %8058 = vmatmul.mubr.msk.f32.gmra.mxu1 %vm3074_vm1, %v3072_v62  ;;  %8068 = vmatmul.mubr.msk.f32.gmra.mxu0 %vm3074_vm1, %v3072_v62  ;;  %v3073_v35 = vld [vmem:[%s12541_s2 + $0x38] sm:$0xff] }
 0x174   :  { %v8775_v11 = vld [vmem:[%s12544_s5 + $0x100] ss:$8 sps:$4 sm:$0xff]   ;;  %v8780_v20 = vld [vmem:[%s12544_s5 + $0xf4] ss:$8 sps:$4 sm:$0xff]   ;;  %v1767_v21 = vor.u32 %v1766_v9, %v1763_v8  ;;  %v1772_v50 = vrot.slane %v1770_v10, 5  ;;  %v2040_v23 = vrot.slane %v1701_v55, 5  ;;  %4439 = vmatpush1.bf16.msra.mxu1 %v8766_v25  ;;  %4552 = vmatpush1.bf16.msra.mxu0 %v8769_v59 }
 0x175   :  { %v8783_v15 = vld [vmem:[%s12544_s5 + $0x1f4] ss:$8 sps:$4 sm:$0xff]   ;;  %v1342_v24 = vshrl.u32 %v9590_v52, 16  ;;  %v8813_v32 = vld [vmem:[#allocation4 + $0xc] ss:$36 sps:$4 sm:$0xff]   ;;  %v1754_v38 = vrot.slane %v1753_v33, 4  ;;  %v2037_v40 = vsel %vm9550_vm14, %v8013_v12, %v2036_v48  ;;  %4440 = vmatprep.subr.bf16.mxu1 %v8774_v51  ;;  %4553 = vmatprep.subr.bf16.mxu0 %v8777_v45 }
 0x176   :  { %v1345_v28 = vshll.u32 %v9590_v52, 16  ;;  %v8810_v47 = vld [vmem:[#allocation4 + $0x4] ss:$36 sps:$4 sm:$0xff]   ;;  %v1768_v34 = vrot.slane %v1767_v21, 4  ;;  %v1270_v46 = vld [vmem:[#allocation2 + $0x1c] sm:$0x1]  ;;  %v2041_v16 = vsel %vm9550_vm14, %v8014_v13, %v2040_v23  ;;  %3212 = vmatprep.mubr.f32.mxu1 %v9160_v2  ;;  %3331 = vmatprep.mubr.f32.mxu0 %v9160_v2 }
 0x177   :  { %v1344_v44 = vrot.slane %v1342_v24, 4  ;;  %2114 = vst [vmem:[#allocation4 + $0x20] sm:$0xf] %v2037_v40  ;;  %v8778_v26 = vld [vmem:[%s12544_s5 + $0xf0] ss:$8 sps:$4 sm:$0xff]   ;;  %v1759_v37 = vsel %vm9568_vm15, %v1754_v38, %v1758_v0  ;;  %v1351_v56 = vshll.u32 %v1270_v46, 16  ;;  %8059 = vmatmul.mubr.msk.f32.gmra.mxu1 %vm3074_vm1, %v3073_v35  ;;  %8069 = vmatmul.mubr.msk.f32.gmra.mxu0 %vm3074_vm1, %v3073_v35 }
 0x178   :  { %v8781_v25 = vld [vmem:[%s12544_s5 + $0x1f0] ss:$8 sps:$4 sm:$0xff]   ;;  %v1272_v54 = vld [vmem:[#allocation2 + $0x24] sm:$0x1]  ;;  %v1347_v55 = vrot.slane %v1345_v28, 5  ;;  %v1356_v58 = vshrl.u32 %v9592_v57, 16  ;;  %v1773_v59 = vsel %vm9568_vm15, %v1768_v34, %v1772_v50  ;;  %4441 = vmatpush1.bf16.msra.mxu1 %v8772_v60  ;;  %4554 = vmatpush1.bf16.msra.mxu0 %v8775_v11 }
 0x179   :  { %2115 = vst [vmem:[#allocation4 + $0x44] sm:$0xf] %v2041_v16  ;;  %1986 = vst [vmem:[#allocation4 + $0x1c] sm:$0xf] %v1759_v37  ;;  %v1359_v61 = vshll.u32 %v9592_v57, 16  ;;  %v1365_v2 = vshll.u32 %v1272_v54, 16  ;;  %4442 = vmatprep.subr.bf16.mxu1 %v8780_v20  ;;  %4555 = vmatprep.subr.bf16.mxu0 %v8783_v15 }
 0x17a   :  { %v7999_v29 = vrot.slane %v9590_v52, 9  ;;  %v9991_v53 = vld [vmem:[#allocation2 + $0x20] sm:$0xf]  ;;  %v8786_v49 = vld [vmem:[%s12544_s5 + $0xe4] ss:$8 sps:$4 sm:$0xff]   ;;  %v1348_v62 = vor.u32 %v1347_v55, %v1344_v44  ;;  %v1353_v63 = vrot.slane %v1351_v56, 5  ;;  %4458 = vmatprep.mubr.bf16.mxu1 %v8810_v47  ;;  %4571 = vmatprep.mubr.bf16.mxu0 %v8813_v32 }
 0x17b   :  { %v8789_v51 = vld [vmem:[%s12544_s5 + $0x1e4] ss:$8 sps:$4 sm:$0xff]   ;;  %1987 = vst [vmem:[#allocation4 + $0x40] sm:$0xf] %v1773_v59  ;;  %1732 = vst [vmem:[#allocation4 + $0x60] sm:$0xf] %v9991_v53 }
 0x17c   :  { %v1358_v52 = vrot.slane %v1356_v58, 4  ;;  %v1361_v1 = vrot.slane %v1359_v61, 5  ;;  %v1367_v45 = vrot.slane %v1365_v2, 5  ;;  %v1611_v0 = vrot.slane %v1270_v46, 5  ;;  %v1703_v8 = vld [vmem:[#allocation2 + $0x24] sm:$0x1]  ;;  %4443 = vmatpush2.bf16.msra.mxu1 %v8778_v26  ;;  %4556 = vmatpush2.bf16.msra.mxu0 %v8781_v25 }
 0x17d   :  { %v8784_v9 = vld [vmem:[%s12544_s5 + $0xe0] ss:$8 sps:$4 sm:$0xff]   ;;  %v1349_v10 = vrot.slane %v1348_v62, 4  ;;  %v8000_v60 = vrot.slane %v9592_v57, 9  ;;  %v1615_v11 = vrot.slane %v1272_v54, 5  ;;  %v1775_v12 = vshrl.u32 %v9991_v53, 16  ;;  %4444 = vmatprep.subr.bf16.mxu1 %v8786_v49  ;;  %4557 = vmatprep.subr.bf16.mxu0 %v8789_v51 }
 0x17e   :  { %v10004_v33 = vld [vmem:[#allocation2 + $0x28] sm:$0xf]  ;;  %v1362_v13 = vor.u32 %v1361_v1, %v1358_v52  ;;  %v1612_v20 = vsel %vm9550_vm14, %v7999_v29, %v1611_v0  ;;  %v1705_v15 = vld [vmem:[#allocation2 + $0x2c] sm:$0x1]  ;;  %v1778_v21 = vshll.u32 %v9991_v53, 16  ;;  %v1784_v50 = vshll.u32 %v1703_v8, 16 }
 0x17f   :  { %v8787_v48 = vld [vmem:[%s12544_s5 + $0x1e0] ss:$8 sps:$4 sm:$0xff]   ;;  %1733 = vst [vmem:[#allocation4 + $0x84] sm:$0xf] %v10004_v33  ;;  %v8792_v57 = vld [vmem:[%s12544_s5 + $0xd4] ss:$8 sps:$4 sm:$0xff]   ;;  %v1354_v24 = vsel %vm9568_vm15, %v1349_v10, %v1353_v63  ;;  %v1616_v35 = vsel %vm9550_vm14, %v8000_v60, %v1615_v11 }
 0x180   :  { %v8795_v23 = vld [vmem:[%s12544_s5 + $0x1d4] ss:$8 sps:$4 sm:$0xff]   ;;  %1683 = vst [vmem:[#allocation4 + $0x5c] sm:$0xf] %v1612_v20  ;;  %v1777_v32 = vrot.slane %v1775_v12, 4  ;;  %v1789_v38 = vshrl.u32 %v10004_v33, 16  ;;  %4445 = vmatpush2.bf16.msra.mxu1 %v8784_v9  ;;  %4558 = vmatpush2.bf16.msra.mxu0 %v8787_v48 }
 0x181   :  { %v1363_v28 = vrot.slane %v1362_v13, 4  ;;  %1555 = vst [vmem:[#allocation4 + $0x58] sm:$0xf] %v1354_v24  ;;  %1684 = vst [vmem:[#allocation4 + $0x80] sm:$0xf] %v1616_v35  ;;  %v1780_v40 = vrot.slane %v1778_v21, 5  ;;  %4446 = vmatprep.subr.bf16.mxu1 %v8792_v57  ;;  %4559 = vmatprep.subr.bf16.mxu0 %v8795_v23 }
 0x182   :  { %v1792_v47 = vshll.u32 %v10004_v33, 16  ;;  %v10026_v34 = vld [vmem:[#allocation2 + $0x2c] sm:$0x1]  ;;  %v8790_v46 = vld [vmem:[%s12544_s5 + $0xd0] ss:$8 sps:$4 sm:$0xff]   ;;  %v1791_v16 = vrot.slane %v1789_v38, 4 }
 0x183   :  { %v8793_v44 = vld [vmem:[%s12544_s5 + $0x1d0] ss:$8 sps:$4 sm:$0xff]   ;;  %v1798_v26 = vshll.u32 %v1705_v15, 16  ;;  %v1370_v25 = vshrl.u32 %v9604_v17, 16  ;;  %v1373_v37 = vshll.u32 %v9604_v17, 16  ;;  %v1368_v55 = vsel %vm9568_vm15, %v1363_v28, %v1367_v45 }
 0x184   :  { %v8798_v54 = vld [vmem:[%s12544_s5 + $0xc4] ss:$8 sps:$4 sm:$0xff]   ;;  %v1781_v56 = vor.u32 %v1780_v40, %v1777_v32  ;;  %v1786_v58 = vrot.slane %v1784_v50, 5  ;;  %v1794_v59 = vrot.slane %v1792_v47, 5  ;;  %v1276_v61 = vld [vmem:[#allocation2 + $0x34] sm:$0x1]  ;;  %4447 = vmatpush2.bf16.msra.mxu1 %v8790_v46  ;;  %4560 = vmatpush2.bf16.msra.mxu0 %v8793_v44 }
 0x185   :  { %1556 = vst [vmem:[#allocation4 + $0x7c] sm:$0xf] %v1368_v55  ;;  %v1800_v2 = vrot.slane %v1798_v26, 5  ;;  %v1372_v29 = vrot.slane %v1370_v25, 4  ;;  %v1375_v49 = vrot.slane %v1373_v37, 5  ;;  %v1379_v51 = vshll.u32 %v10026_v34, 16  ;;  %4448 = vmatprep.subr.bf16.mxu1 %v8798_v54 }
 0x186   :  { %v10042_v62 = vld [vmem:[#allocation2 + $0x30] sm:$0xf]  ;;  %v8801_v63 = vld [vmem:[%s12544_s5 + $0x1c4] ss:$8 sps:$4 sm:$0xff]   ;;  %v1782_v52 = vrot.slane %v1781_v56, 4  ;;  %v1795_v1 = vor.u32 %v1794_v59, %v1791_v16  ;;  %v1384_v45 = vshrl.u32 %v9606_v22, 16 }
 0x187   :  { %v1387_v0 = vshll.u32 %v9606_v22, 16  ;;  %1734 = vst [vmem:[#allocation4 + $0xa8] sm:$0xf] %v10042_v62  ;;  %v8796_v8 = vld [vmem:[%s12544_s5 + $0xc0] ss:$8 sps:$4 sm:$0xff]   ;;  %v1376_v9 = vor.u32 %v1375_v49, %v1372_v29  ;;  %v1381_v10 = vrot.slane %v1379_v51, 5  ;;  %4561 = vmatprep.subr.bf16.mxu0 %v8801_v63 }
 0x188   :  { %v1393_v60 = vshll.u32 %v1276_v61, 16  ;;  %v8001_v11 = vrot.slane %v9604_v17, 9  ;;  %v10054_v12 = vld [vmem:[#allocation2 + $0x38] sm:$0xf]  ;;  %v1787_v48 = vsel %vm9568_vm15, %v1782_v52, %v1786_v58  ;;  %v1796_v13 = vrot.slane %v1795_v1, 4  ;;  %4449 = vmatpush2.bf16.msra.mxu1 %v8796_v8 }
 0x189   :  { %v1386_v20 = vrot.slane %v1384_v45, 4  ;;  %v1389_v15 = vrot.slane %v1387_v0, 5  ;;  %v1707_v21 = vld [vmem:[#allocation2 + $0x34] sm:$0x1]  ;;  %1735 = vst [vmem:[#allocation4 + $0xcc] sm:$0xf] %v10054_v12 }
 0x18a   :  { %v8799_v50 = vld [vmem:[%s12544_s5 + $0x1c0] ss:$8 sps:$4 sm:$0xff]   ;;  %1988 = vst [vmem:[#allocation4 + $0x64] sm:$0xf] %v1787_v48  ;;  %v1377_v57 = vrot.slane %v1376_v9, 4  ;;  %v1395_v17 = vrot.slane %v1393_v60, 5  ;;  %v1801_v38 = vsel %vm9568_vm15, %v1796_v13, %v1800_v2 }
 0x18b   :  { %v1619_v23 = vrot.slane %v10026_v34, 5  ;;  %v8002_v24 = vrot.slane %v9606_v22, 9  ;;  %v8804_v35 = vld [vmem:[%s12544_s5 + $0xb4] ss:$8 sps:$4 sm:$0xff]   ;;  %v1390_v28 = vor.u32 %v1389_v15, %v1386_v20  ;;  %v1623_v40 = vrot.slane %v1276_v61, 5  ;;  %4562 = vmatpush2.bf16.msra.mxu0 %v8799_v50 }
 0x18c   :  { %v8807_v32 = vld [vmem:[%s12544_s5 + $0x1b4] ss:$8 sps:$4 sm:$0xff]   ;;  %v1803_v47 = vshrl.u32 %v10042_v62, 16  ;;  %v8802_v22 = vld [vmem:[%s12544_s5 + $0xb0] ss:$8 sps:$4 sm:$0xff]   ;;  %v1382_v46 = vsel %vm9568_vm15, %v1377_v57, %v1381_v10  ;;  %v1806_v26 = vshll.u32 %v10042_v62, 16  ;;  %4450 = vmatprep.subr.bf16.mxu1 %v8804_v35 }
 0x18d   :  { %v8805_v34 = vld [vmem:[%s12544_s5 + $0x1b0] ss:$8 sps:$4 sm:$0xff]   ;;  %1989 = vst [vmem:[#allocation4 + $0x88] sm:$0xf] %v1801_v38  ;;  %v1620_v44 = vsel %vm9550_vm14, %v8001_v11, %v1619_v23  ;;  %v1709_v16 = vld [vmem:[#allocation2 + $0x3c] sm:$0x1]  ;;  %v1624_v54 = vsel %vm9550_vm14, %v8002_v24, %v1623_v40  ;;  %4563 = vmatprep.subr.bf16.mxu0 %v8807_v32  ;;  %4451 = vmatpush2.bf16.msra.mxu1 %v8802_v22 }
 0x18e   :  { %v1812_v25 = vshll.u32 %v1707_v21, 16  ;;  %v1391_v37 = vrot.slane %v1390_v28, 4  ;;  %1557 = vst [vmem:[#allocation4 + $0xa0] sm:$0xf] %v1382_v46  ;;  %1685 = vst [vmem:[#allocation4 + $0xa4] sm:$0xf] %v1620_v44 }
 0x18f   :  { %v1805_v55 = vrot.slane %v1803_v47, 4  ;;  %v1817_v56 = vshrl.u32 %v10054_v12, 16  ;;  %v10087_v58 = vld [vmem:[#allocation2 + $0x3c] sm:$0x1]  ;;  %v8816_v59 = vld [vmem:[%s12544_s5 + $0xa4] ss:$8 sps:$4 sm:$0xff]   ;;  %4564 = vmatpush2.bf16.msra.mxu0 %v8805_v34 }
 0x190   :  { %1686 = vst [vmem:[#allocation4 + $0xc8] sm:$0xf] %v1624_v54  ;;  %v1808_v61 = vrot.slane %v1806_v26, 5  ;;  %v1814_v2 = vrot.slane %v1812_v25, 5  ;;  %v1820_v29 = vshll.u32 %v10054_v12, 16  ;;  %v1396_v51 = vsel %vm9568_vm15, %v1391_v37, %v1395_v17  ;;  %4452 = vmatprep.subr.bf16.mxu1 %v8816_v59 }
 0x191   :  { %v8819_v49 = vld [vmem:[%s12544_s5 + $0x1a4] ss:$8 sps:$4 sm:$0xff]   ;;  %v1819_v63 = vrot.slane %v1817_v56, 4  ;;  %v1826_v52 = vshll.u32 %v1709_v16, 16  ;;  %v1398_v1 = vshrl.u32 %v9618_v6, 16  ;;  %v1401_v10 = vshll.u32 %v9618_v6, 16 }
 0x192   :  { %v8814_v45 = vld [vmem:[%s12544_s5 + $0xa0] ss:$8 sps:$4 sm:$0xff]   ;;  %1558 = vst [vmem:[#allocation4 + $0xc4] sm:$0xf] %v1396_v51  ;;  %v1809_v8 = vor.u32 %v1808_v61, %v1805_v55  ;;  %v1822_v9 = vrot.slane %v1820_v29, 5  ;;  %v1407_v60 = vshll.u32 %v10087_v58, 16  ;;  %4565 = vmatprep.subr.bf16.mxu0 %v8819_v49 }
 0x193   :  { %v8817_v0 = vld [vmem:[%s12544_s5 + $0x1a0] ss:$8 sps:$4 sm:$0xff]   ;;  %v8822_v48 = vld [vmem:[%s12544_s5 + $0x94] ss:$8 sps:$4 sm:$0xff]   ;;  %v1400_v13 = vrot.slane %v1398_v1, 4  ;;  %v1412_v20 = vshrl.u32 %v9621_v18, 16  ;;  %4453 = vmatpush2.bf16.msra.mxu1 %v8814_v45 }
 0x194   :  { %v10107_v11 = vld [vmem:[#allocation2 + $0x40] sm:$0xf]  ;;  %v1415_v15 = vshll.u32 %v9621_v18, 16  ;;  %v1810_v21 = vrot.slane %v1809_v8, 4  ;;  %v1823_v50 = vor.u32 %v1822_v9, %v1819_v63  ;;  %v1828_v57 = vrot.slane %v1826_v52, 5  ;;  %4566 = vmatpush2.bf16.msra.mxu0 %v8817_v0  ;;  %4454 = vmatprep.subr.bf16.mxu1 %v8822_v48 }
 0x195   :  { %1736 = vst [vmem:[#allocation4 + $0xf0] sm:$0xf] %v10107_v11  ;;  %v1280_v17 = vld [vmem:[#allocation2 + $0x44] sm:$0x1]  ;;  %v1403_v23 = vrot.slane %v1401_v10, 5  ;;  %v1409_v35 = vrot.slane %v1407_v60, 5 }
 0x196   :  { %v8825_v24 = vld [vmem:[%s12544_s5 + $0x194] ss:$8 sps:$4 sm:$0xff]   ;;  %v1414_v32 = vrot.slane %v1412_v20, 4  ;;  %v8820_v38 = vld [vmem:[%s12544_s5 + $0x90] ss:$8 sps:$4 sm:$0xff]   ;;  %v1815_v40 = vsel %vm9568_vm15, %v1810_v21, %v1814_v2  ;;  %v1824_v47 = vrot.slane %v1823_v50, 4 }
 0x197   :  { %v8823_v28 = vld [vmem:[%s12544_s5 + $0x190] ss:$8 sps:$4 sm:$0xff]   ;;  %v1404_v22 = vor.u32 %v1403_v23, %v1400_v13  ;;  %v1417_v34 = vrot.slane %v1415_v15, 5  ;;  %v82_v46 = vld [vmem:[#allocation2 + $0x48] sm:$0x1]  ;;  %v1421_v26 = vshll.u32 %v1280_v17, 16  ;;  %4567 = vmatprep.subr.bf16.mxu0 %v8825_v24  ;;  %4455 = vmatpush2.bf16.msra.mxu1 %v8820_v38 }
 0x198   :  { %v144_v44 = vld [vmem:[#allocation2 + $0x4c] sm:$0x1]  ;;  %1990 = vst [vmem:[#allocation4 + $0xac] sm:$0xf] %v1815_v40  ;;  %v8003_v25 = vrot.slane %v9618_v6, 9  ;;  %v1627_v37 = vrot.slane %v10087_v58, 5  ;;  %v1829_v56 = vsel %vm9568_vm15, %v1824_v47, %v1828_v57  ;;  %4568 = vmatpush2.bf16.msra.mxu0 %v8823_v28 }
 0x199   :  { %v8828_v16 = vld [vmem:[%s12544_s5 + $0x84] ss:$8 sps:$4 sm:$0xff]   ;;  %v8004_v54 = vrot.slane %v9621_v18, 9  ;;  %v1405_v59 = vrot.slane %v1404_v22, 4  ;;  %v1418_v61 = vor.u32 %v1417_v34, %v1414_v32  ;;  %v1631_v2 = vrot.slane %v1280_v17, 5 }
 0x19a   :  { %v8831_v55 = vld [vmem:[%s12544_s5 + $0x184] ss:$8 sps:$4 sm:$0xff]   ;;  %1991 = vst [vmem:[#allocation4 + $0xd0] sm:$0xf] %v1829_v56  ;;  %v1423_v6 = vrot.slane %v1421_v26, 5  ;;  %v1628_v18 = vsel %vm9550_vm14, %v8003_v25, %v1627_v37  ;;  %v83_v58 = vsel %vm9368_vm6, 0, %v82_v46  ;;  %4456 = vmatprep.subr.bf16.mxu1 %v8828_v16 }
 0x19b   :  { %v10137_v29 = vld [vmem:[#allocation2 + $0x44] sm:$0x1]  ;;  %v145_v49 = vsel %vm9374_vm7, 0, %v144_v44  ;;  %v10145_v51 = vld [vmem:[#allocation2 + $0x5c] sm:$0x1]  ;;  %v1410_v1 = vsel %vm9568_vm15, %v1405_v59, %v1409_v35  ;;  %v1419_v45 = vrot.slane %v1418_v61, 4  ;;  %v1632_v0 = vsel %vm9550_vm14, %v8004_v54, %v1631_v2  ;;  %4569 = vmatprep.subr.bf16.mxu0 %v8831_v55 }
 0x19c   :  { %v8826_v63 = vld [vmem:[%s12544_s5 + $0x80] ss:$8 sps:$4 sm:$0xff]   ;;  %1687 = vst [vmem:[#allocation4 + $0xec] sm:$0xf] %v1628_v18  ;;  %84 = vst [vmem:[#allocation2 + $0x48] sm:$0x1] %v83_v58 }
 0x19d   :  { %v8829_v52 = vld [vmem:[%s12544_s5 + $0x180] ss:$8 sps:$4 sm:$0xff]   ;;  %146 = vst [vmem:[#allocation2 + $0x4c] sm:$0x1] %v145_v49  ;;  %v8834_v9 = vld [vmem:[%s12544_s5 + $0x274] ss:$8 sps:$4 sm:$0xff]   ;;  %v1424_v15 = vsel %vm9568_vm15, %v1419_v45, %v1423_v6  ;;  %4457 = vmatpush2.bf16.msra.mxu1 %v8826_v63 }
 0x19e   :  { %v10157_v8 = vld [vmem:[#allocation2 + $0x60] sm:$0xf]  ;;  %1559 = vst [vmem:[#allocation4 + $0xe8] sm:$0xf] %v1410_v1  ;;  %1688 = vst [vmem:[#allocation4 + $0x110] sm:$0xf] %v1632_v0  ;;  %4570 = vmatpush2.bf16.msra.mxu0 %v8829_v52  ;;  %4652 = vmatprep.subr.bf16.mxu1 %v8834_v9 }
 0x19f   :  { %v1831_v10 = vshrl.u32 %v10107_v11, 16  ;;  %v1834_v60 = vshll.u32 %v10107_v11, 16  ;;  %v1840_v48 = vshll.u32 %v10137_v29, 16  ;;  %v1426_v13 = vshrl.u32 %v9644_v4, 16  ;;  %v10166_v20 = vld [vmem:[#allocation2 + $0x68] sm:$0xf] }
 0x1a0   :  { %1738 = vst [vmem:[#allocation4 + $0x138] sm:$0xf] %v10157_v8  ;;  %v10171_v21 = vld [vmem:[#allocation2 + $0x64] sm:$0x1]  ;;  %v1429_v50 = vshll.u32 %v9644_v4, 16  ;;  %v1435_v57 = vshll.u32 %v10145_v51, 16 }
 0x1a1   :  { %v1440_v17 = vshrl.u32 %v9646_v5, 16  ;;  %1739 = vst [vmem:[#allocation4 + $0x15c] sm:$0xf] %v10166_v20  ;;  %v8837_v23 = vld [vmem:[%s12544_s5 + $0x374] ss:$8 sps:$4 sm:$0xff]   ;;  %v1833_v24 = vrot.slane %v1831_v10, 4 }
 0x1a2   :  { %1560 = vst [vmem:[#allocation4 + $0x10c] sm:$0xf] %v1424_v15  ;;  %v1836_v35 = vrot.slane %v1834_v60, 5  ;;  %v1428_v32 = vrot.slane %v1426_v13, 4  ;;  %v1842_v38 = vrot.slane %v1840_v48, 5  ;;  %v1431_v28 = vrot.slane %v1429_v50, 5  ;;  %4765 = vmatprep.subr.bf16.mxu0 %v8837_v23 }
 0x1a3   :  { %v1442_v40 = vrot.slane %v1440_v17, 4  ;;  %v1443_v47 = vshll.u32 %v9646_v5, 16  ;;  %v8808_v22 = vld [vmem:[#allocation4] ss:$36 sps:$4 sm:$0xff]   ;;  %v8811_v34 = vld [vmem:[#allocation4 + $0x8] ss:$36 sps:$4 sm:$0xff]  }
 0x1a4   :  { %v8832_v46 = vld [vmem:[%s12544_s5 + $0x270] ss:$8 sps:$4 sm:$0xff]   ;;  %v1837_v16 = vor.u32 %v1836_v35, %v1833_v24  ;;  %v1449_v26 = vshll.u32 %v10171_v21, 16  ;;  %v8005_v25 = vrot.slane %v9644_v4, 9  ;;  %v1635_v37 = vrot.slane %v10145_v51, 5  ;;  %v10190_v54 = vld [vmem:[#allocation4 + $0x48] sm:$0xff]  ;;  %4459 = vmatmul.mubr.bf16.vlgmr.msra.gmra.mxu1 %v8808_v22  ;;  %4572 = vmatmul.mubr.bf16.vlgmr.msra.gmra.mxu0 %v8811_v34 }
 0x1a5   :  { %v8835_v44 = vld [vmem:[%s12544_s5 + $0x370] ss:$8 sps:$4 sm:$0xff]   ;;  %v8844_v59 = vld [vmem:[%s12544_s5 + $0x264] ss:$8 sps:$4 sm:$0xff]   ;;  %v1432_v2 = vor.u32 %v1431_v28, %v1428_v32  ;;  %v1437_v6 = vrot.slane %v1435_v57, 5  ;;  %v1445_v4 = vrot.slane %v1443_v47, 5  ;;  %4653 = vmatpush1.bf16.msra.mxu1 %v8832_v46 }
 0x1a6   :  { %v10192_v55 = vld [vmem:[#allocation4 + $0x6c] sm:$0xff]  ;;  %v8840_v56 = vld [vmem:[#allocation4 + $0x54] ss:$36 sps:$4 sm:$0xff]   ;;  %v10200_v18 = vld [vmem:[#allocation2 + $0x48] sm:$0xf]  ;;  %v1838_v49 = vrot.slane %v1837_v16, 4  ;;  %v1636_v63 = vsel %vm9550_vm14, %v8005_v25, %v1635_v37  ;;  %4766 = vmatpush1.bf16.msra.mxu0 %v8835_v44  ;;  %4654 = vmatprep.subr.bf16.mxu1 %v8844_v59 }
 0x1a7   :  { %v8847_v61 = vld [vmem:[%s12544_s5 + $0x364] ss:$8 sps:$4 sm:$0xff]   ;;  %v1451_v51 = vrot.slane %v1449_v26, 5  ;;  %1737 = vst [vmem:[#allocation4 + $0x114] sm:$0xf] %v10200_v18  ;;  %v1845_v1 = vshrl.u32 %v10200_v18, 16  ;;  %v1446_v13 = vor.u32 %v1445_v4, %v1442_v40  ;;  %4581 = vmatprep.mubr.bf16.mxu0 %v8840_v56  ;;  %v8079_v17 = vcombine.low %v10190_v54, %v10192_v55 }
 0x1a8   :  { %v10202_v58 = vld [vmem:[#allocation2 + $0x4c] sm:$0x1]  ;;  %v1848_v45 = vshll.u32 %v10200_v18, 16  ;;  %v1433_v9 = vrot.slane %v1432_v2, 4  ;;  %1689 = vst [vmem:[#allocation4 + $0x134] sm:$0xf] %v1636_v63  ;;  %v1843_v48 = vsel %vm9568_vm15, %v1838_v49, %v1842_v38  ;;  %4767 = vmatprep.subr.bf16.mxu0 %v8847_v61 }
 0x1a9   :  { %v8838_v52 = vld [vmem:[#allocation4 + $0x4c] ss:$36 sps:$4 sm:$0xff]   ;;  %v1854_v0 = vshll.u32 %v10202_v58, 16  ;;  %v8842_v10 = vld [vmem:[%s12544_s5 + $0x260] ss:$8 sps:$4 sm:$0xff]   ;;  %v8006_v15 = vrot.slane %v9646_v5, 9 }
 0x1aa   :  { %v8845_v60 = vld [vmem:[%s12544_s5 + $0x360] ss:$8 sps:$4 sm:$0xff]   ;;  %v1639_v50 = vrot.slane %v10171_v21, 5  ;;  %v10220_v57 = vld [vmem:[#allocation2 + $0x64] sm:$0x1]  ;;  %4468 = vmatprep.mubr.bf16.mxu1 %v8838_v52  ;;  %v10230_v35 = vld [vmem:[#allocation4 + $0x90] sm:$0xff]  ;;  %v1438_v21 = vsel %vm9568_vm15, %v1433_v9, %v1437_v6  ;;  %4655 = vmatpush1.bf16.msra.mxu1 %v8842_v10 }
 0x1ab   :  { %v8851_v23 = vld [vmem:[%s12544_s5 + $0x254] ss:$8 sps:$4 sm:$0xff]   ;;  %v1847_v5 = vrot.slane %v1845_v1, 4  ;;  %v1850_v32 = vrot.slane %v1848_v45, 5  ;;  %1992 = vst [vmem:[#allocation4 + $0xf4] sm:$0xf] %v1843_v48  ;;  %4768 = vmatpush1.bf16.msra.mxu0 %v8845_v60 }
 0x1ac   :  { %v8854_v24 = vld [vmem:[%s12544_s5 + $0x354] ss:$8 sps:$4 sm:$0xff]   ;;  %v10234_v38 = vld [vmem:[#allocation2 + $0x6c] sm:$0x1]  ;;  %v1856_v40 = vrot.slane %v1854_v0, 5  ;;  %v1447_v47 = vrot.slane %v1446_v13, 4  ;;  %v1640_v22 = vsel %vm9550_vm14, %v8006_v15, %v1639_v50  ;;  %4656 = vmatprep.subr.bf16.mxu1 %v8851_v23  ;;  %4469 = vmatmul.mubr.bf16.gmra.mxu1 %v8079_v17 }
 0x1ad   :  { %v10236_v28 = vld [vmem:[#allocation4 + $0xb4] sm:$0xff]  ;;  %1561 = vst [vmem:[#allocation4 + $0x130] sm:$0xf] %v1438_v21  ;;  %v1859_v34 = vshrl.u32 %v10157_v8, 16  ;;  %v10241_v16 = vld [vmem:[#allocation2 + $0x70] sm:$0xf]  ;;  %v1851_v26 = vor.u32 %v1850_v32, %v1847_v5  ;;  %4769 = vmatprep.subr.bf16.mxu0 %v8854_v24 }
 0x1ae   :  { %1690 = vst [vmem:[#allocation4 + $0x158] sm:$0xf] %v1640_v22  ;;  %v1862_v25 = vshll.u32 %v10157_v8, 16  ;;  %v1868_v46 = vshll.u32 %v10220_v57, 16  ;;  %v1873_v44 = vshrl.u32 %v10166_v20, 16  ;;  %v1452_v59 = vsel %vm9568_vm15, %v1447_v47, %v1451_v51 }
 0x1af   :  { %v10246_v37 = vld [vmem:[#allocation2 + $0x78] sm:$0xf]  ;;  %1740 = vst [vmem:[#allocation4 + $0x180] sm:$0xf] %v10241_v16  ;;  %v8848_v54 = vld [vmem:[#allocation4 + $0x50] ss:$36 sps:$4 sm:$0xff]   ;;  %v8088_v63 = vcombine.low %v10230_v35, %v10236_v28 }
 0x1b0   :  { %v8849_v55 = vld [vmem:[%s12544_s5 + $0x250] ss:$8 sps:$4 sm:$0xff]   ;;  %v1861_v61 = vrot.slane %v1859_v34, 4  ;;  %v1876_v2 = vshll.u32 %v10166_v20, 16  ;;  %v1882_v6 = vshll.u32 %v10234_v38, 16  ;;  %v1852_v52 = vrot.slane %v1851_v26, 4  ;;  %4582 = vmatmul.mubr.bf16.gmra.mxu0 %v8848_v54 }
 0x1b1   :  { %v8852_v56 = vld [vmem:[%s12544_s5 + $0x350] ss:$8 sps:$4 sm:$0xff]   ;;  %1741 = vst [vmem:[#allocation4 + $0x1a4] sm:$0xf] %v10246_v37  ;;  %v8861_v4 = vld [vmem:[%s12544_s5 + $0x244] ss:$8 sps:$4 sm:$0xff]   ;;  %4657 = vmatpush1.bf16.msra.mxu1 %v8849_v55 }
 0x1b2   :  { %v8864_v49 = vld [vmem:[%s12544_s5 + $0x344] ss:$8 sps:$4 sm:$0xff]   ;;  %1562 = vst [vmem:[#allocation4 + $0x154] sm:$0xf] %v1452_v59  ;;  %v1864_v51 = vrot.slane %v1862_v25, 5  ;;  %v1875_v1 = vrot.slane %v1873_v44, 4  ;;  %v1857_v32 = vsel %vm9568_vm15, %v1852_v52, %v1856_v40  ;;  %4770 = vmatpush1.bf16.msra.mxu0 %v8852_v56  ;;  %4658 = vmatprep.subr.bf16.mxu1 %v8861_v4 }
 0x1b3   :  { %v10268_v45 = vld [vmem:[#allocation2 + $0x6c] sm:$0x1]  ;;  %v1870_v0 = vrot.slane %v1868_v46, 5  ;;  %v1878_v9 = vrot.slane %v1876_v2, 5  ;;  %v1884_v48 = vrot.slane %v1882_v6, 5  ;;  %v8021_v13 = vrot.slane %v10157_v8, 9  ;;  %4771 = vmatprep.subr.bf16.mxu0 %v8864_v49 }
 0x1b4   :  { %v10271_v15 = vld [vmem:[#allocation2 + $0x74] sm:$0x1]  ;;  %v8857_v5 = vld [vmem:[#allocation4 + $0x9c] ss:$36 sps:$4 sm:$0xff]   ;;  %v1865_v21 = vor.u32 %v1864_v51, %v1861_v61  ;;  %v2068_v47 = vrot.slane %v10220_v57, 5  ;;  %v8022_v10 = vrot.slane %v10166_v20, 9 }
 0x1b5   :  { %v8855_v50 = vld [vmem:[#allocation4 + $0x94] ss:$36 sps:$4 sm:$0xff]   ;;  %v8859_v60 = vld [vmem:[%s12544_s5 + $0x240] ss:$8 sps:$4 sm:$0xff]   ;;  %1993 = vst [vmem:[#allocation4 + $0x118] sm:$0xf] %v1857_v32  ;;  %v1879_v24 = vor.u32 %v1878_v9, %v1875_v1  ;;  %4591 = vmatprep.mubr.bf16.mxu0 %v8857_v5 }
 0x1b6   :  { %v8862_v23 = vld [vmem:[%s12544_s5 + $0x340] ss:$8 sps:$4 sm:$0xff]   ;;  %v1454_v22 = vshrl.u32 %v9689_v3, 16  ;;  %v1457_v40 = vshll.u32 %v9689_v3, 16  ;;  %v1463_v34 = vshll.u32 %v10268_v45, 16  ;;  %4478 = vmatprep.mubr.bf16.mxu1 %v8855_v50  ;;  %v1866_v25 = vrot.slane %v1865_v21, 4  ;;  %4659 = vmatpush1.bf16.msra.mxu1 %v8859_v60 }
 0x1b7   :  { %v10286_v26 = vld [vmem:[#allocation2 + $0x80] sm:$0xf]  ;;  %v8868_v17 = vld [vmem:[%s12544_s5 + $0x234] ss:$8 sps:$4 sm:$0xff]   ;;  %v1468_v46 = vshrl.u32 %v9691_v7, 16  ;;  %v1471_v44 = vshll.u32 %v9691_v7, 16  ;;  %4772 = vmatpush1.bf16.msra.mxu0 %v8862_v23  ;;  %v2069_v23 = vsel %vm9550_vm14, %v8021_v13, %v2068_v47  ;;  %4479 = vmatmul.mubr.bf16.gmra.mxu1 %v8088_v63 }
 0x1b8   :  { %v1477_v54 = vshll.u32 %v10271_v15, 16  ;;  %1742 = vst [vmem:[#allocation4 + $0x1c8] sm:$0xf] %v10286_v26  ;;  %v8871_v59 = vld [vmem:[%s12544_s5 + $0x334] ss:$8 sps:$4 sm:$0xff]   ;;  %v1880_v61 = vrot.slane %v1879_v24, 4  ;;  %v1871_v51 = vsel %vm9568_vm15, %v1866_v25, %v1870_v0  ;;  %4660 = vmatprep.subr.bf16.mxu1 %v8868_v17 }
 0x1b9   :  { %v2072_v2 = vrot.slane %v10234_v38, 5  ;;  %v1456_v6 = vrot.slane %v1454_v22, 4  ;;  %v1459_v52 = vrot.slane %v1457_v40, 5  ;;  %v1465_v1 = vrot.slane %v1463_v34, 5  ;;  %v10301_v5 = vld [vmem:[#allocation2 + $0x88] sm:$0xf]  ;;  %4773 = vmatprep.subr.bf16.mxu0 %v8871_v59 }
 0x1ba   :  { %v1470_v9 = vrot.slane %v1468_v46, 4  ;;  %v1473_v50 = vrot.slane %v1471_v44, 5  ;;  %v8865_v55 = vld [vmem:[#allocation4 + $0x98] ss:$36 sps:$4 sm:$0xff]   ;;  %v1885_v4 = vsel %vm9568_vm15, %v1880_v61, %v1884_v48  ;;  %1994 = vst [vmem:[#allocation4 + $0x13c] sm:$0xf] %v1871_v51 }
 0x1bb   :  { %v8866_v56 = vld [vmem:[%s12544_s5 + $0x230] ss:$8 sps:$4 sm:$0xff]   ;;  %v1460_v49 = vor.u32 %v1459_v52, %v1456_v6  ;;  %v8007_v0 = vrot.slane %v9689_v3, 9  ;;  %v1643_v32 = vrot.slane %v10268_v45, 5  ;;  %1743 = vst [vmem:[#allocation4 + $0x1ec] sm:$0xf] %v10301_v5  ;;  %v2073_v17 = vsel %vm9550_vm14, %v8022_v10, %v2072_v2  ;;  %4592 = vmatmul.mubr.bf16.gmra.mxu0 %v8865_v55 }
 0x1bc   :  { %v8869_v38 = vld [vmem:[%s12544_s5 + $0x330] ss:$8 sps:$4 sm:$0xff]   ;;  %v8874_v21 = vld [vmem:[#allocation4 + $0xe4] ss:$36 sps:$4 sm:$0xff]   ;;  %1995 = vst [vmem:[#allocation4 + $0x160] sm:$0xf] %v1885_v4  ;;  %v1474_v40 = vor.u32 %v1473_v50, %v1470_v9  ;;  %4661 = vmatpush1.bf16.msra.mxu1 %v8866_v56 }
 0x1bd   :  { %v8878_v24 = vld [vmem:[%s12544_s5 + $0x224] ss:$8 sps:$4 sm:$0xff]   ;;  %v1479_v48 = vrot.slane %v1477_v54, 5  ;;  %v8008_v34 = vrot.slane %v9691_v7, 9  ;;  %v1647_v3 = vrot.slane %v10271_v15, 5  ;;  %v1461_v45 = vrot.slane %v1460_v49, 4  ;;  %4601 = vmatprep.mubr.bf16.mxu0 %v8874_v21  ;;  %4774 = vmatpush1.bf16.msra.mxu0 %v8869_v38 }
 0x1be   :  { %v8881_v22 = vld [vmem:[%s12544_s5 + $0x324] ss:$8 sps:$4 sm:$0xff]   ;;  %v10322_v25 = vld [vmem:[#allocation2 + $0x74] sm:$0x1]  ;;  %v1644_v46 = vsel %vm9550_vm14, %v8007_v0, %v1643_v32  ;;  %v10326_v44 = vld [vmem:[#allocation2 + $0x7c] sm:$0x1]  ;;  %4662 = vmatprep.subr.bf16.mxu1 %v8878_v24 }
 0x1bf   :  { %v1887_v61 = vshrl.u32 %v10241_v16, 16  ;;  %v1890_v6 = vshll.u32 %v10241_v16, 16  ;;  %v10330_v54 = vld [vmem:[#allocation4 + $0xd8] sm:$0xff]  ;;  %v1475_v15 = vrot.slane %v1474_v40, 4  ;;  %v1648_v60 = vsel %vm9550_vm14, %v8008_v34, %v1647_v3  ;;  %1691 = vst [vmem:[#allocation4 + $0x17c] sm:$0xf] %v1644_v46  ;;  %4775 = vmatprep.subr.bf16.mxu0 %v8881_v22 }
 0x1c0   :  { %v8872_v7 = vld [vmem:[#allocation4 + $0xdc] ss:$36 sps:$4 sm:$0xff]   ;;  %v10357_v20 = vld [vmem:[#allocation4 + $0x144] sm:$0xff]  ;;  %v1466_v47 = vsel %vm9568_vm15, %v1461_v45, %v1465_v1  ;;  %1692 = vst [vmem:[#allocation4 + $0x1a0] sm:$0xf] %v1648_v60  ;;  %v1896_v63 = vshll.u32 %v10322_v25, 16 }
 0x1c1   :  { %v10347_v59 = vld [vmem:[#allocation4 + $0xfc] sm:$0xff]  ;;  %v1889_v35 = vrot.slane %v1887_v61, 4  ;;  %v1892_v28 = vrot.slane %v1890_v6, 5  ;;  %2122 = vst [vmem:[#allocation4 + $0x140] sm:$0xf] %v2069_v23  ;;  %4488 = vmatprep.mubr.bf16.mxu1 %v8872_v7  ;;  %v10365_v2 = vld [vmem:[#allocation4 + $0x168] sm:$0xff]  ;;  %v1480_v51 = vsel %vm9568_vm15, %v1475_v15, %v1479_v48 }
 0x1c2   :  { %v8876_v57 = vld [vmem:[%s12544_s5 + $0x220] ss:$8 sps:$4 sm:$0xff]   ;;  %2123 = vst [vmem:[#allocation4 + $0x164] sm:$0xf] %v2073_v17  ;;  %v8885_v10 = vld [vmem:[%s12544_s5 + $0x214] ss:$8 sps:$4 sm:$0xff]   ;;  %v8097_v21 = vcombine.low %v10330_v54, %v10347_v59 }
 0x1c3   :  { %v8879_v8 = vld [vmem:[%s12544_s5 + $0x320] ss:$8 sps:$4 sm:$0xff]   ;;  %v10367_v52 = vld [vmem:[#allocation4 + $0x18c] sm:$0xff]  ;;  %1563 = vst [vmem:[#allocation4 + $0x178] sm:$0xf] %v1466_v47  ;;  %v1901_v1 = vshrl.u32 %v10246_v37, 16  ;;  %v1893_v4 = vor.u32 %v1892_v28, %v1889_v35  ;;  %4663 = vmatpush1.bf16.msra.mxu1 %v8876_v57 }
 0x1c4   :  { %v10355_v13 = vld [vmem:[#allocation4 + $0x120] sm:$0xff]  ;;  %v1904_v9 = vshll.u32 %v10246_v37, 16  ;;  %v1910_v50 = vshll.u32 %v10326_v44, 16  ;;  %v8888_v55 = vld [vmem:[%s12544_s5 + $0x314] ss:$8 sps:$4 sm:$0xff]   ;;  %v1898_v49 = vrot.slane %v1896_v63, 5  ;;  %v8115_v24 = vcombine.low %v10365_v2, %v10367_v52  ;;  %4776 = vmatpush1.bf16.msra.mxu0 %v8879_v8  ;;  %4664 = vmatprep.subr.bf16.mxu1 %v8885_v10 }
 0x1c5   :  { %1564 = vst [vmem:[#allocation4 + $0x19c] sm:$0xf] %v1480_v51  ;;  %v8023_v0 = vrot.slane %v10241_v16, 9  ;;  %v2076_v32 = vrot.slane %v10322_v25, 5  ;;  %v8106_v56 = vcombine.low %v10355_v13, %v10357_v20  ;;  %v1903_v38 = vrot.slane %v1901_v1, 4  ;;  %4777 = vmatprep.subr.bf16.mxu0 %v8888_v55  ;;  %4489 = vmatmul.mubr.bf16.gmra.mxu1 %v8097_v21 }
 0x1c6   :  { %v1906_v40 = vrot.slane %v1904_v9, 5  ;;  %v10383_v48 = vld [vmem:[#allocation2 + $0x7c] sm:$0x1]  ;;  %v8882_v34 = vld [vmem:[#allocation4 + $0xe0] ss:$36 sps:$4 sm:$0xff]   ;;  %v1894_v22 = vrot.slane %v1893_v4, 4 }
 0x1c7   :  { %v8883_v3 = vld [vmem:[%s12544_s5 + $0x210] ss:$8 sps:$4 sm:$0xff]   ;;  %v1912_v25 = vrot.slane %v1910_v50, 5  ;;  %v10393_v45 = vld [vmem:[#allocation2 + $0x84] sm:$0x1]  ;;  %v2077_v46 = vsel %vm9550_vm14, %v8023_v0, %v2076_v32  ;;  %v8024_v15 = vrot.slane %v10246_v37, 9  ;;  %4602 = vmatmul.mubr.bf16.gmra.mxu0 %v8882_v34 }
 0x1c8   :  { %v8886_v16 = vld [vmem:[%s12544_s5 + $0x310] ss:$8 sps:$4 sm:$0xff]   ;;  %v8895_v6 = vld [vmem:[%s12544_s5 + $0x204] ss:$8 sps:$4 sm:$0xff]   ;;  %v1907_v7 = vor.u32 %v1906_v40, %v1903_v38  ;;  %v1482_v60 = vshrl.u32 %v9757_v19, 16  ;;  %v1485_v23 = vshll.u32 %v9757_v19, 16  ;;  %v1899_v17 = vsel %vm9568_vm15, %v1894_v22, %v1898_v49  ;;  %4665 = vmatpush1.bf16.msra.mxu1 %v8883_v3 }
 0x1c9   :  { %v8891_v61 = vld [vmem:[#allocation4 + $0x12c] ss:$36 sps:$4 sm:$0xff]   ;;  %2124 = vst [vmem:[#allocation4 + $0x188] sm:$0xf] %v2077_v46  ;;  %v1491_v59 = vshll.u32 %v10383_v48, 16  ;;  %v1496_v47 = vshrl.u32 %v9764_v27, 16  ;;  %4778 = vmatpush1.bf16.msra.mxu0 %v8886_v16  ;;  %4666 = vmatprep.subr.bf16.mxu1 %v8895_v6 }
 0x1ca   :  { %v8898_v54 = vld [vmem:[%s12544_s5 + $0x304] ss:$8 sps:$4 sm:$0xff]   ;;  %v1499_v35 = vshll.u32 %v9764_v27, 16  ;;  %v10411_v28 = vld [vmem:[#allocation2 + $0x90] sm:$0xf]  ;;  %v1908_v51 = vrot.slane %v1907_v7, 4  ;;  %4611 = vmatprep.mubr.bf16.mxu0 %v8891_v61 }
 0x1cb   :  { %v8889_v63 = vld [vmem:[#allocation4 + $0x124] ss:$36 sps:$4 sm:$0xff]   ;;  %1996 = vst [vmem:[#allocation4 + $0x184] sm:$0xf] %v1899_v17  ;;  %v1484_v1 = vrot.slane %v1482_v60, 4  ;;  %v1487_v9 = vrot.slane %v1485_v23, 5  ;;  %4779 = vmatprep.subr.bf16.mxu0 %v8898_v54 }
 0x1cc   :  { %v1505_v57 = vshll.u32 %v10393_v45, 16  ;;  %1744 = vst [vmem:[#allocation4 + $0x210] sm:$0xf] %v10411_v28  ;;  %v8893_v8 = vld [vmem:[%s12544_s5 + $0x200] ss:$8 sps:$4 sm:$0xff]   ;;  %v2080_v50 = vrot.slane %v10326_v44, 5  ;;  %4498 = vmatprep.mubr.bf16.mxu1 %v8889_v63  ;;  %v1913_v21 = vsel %vm9568_vm15, %v1908_v51, %v1912_v25 }
 0x1cd   :  { %v8896_v10 = vld [vmem:[%s12544_s5 + $0x300] ss:$8 sps:$4 sm:$0xff]   ;;  %v1498_v55 = vrot.slane %v1496_v47, 4  ;;  %v1501_v4 = vrot.slane %v1499_v35, 5  ;;  %v8009_v49 = vrot.slane %v9757_v19, 9  ;;  %v1488_v38 = vor.u32 %v1487_v9, %v1484_v1  ;;  %v10460_v9 = vld [vmem:[#allocation4 + $0x1d4] sm:$0xff]  ;;  %4667 = vmatpush1.bf16.msra.mxu1 %v8893_v8 }
 0x1ce   :  { %v8902_v0 = vld [vmem:[%s12544_s5 + $0x2f4] ss:$8 sps:$4 sm:$0xff]   ;;  %v1493_v40 = vrot.slane %v1491_v59, 5  ;;  %v1651_v34 = vrot.slane %v10383_v48, 5  ;;  %v10432_v22 = vld [vmem:[#allocation2 + $0x84] sm:$0x1]  ;;  %4780 = vmatpush1.bf16.msra.mxu0 %v8896_v10  ;;  %4499 = vmatmul.mubr.bf16.gmra.mxu1 %v8106_v56 }
 0x1cf   :  { %v8905_v32 = vld [vmem:[%s12544_s5 + $0x3f4] ss:$8 sps:$4 sm:$0xff]   ;;  %1997 = vst [vmem:[#allocation4 + $0x1a8] sm:$0xf] %v1913_v21  ;;  %v1502_v19 = vor.u32 %v1501_v4, %v1498_v55  ;;  %v1507_v46 = vrot.slane %v1505_v57, 5  ;;  %v8010_v61 = vrot.slane %v9764_v27, 9  ;;  %4668 = vmatprep.subr.bf16.mxu1 %v8902_v0 }
 0x1d0   :  { %v1655_v7 = vrot.slane %v10393_v45, 5  ;;  %v10436_v60 = vld [vmem:[#allocation2 + $0x8c] sm:$0x1]  ;;  %v1489_v25 = vrot.slane %v1488_v38, 4  ;;  %v1652_v23 = vsel %vm9550_vm14, %v8009_v49, %v1651_v34  ;;  %v1915_v48 = vshrl.u32 %v10286_v26, 16  ;;  %v10448_v45 = vld [vmem:[#allocation4 + $0x1b0] sm:$0xff]  ;;  %4781 = vmatprep.subr.bf16.mxu0 %v8905_v32 }
 0x1d1   :  { %v1918_v3 = vshll.u32 %v10286_v26, 16  ;;  %v8899_v16 = vld [vmem:[#allocation4 + $0x128] ss:$36 sps:$4 sm:$0xff]   ;;  %v8900_v17 = vld [vmem:[%s12544_s5 + $0x2f0] ss:$8 sps:$4 sm:$0xff]   ;;  %v1503_v6 = vrot.slane %v1502_v19, 4  ;;  %v8124_v0 = vcombine.low %v10448_v45, %v10460_v9 }
 0x1d2   :  { %v8903_v27 = vld [vmem:[%s12544_s5 + $0x3f0] ss:$8 sps:$4 sm:$0xff]   ;;  %v1656_v54 = vsel %vm9550_vm14, %v8010_v61, %v1655_v7  ;;  %1693 = vst [vmem:[#allocation4 + $0x1c4] sm:$0xf] %v1652_v23  ;;  %v1924_v59 = vshll.u32 %v10432_v22, 16  ;;  %v1929_v47 = vshrl.u32 %v10301_v5, 16  ;;  %v1494_v57 = vsel %vm9568_vm15, %v1489_v25, %v1493_v40  ;;  %4612 = vmatmul.mubr.bf16.gmra.mxu0 %v8899_v16  ;;  %4669 = vmatpush2.bf16.msra.mxu1 %v8900_v17 }
 0x1d3   :  { %v8906_v35 = vld [vmem:[#allocation4 + $0x16c] ss:$36 sps:$4 sm:$0xff]   ;;  %v8908_v63 = vld [vmem:[#allocation4 + $0x174] ss:$36 sps:$4 sm:$0xff]   ;;  %1694 = vst [vmem:[#allocation4 + $0x1e8] sm:$0xf] %v1656_v54  ;;  %v1508_v38 = vsel %vm9568_vm15, %v1503_v6, %v1507_v46  ;;  %4782 = vmatpush2.bf16.msra.mxu0 %v8903_v27 }
 0x1d4   :  { %v8912_v51 = vld [vmem:[%s12544_s5 + $0x2e4] ss:$8 sps:$4 sm:$0xff]   ;;  %v1917_v55 = vrot.slane %v1915_v48, 4  ;;  %v1920_v4 = vrot.slane %v1918_v3, 5  ;;  %v1932_v49 = vshll.u32 %v10301_v5, 16  ;;  %v1926_v34 = vrot.slane %v1924_v59, 5  ;;  %4508 = vmatprep.mubr.bf16.mxu1 %v8906_v35  ;;  %4621 = vmatprep.mubr.bf16.mxu0 %v8908_v63 }
 0x1d5   :  { %v8915_v1 = vld [vmem:[%s12544_s5 + $0x3e4] ss:$8 sps:$4 sm:$0xff]   ;;  %1565 = vst [vmem:[#allocation4 + $0x1c0] sm:$0xf] %v1494_v57  ;;  %v1931_v19 = vrot.slane %v1929_v47, 4  ;;  %v1938_v61 = vshll.u32 %v10436_v60, 16  ;;  %v2081_v3 = vsel %vm9550_vm14, %v8024_v15, %v2080_v50  ;;  %4670 = vmatprep.subr.bf16.mxu1 %v8912_v51 }
 0x1d6   :  { %v10465_v21 = vld [vmem:[#allocation2 + $0x8c] sm:$0x1]  ;;  %1566 = vst [vmem:[#allocation4 + $0x1e4] sm:$0xf] %v1508_v38  ;;  %v1921_v40 = vor.u32 %v1920_v4, %v1917_v55  ;;  %v1934_v7 = vrot.slane %v1932_v49, 5  ;;  %v8025_v25 = vrot.slane %v10286_v26, 9  ;;  %4783 = vmatprep.subr.bf16.mxu0 %v8915_v1  ;;  %4509 = vmatmul.mubr.bf16.gmra.mxu1 %v8115_v24 }
 0x1d7   :  { %v2084_v23 = vrot.slane %v10432_v22, 5  ;;  %v8910_v8 = vld [vmem:[%s12544_s5 + $0x2e0] ss:$8 sps:$4 sm:$0xff]   ;;  %v1940_v32 = vrot.slane %v1938_v61, 5  ;;  %v8026_v26 = vrot.slane %v10301_v5, 9  ;;  %v1510_v13 = vshrl.u32 %v9842_v43, 16 }
 0x1d8   :  { %v8913_v10 = vld [vmem:[%s12544_s5 + $0x3e0] ss:$8 sps:$4 sm:$0xff]   ;;  %v10484_v22 = vld [vmem:[#allocation2 + $0x94] sm:$0x1]  ;;  %v1922_v46 = vrot.slane %v1921_v40, 4  ;;  %v1935_v48 = vor.u32 %v1934_v7, %v1931_v19  ;;  %v1513_v54 = vshll.u32 %v9842_v43, 16  ;;  %4671 = vmatpush2.bf16.msra.mxu1 %v8910_v8 }
 0x1d9   :  { %v8919_v20 = vld [vmem:[%s12544_s5 + $0x2d4] ss:$8 sps:$4 sm:$0xff]   ;;  %v2085_v16 = vsel %vm9550_vm14, %v8025_v25, %v2084_v23  ;;  %v1512_v6 = vrot.slane %v1510_v13, 4  ;;  %v1519_v59 = vshll.u32 %v10465_v21, 16  ;;  %v1524_v47 = vshrl.u32 %v9847_v30, 16  ;;  %4784 = vmatpush2.bf16.msra.mxu0 %v8913_v10 }
 0x1da   :  { %v8922_v56 = vld [vmem:[%s12544_s5 + $0x3d4] ss:$8 sps:$4 sm:$0xff]   ;;  %2125 = vst [vmem:[#allocation4 + $0x1ac] sm:$0xf] %v2081_v3  ;;  %2126 = vst [vmem:[#allocation4 + $0x1d0] sm:$0xf] %v2085_v16  ;;  %v1927_v37 = vsel %vm9568_vm15, %v1922_v46, %v1926_v34  ;;  %4672 = vmatprep.subr.bf16.mxu1 %v8919_v20 }
 0x1db   :  { %v1936_v44 = vrot.slane %v1935_v48, 4  ;;  %v1527_v15 = vshll.u32 %v9847_v30, 16  ;;  %v1533_v50 = vshll.u32 %v10484_v22, 16  ;;  %v112_v17 = vld [vmem:[#allocation2 + $0x98] sm:$0x1]  ;;  %v2088_v63 = vrot.slane %v10436_v60, 5  ;;  %4785 = vmatprep.subr.bf16.mxu0 %v8922_v56 }
 0x1dc   :  { %v8917_v27 = vld [vmem:[%s12544_s5 + $0x2d0] ss:$8 sps:$4 sm:$0xff]   ;;  %1998 = vst [vmem:[#allocation4 + $0x1cc] sm:$0xf] %v1927_v37  ;;  %v1515_v51 = vrot.slane %v1513_v54, 5  ;;  %v1526_v1 = vrot.slane %v1524_v47, 4 }
 0x1dd   :  { %v8920_v35 = vld [vmem:[%s12544_s5 + $0x3d0] ss:$8 sps:$4 sm:$0xff]   ;;  %v8011_v57 = vrot.slane %v9842_v43, 9  ;;  %v174_v55 = vld [vmem:[#allocation2 + $0x9c] sm:$0x1]  ;;  %v1941_v34 = vsel %vm9568_vm15, %v1936_v44, %v1940_v32  ;;  %v1521_v19 = vrot.slane %v1519_v59, 5  ;;  %4673 = vmatpush2.bf16.msra.mxu1 %v8917_v27 }
 0x1de   :  { %v8916_v4 = vld [vmem:[#allocation4 + $0x170] ss:$36 sps:$4 sm:$0xff]   ;;  %v8929_v49 = vld [vmem:[%s12544_s5 + $0x2c4] ss:$8 sps:$4 sm:$0xff]   ;;  %v1529_v61 = vrot.slane %v1527_v15, 5  ;;  %v1659_v40 = vrot.slane %v10465_v21, 5  ;;  %v1516_v43 = vor.u32 %v1515_v51, %v1512_v6  ;;  %4786 = vmatpush2.bf16.msra.mxu0 %v8920_v35 }
 0x1df   :  { %v8932_v38 = vld [vmem:[%s12544_s5 + $0x3c4] ss:$8 sps:$4 sm:$0xff]   ;;  %1999 = vst [vmem:[#allocation4 + $0x1f0] sm:$0xf] %v1941_v34  ;;  %v8012_v7 = vrot.slane %v9847_v30, 9  ;;  %v1663_v25 = vrot.slane %v10484_v22, 5  ;;  %4622 = vmatmul.mubr.bf16.gmra.mxu0 %v8916_v4  ;;  %4674 = vmatprep.subr.bf16.mxu1 %v8929_v49 }
 0x1e0   :  { %v113_v23 = vsel %vm9368_vm6, 0, %v112_v17  ;;  %v1727_v13 = vld [vmem:[#allocation2 + $0x94] sm:$0x1]  ;;  %v8925_v32 = vld [vmem:[#allocation4 + $0x1bc] ss:$36 sps:$4 sm:$0xff]   ;;  %v1530_v48 = vor.u32 %v1529_v61, %v1526_v1  ;;  %v1535_v3 = vrot.slane %v1533_v50, 5  ;;  %v1660_v21 = vsel %vm9550_vm14, %v8011_v57, %v1659_v40  ;;  %4787 = vmatprep.subr.bf16.mxu0 %v8932_v38  ;;  %vm10764_vm6 = vmand %vm179_vm3, %vm53_vm4 }
 0x1e1   :  { %v8923_v46 = vld [vmem:[#allocation4 + $0x1b4] ss:$36 sps:$4 sm:$0xff]   ;;  %114 = vst [vmem:[#allocation2 + $0x98] sm:$0x1] %v113_v23  ;;  %v175_v8 = vsel %vm9374_vm7, 0, %v174_v55  ;;  %v1517_v10 = vrot.slane %v1516_v43, 4  ;;  %v1664_v22 = vsel %vm9550_vm14, %v8012_v7, %v1663_v25  ;;  %4631 = vmatprep.mubr.bf16.mxu0 %v8925_v32  ;;  %4675 = vmatpush2.bf16.msra.mxu1 %v8927_v39  ;;  %vm10788_vm4 = vmand %vm179_vm3, %vm115_vm5 }
 0x1e2   :  { %v8930_v30 = vld [vmem:[%s12544_s5 + $0x3c0] ss:$8 sps:$4 sm:$0xff]   ;;  %1695 = vst [vmem:[#allocation4 + $0x20c] sm:$0xf] %v1660_v21  ;;  %176 = vst [vmem:[#allocation2 + $0x9c] sm:$0x1] %v175_v8  ;;  %4518 = vmatprep.mubr.bf16.mxu1 %v8923_v46 }
 0x1e3   :  { %v1943_v41 = vshrl.u32 %v10411_v28, 16  ;;  %v1946_v2 = vshll.u32 %v10411_v28, 16  ;;  %v8936_v52 = vld [vmem:[%s12544_s5 + $0x2b4] ss:$8 sps:$4 sm:$0xff]   ;;  %v1531_v24 = vrot.slane %v1530_v48, 4  ;;  %v1952_v20 = vshll.u32 %v1727_v13, 16  ;;  %4788 = vmatpush2.bf16.msra.mxu0 %v8930_v30  ;;  %4519 = vmatmul.mubr.bf16.gmra.mxu1 %v8124_v0  ;;  %vm11163_vm7 = vmand %vm177_vm2, %vm115_vm5 }
 0x1e4   :  { %1696 = vst [vmem:[#allocation4 + $0x230] sm:$0xf] %v1664_v22  ;;  %v8027_v56 = vrot.slane %v10411_v28, 9  ;;  %v2092_v16 = vrot.slane %v1727_v13, 5  ;;  %v8939_v6 = vld [vmem:[%s12544_s5 + $0x3b4] ss:$8 sps:$4 sm:$0xff]   ;;  %v1522_v54 = vsel %vm9568_vm15, %v1517_v10, %v1521_v19  ;;  %4676 = vmatprep.subr.bf16.mxu1 %v8936_v52 }
 0x1e5   :  { %v1945_v59 = vrot.slane %v1943_v41, 4  ;;  %v1948_v47 = vrot.slane %v1946_v2, 5  ;;  %v8015_v37 = vrot.slane %v9991_v53, 9  ;;  %v1536_v44 = vsel %vm9568_vm15, %v1531_v24, %v1535_v3  ;;  %1567 = vst [vmem:[#allocation4 + $0x208] sm:$0xf] %v1522_v54  ;;  %4789 = vmatprep.subr.bf16.mxu0 %v8939_v6  ;;  %v2200_v2 = vld [vmem:[#allocation4 + $0x1f8] sm:$0xff] }
 0x1e6   :  { %v1954_v28 = vrot.slane %v1952_v20, 5  ;;  %v9133_v15 = vld [vmem:[#allocation2 + $0x24] sm:$0x1]  ;;  %v8016_v17 = vrot.slane %v10004_v33, 9  ;;  %v8933_v27 = vld [vmem:[#allocation4 + $0x1b8] ss:$36 sps:$4 sm:$0xff]   ;;  %v2093_v40 = vsel %vm9550_vm14, %v8027_v56, %v2092_v16 }
 0x1e7   :  { %v2044_v50 = vrot.slane %v9133_v15, 5  ;;  %v8934_v35 = vld [vmem:[%s12544_s5 + $0x2b0] ss:$8 sps:$4 sm:$0xff]   ;;  %1568 = vst [vmem:[#allocation4 + $0x22c] sm:$0xf] %v1536_v44  ;;  %v1949_v51 = vor.u32 %v1948_v47, %v1945_v59  ;;  %v8017_v55 = vrot.slane %v10042_v62, 9  ;;  %v2089_v62 = vsel %vm9550_vm14, %v8026_v26, %v2088_v63  ;;  %4632 = vmatmul.mubr.bf16.gmra.mxu0 %v8933_v27 }
 0x1e8   :  { %v8937_v53 = vld [vmem:[%s12544_s5 + $0x3b0] ss:$8 sps:$4 sm:$0xff]   ;;  %v9134_v1 = vld [vmem:[#allocation2 + $0x2c] sm:$0x1]  ;;  %v9135_v4 = vld [vmem:[#allocation2 + $0x34] sm:$0x1]  ;;  %4677 = vmatpush2.bf16.msra.mxu1 %v8934_v35 }
 0x1e9   :  { %v2048_v57 = vrot.slane %v9134_v1, 5  ;;  %v2052_v49 = vrot.slane %v9135_v4, 5  ;;  %v8942_v38 = vld [vmem:[#allocation4 + $0x204] ss:$36 sps:$4 sm:$0xff]   ;;  %v2045_v19 = vsel %vm9550_vm14, %v8015_v37, %v2044_v50  ;;  %v8018_v61 = vrot.slane %v10054_v12, 9  ;;  %4790 = vmatpush2.bf16.msra.mxu0 %v8937_v53  ;;  %v2205_v52 = vld [vmem:[#allocation4 + $0x21c] sm:$0xff] }
 0x1ea   :  { %v8946_v33 = vld [vmem:[%s12544_s5 + $0x2a4] ss:$8 sps:$4 sm:$0xff]   ;;  %v8940_v43 = vld [vmem:[#allocation4 + $0x1fc] ss:$36 sps:$4 sm:$0xff]   ;;  %v1728_v7 = vld [vmem:[#allocation2 + $0x98] sm:$0xf]  ;;  %4641 = vmatprep.mubr.bf16.mxu0 %v8942_v38  ;;  %v8133_v47 = vcombine.low %v2200_v2, %v2205_v52 }
 0x1eb   :  { %v8949_v34 = vld [vmem:[%s12544_s5 + $0x3a4] ss:$8 sps:$4 sm:$0xff]   ;;  %v1950_v25 = vrot.slane %v1949_v51, 4  ;;  %v2049_v23 = vsel %vm9550_vm14, %v8016_v17, %v2048_v57  ;;  %2116 = vst [vmem:[#allocation4 + $0x68] sm:$0xf] %v2045_v19  ;;  %v2053_v12 = vsel %vm9550_vm14, %v8017_v55, %v2052_v49  ;;  %v1957_v63 = vshrl.u32 %v1728_v7, 16  ;;  %4528 = vmatprep.mubr.bf16.mxu1 %v8940_v43  ;;  %4678 = vmatprep.subr.bf16.mxu1 %v8946_v33 }
 0x1ec   :  { %v9136_v60 = vld [vmem:[#allocation2 + $0x3c] sm:$0x1]  ;;  %2127 = vst [vmem:[#allocation4 + $0x1f4] sm:$0xf] %v2089_v62  ;;  %2128 = vst [vmem:[#allocation4 + $0x218] sm:$0xf] %v2093_v40  ;;  %4791 = vmatprep.subr.bf16.mxu0 %v8949_v34  ;;  %4529 = vmatmul.mubr.bf16.gmra.mxu1 %v8133_v47 }
 0x1ed   :  { %v2056_v5 = vrot.slane %v9136_v60, 5  ;;  %v1729_v26 = vld [vmem:[#allocation2 + $0x9c] sm:$0x1]  ;;  %1745 = vst [vmem:[#allocation4 + $0x234] sm:$0xf] %v1728_v7  ;;  %v1960_v13 = vshll.u32 %v1728_v7, 16  ;;  %v1955_v48 = vsel %vm9568_vm15, %v1950_v25, %v1954_v28 }
 0x1ee   :  { %v8028_v46 = vrot.slane %v1728_v7, 9  ;;  %2117 = vst [vmem:[#allocation4 + $0x8c] sm:$0xf] %v2049_v23  ;;  %2118 = vst [vmem:[#allocation4 + $0xb0] sm:$0xf] %v2053_v12  ;;  %v8019_v32 = vrot.slane %v10107_v11, 9 }
 0x1ef   :  { %v1966_v3 = vshll.u32 %v1729_v26, 16  ;;  %v2096_v21 = vrot.slane %v1729_v26, 5  ;;  %v2057_v8 = vsel %vm9550_vm14, %v8018_v61, %v2056_v5  ;;  %v8944_v39 = vld [vmem:[%s12544_s5 + $0x2a0] ss:$8 sps:$4 sm:$0xff]   ;;  %v1959_v11 = vrot.slane %v1957_v63, 4  ;;  %v2142_v49 = vld [vmem:[#allocation4 + $0x58] sm:$0xff] }
 0x1f0   :  { %v1962_v30 = vrot.slane %v1960_v13, 5  ;;  %2000 = vst [vmem:[#allocation4 + $0x214] sm:$0xf] %v1955_v48  ;;  %2119 = vst [vmem:[#allocation4 + $0xd4] sm:$0xf] %v2057_v8  ;;  %v2060_v45 = vrot.slane %v10137_v29, 5  ;;  %4679 = vmatpush2.bf16.msra.mxu1 %v8944_v39 }
 0x1f1   :  { %v8020_v9 = vrot.slane %v10200_v18, 9  ;;  %v8947_v0 = vld [vmem:[%s12544_s5 + $0x3a0] ss:$8 sps:$4 sm:$0xff]   ;;  %v8953_v10 = vld [vmem:[%s12544_s5 + $0x294] ss:$8 sps:$4 sm:$0xff]   ;;  %v2064_v22 = vrot.slane %v10202_v58, 5  ;;  %v2097_v41 = vsel %vm9550_vm14, %v8028_v46, %v2096_v21 }
 0x1f2   :  { %v8956_v29 = vld [vmem:[%s12544_s5 + $0x394] ss:$8 sps:$4 sm:$0xff]   ;;  %v1963_v18 = vor.u32 %v1962_v30, %v1959_v11  ;;  %v1968_v24 = vrot.slane %v1966_v3, 5  ;;  %v2061_v20 = vsel %vm9550_vm14, %v8019_v32, %v2060_v45  ;;  %2129 = vst [vmem:[#allocation4 + $0x23c] sm:$0xf] %v2097_v41  ;;  %4792 = vmatpush2.bf16.msra.mxu0 %v8947_v0  ;;  %4680 = vmatprep.subr.bf16.mxu1 %v8953_v10  ;;  %v2152_v25 = vld [vmem:[#allocation4 + $0xa0] sm:$0xff] }
 0x1f3   :  { %v8950_v56 = vld [vmem:[#allocation4 + $0x200] ss:$36 sps:$4 sm:$0xff]   ;;  %v8951_v58 = vld [vmem:[%s12544_s5 + $0x290] ss:$8 sps:$4 sm:$0xff]   ;;  %v2065_v6 = vsel %vm9550_vm14, %v8020_v9, %v2064_v22  ;;  %2120 = vst [vmem:[#allocation4 + $0xf8] sm:$0xf] %v2061_v20  ;;  %4793 = vmatprep.subr.bf16.mxu0 %v8956_v29 }
 0x1f4   :  { %v8954_v16 = vld [vmem:[%s12544_s5 + $0x390] ss:$8 sps:$4 sm:$0xff]   ;;  %v8965_v54 = vld [vmem:[%s12544_s5 + $0x284] ss:$8 sps:$4 sm:$0xff]   ;;  %v1964_v59 = vrot.slane %v1963_v18, 4  ;;  %4642 = vmatmul.mubr.bf16.gmra.mxu0 %v8950_v56  ;;  %4681 = vmatpush2.bf16.msra.mxu1 %v8951_v58  ;;  %v2147_v38 = vld [vmem:[#allocation4 + $0x7c] sm:$0xff] }
 0x1f5   :  { %2121 = vst [vmem:[#allocation4 + $0x11c] sm:$0xf] %v2065_v6  ;;  %v8968_v37 = vld [vmem:[%s12544_s5 + $0x384] ss:$8 sps:$4 sm:$0xff]   ;;  %v8959_v44 = vld [vmem:[#allocation4 + $0x14] ss:$36 sps:$4 sm:$0xff]   ;;  %4682 = vmatprep.subr.bf16.mxu1 %v8965_v54  ;;  %v8083_v34 = vcombine.low %v2142_v49, %v2147_v38 }
 0x1f6   :  { %v8962_v28 = vld [vmem:[#allocation4 + $0x1c] ss:$36 sps:$4 sm:$0xff]   ;;  %v1969_v15 = vsel %vm9568_vm15, %v1964_v59, %v1968_v24  ;;  %4684 = vmatprep.mubr.bf16.mxu1 %v8959_v44  ;;  %4794 = vmatpush2.bf16.msra.mxu0 %v8954_v16  ;;  %v8969_v35 = vld [vmem:[%s12544_s5 + $0x470] ss:$8 sps:$4 sm:$0xff]   ;;  %v8974_v57 = vld [vmem:[#allocation4 + $0x64] ss:$36 sps:$4 sm:$0xff]  }
 0x1f7   :  { %2001 = vst [vmem:[#allocation4 + $0x238] sm:$0xf] %v1969_v15  ;;  %4797 = vmatprep.mubr.bf16.mxu0 %v8962_v28  ;;  %v8963_v50 = vld [vmem:[%s12544_s5 + $0x280] ss:$8 sps:$4 sm:$0xff]   ;;  %4795 = vmatprep.subr.bf16.mxu0 %v8968_v37  ;;  %v8971_v27 = vld [vmem:[%s12544_s5 + $0x474] ss:$8 sps:$4 sm:$0xff]  }
 0x1f8   :  { %v8966_v17 = vld [vmem:[%s12544_s5 + $0x380] ss:$8 sps:$4 sm:$0xff]   ;;  %4683 = vmatpush2.bf16.msra.mxu1 %v8963_v50  ;;  %v8957_v53 = vld [vmem:[#allocation4 + $0x10] ss:$36 sps:$4 sm:$0xff]   ;;  %v8960_v51 = vld [vmem:[#allocation4 + $0x18] ss:$36 sps:$4 sm:$0xff]  }
 0x1f9   :  { %4878 = vmatprep.subr.bf16.mxu1 %v8971_v27  ;;  %v8972_v1 = vld [vmem:[#allocation4 + $0x5c] ss:$36 sps:$4 sm:$0xff]   ;;  %v8979_v55 = vld [vmem:[%s12544_s5 + $0x464] ss:$8 sps:$4 sm:$0xff]   ;;  %v8985_v61 = vld [vmem:[%s12544_s5 + $0x450] ss:$8 sps:$4 sm:$0xff]  }
 0x1fa   :  { %4796 = vmatpush2.bf16.msra.mxu0 %v8966_v17  ;;  %v8977_v4 = vld [vmem:[%s12544_s5 + $0x460] ss:$8 sps:$4 sm:$0xff]   ;;  %v8987_v33 = vld [vmem:[%s12544_s5 + $0x454] ss:$8 sps:$4 sm:$0xff]   ;;  %v8982_v40 = vld [vmem:[#allocation4 + $0xac] ss:$36 sps:$4 sm:$0xff]  }
 0x1fb   :  { %4685 = vmatmul.mubr.bf16.vlgmr.msra.gmra.mxu1 %v8957_v53  ;;  %v8976_v19 = vld [vmem:[#allocation4 + $0x60] ss:$36 sps:$4 sm:$0xff]   ;;  %v9003_v12 = vld [vmem:[%s12544_s5 + $0x434] ss:$8 sps:$4 sm:$0xff]   ;;  %v8984_v5 = vld [vmem:[#allocation4 + $0xa8] ss:$36 sps:$4 sm:$0xff]  }
 0x1fc   :  { %4694 = vmatprep.mubr.bf16.mxu1 %v8972_v1  ;;  %4879 = vmatpush1.bf16.msra.mxu1 %v8969_v35  ;;  %v8980_v62 = vld [vmem:[#allocation4 + $0xa4] ss:$36 sps:$4 sm:$0xff]   ;;  %v9001_v26 = vld [vmem:[%s12544_s5 + $0x430] ss:$8 sps:$4 sm:$0xff]   ;;  %v9019_v21 = vld [vmem:[%s12544_s5 + $0x414] ss:$8 sps:$4 sm:$0xff]  }
 0x1fd   :  { %4798 = vmatmul.mubr.bf16.vlgmr.msra.gmra.mxu0 %v8960_v51  ;;  %4880 = vmatprep.subr.bf16.mxu1 %v8979_v55  ;;  %v8995_v43 = vld [vmem:[%s12544_s5 + $0x444] ss:$8 sps:$4 sm:$0xff]   ;;  %v8993_v7 = vld [vmem:[%s12544_s5 + $0x440] ss:$8 sps:$4 sm:$0xff]   ;;  %v8990_v13 = vld [vmem:[#allocation4 + $0xf4] ss:$36 sps:$4 sm:$0xff]  }
 0x1fe   :  { %4807 = vmatprep.mubr.bf16.mxu0 %v8974_v57  ;;  %v2157_v23 = vld [vmem:[#allocation4 + $0xc4] sm:$0xff]  ;;  %v8988_v63 = vld [vmem:[#allocation4 + $0xec] ss:$36 sps:$4 sm:$0xff]   ;;  %v8996_v30 = vld [vmem:[#allocation4 + $0x134] ss:$36 sps:$4 sm:$0xff]   ;;  %vm5694_vm5 = vcmask 1043968  }
 0x1ff   :  { %v8092_v60 = vcombine.low %v2152_v25, %v2157_v23  ;;  %v9011_v46 = vld [vmem:[%s12544_s5 + $0x424] ss:$8 sps:$4 sm:$0xff]   ;;  %v9009_v32 = vld [vmem:[%s12544_s5 + $0x420] ss:$8 sps:$4 sm:$0xff]   ;;  %v8992_v39 = vld [vmem:[#allocation4 + $0xf0] ss:$36 sps:$4 sm:$0xff]  }
 0x200   :  { %4881 = vmatpush1.bf16.msra.mxu1 %v8977_v4  ;;  %v2162_v48 = vld [vmem:[#allocation4 + $0xe8] sm:$0xff]  ;;  %v9017_v11 = vld [vmem:[%s12544_s5 + $0x410] ss:$8 sps:$4 sm:$0xff]   ;;  %v8998_v45 = vld [vmem:[#allocation4 + $0x13c] ss:$36 sps:$4 sm:$0xff]  }
 0x201   :  { %4882 = vmatprep.subr.bf16.mxu1 %v8987_v33  ;;  %v2167_v3 = vld [vmem:[#allocation4 + $0x10c] sm:$0xff]  ;;  %v9025_v0 = vld [vmem:[%s12544_s5 + $0x400] ss:$8 sps:$4 sm:$0xff]   ;;  %v2177_v22 = vld [vmem:[#allocation4 + $0x154] sm:$0xff] }
 0x202   :  { %v8101_v8 = vcombine.low %v2162_v48, %v2167_v3  ;;  %v9027_v9 = vld [vmem:[%s12544_s5 + $0x404] ss:$8 sps:$4 sm:$0xff]   ;;  %v2172_v10 = vld [vmem:[#allocation4 + $0x130] sm:$0xff]  ;;  %v9000_v2 = vld [vmem:[#allocation4 + $0x138] ss:$36 sps:$4 sm:$0xff]  }
 0x203   :  { %4695 = vmatmul.mubr.bf16.gmra.mxu1 %v8083_v34  ;;  %v8110_v41 = vcombine.low %v2172_v10, %v2177_v22  ;;  %v9004_v52 = vld [vmem:[#allocation4 + $0x17c] ss:$36 sps:$4 sm:$0xff]   ;;  %v9006_v29 = vld [vmem:[#allocation4 + $0x184] ss:$36 sps:$4 sm:$0xff]   ;;  %v9014_v16 = vld [vmem:[#allocation4 + $0x1cc] ss:$36 sps:$4 sm:$0xff]  }
 0x204   :  { %4704 = vmatprep.mubr.bf16.mxu1 %v8980_v62  ;;  %4883 = vmatpush1.bf16.msra.mxu1 %v8985_v61  ;;  %v2182_v18 = vld [vmem:[#allocation4 + $0x178] sm:$0xff]  ;;  %v9008_v56 = vld [vmem:[#allocation4 + $0x180] ss:$36 sps:$4 sm:$0xff]   ;;  %v9016_v47 = vld [vmem:[#allocation4 + $0x1c8] ss:$36 sps:$4 sm:$0xff]  }
 0x205   :  { %4808 = vmatmul.mubr.bf16.gmra.mxu0 %v8976_v19  ;;  %4884 = vmatprep.subr.bf16.mxu1 %v8995_v43  ;;  %v2187_v24 = vld [vmem:[#allocation4 + $0x19c] sm:$0xff]  ;;  %v9012_v58 = vld [vmem:[#allocation4 + $0x1c4] ss:$36 sps:$4 sm:$0xff]   ;;  %v9020_v37 = vld [vmem:[#allocation4 + $0x20c] ss:$36 sps:$4 sm:$0xff]  }
 0x206   :  { %4817 = vmatprep.mubr.bf16.mxu0 %v8982_v40  ;;  %v8119_v20 = vcombine.low %v2182_v18, %v2187_v24  ;;  %v2192_v6 = vld [vmem:[#allocation4 + $0x1c0] sm:$0xff]  ;;  %v9022_v44 = vld [vmem:[#allocation4 + $0x214] ss:$36 sps:$4 sm:$0xff]   ;;  %v2202_v28 = vld [vmem:[#allocation4 + $0x208] sm:$0xff] }
 0x207   :  { %v2197_v54 = vld [vmem:[#allocation4 + $0x1e4] sm:$0xff]  ;;  %v2207_v15 = vld [vmem:[#allocation4 + $0x22c] sm:$0xff]  ;;  %v9031_v40 = vld [vmem:[#allocation4 + $0xf8] ss:$36 sps:$4 sm:$0xff]  }
 0x208   :  { %4885 = vmatpush1.bf16.msra.mxu1 %v8993_v7  ;;  %v8128_v59 = vcombine.low %v2192_v6, %v2197_v54  ;;  %v8137_v50 = vcombine.low %v2202_v28, %v2207_v15  ;;  %v9024_v17 = vld [vmem:[#allocation4 + $0x210] ss:$36 sps:$4 sm:$0xff]   ;;  %v9028_v27 = vld [vmem:[#allocation4 + $0x20] ss:$36 sps:$4 sm:$0xff]   ;;  %v9029_v1 = vld [vmem:[#allocation4 + $0x68] ss:$36 sps:$4 sm:$0xff]  }
 0x209   :  { %4886 = vmatprep.subr.bf16.mxu1 %v9003_v12  ;;  %v9030_v33 = vld [vmem:[#allocation4 + $0xb0] ss:$36 sps:$4 sm:$0xff]   ;;  %v9032_v12 = vld [vmem:[#allocation4 + $0x140] ss:$36 sps:$4 sm:$0xff]  }
 0x20b   :  { %4705 = vmatmul.mubr.bf16.gmra.mxu1 %v8092_v60 }
 0x20c   :  { %4714 = vmatprep.mubr.bf16.mxu1 %v8988_v63  ;;  %4887 = vmatpush1.bf16.msra.mxu1 %v9001_v26 }
 0x20d   :  { %4818 = vmatmul.mubr.bf16.gmra.mxu0 %v8984_v5  ;;  %4888 = vmatprep.subr.bf16.mxu1 %v9011_v46 }
 0x20e   :  { %4827 = vmatprep.mubr.bf16.mxu0 %v8990_v13  ;;  %v9033_v13 = vld [vmem:[#allocation4 + $0x188] ss:$36 sps:$4 sm:$0xff]  }
 0x210   :  { %4889 = vmatpush1.bf16.msra.mxu1 %v9009_v32 }
 0x211   :  { %4890 = vmatprep.subr.bf16.mxu1 %v9019_v21  ;;  %v9034_v21 = vld [vmem:[#allocation4 + $0x1d0] ss:$36 sps:$4 sm:$0xff]  }
 0x213   :  { %4715 = vmatmul.mubr.bf16.gmra.mxu1 %v8101_v8 }
 0x214   :  { %4724 = vmatprep.mubr.bf16.mxu1 %v8996_v30  ;;  %4891 = vmatpush1.bf16.msra.mxu1 %v9017_v11 }
 0x215   :  { %4828 = vmatmul.mubr.bf16.gmra.mxu0 %v8992_v39  ;;  %4892 = vmatprep.subr.bf16.mxu1 %v9027_v9 }
 0x216   :  { %4837 = vmatprep.mubr.bf16.mxu0 %v8998_v45  ;;  %v9035_v45 = vld [vmem:[#allocation4 + $0x218] ss:$36 sps:$4 sm:$0xff]  }
 0x218   :  { %4893 = vmatpush1.bf16.msra.mxu1 %v9025_v0 }
 0x21a   :  { %v3172_v53 = vpop.f32.mrf.mxu1 }
 0x21b   :  { %4725 = vmatmul.mubr.bf16.gmra.mxu1 %v8110_v41  ;;  %v10685_v35 = vpop.f32.mrf.mxu0 }
 0x21c   :  { %4734 = vmatprep.mubr.bf16.mxu1 %v9004_v52  ;;  %v3174_v57 = vpop.f32.mrf.mxu1 }
 0x21d   :  { %4838 = vmatmul.mubr.bf16.gmra.mxu0 %v9000_v2  ;;  %v10688_v51 = vpop.f32.mrf.mxu0 }
 0x21e   :  { %4847 = vmatprep.mubr.bf16.mxu0 %v9006_v29 }
 0x21f   :  { %v10690_v55 = vpop.f32.mrf.mxu0  ;;  %v3178_v4 = vpop.f32.mrf.mxu1 }
 0x221   :  { %v10693_v49 = vpop.f32.mrf.mxu0  ;;  %v10695_v38 = vpop.f32.mrf.mxu1 }
 0x223   :  { %4735 = vmatmul.mubr.bf16.gmra.mxu1 %v8119_v20  ;;  %v10697_v34 = vpop.f32.mrf.mxu0  ;;  %v10700_v19 = vpop.f32.mrf.mxu1 }
 0x224   :  { %4744 = vmatprep.mubr.bf16.mxu1 %v9012_v58 }
 0x225   :  { %4848 = vmatmul.mubr.bf16.gmra.mxu0 %v9008_v56  ;;  %v10702_v61 = vpop.f32.mrf.mxu0  ;;  %v10704_v62 = vpop.f32.mrf.mxu1 }
 0x226   :  { %4857 = vmatprep.mubr.bf16.mxu0 %v9014_v16 }
 0x227   :  { %v10706_v43 = vpop.f32.mrf.mxu0  ;;  %v10709_v7 = vpop.f32.mrf.mxu1 }
 0x229   :  { %v10711_v25 = vpop.f32.mrf.mxu0  ;;  %v10713_v23 = vpop.f32.mrf.mxu1 }
 0x22b   :  { %4745 = vmatmul.mubr.bf16.gmra.mxu1 %v8128_v59  ;;  %v10715_v60 = vpop.f32.mrf.mxu0  ;;  %v10718_v5 = vpop.f32.mrf.mxu1  ;;  %v193_v59 = vld [vmem:[#allocation3 + $0x8] sm:$0x1] }
 0x22c   :  { %4754 = vmatprep.mubr.bf16.mxu1 %v9020_v37 }
 0x22d   :  { %4858 = vmatmul.mubr.bf16.gmra.mxu0 %v9016_v47  ;;  %v10720_v26 = vpop.f32.mrf.mxu0  ;;  %v10722_v63 = vpop.f32.mrf.mxu1  ;;  %v254_v47 = vld [vmem:[#allocation3 + $0xc] sm:$0x1] }
 0x22e   :  { %4867 = vmatprep.mubr.bf16.mxu0 %v9022_v44 }
 0x22f   :  { %v10724_v46 = vpop.f32.mrf.mxu0  ;;  %v10727_v32 = vpop.f32.mrf.mxu1 }
 0x231   :  { %v10729_v48 = vpop.f32.mrf.mxu0  ;;  %v10731_v3 = vpop.f32.mrf.mxu1 }
 0x232   :  { %12594 = vst [vmem:[#allocation11_spill] sm:$0xff] %v10731_v3 }
 0x233   :  { %4755 = vmatmul.mubr.bf16.gmra.mxu1 %v8137_v50  ;;  %v10733_v8 = vpop.f32.mrf.mxu0  ;;  %v10735_v39 = vpop.f32.mrf.mxu1  ;;  %v194_v50 = vsel %vm10764_vm6, 0, %v193_v59 }
 0x234   :  { %4910 = vmatprep.mubr.bf16.mxu1 %v9163_v36  ;;  %195 = vst [vmem:[#allocation3 + $0x8] sm:$0x1] %v194_v50 }
 0x235   :  { %4868 = vmatmul.mubr.bf16.gmra.mxu0 %v9024_v17  ;;  %v10738_v11 = vpop.f32.mrf.mxu0  ;;  %v10740_v30 = vpop.f32.mrf.mxu1  ;;  %v12598_v17 = vmov 0 }
 0x236   :  { %v12599_v17 = vsel %vm10788_vm4, 4294967295, %v12598_v17 }
 0x237   :  { %v10742_v9 = vpop.f32.mrf.mxu0  ;;  %v10744_v0 = vpop.f32.mrf.mxu1  ;;  %12600 = vst [vmem:[#allocation13_spill] sm:$0xff] %v12599_v17 }
 0x239   :  { %v10746_v10 = vpop.f32.mrf.mxu0  ;;  %v10748_v22 = vpop.f32.mrf.mxu1 }
 0x23a   :  { %12595 = vst [vmem:[#allocation12_spill] sm:$0xff] %v10748_v22 }
 0x23b   :  { %4911 = vmatmul.mubr.bf16.vlgmr.msra.gmra.mxu1 %v9028_v27 }
 0x23c   :  { %4920 = vmatprep.mubr.bf16.mxu1 %v9163_v36 }
 0x243   :  { %4921 = vmatmul.mubr.bf16.gmra.mxu1 %v9029_v1 }
 0x244   :  { %4930 = vmatprep.mubr.bf16.mxu1 %v9163_v36 }
 0x24b   :  { %4931 = vmatmul.mubr.bf16.gmra.mxu1 %v9030_v33 }
 0x24c   :  { %4940 = vmatprep.mubr.bf16.mxu1 %v9163_v36 }
 0x253   :  { %4941 = vmatmul.mubr.bf16.gmra.mxu1 %v9031_v40 }
 0x254   :  { %4950 = vmatprep.mubr.bf16.mxu1 %v9163_v36 }
 0x25b   :  { %4951 = vmatmul.mubr.bf16.gmra.mxu1 %v9032_v12 }
 0x25c   :  { %4960 = vmatprep.mubr.bf16.mxu1 %v9163_v36 }
 0x263   :  { %4961 = vmatmul.mubr.bf16.gmra.mxu1 %v9033_v13 }
 0x264   :  { %4970 = vmatprep.mubr.bf16.mxu1 %v9163_v36  ;;  %v4460_v41 = vpop.f32.mrf.mxu1  ;;  %v4573_v2 = vpop.f32.mrf.mxu0 }
 0x265   :  { %v4461_v52 = vadd.f32 %v4460_v41, %v3172_v53  ;;  %v255_v53 = vsel %vm10788_vm4, 0, %v254_v47 }
 0x266   :  { %v4462_v29 = vpop.f32.mrf.mxu1  ;;  %v10750_v18 = vpop.f32.mrf.mxu0  ;;  %256 = vst [vmem:[#allocation3 + $0xc] sm:$0x1] %v255_v53  ;;  %v260_v53 = vld [vmem:[#allocation3 + $0x1c] sm:$0x1] }
 0x267   :  { %v10752_v24 = vadd.f32 %v4573_v2, %v4461_v52  ;;  %v10754_v20 = vadd.f32 %v4462_v29, %v3174_v57 }
 0x268   :  { %v4464_v56 = vpop.f32.mrf.mxu1  ;;  %v4577_v58 = vpop.f32.mrf.mxu0 }
 0x269   :  { %v4465_v16 = vadd.f32 %v4464_v56, %v3178_v4 }
 0x26a   :  { %v10756_v6 = vpop.f32.mrf.mxu1  ;;  %v10758_v54 = vpop.f32.mrf.mxu0 }
 0x26b   :  { %4971 = vmatmul.mubr.bf16.gmra.mxu1 %v9034_v21  ;;  %v10760_v37 = vadd.f32 %v4577_v58, %v4465_v16  ;;  %v196_v58 = vld [vmem:[#allocation3 + $0x10] sm:$0x1] }
 0x26c   :  { %4980 = vmatprep.mubr.bf16.mxu1 %v9163_v36  ;;  %v4470_v28 = vpop.f32.mrf.mxu1  ;;  %v197_v47 = vsel %vm10764_vm6, 0, %v196_v58 }
 0x26d   :  { %v4471_v27 = vadd.f32 %v4470_v28, %v10700_v19  ;;  %198 = vst [vmem:[#allocation3 + $0x10] sm:$0x1] %v197_v47 }
 0x26e   :  { %v4472_v1 = vpop.f32.mrf.mxu1 }
 0x26f   :  { %v10800_v4 = vadd.f32 %v4472_v1, %v10704_v62 }
 0x270   :  { %v4583_v15 = vpop.f32.mrf.mxu0  ;;  %v4474_v33 = vpop.f32.mrf.mxu1 }
 0x271   :  { %v10797_v36 = vadd.f32 %v4583_v15, %v4471_v27  ;;  %v4475_v12 = vadd.f32 %v4474_v33, %v10709_v7  ;;  %v257_v7 = vld [vmem:[#allocation3 + $0x14] sm:$0x1]  ;;  %v199_v27 = vld [vmem:[#allocation3 + $0x18] sm:$0x1] }
 0x272   :  { %v10795_v57 = vpop.f32.mrf.mxu0  ;;  %v10803_v13 = vpop.f32.mrf.mxu1  ;;  %v258_v28 = vsel %vm10788_vm4, 0, %v257_v7 }
 0x273   :  { %4981 = vmatmul.mubr.bf16.gmra.mxu1 %v9035_v45  ;;  %12601 = vst [vmem:[#allocation14_spill] sm:$0xff] %v10803_v13  ;;  %259 = vst [vmem:[#allocation3 + $0x14] sm:$0x1] %v258_v28  ;;  %v263_v28 = vld [vmem:[#allocation3 + $0x24] sm:$0x1] }
 0x274   :  { %v4587_v40 = vpop.f32.mrf.mxu0 }
 0x275   :  { %v10807_v21 = vadd.f32 %v4587_v40, %v4475_v12  ;;  %v200_v40 = vsel %vm10764_vm6, 0, %v199_v27  ;;  %v261_v12 = vsel %vm10788_vm4, 0, %v260_v53  ;;  %v264_v27 = vsel %vm10788_vm4, 0, %v263_v28 }
 0x276   :  { %v10805_v19 = vpop.f32.mrf.mxu0  ;;  %201 = vst [vmem:[#allocation3 + $0x18] sm:$0x1] %v200_v40  ;;  %262 = vst [vmem:[#allocation3 + $0x1c] sm:$0x1] %v261_v12  ;;  %v251_v12 = vld [vmem:[#allocation3 + $0x4] sm:$0x1] }
 0x277   :  { %12602 = vst [vmem:[#allocation15_spill] sm:$0xff] %v10805_v19  ;;  %v4480_v45 = vpop.f32.mrf.mxu1  ;;  %265 = vst [vmem:[#allocation3 + $0x24] sm:$0x1] %v264_v27  ;;  %v220_v27 = vld [vmem:[#allocation3 + $0x50] sm:$0x1] }
 0x278   :  { %v4481_v2 = vadd.f32 %v4480_v45, %v10718_v5 }
 0x279   :  { %v4482_v52 = vpop.f32.mrf.mxu1 }
 0x27a   :  { %v10815_v62 = vadd.f32 %v4482_v52, %v10722_v63 }
 0x27b   :  { %v4593_v41 = vpop.f32.mrf.mxu0  ;;  %v4484_v16 = vpop.f32.mrf.mxu1 }
 0x27c   :  { %v10812_v56 = vadd.f32 %v4593_v41, %v4481_v2  ;;  %12604 = vst [vmem:[#allocation17_spill] sm:$0xff] %v10815_v62  ;;  %v4485_v5 = vadd.f32 %v4484_v16, %v10727_v32  ;;  %v202_v16 = vld [vmem:[#allocation3 + $0x20] sm:$0x1] }
 0x27d   :  { %v10810_v29 = vpop.f32.mrf.mxu0  ;;  %v10822_v15 = vpop.f32.mrf.mxu1  ;;  %v203_v47 = vsel %vm10764_vm6, 0, %v202_v16  ;;  %v252_v16 = vsel %vm10788_vm4, 0, %v251_v12  ;;  %v221_v12 = vsel %vm10764_vm6, 0, %v220_v27 }
 0x27e   :  { %12603 = vst [vmem:[#allocation16_spill] sm:$0xff] %v10810_v29  ;;  %12605 = vst [vmem:[#allocation18_spill] sm:$0xff] %v10822_v15 }
 0x27f   :  { %v4597_v59 = vpop.f32.mrf.mxu0  ;;  %204 = vst [vmem:[#allocation3 + $0x20] sm:$0x1] %v203_v47  ;;  %253 = vst [vmem:[#allocation3 + $0x4] sm:$0x1] %v252_v16 }
 0x280   :  { %v10826_v63 = vadd.f32 %v4597_v59, %v4485_v5  ;;  %222 = vst [vmem:[#allocation3 + $0x50] sm:$0x1] %v221_v12 }
 0x281   :  { %v10824_v50 = vpop.f32.mrf.mxu0 }
 0x282   :  { %12606 = vst [vmem:[#allocation19_spill] sm:$0xff] %v10824_v50 }
 0x285   :  { %v4490_v1 = vpop.f32.mrf.mxu1 }
 0x286   :  { %v4491_v32 = vadd.f32 %v4490_v1, %v10735_v39 }
 0x287   :  { %v4603_v33 = vpop.f32.mrf.mxu0  ;;  %v4492_v45 = vpop.f32.mrf.mxu1 }
 0x288   :  { %v10835_v2 = vadd.f32 %v4603_v33, %v4491_v32  ;;  %v10838_v52 = vadd.f32 %v4492_v45, %v10740_v30  ;;  %v190_v33 = vld [vmem:[#allocation3] sm:$0x1]  ;;  %v205_v32 = vld [vmem:[#allocation3 + $0x28] sm:$0x1] }
 0x289   :  { %v10833_v41 = vpop.f32.mrf.mxu0  ;;  %v4494_v58 = vpop.f32.mrf.mxu1  ;;  %v191_v40 = vsel %vm10764_vm6, 0, %v190_v33 }
 0x28a   :  { %12607 = vst [vmem:[#allocation20_spill] sm:$0xff] %v10833_v41  ;;  %12608 = vst [vmem:[#allocation21_spill] sm:$0xff] %v10838_v52  ;;  %v4495_v59 = vadd.f32 %v4494_v58, %v10744_v0 }
 0x28b   :  { %v4607_v7 = vpop.f32.mrf.mxu0  ;;  %v10843_v39 = vpop.f32.mrf.mxu1  ;;  %192 = vst [vmem:[#allocation3] sm:$0x1] %v191_v40 }
 0x28c   :  { %12609 = vst [vmem:[#allocation22_spill] sm:$0xff] %v10843_v39  ;;  %v10849_v53 = vadd.f32 %v4607_v7, %v4495_v59  ;;  %v206_v7 = vsel %vm10764_vm6, 0, %v205_v32  ;;  %v266_v59 = vld [vmem:[#allocation3 + $0x2c] sm:$0x1] }
 0x28d   :  { %v10845_v5 = vpop.f32.mrf.mxu0  ;;  %207 = vst [vmem:[#allocation3 + $0x28] sm:$0x1] %v206_v7 }
 0x28e   :  { %12610 = vst [vmem:[#allocation23_spill] sm:$0xff] %v10845_v5  ;;  %v4500_v30 = vpop.f32.mrf.mxu1 }
 0x28f   :  { %v4501_v0 = vadd.f32 %v4500_v30, %v10685_v35  ;;  %v267_v35 = vsel %vm10788_vm4, 0, %v266_v59  ;;  %v281_v30 = vld [vmem:[#allocation3 + $0x54] sm:$0x1] }
 0x290   :  { %v4502_v45 = vpop.f32.mrf.mxu1  ;;  %268 = vst [vmem:[#allocation3 + $0x2c] sm:$0x1] %v267_v35  ;;  %v282_v32 = vsel %vm10788_vm4, 0, %v281_v30  ;;  %v211_v30 = vld [vmem:[#allocation3 + $0x38] sm:$0x1] }
 0x291   :  { %v4503_v28 = vadd.f32 %v4502_v45, %v10688_v51  ;;  %283 = vst [vmem:[#allocation3 + $0x54] sm:$0x1] %v282_v32 }
 0x292   :  { %v4613_v1 = vpop.f32.mrf.mxu0  ;;  %v4504_v33 = vpop.f32.mrf.mxu1 }
 0x293   :  { %v10858_v47 = vadd.f32 %v4613_v1, %v4501_v0  ;;  %v208_v1 = vld [vmem:[#allocation3 + $0x30] sm:$0x1]  ;;  %v269_v0 = vld [vmem:[#allocation3 + $0x34] sm:$0x1]  ;;  %v4505_v51 = vadd.f32 %v4504_v33, %v10690_v55 }
 0x294   :  { %v4615_v58 = vpop.f32.mrf.mxu0  ;;  %v209_v45 = vsel %vm10764_vm6, 0, %v208_v1  ;;  %v270_v16 = vsel %vm10788_vm4, 0, %v269_v0  ;;  %v4506_v7 = vpop.f32.mrf.mxu1  ;;  %v212_v1 = vsel %vm10764_vm6, 0, %v211_v30  ;;  %v272_v0 = vld [vmem:[#allocation3 + $0x3c] sm:$0x1] }
 0x295   :  { %v10867_v5 = vadd.f32 %v4615_v58, %v4503_v28  ;;  %210 = vst [vmem:[#allocation3 + $0x30] sm:$0x1] %v209_v45  ;;  %271 = vst [vmem:[#allocation3 + $0x34] sm:$0x1] %v270_v16  ;;  %v4507_v27 = vadd.f32 %v4506_v7, %v10693_v49  ;;  %v217_v58 = vld [vmem:[#allocation3 + $0x48] sm:$0x1] }
 0x296   :  { %v4617_v40 = vpop.f32.mrf.mxu0  ;;  %v278_v28 = vld [vmem:[#allocation3 + $0x4c] sm:$0x1]  ;;  %v4510_v55 = vpop.f32.mrf.mxu1  ;;  %v218_v12 = vsel %vm10764_vm6, 0, %v217_v58  ;;  %v10886_v49 = vld [vmem:[#allocation3] sm:$0xf] }
 0x297   :  { %v10874_v35 = vadd.f32 %v4617_v40, %v4505_v51  ;;  %v279_v32 = vsel %vm10788_vm4, 0, %v278_v28  ;;  %v4511_v40 = vadd.f32 %v4510_v55, %v10697_v34  ;;  %12611 = vst [vmem:[#allocation24_spill] sm:$0xff] %v10886_v49  ;;  %219 = vst [vmem:[#allocation3 + $0x48] sm:$0x1] %v218_v12  ;;  %v273_v51 = vsel %vm10788_vm4, 0, %v272_v0 }
 0x298   :  { %v4619_v59 = vpop.f32.mrf.mxu0  ;;  %280 = vst [vmem:[#allocation3 + $0x4c] sm:$0x1] %v279_v32  ;;  %213 = vst [vmem:[#allocation3 + $0x38] sm:$0x1] %v212_v1  ;;  %v4512_v16 = vpop.f32.mrf.mxu1  ;;  %v10890_v58 = vld [vmem:[#allocation3 + $0x4] sm:$0x1] }
 0x299   :  { %v10883_v45 = vadd.f32 %v4619_v59, %v4507_v27  ;;  %12612 = vst [vmem:[#allocation25_spill] sm:$0xff] %v10890_v58  ;;  %v5423_v28 = vshrl.u32 %v10886_v49, 16  ;;  %v5426_v30 = vshll.u32 %v10886_v49, 16  ;;  %5406 = vst.msk [vmem:[#allocation5] sm:$0xf] %vm177_vm2, %v10886_v49  ;;  %v4513_v59 = vadd.f32 %v4512_v16, %v10702_v61 }
 0x29a   :  { %274 = vst [vmem:[#allocation3 + $0x3c] sm:$0x1] %v273_v51  ;;  %v5432_v27 = vshll.u32 %v10890_v58, 16  ;;  %v4514_v55 = vpop.f32.mrf.mxu1  ;;  %v10900_v0 = vld [vmem:[#allocation3 + $0x50] sm:$0xf] }
 0x29b   :  { %v5425_v32 = vrot.slane %v5423_v28, 4  ;;  %v5428_v1 = vrot.slane %v5426_v30, 5  ;;  %12613 = vst [vmem:[#allocation26_spill] sm:$0xff] %v10900_v0  ;;  %v10902_v39 = vld [vmem:[#allocation3 + $0x54] sm:$0x1]  ;;  %v4515_v41 = vadd.f32 %v4514_v55, %v10706_v43  ;;  %v5535_v51 = vshrl.u32 %v10900_v0, 16 }
 0x29c   :  { %12614 = vst [vmem:[#allocation27_spill] sm:$0xff] %v10902_v39  ;;  %5414 = vst.msk [vmem:[#allocation5 + $0xa0] sm:$0xf] %vm177_vm2, %v10900_v0  ;;  %v4516_v61 = vpop.f32.mrf.mxu1  ;;  %v5434_v16 = vrot.slane %v5432_v27, 5  ;;  %v5538_v28 = vshll.u32 %v10900_v0, 16  ;;  %v5544_v30 = vshll.u32 %v10902_v39, 16 }
 0x29d   :  { %v214_v49 = vld [vmem:[#allocation3 + $0x40] sm:$0x1]  ;;  %v275_v55 = vld [vmem:[#allocation3 + $0x44] sm:$0x1]  ;;  %v223_v39 = vld [vmem:[#allocation3 + $0x58] sm:$0x1] }
 0x29e   :  { %v215_v43 = vsel %vm10764_vm6, 0, %v214_v49  ;;  %v5540_v3 = vrot.slane %v5538_v28, 5  ;;  %v6366_v27 = vld [vmem:[#allocation3 + $0x48] sm:$0xf] }
 0x29f   :  { %v4623_v33 = vpop.f32.mrf.mxu0  ;;  %216 = vst [vmem:[#allocation3 + $0x40] sm:$0x1] %v215_v43  ;;  %6391 = vst.msk [vmem:[#allocation5 + $0x98] sm:$0xf] %vm177_vm2, %v6366_v27  ;;  %v8341_v43 = vrot.slane %v6366_v27, 9 }
 0x2a0   :  { %v10896_v34 = vadd.f32 %v4623_v33, %v4511_v40  ;;  %v5429_v40 = vor.u32 %v5428_v1, %v5425_v32  ;;  %v5546_v32 = vrot.slane %v5544_v30, 5  ;;  %v276_v1 = vsel %vm10788_vm4, 0, %v275_v55 }
 0x2a1   :  { %v4625_v7 = vpop.f32.mrf.mxu0  ;;  %277 = vst [vmem:[#allocation3 + $0x44] sm:$0x1] %v276_v1 }
 0x2a2   :  { %v10904_v22 = vadd.f32 %v4625_v7, %v4513_v59  ;;  %v4517_v7 = vadd.f32 %v4516_v61, %v10711_v25  ;;  %v5537_v59 = vrot.slane %v5535_v51, 4  ;;  %v5430_v15 = vrot.slane %v5429_v40, 4  ;;  %v6367_v25 = vld [vmem:[#allocation3 + $0x4c] sm:$0x1] }
 0x2a3   :  { %v4627_v12 = vpop.f32.mrf.mxu0  ;;  %v4520_v52 = vpop.f32.mrf.mxu1  ;;  %v6502_v51 = vshll.u32 %v6366_v27, 16  ;;  %v6508_v30 = vshll.u32 %v6367_v25, 16  ;;  %v6750_v13 = vrot.slane %v6367_v25, 5 }
 0x2a4   :  { %v10912_v58 = vadd.f32 %v4627_v12, %v4515_v41  ;;  %v4521_v41 = vadd.f32 %v4520_v52, %v10715_v60  ;;  %v6499_v12 = vshrl.u32 %v6366_v27, 16  ;;  %v5435_v40 = vsel %vm9568_vm15, %v5430_v15, %v5434_v16 }
 0x2a5   :  { %v4629_v33 = vpop.f32.mrf.mxu0  ;;  %v4522_v49 = vpop.f32.mrf.mxu1  ;;  %v5541_v28 = vor.u32 %v5540_v3, %v5537_v59  ;;  %5646 = vrot.lane.b32.xlu0 %v5435_v40, %s9161_s28  ;;  %v6504_v52 = vrot.slane %v6502_v51, 5  ;;  %v6510_v19 = vrot.slane %v6508_v30, 5  ;;  %v224_v3 = vsel %vm10764_vm6, 0, %v223_v39 }
 0x2a6   :  { %v10919_v0 = vadd.f32 %v4629_v33, %v4517_v7  ;;  %v4523_v33 = vadd.f32 %v4522_v49, %v10720_v26  ;;  %v6501_v60 = vrot.slane %v6499_v12, 4  ;;  %v284_v7 = vld [vmem:[#allocation3 + $0x5c] sm:$0x1]  ;;  %225 = vst [vmem:[#allocation3 + $0x58] sm:$0x1] %v224_v3  ;;  %v6751_v25 = vsel %vm9550_vm14, %v8341_v43, %v6750_v13 }
 0x2a7   :  { %v4633_v50 = vpop.f32.mrf.mxu0  ;;  %v4524_v29 = vpop.f32.mrf.mxu1  ;;  %v5542_v62 = vrot.slane %v5541_v28, 4  ;;  %v285_v26 = vsel %vm10788_vm4, 0, %v284_v7  ;;  %6807 = vst.msk [vmem:[#allocation5 + $0x9c] sm:$0xf] %vm177_vm2, %v6751_v25 }
 0x2a8   :  { %v10925_v55 = vadd.f32 %v4633_v50, %v4521_v41  ;;  %v4525_v50 = vadd.f32 %v4524_v29, %v10724_v46  ;;  %v6505_v16 = vor.u32 %v6504_v52, %v6501_v60  ;;  %286 = vst [vmem:[#allocation3 + $0x5c] sm:$0x1] %v285_v26  ;;  %v226_v29 = vld [vmem:[#allocation3 + $0x60] sm:$0x1] }
 0x2a9   :  { %v4635_v61 = vpop.f32.mrf.mxu0  ;;  %v4526_v59 = vpop.f32.mrf.mxu1  ;;  %v5547_v41 = vsel %vm9568_vm15, %v5542_v62, %v5546_v32  ;;  %v287_v62 = vld [vmem:[#allocation3 + $0x64] sm:$0x1] }
 0x2aa   :  { %v10931_v15 = vadd.f32 %v4635_v61, %v4523_v33  ;;  %v4527_v39 = vadd.f32 %v4526_v59, %v10729_v48  ;;  %5662 = vrot.lane.b32.xlu0 %v5547_v41, %s9161_s28  ;;  %v6506_v46 = vrot.slane %v6505_v16, 4  ;;  %v227_v61 = vsel %vm10764_vm6, 0, %v226_v29 }
 0x2ab   :  { %v4637_v1 = vpop.f32.mrf.mxu0  ;;  %228 = vst [vmem:[#allocation3 + $0x60] sm:$0x1] %v227_v61  ;;  %v288_v48 = vsel %vm10788_vm4, 0, %v287_v62 }
 0x2ac   :  { %v10940_v12 = vadd.f32 %v4637_v1, %v4525_v50  ;;  %v4530_v51 = vpop.f32.mrf.mxu1  ;;  %v6511_v40 = vsel %vm9568_vm15, %v6506_v46, %v6510_v19  ;;  %289 = vst [vmem:[#allocation3 + $0x64] sm:$0x1] %v288_v48  ;;  %v229_v19 = vld [vmem:[#allocation3 + $0x68] sm:$0x1]  ;;  %v290_v1 = vld [vmem:[#allocation3 + $0x6c] sm:$0x1] }
 0x2ad   :  { %v4639_v27 = vpop.f32.mrf.mxu0  ;;  %v4531_v13 = vadd.f32 %v4530_v51, %v10733_v8  ;;  %6638 = vrot.lane.b32.xlu1 %v6511_v40, %s9161_s28  ;;  %v230_v16 = vsel %vm10764_vm6, 0, %v229_v19  ;;  %v291_v26 = vsel %vm10788_vm4, 0, %v290_v1  ;;  %v232_v51 = vld [vmem:[#allocation3 + $0x70] sm:$0x1]  ;;  %v235_v1 = vld [vmem:[#allocation3 + $0x78] sm:$0x1] }
 0x2ae   :  { %v10947_v32 = vadd.f32 %v4639_v27, %v4527_v39  ;;  %v4532_v28 = vpop.f32.mrf.mxu1  ;;  %231 = vst [vmem:[#allocation3 + $0x68] sm:$0x1] %v230_v16  ;;  %292 = vst [vmem:[#allocation3 + $0x6c] sm:$0x1] %v291_v26  ;;  %v236_v16 = vsel %vm10764_vm6, 0, %v235_v1 }
 0x2af   :  { %v4533_v33 = vadd.f32 %v4532_v28, %v10738_v11  ;;  %237 = vst [vmem:[#allocation3 + $0x78] sm:$0x1] %v236_v16 }
 0x2b0   :  { %v4534_v60 = vpop.f32.mrf.mxu1 }
 0x2b1   :  { %v4535_v8 = vadd.f32 %v4534_v60, %v10742_v9 }
 0x2b2   :  { %v4536_v3 = vpop.f32.mrf.mxu1 }
 0x2b3   :  { %v4537_v11 = vadd.f32 %v4536_v3, %v10746_v10  ;;  %v233_v10 = vsel %vm10764_vm6, 0, %v232_v51 }
 0x2b4   :  { %v4643_v49 = vpop.f32.mrf.mxu0  ;;  %234 = vst [vmem:[#allocation3 + $0x70] sm:$0x1] %v233_v10 }
 0x2b5   :  { %v10955_v43 = vadd.f32 %v4643_v49, %v4531_v13  ;;  %v293_v49 = vld [vmem:[#allocation3 + $0x74] sm:$0x1] }
 0x2b6   :  { %v4645_v30 = vpop.f32.mrf.mxu0  ;;  %v294_v13 = vsel %vm10788_vm4, 0, %v293_v49 }
 0x2b7   :  { %v10958_v7 = vadd.f32 %v4645_v30, %v4533_v33  ;;  %295 = vst [vmem:[#allocation3 + $0x74] sm:$0x1] %v294_v13  ;;  %v238_v13 = vld [vmem:[#allocation3 + $0x80] sm:$0x1] }
 0x2b8   :  { %v4647_v52 = vpop.f32.mrf.mxu0 }
 0x2b9   :  { %v10965_v59 = vadd.f32 %v4647_v52, %v4535_v8 }
 0x2ba   :  { %v4649_v50 = vpop.f32.mrf.mxu0 }
 0x2bb   :  { %v10968_v27 = vadd.f32 %v4649_v50, %v4537_v11  ;;  %v4686_v41 = vpop.f32.mrf.mxu1 }
 0x2bc   :  { %v4687_v25 = vadd.f32 %v4686_v41, %v10752_v24 }
 0x2bd   :  { %v4799_v9 = vpop.f32.mrf.mxu0  ;;  %v10971_v39 = vpop.f32.mrf.mxu1 }
 0x2be   :  { %v10975_v29 = vadd.f32 %v4799_v9, %v4687_v25 }
 0x2bf   :  { %v10973_v46 = vpop.f32.mrf.mxu0  ;;  %v4690_v61 = vpop.f32.mrf.mxu1 }
 0x2c0   :  { %v4691_v40 = vadd.f32 %v4690_v61, %v10760_v37  ;;  %v296_v37 = vld [vmem:[#allocation3 + $0x7c] sm:$0x1] }
 0x2c1   :  { %v4803_v62 = vpop.f32.mrf.mxu0  ;;  %v10982_v24 = vpop.f32.mrf.mxu1  ;;  %v297_v26 = vsel %vm10788_vm4, 0, %v296_v37 }
 0x2c2   :  { %v10986_v28 = vadd.f32 %v4803_v62, %v4691_v40  ;;  %298 = vst [vmem:[#allocation3 + $0x7c] sm:$0x1] %v297_v26  ;;  %v241_v26 = vld [vmem:[#allocation3 + $0x88] sm:$0x1] }
 0x2c3   :  { %v10984_v48 = vpop.f32.mrf.mxu0  ;;  %v4696_v30 = vpop.f32.mrf.mxu1 }
 0x2c4   :  { %v4697_v60 = vadd.f32 %v4696_v30, %v10797_v36 }
 0x2c5   :  { %v4809_v33 = vpop.f32.mrf.mxu0  ;;  %v10989_v52 = vpop.f32.mrf.mxu1 }
 0x2c6   :  { %v10993_v19 = vadd.f32 %v4809_v33, %v4697_v60  ;;  %v239_v33 = vsel %vm10764_vm6, 0, %v238_v13 }
 0x2c7   :  { %v10991_v8 = vpop.f32.mrf.mxu0  ;;  %v4700_v3 = vpop.f32.mrf.mxu1  ;;  %240 = vst [vmem:[#allocation3 + $0x80] sm:$0x1] %v239_v33 }
 0x2c8   :  { %v4701_v11 = vadd.f32 %v4700_v3, %v10807_v21  ;;  %v299_v21 = vld [vmem:[#allocation3 + $0x84] sm:$0x1] }
 0x2c9   :  { %v4813_v50 = vpop.f32.mrf.mxu0  ;;  %v11000_v36 = vpop.f32.mrf.mxu1  ;;  %v300_v60 = vsel %vm10788_vm4, 0, %v299_v21 }
 0x2ca   :  { %v11004_v9 = vadd.f32 %v4813_v50, %v4701_v11  ;;  %301 = vst [vmem:[#allocation3 + $0x84] sm:$0x1] %v300_v60  ;;  %v302_v11 = vld [vmem:[#allocation3 + $0x8c] sm:$0x1] }
 0x2cb   :  { %v11002_v41 = vpop.f32.mrf.mxu0  ;;  %v4706_v25 = vpop.f32.mrf.mxu1 }
 0x2cc   :  { %v4707_v49 = vadd.f32 %v4706_v25, %v10812_v56 }
 0x2cd   :  { %v4819_v51 = vpop.f32.mrf.mxu0  ;;  %v11007_v61 = vpop.f32.mrf.mxu1 }
 0x2ce   :  { %v11011_v10 = vadd.f32 %v4819_v51, %v4707_v49  ;;  %v242_v51 = vsel %vm10764_vm6, 0, %v241_v26 }
 0x2cf   :  { %v11009_v62 = vpop.f32.mrf.mxu0  ;;  %v4710_v40 = vpop.f32.mrf.mxu1  ;;  %243 = vst [vmem:[#allocation3 + $0x88] sm:$0x1] %v242_v51  ;;  %v244_v51 = vld [vmem:[#allocation3 + $0x90] sm:$0x1] }
 0x2d0   :  { %v4711_v1 = vadd.f32 %v4710_v40, %v10826_v63  ;;  %v303_v63 = vsel %vm10788_vm4, 0, %v302_v11 }
 0x2d1   :  { %v4823_v30 = vpop.f32.mrf.mxu0  ;;  %v11018_v56 = vpop.f32.mrf.mxu1  ;;  %304 = vst [vmem:[#allocation3 + $0x8c] sm:$0x1] %v303_v63 }
 0x2d2   :  { %v11022_v3 = vadd.f32 %v4823_v30, %v4711_v1 }
 0x2d3   :  { %v11020_v37 = vpop.f32.mrf.mxu0  ;;  %v4716_v50 = vpop.f32.mrf.mxu1 }
 0x2d4   :  { %v4717_v25 = vadd.f32 %v4716_v50, %v10835_v2 }
 0x2d5   :  { %v4829_v16 = vpop.f32.mrf.mxu0  ;;  %v11029_v49 = vpop.f32.mrf.mxu1 }
 0x2d6   :  { %v11033_v21 = vadd.f32 %v4829_v16, %v4717_v25  ;;  %v305_v16 = vld [vmem:[#allocation3 + $0x94] sm:$0x1] }
 0x2d7   :  { %v11031_v13 = vpop.f32.mrf.mxu0  ;;  %v4720_v40 = vpop.f32.mrf.mxu1 }
 0x2d8   :  { %v4721_v33 = vadd.f32 %v4720_v40, %v10849_v53  ;;  %v245_v53 = vsel %vm10764_vm6, 0, %v244_v51  ;;  %v306_v40 = vsel %vm10788_vm4, 0, %v305_v16 }
 0x2d9   :  { %v4833_v30 = vpop.f32.mrf.mxu0  ;;  %v11036_v60 = vpop.f32.mrf.mxu1  ;;  %246 = vst [vmem:[#allocation3 + $0x90] sm:$0x1] %v245_v53  ;;  %307 = vst [vmem:[#allocation3 + $0x94] sm:$0x1] %v306_v40 }
 0x2da   :  { %v11040_v1 = vadd.f32 %v4833_v30, %v4721_v33 }
 0x2db   :  { %v11038_v2 = vpop.f32.mrf.mxu0  ;;  %v4726_v50 = vpop.f32.mrf.mxu1 }
 0x2dc   :  { %12615 = vst [vmem:[#allocation28_spill] sm:$0xff] %v11040_v1  ;;  %v4727_v11 = vadd.f32 %v4726_v50, %v10858_v47 }
 0x2dd   :  { %v4839_v26 = vpop.f32.mrf.mxu0  ;;  %v4728_v31 = vpop.f32.mrf.mxu1 }
 0x2de   :  { %v11045_v25 = vadd.f32 %v4839_v26, %v4727_v11  ;;  %v11048_v63 = vadd.f32 %v4728_v31, %v10867_v5 }
 0x2df   :  { %v11043_v14 = vpop.f32.mrf.mxu0  ;;  %v4730_v30 = vpop.f32.mrf.mxu1 }
 0x2e0   :  { %12616 = vst [vmem:[#allocation29_spill] sm:$0xff] %v11045_v25  ;;  %v4731_v47 = vadd.f32 %v4730_v30, %v10874_v35 }
 0x2e1   :  { %v4843_v33 = vpop.f32.mrf.mxu0  ;;  %v4732_v50 = vpop.f32.mrf.mxu1 }
 0x2e2   :  { %v11057_v26 = vadd.f32 %v4843_v33, %v4731_v47  ;;  %v11060_v31 = vadd.f32 %v4732_v50, %v10883_v45 }
 0x2e3   :  { %v11055_v1 = vpop.f32.mrf.mxu0  ;;  %v4736_v5 = vpop.f32.mrf.mxu1 }
 0x2e4   :  { %v4737_v51 = vadd.f32 %v4736_v5, %v10896_v34 }
 0x2e5   :  { %v4849_v11 = vpop.f32.mrf.mxu0  ;;  %v4738_v17 = vpop.f32.mrf.mxu1 }
 0x2e6   :  { %v11065_v25 = vadd.f32 %v4849_v11, %v4737_v51  ;;  %v11068_v53 = vadd.f32 %v4738_v17, %v10904_v22 }
 0x2e7   :  { %v11063_v16 = vpop.f32.mrf.mxu0  ;;  %v4740_v35 = vpop.f32.mrf.mxu1 }
 0x2e8   :  { %12617 = vst [vmem:[#allocation30_spill] sm:$0xff] %v11065_v25  ;;  %v4741_v30 = vadd.f32 %v4740_v35, %v10912_v58 }
 0x2e9   :  { %v4853_v40 = vpop.f32.mrf.mxu0  ;;  %v4742_v33 = vpop.f32.mrf.mxu1 }
 0x2ea   :  { %v11073_v45 = vadd.f32 %v4853_v40, %v4741_v30  ;;  %v11076_v50 = vadd.f32 %v4742_v33, %v10919_v0 }
 0x2eb   :  { %v11071_v47 = vpop.f32.mrf.mxu0  ;;  %v4746_v34 = vpop.f32.mrf.mxu1 }
 0x2ec   :  { %12618 = vst [vmem:[#allocation31_spill] sm:$0xff] %v11073_v45  ;;  %v4747_v11 = vadd.f32 %v4746_v34, %v10925_v55 }
 0x2ed   :  { %v4859_v5 = vpop.f32.mrf.mxu0  ;;  %v4748_v51 = vpop.f32.mrf.mxu1 }
 0x2ee   :  { %v11081_v22 = vadd.f32 %v4859_v5, %v4747_v11  ;;  %v11084_v17 = vadd.f32 %v4748_v51, %v10931_v15  ;;  %v4995_v15 = vsub.s32 0, %v9378_v42  ;;  %v4467_v51 = vadd.f32 %v10756_v6, %v10695_v38 }
 0x2ef   :  { %v11079_v25 = vpop.f32.mrf.mxu0  ;;  %v4750_v58 = vpop.f32.mrf.mxu1 }
 0x2f0   :  { %12619 = vst [vmem:[#allocation32_spill] sm:$0xff] %v11081_v22  ;;  %v4751_v40 = vadd.f32 %v4750_v58, %v10940_v12  ;;  %v4576_v12 = vadd.f32 %v10750_v18, %v10754_v20  ;;  %v4580_v38 = vadd.f32 %v10758_v54, %v4467_v51 }
 0x2f1   :  { %v4863_v35 = vpop.f32.mrf.mxu0  ;;  %v4752_v30 = vpop.f32.mrf.mxu1 }
 0x2f2   :  { %v11089_v0 = vadd.f32 %v4863_v35, %v4751_v40  ;;  %v11092_v33 = vadd.f32 %v4752_v30, %v10947_v32  ;;  %v4689_v40 = vadd.f32 %v10971_v39, %v4576_v12  ;;  %v4693_v39 = vadd.f32 %v10982_v24, %v4580_v38  ;;  %v12623_v38 = vld [vmem:[#allocation15_spill] sm:$0xff] }
 0x2f3   :  { %v11087_v45 = vpop.f32.mrf.mxu0  ;;  %v4756_v55 = vpop.f32.mrf.mxu1 }
 0x2f4   :  { %v4757_v5 = vadd.f32 %v4756_v55, %v10955_v43  ;;  %v4991_v43 = vld [vmem:[%s12546_s7] sm:$0x3]  ;;  %v4999_v55 = vsub.s32 1, %v9378_v42 }
 0x2f5   :  { %v4869_v34 = vpop.f32.mrf.mxu0  ;;  %v4758_v11 = vpop.f32.mrf.mxu1 }
 0x2f6   :  { %v11102_v58 = vadd.f32 %v4869_v34, %v4757_v5  ;;  %v11105_v32 = vadd.f32 %v4758_v11, %v10958_v7  ;;  %v11119_v34 = vrot.slane %v4991_v43, %v4995_v15  ;;  %v4802_v11 = vadd.f32 %v10973_v46, %v4689_v40  ;;  %v12621_v15 = vld [vmem:[#allocation14_spill] sm:$0xff] }
 0x2f7   :  { %v11095_v22 = vpop.f32.mrf.mxu0  ;;  %v4760_v35 = vpop.f32.mrf.mxu1  ;;  %v11124_v12 = vrot.slane %v4991_v43, %v4999_v55  ;;  %v4477_v51 = vadd.f32 %v12621_v15, %v10713_v23  ;;  %v4806_v46 = vadd.f32 %v10984_v48, %v4693_v39 }
 0x2f8   :  { %v4761_v30 = vadd.f32 %v4760_v35, %v10965_v59 }
 0x2f9   :  { %v4873_v18 = vpop.f32.mrf.mxu0  ;;  %v4762_v20 = vpop.f32.mrf.mxu1 }
 0x2fa   :  { %v11114_v6 = vadd.f32 %v4873_v18, %v4761_v30  ;;  %v11117_v7 = vadd.f32 %v4762_v20, %v10968_v27  ;;  %v4586_v27 = vadd.f32 %v10795_v57, %v10800_v4  ;;  %v4590_v57 = vadd.f32 %v12623_v38, %v4477_v51  ;;  %v12624_v4 = vld [vmem:[#allocation17_spill] sm:$0xff] }
 0x2fb   :  { %v4912_v5 = vpop.f32.mrf.mxu1  ;;  %v12630_v38 = vld [vmem:[#allocation21_spill] sm:$0xff] }
 0x2fc   :  { %v4913_v59 = vadd.f32 %v4912_v5, %v10975_v29  ;;  %v4699_v43 = vadd.f32 %v10989_v52, %v4586_v27  ;;  %v12625_v5 = vld [vmem:[#allocation16_spill] sm:$0xff]  ;;  %v4703_v27 = vadd.f32 %v11000_v36, %v4590_v57 }
 0x2fd   :  { %v4914_v42 = vpop.f32.mrf.mxu1  ;;  %v4596_v23 = vadd.f32 %v12625_v5, %v12624_v4 }
 0x2fe   :  { %v11127_v35 = vadd.f32 %v11119_v34, %v4913_v59  ;;  %v4915_v54 = vadd.f32 %v4914_v42, %v4802_v11  ;;  %v12626_v11 = vld [vmem:[#allocation11_spill] sm:$0xff]  ;;  %v12627_v59 = vld [vmem:[#allocation18_spill] sm:$0xff] }
 0x2ff   :  { %v4916_v30 = vpop.f32.mrf.mxu1  ;;  %v4487_v48 = vadd.f32 %v12627_v59, %v12626_v11  ;;  %v4709_v15 = vadd.f32 %v11007_v61, %v4596_v23  ;;  %v12633_v61 = vld [vmem:[#allocation22_spill] sm:$0xff]  ;;  %v4816_v23 = vadd.f32 %v11002_v41, %v4703_v27 }
 0x300   :  { %12620 = vst [vmem:[#allocation33_spill] sm:$0xff] %v11127_v35  ;;  %v5004_v24 = vadd.f32 %v11124_v12, %v4915_v54  ;;  %v4917_v29 = vadd.f32 %v4916_v30, %v10986_v28  ;;  %v4812_v54 = vadd.f32 %v10991_v8, %v4699_v43  ;;  %v12632_v43 = vld [vmem:[#allocation12_spill] sm:$0xff]  ;;  %v5335_v35 = vld [vmem:[#allocation3 + $0x64] sm:$0x1] }
 0x301   :  { %v4918_v40 = vpop.f32.mrf.mxu1  ;;  %v4497_v57 = vadd.f32 %v12633_v61, %v12632_v43  ;;  %v4822_v59 = vadd.f32 %v11009_v62, %v4709_v15 }
 0x302   :  { %v5036_v55 = vmax.f32 %v5004_v24, 0.0  ;;  %v11138_v18 = vadd.f32 %v11119_v34, %v4917_v29  ;;  %v4919_v20 = vadd.f32 %v4918_v40, %v4806_v46  ;;  %v12629_v29 = vld [vmem:[#allocation19_spill] sm:$0xff] }
 0x303   :  { %v4922_v39 = vpop.f32.mrf.mxu1  ;;  %v4600_v40 = vadd.f32 %v12629_v29, %v4487_v48 }
 0x304   :  { %12622 = vst [vmem:[#allocation14_spill] sm:$0xff] %v11138_v18  ;;  %v8460_v42 = vpack.c.bf16 %v5036_v55, %v5036_v55  ;;  %v5006_v28 = vadd.f32 %v11124_v12, %v4919_v20  ;;  %v4923_v52 = vadd.f32 %v4922_v39, %v10993_v19  ;;  %v12631_v55 = vld [vmem:[#allocation20_spill] sm:$0xff]  ;;  %v5278_v39 = vld [vmem:[#allocation3 + $0x8] sm:$0xf] }
 0x305   :  { %v4924_v30 = vpop.f32.mrf.mxu1  ;;  %v4606_v4 = vadd.f32 %v12631_v55, %v12630_v38 }
 0x306   :  { %v5116_v51 = vshrl.u32 %v8460_v42, 16  ;;  %v5038_v46 = vmax.f32 %v5006_v28, 0.0  ;;  %v11151_v24 = vadd.f32 %v11119_v34, %v4923_v52  ;;  %v4925_v20 = vadd.f32 %v4924_v30, %v4812_v54  ;;  %v5281_v28 = vld [vmem:[#allocation3 + $0xc] sm:$0x1] }
 0x307   :  { %v4926_v5 = vpop.f32.mrf.mxu1  ;;  %v5119_v11 = vshll.u32 %v8460_v42, 16 }
 0x308   :  { %12628 = vst [vmem:[#allocation15_spill] sm:$0xff] %v11151_v24  ;;  %v5118_v19 = vrot.slane %v5116_v51, 7  ;;  %v8461_v8 = vpack.c.bf16 %v5038_v46, %v5038_v46  ;;  %v4927_v36 = vadd.f32 %v4926_v5, %v11004_v9  ;;  %v5008_v42 = vadd.f32 %v11124_v12, %v4925_v20  ;;  %v5287_v5 = vld [vmem:[#allocation3 + $0x14] sm:$0x1] }
 0x309   :  { %v4928_v52 = vpop.f32.mrf.mxu1  ;;  %v4713_v9 = vadd.f32 %v11018_v56, %v4600_v40  ;;  %v4719_v56 = vadd.f32 %v11029_v49, %v4606_v4  ;;  %v5284_v40 = vld [vmem:[#allocation3 + $0x10] sm:$0xf] }
 0x30a   :  { %v5121_v54 = vor.u32 %v5119_v11, %v5118_v19  ;;  %v5122_v30 = vrot.slane %v5118_v19, 4  ;;  %v5124_v51 = vshrl.u32 %v8461_v8, 16  ;;  %v5127_v46 = vshll.u32 %v8461_v8, 16 }
 0x30b   :  { %v5040_v41 = vmax.f32 %v5008_v42, 0.0  ;;  %v11170_v62 = vadd.f32 %v11119_v34, %v4927_v36  ;;  %v4929_v27 = vadd.f32 %v4928_v52, %v4816_v23  ;;  %v4932_v15 = vpop.f32.mrf.mxu1  ;;  %v4826_v49 = vadd.f32 %v11020_v37, %v4713_v9  ;;  %v5293_v37 = vld [vmem:[#allocation3 + $0x1c] sm:$0x1] }
 0x30c   :  { %v5279_v29 = vsel %vm11163_vm7, %v5121_v54, %v5278_v39  ;;  %v5282_v38 = vsel %vm10764_vm6, %v5122_v30, %v5281_v28  ;;  %v5126_v55 = vrot.slane %v5124_v51, 7  ;;  %v4933_v20 = vadd.f32 %v4932_v15, %v11011_v10  ;;  %v12638_v39 = vld [vmem:[#allocation23_spill] sm:$0xff] }
 0x30d   :  { %12636 = vst [vmem:[#allocation17_spill] sm:$0xff] %v11170_v62  ;;  %5280 = vst [vmem:[#allocation3 + $0x8] sm:$0xf] %v5279_v29  ;;  %v8462_v19 = vpack.c.bf16 %v5040_v41, %v5040_v41  ;;  %v5010_v11 = vadd.f32 %v11124_v12, %v4929_v27  ;;  %v4934_v8 = vpop.f32.mrf.mxu1  ;;  %v4610_v28 = vadd.f32 %v12638_v39, %v4497_v57  ;;  %v5290_v15 = vld [vmem:[#allocation3 + $0x18] sm:$0xf] }
 0x30e   :  { %5283 = vst [vmem:[#allocation3 + $0xc] sm:$0x1] %v5282_v38  ;;  %v5129_v36 = vor.u32 %v5127_v46, %v5126_v55  ;;  %v5130_v43 = vrot.slane %v5126_v55, 4  ;;  %v11180_v61 = vadd.f32 %v11119_v34, %v4933_v20  ;;  %v4935_v23 = vadd.f32 %v4934_v8, %v4822_v59  ;;  %v5296_v39 = vld [vmem:[#allocation3 + $0x20] sm:$0xf] }
 0x30f   :  { %v5132_v42 = vshrl.u32 %v8462_v19, 16  ;;  %v5042_v10 = vmax.f32 %v5010_v11, 0.0  ;;  %v4936_v52 = vpop.f32.mrf.mxu1  ;;  %v5135_v46 = vshll.u32 %v8462_v19, 16  ;;  %v4832_v27 = vadd.f32 %v11031_v13, %v4719_v56 }
 0x310   :  { %12637 = vst [vmem:[#allocation16_spill] sm:$0xff] %v11180_v61  ;;  %v5285_v4 = vsel %vm11163_vm7, %v5129_v36, %v5284_v40  ;;  %v5288_v54 = vsel %vm10764_vm6, %v5130_v43, %v5287_v5  ;;  %v5012_v30 = vadd.f32 %v11124_v12, %v4935_v23  ;;  %v4937_v57 = vadd.f32 %v4936_v52, %v11022_v3 }
 0x311   :  { %5286 = vst [vmem:[#allocation3 + $0x10] sm:$0xf] %v5285_v4  ;;  %5289 = vst [vmem:[#allocation3 + $0x14] sm:$0x1] %v5288_v54  ;;  %v5134_v51 = vrot.slane %v5132_v42, 7  ;;  %v8463_v59 = vpack.c.bf16 %v5042_v10, %v5042_v10  ;;  %v4938_v41 = vpop.f32.mrf.mxu1  ;;  %v4723_v38 = vadd.f32 %v11036_v60, %v4610_v28  ;;  %v12640_v42 = vld [vmem:[#allocation25_spill] sm:$0xff] }
 0x312   :  { %v5044_v9 = vmax.f32 %v5012_v30, 0.0  ;;  %v4939_v29 = vadd.f32 %v4938_v41, %v4826_v49  ;;  %v11193_v8 = vadd.f32 %v11119_v34, %v4937_v57 }
 0x313   :  { %v5137_v55 = vor.u32 %v5135_v46, %v5134_v51  ;;  %v5138_v20 = vrot.slane %v5134_v51, 4  ;;  %v5140_v40 = vshrl.u32 %v8463_v59, 16  ;;  %v4942_v5 = vpop.f32.mrf.mxu1  ;;  %v5143_v23 = vshll.u32 %v8463_v59, 16 }
 0x314   :  { %v8464_v11 = vpack.c.bf16 %v5044_v9, %v5044_v9  ;;  %12639 = vst [vmem:[#allocation11_spill] sm:$0xff] %v11193_v8  ;;  %v5014_v19 = vadd.f32 %v11124_v12, %v4939_v29  ;;  %v4943_v3 = vadd.f32 %v4942_v5, %v11033_v21  ;;  %v11197_v36 = vld [vmem:[#allocation3 + $0x8] sm:$0xf]  ;;  %v5299_v21 = vld [vmem:[#allocation3 + $0x24] sm:$0x1]  ;;  %v4836_v41 = vadd.f32 %v11038_v2, %v4723_v38 }
 0x315   :  { %v11199_v13 = vld [vmem:[#allocation3 + $0x8] sm:$0xf]  ;;  %v5291_v56 = vsel %vm11163_vm7, %v5137_v55, %v5290_v15  ;;  %v5294_v60 = vsel %vm10764_vm6, %v5138_v20, %v5293_v37  ;;  %v5142_v43 = vrot.slane %v5140_v40, 7  ;;  %v4944_v28 = vpop.f32.mrf.mxu1  ;;  %5887 = vrot.lane.b32.xlu0 %v11197_v36, %s9161_s28  ;;  %v11219_v55 = vadd.f32 %v11043_v14, %v11048_v63 }
 0x316   :  { %5407 = vst.msk [vmem:[#allocation5 + $0x14] sm:$0xf] %vm177_vm2, %v11199_v13  ;;  %5292 = vst [vmem:[#allocation3 + $0x18] sm:$0xf] %v5291_v56  ;;  %v5148_v52 = vshrl.u32 %v8464_v11, 16  ;;  %v5046_v54 = vmax.f32 %v5014_v19, 0.0  ;;  %v11212_v46 = vadd.f32 %v11119_v34, %v4943_v3  ;;  %v4945_v59 = vadd.f32 %v4944_v28, %v4832_v27 }
 0x317   :  { %5295 = vst [vmem:[#allocation3 + $0x1c] sm:$0x1] %v5294_v60  ;;  %v5145_v30 = vor.u32 %v5143_v23, %v5142_v43  ;;  %v5146_v51 = vrot.slane %v5142_v43, 4  ;;  %v4946_v57 = vpop.f32.mrf.mxu1  ;;  %v5151_v37 = vshll.u32 %v8464_v11, 16  ;;  %v5302_v5 = vld [vmem:[#allocation3 + $0x28] sm:$0xf]  ;;  %v11232_v14 = vadd.f32 %v11055_v1, %v11060_v31 }
 0x318   :  { %12642 = vst [vmem:[#allocation18_spill] sm:$0xff] %v11212_v46  ;;  %v5150_v15 = vrot.slane %v5148_v52, 7  ;;  %v8465_v9 = vpack.c.bf16 %v5046_v54, %v5046_v54  ;;  %v11215_v29 = vld [vmem:[#allocation3 + $0x10] sm:$0xf]  ;;  %v5305_v27 = vld [vmem:[#allocation3 + $0x2c] sm:$0x1]  ;;  %v5016_v19 = vadd.f32 %v11124_v12, %v4945_v59  ;;  %v11238_v56 = vadd.f32 %v11063_v16, %v11068_v53 }
 0x319   :  { %v5297_v20 = vsel %vm11163_vm7, %v5145_v30, %v5296_v39  ;;  %v5300_v40 = vsel %vm10764_vm6, %v5146_v51, %v5299_v21  ;;  %v4948_v2 = vpop.f32.mrf.mxu1  ;;  %5889 = vrot.lane.b32.xlu1 %v11215_v29, %s9161_s28  ;;  %v11228_v38 = vld [vmem:[#allocation3 + $0x10] sm:$0xf]  ;;  %v12643_v43 = vld [vmem:[#allocation28_spill] sm:$0xff]  ;;  %v11251_v16 = vadd.f32 %v11071_v47, %v11076_v50  ;;  %v5311_v30 = vld [vmem:[#allocation3 + $0x34] sm:$0x1]  ;;  %v4875_v47 = vpop.f32.mrf.mxu0 }
 0x31a   :  { %5298 = vst [vmem:[#allocation3 + $0x20] sm:$0xf] %v5297_v20  ;;  %5301 = vst [vmem:[#allocation3 + $0x24] sm:$0x1] %v5300_v40  ;;  %v5153_v63 = vor.u32 %v5151_v37, %v5150_v15  ;;  %v5154_v11 = vrot.slane %v5150_v15, 4  ;;  %v5156_v3 = vshrl.u32 %v8465_v9, 16  ;;  %v4947_v23 = vadd.f32 %v4946_v57, %v12643_v43 }
 0x31b   :  { %5408 = vst.msk [vmem:[#allocation5 + $0x28] sm:$0xf] %vm177_vm2, %v11228_v38  ;;  %v5048_v60 = vmax.f32 %v5016_v19, 0.0  ;;  %v4949_v39 = vadd.f32 %v4948_v2, %v4836_v41  ;;  %v4952_v28 = vpop.f32.mrf.mxu1  ;;  %v11241_v21 = vld [vmem:[#allocation3 + $0x10] sm:$0xf]  ;;  %v5159_v54 = vshll.u32 %v8465_v9, 16  ;;  %v11259_v15 = vadd.f32 %v11079_v25, %v11084_v17 }
 0x31c   :  { %v5303_v1 = vsel %vm11163_vm7, %v5153_v63, %v5302_v5  ;;  %v5306_v31 = vsel %vm10764_vm6, %v5154_v11, %v5305_v27  ;;  %v5158_v52 = vrot.slane %v5156_v3, 7  ;;  %6384 = vst.msk [vmem:[#allocation5 + $0xc] sm:$0xf] %vm177_vm2, %v11241_v21  ;;  %v5308_v53 = vld [vmem:[#allocation3 + $0x30] sm:$0xf]  ;;  %v11254_v59 = vadd.f32 %v11119_v34, %v4947_v23 }
 0x31d   :  { %5304 = vst [vmem:[#allocation3 + $0x28] sm:$0xf] %v5303_v1  ;;  %5307 = vst [vmem:[#allocation3 + $0x2c] sm:$0x1] %v5306_v31  ;;  %v8466_v51 = vpack.c.bf16 %v5048_v60, %v5048_v60  ;;  %v5018_v57 = vadd.f32 %v11124_v12, %v4949_v39  ;;  %v4954_v41 = vpop.f32.mrf.mxu1  ;;  %v11263_v37 = vadd.f32 %v11087_v45, %v11092_v33  ;;  %v11265_v20 = vld [vmem:[#allocation3 + $0xc] sm:$0x1] }
 0x31e   :  { %12644 = vst [vmem:[#allocation19_spill] sm:$0xff] %v11254_v59  ;;  %v5161_v50 = vor.u32 %v5159_v54, %v5158_v52  ;;  %v5162_v9 = vrot.slane %v5158_v52, 4  ;;  %v11267_v40 = vld [vmem:[#allocation3 + $0x18] sm:$0xf]  ;;  %v11271_v5 = vadd.f32 %v11095_v22, %v11105_v32  ;;  %v11274_v27 = vadd.f32 %v4875_v47, %v11117_v7  ;;  %v5317_v11 = vld [vmem:[#allocation3 + $0x3c] sm:$0x1] }
 0x31f   :  { %12645 = vst [vmem:[#allocation21_spill] sm:$0xff] %v11267_v40  ;;  %v5164_v25 = vshrl.u32 %v8466_v51, 16  ;;  %v5050_v17 = vmax.f32 %v5018_v57, 0.0  ;;  %v4956_v19 = vpop.f32.mrf.mxu1  ;;  %5409 = vst.msk [vmem:[#allocation5 + $0x3c] sm:$0xf] %vm177_vm2, %v11267_v40  ;;  %v5167_v2 = vshll.u32 %v8466_v51, 16  ;;  %v4955_v54 = vadd.f32 %v4954_v41, %v11219_v55 }
 0x320   :  { %v5309_v45 = vsel %vm11163_vm7, %v5161_v50, %v5308_v53  ;;  %v5312_v33 = vsel %vm10764_vm6, %v5162_v9, %v5311_v30  ;;  %v5314_v63 = vld [vmem:[#allocation3 + $0x38] sm:$0xf]  ;;  %v5952_v22 = vshrl.u32 %v11197_v36, 16  ;;  %v8318_v60 = vrot.slane %v11197_v36, 9  ;;  %v12646_v31 = vld [vmem:[#allocation29_spill] sm:$0xff] }
 0x321   :  { %v11283_v32 = vld [vmem:[#allocation3 + $0x18] sm:$0xf]  ;;  %5310 = vst [vmem:[#allocation3 + $0x30] sm:$0xf] %v5309_v45  ;;  %5313 = vst [vmem:[#allocation3 + $0x34] sm:$0x1] %v5312_v33  ;;  %v8467_v3 = vpack.c.bf16 %v5050_v17, %v5050_v17  ;;  %v4958_v23 = vpop.f32.mrf.mxu1  ;;  %v4953_v52 = vadd.f32 %v4952_v28, %v12646_v31  ;;  %v5020_v55 = vadd.f32 %v11124_v12, %v4955_v54 }
 0x322   :  { %v5166_v7 = vrot.slane %v5164_v25, 7  ;;  %v6225_v43 = vrot.slane %v11265_v20, 5  ;;  %6385 = vst.msk [vmem:[#allocation5 + $0x20] sm:$0xf] %vm177_vm2, %v11283_v32  ;;  %v5955_v39 = vshll.u32 %v11197_v36, 16  ;;  %v5966_v1 = vshrl.u32 %v11215_v29, 16 }
 0x323   :  { %v5842_v53 = vld [vmem:[#allocation3 + $0x14] sm:$0x1]  ;;  %v11293_v30 = vld [vmem:[#allocation3 + $0x20] sm:$0xf]  ;;  %v5172_v47 = vshrl.u32 %v8467_v3, 16  ;;  %v8319_v50 = vrot.slane %v11215_v29, 9  ;;  %v11301_v28 = vadd.f32 %v11119_v34, %v4953_v52  ;;  %v11304_v41 = vpop.f32.mrf.mxu1 }
 0x324   :  { %v5169_v51 = vor.u32 %v5167_v2, %v5166_v7  ;;  %v5170_v57 = vrot.slane %v5166_v7, 4  ;;  %5410 = vst.msk [vmem:[#allocation5 + $0x50] sm:$0xf] %vm177_vm2, %v11293_v30  ;;  %v5175_v9 = vshll.u32 %v8467_v3, 16  ;;  %v5320_v25 = vld [vmem:[#allocation3 + $0x40] sm:$0xf]  ;;  %v6226_v45 = vsel %vm9550_vm14, %v8318_v60, %v6225_v43 }
 0x325   :  { %v5323_v36 = vld [vmem:[#allocation3 + $0x44] sm:$0x1]  ;;  %12648 = vst [vmem:[#allocation20_spill] sm:$0xff] %v11301_v28  ;;  %v9036_v33 = vld [vmem:[%s12547_s8 + $0x78] sm:$0xff]   ;;  %v5174_v3 = vrot.slane %v5172_v47, 7  ;;  %6287 = vrot.lane.b32.xlu0 %v6226_v45, %s9161_s28  ;;  %v6229_v60 = vrot.slane %v5842_v53, 5  ;;  %v4957_v47 = vadd.f32 %v4956_v19, %v11057_v26  ;;  %v4964_v26 = vpop.f32.mrf.mxu1 }
 0x326   :  { %v5315_v2 = vsel %vm11163_vm7, %v5169_v51, %v5314_v63  ;;  %v5318_v7 = vsel %vm10764_vm6, %v5170_v57, %v5317_v11  ;;  %v11314_v43 = vld [vmem:[#allocation3 + $0x18] sm:$0xf]  ;;  %v11316_v31 = vld [vmem:[#allocation3 + $0x20] sm:$0xf]  ;;  %v5969_v52 = vshll.u32 %v11215_v29, 16  ;;  %v5961_v54 = vshll.u32 %v11265_v20, 16  ;;  %8485 = vmatprep.subr.bf16.mxu0 %v9036_v33 }
 0x327   :  { %5316 = vst [vmem:[#allocation3 + $0x38] sm:$0xf] %v5315_v2  ;;  %5319 = vst [vmem:[#allocation3 + $0x3c] sm:$0x1] %v5318_v7  ;;  %v5052_v4 = vmax.f32 %v5020_v55, 0.0  ;;  %v5975_v10 = vshll.u32 %v5842_v53, 16  ;;  %v5177_v11 = vor.u32 %v5175_v9, %v5174_v3  ;;  %v6230_v57 = vsel %vm9550_vm14, %v8319_v50, %v6229_v60 }
 0x328   :  { %6386 = vst.msk [vmem:[#allocation5 + $0x34] sm:$0xf] %vm177_vm2, %v11316_v31  ;;  %v11322_v63 = vld [vmem:[#allocation3 + $0x28] sm:$0xf]  ;;  %v5178_v51 = vrot.slane %v5174_v3, 4  ;;  %v9037_v20 = vld [vmem:[%s12547_s8 + $0x38] sm:$0xff]   ;;  %6289 = vrot.lane.b32.xlu1 %v6230_v57, %s9161_s28  ;;  %v4959_v50 = vadd.f32 %v4958_v23, %v11232_v14  ;;  %v4965_v62 = vadd.f32 %v4964_v26, %v11238_v56 }
 0x329   :  { %5411 = vst.msk [vmem:[#allocation5 + $0x64] sm:$0xf] %vm177_vm2, %v11322_v63  ;;  %v11329_v29 = vld [vmem:[#allocation3 + $0x28] sm:$0xf]  ;;  %v11334_v53 = vrot.slane %v5952_v22, 4  ;;  %v11336_v45 = vrot.slane %v5955_v39, 5  ;;  %v8468_v9 = vpack.c.bf16 %v5052_v4, %v5052_v4  ;;  %v5321_v19 = vsel %vm11163_vm7, %v5177_v11, %v5320_v25  ;;  %5891 = vrot.lane.b32.xlu0 %v11314_v43, %s9161_s28  ;;  %8486 = vmatpush3.bf16.msra.mxu0 %v9037_v20  ;;  %v11374_v20 = vpop.f32.mrf.mxu1 }
 0x32a   :  { %v11340_v55 = vld [vmem:[#allocation3 + $0x1c] sm:$0x1]  ;;  %6387 = vst.msk [vmem:[#allocation5 + $0x48] sm:$0xf] %vm177_vm2, %v11329_v29  ;;  %v5324_v22 = vsel %vm10764_vm6, %v5178_v51, %v5323_v36  ;;  %v11348_v33 = vrot.slane %v5966_v1, 4  ;;  %v11353_v4 = vadd.f32 %v11119_v34, %v4957_v47  ;;  %v11357_v23 = vrot.slane %v5969_v52, 5 }
 0x32b   :  { %v11355_v14 = vld [vmem:[#allocation3 + $0x30] sm:$0xf]  ;;  %5322 = vst [vmem:[#allocation3 + $0x40] sm:$0xf] %v5321_v19  ;;  %5325 = vst [vmem:[#allocation3 + $0x44] sm:$0x1] %v5324_v22  ;;  %v5022_v25 = vadd.f32 %v11124_v12, %v4959_v50 }
 0x32c   :  { %12649 = vst [vmem:[#allocation12_spill] sm:$0xff] %v11353_v4  ;;  %v5180_v39 = vshrl.u32 %v8468_v9, 16  ;;  %v8320_v36 = vrot.slane %v11314_v43, 9  ;;  %5412 = vst.msk [vmem:[#allocation5 + $0x78] sm:$0xf] %vm177_vm2, %v11355_v14  ;;  %v11363_v1 = vrot.slane %v5961_v54, 5 }
 0x32d   :  { %v11365_v2 = vrot.slane %v5975_v10, 5  ;;  %v6233_v7 = vrot.slane %v11340_v55, 5  ;;  %v5437_v3 = vshrl.u32 %v11199_v13, 16  ;;  %v11369_v60 = vld [vmem:[#allocation3 + $0x30] sm:$0xf]  ;;  %v5183_v11 = vshll.u32 %v8468_v9, 16 }
 0x32e   :  { %v5182_v52 = vrot.slane %v5180_v39, 7  ;;  %v5054_v51 = vmax.f32 %v5022_v25, 0.0  ;;  %v11371_v57 = vld [vmem:[#allocation3 + $0xc] sm:$0x1]  ;;  %v5440_v47 = vshll.u32 %v11199_v13, 16  ;;  %v5980_v50 = vshrl.u32 %v11314_v43, 16 }
 0x32f   :  { %12650 = vst [vmem:[#allocation22_spill] sm:$0xff] %v11365_v2  ;;  %6388 = vst.msk [vmem:[#allocation5 + $0x5c] sm:$0xf] %vm177_vm2, %v11369_v60  ;;  %v5326_v10 = vld [vmem:[#allocation3 + $0x58] sm:$0xf]  ;;  %v6234_v19 = vsel %vm9550_vm14, %v8320_v36, %v6233_v7  ;;  %v5439_v22 = vrot.slane %v5437_v3, 4 }
 0x330   :  { %v5329_v54 = vld [vmem:[#allocation3 + $0x5c] sm:$0x1]  ;;  %v12651_v39 = vld [vmem:[#allocation30_spill] sm:$0xff]  ;;  %v5185_v25 = vor.u32 %v5183_v11, %v5182_v52  ;;  %v5186_v4 = vrot.slane %v5182_v52, 4  ;;  %v8469_v28 = vpack.c.bf16 %v5054_v51, %v5054_v51  ;;  %6291 = vrot.lane.b32.xlu0 %v6234_v19, %s9161_s28  ;;  %v5442_v8 = vrot.slane %v5440_v47, 5  ;;  %v4968_v47 = vpop.f32.mrf.mxu1 }
 0x331   :  { %v4963_v9 = vadd.f32 %v11304_v41, %v12651_v39  ;;  %v11384_v59 = vld [vmem:[#allocation3 + $0x38] sm:$0xf]  ;;  %v5446_v46 = vshll.u32 %v11371_v57, 16  ;;  %v11391_v36 = vld [vmem:[#allocation3 + $0x14] sm:$0x1]  ;;  %v5451_v7 = vshrl.u32 %v11228_v38, 16  ;;  %v5024_v39 = vadd.f32 %v11124_v12, %v4965_v62 }
 0x332   :  { %12652 = vst [vmem:[#allocation23_spill] sm:$0xff] %v11384_v59  ;;  %12654 = vst [vmem:[#allocation28_spill] sm:$0xff] %v11391_v36  ;;  %v11396_v41 = vld [vmem:[#allocation3 + $0x38] sm:$0xf]  ;;  %v5327_v3 = vsel %vm11163_vm7, %v5185_v25, %v5326_v10  ;;  %v5330_v52 = vsel %vm10764_vm6, %v5186_v4, %v5329_v54  ;;  %v5983_v11 = vshll.u32 %v11314_v43, 16  ;;  %v5188_v51 = vshrl.u32 %v8469_v28, 16 }
 0x333   :  { %v11388_v61 = vadd.f32 %v11119_v34, %v4963_v9  ;;  %5413 = vst.msk [vmem:[#allocation5 + $0x8c] sm:$0xf] %vm177_vm2, %v11384_v59  ;;  %6389 = vst.msk [vmem:[#allocation5 + $0x70] sm:$0xf] %vm177_vm2, %v11396_v41  ;;  %v9038_v56 = vld [vmem:[%s12547_s8 + $0x70] sm:$0xff]   ;;  %v9040_v10 = vld [vmem:[%s12547_s8 + $0x68] sm:$0xff]   ;;  %v5443_v19 = vor.u32 %v5442_v8, %v5439_v22  ;;  %v11426_v22 = vpop.f32.mrf.mxu1 }
 0x334   :  { %v9039_v26 = vld [vmem:[%s12547_s8 + $0x30] sm:$0xff]   ;;  %5328 = vst [vmem:[#allocation3 + $0x58] sm:$0xf] %v5327_v3  ;;  %5331 = vst [vmem:[#allocation3 + $0x5c] sm:$0x1] %v5330_v52  ;;  %v11414_v43 = vrot.slane %v5980_v50, 4  ;;  %8487 = vmatprep.subr.bf16.mxu0 %v9038_v56 }
 0x335   :  { %12653 = vst [vmem:[#allocation25_spill] sm:$0xff] %v11388_v61  ;;  %v5332_v4 = vld [vmem:[#allocation3 + $0x60] sm:$0xf]  ;;  %v5989_v54 = vshll.u32 %v11340_v55, 16  ;;  %v5190_v9 = vrot.slane %v5188_v51, 7  ;;  %v5191_v25 = vshll.u32 %v8469_v28, 16  ;;  %8488 = vmatpush3.bf16.msra.mxu0 %v9039_v26 }
 0x336   :  { %v5453_v61 = vrot.slane %v5451_v7, 4  ;;  %v5454_v24 = vshll.u32 %v11228_v38, 16  ;;  %v11419_v18 = vld [vmem:[#allocation3 + $0x40] sm:$0xf]  ;;  %v5444_v49 = vrot.slane %v5443_v19, 4  ;;  %v5448_v3 = vrot.slane %v5446_v46, 5  ;;  %8489 = vmatprep.subr.bf16.mxu0 %v9040_v10 }
 0x337   :  { %v5056_v52 = vmax.f32 %v5024_v39, 0.0  ;;  %v5460_v50 = vshll.u32 %v11391_v36, 16  ;;  %6390 = vst.msk [vmem:[#allocation5 + $0x84] sm:$0xf] %vm177_vm2, %v11419_v18  ;;  %v11424_v8 = vrot.slane %v5983_v11, 5  ;;  %v5193_v62 = vor.u32 %v5191_v25, %v5190_v9  ;;  %v9041_v7 = vld [vmem:[%s12547_s8 + $0x28] sm:$0xff]  }
 0x338   :  { %v5194_v28 = vrot.slane %v5190_v9, 4  ;;  %v5456_v55 = vrot.slane %v5454_v24, 5  ;;  %v9042_v46 = vld [vmem:[%s12547_s8 + $0x60] sm:$0xff]   ;;  %v11434_v51 = vrot.slane %v5989_v54, 5  ;;  %v5449_v11 = vsel %vm9568_vm15, %v5444_v49, %v5448_v3  ;;  %v12658_v9 = vld [vmem:[#allocation31_spill] sm:$0xff] }
 0x339   :  { %12655 = vst [vmem:[#allocation29_spill] sm:$0xff] %v11424_v8  ;;  %v8470_v19 = vpack.c.bf16 %v5056_v52, %v5056_v52  ;;  %v5333_v24 = vsel %vm11163_vm7, %v5193_v62, %v5332_v4  ;;  %5648 = vrot.lane.b32.xlu1 %v5449_v11, %s9161_s28  ;;  %v4967_v25 = vadd.f32 %v11374_v20, %v12658_v9  ;;  %v6353_v54 = vld [vmem:[#allocation3 + $0x14] sm:$0x1]  ;;  %v5462_v49 = vrot.slane %v5460_v50, 5  ;;  %v11446_v3 = vld [vmem:[#allocation3 + $0x20] sm:$0xf]  ;;  %v4974_v11 = vpop.f32.mrf.mxu1 }
 0x33a   :  { %12656 = vst [vmem:[#allocation9_spill] sm:$0xff] %v11434_v51  ;;  %v5336_v10 = vsel %vm10764_vm6, %v5194_v28, %v5335_v35  ;;  %v5457_v39 = vor.u32 %v5456_v55, %v5453_v61  ;;  %5334 = vst [vmem:[#allocation3 + $0x60] sm:$0xf] %v5333_v24  ;;  %v4969_v52 = vadd.f32 %v4968_v47, %v11251_v16  ;;  %v6401_v4 = vshrl.u32 %v11241_v21, 16  ;;  %v9043_v35 = vld [vmem:[%s12547_s8 + $0x20] sm:$0xff]   ;;  %v9044_v16 = vld [vmem:[%s12547_s8 + $0x58] sm:$0xff]  }
 0x33b   :  { %5337 = vst [vmem:[#allocation3 + $0x64] sm:$0x1] %v5336_v10  ;;  %v5196_v51 = vshrl.u32 %v8470_v19, 16  ;;  %8490 = vmatpush3.bf16.msra.mxu0 %v9041_v7  ;;  %v5199_v61 = vshll.u32 %v8470_v19, 16  ;;  %v5338_v62 = vld [vmem:[#allocation3 + $0x68] sm:$0xf]  ;;  %v11454_v20 = vadd.f32 %v11119_v34, %v4967_v25 }
 0x33c   :  { %v5458_v28 = vrot.slane %v5457_v39, 4  ;;  %v6404_v55 = vshll.u32 %v11241_v21, 16  ;;  %v11457_v50 = vld [vmem:[#allocation3 + $0x24] sm:$0x1]  ;;  %8491 = vmatprep.subr.bf16.mxu0 %v9042_v46  ;;  %v5026_v7 = vadd.f32 %v11124_v12, %v4969_v52  ;;  %v6403_v24 = vrot.slane %v6401_v4, 4  ;;  %v9045_v39 = vld [vmem:[%s12547_s8 + $0xf8] sm:$0xff]  }
 0x33d   :  { %12659 = vst [vmem:[#allocation30_spill] sm:$0xff] %v11454_v20  ;;  %v5198_v47 = vrot.slane %v5196_v51, 7  ;;  %v8334_v19 = vrot.slane %v11241_v21, 9  ;;  %v11464_v10 = vld [vmem:[#allocation3 + $0x58] sm:$0xf]  ;;  %v5994_v25 = vshrl.u32 %v11446_v3, 16  ;;  %5893 = vrot.lane.b32.xlu1 %v11446_v3, %s9161_s28  ;;  %8549 = vmatprep.subr.bf16.mxu1 %v9045_v39 }
 0x33e   :  { %12660 = vst [vmem:[#allocation10_spill] sm:$0xff] %v11464_v10  ;;  %v5341_v9 = vld [vmem:[#allocation3 + $0x6c] sm:$0x1]  ;;  %v5463_v46 = vsel %vm9568_vm15, %v5458_v28, %v5462_v49  ;;  %v6406_v51 = vrot.slane %v6404_v55, 5  ;;  %v6410_v52 = vshll.u32 %v6353_v54, 16  ;;  %v5058_v26 = vmax.f32 %v5026_v7, 0.0 }
 0x33f   :  { %5415 = vst.msk [vmem:[#allocation5 + $0xb4] sm:$0xf] %vm177_vm2, %v11464_v10  ;;  %v5201_v21 = vor.u32 %v5199_v61, %v5198_v47  ;;  %v5202_v4 = vrot.slane %v5198_v47, 4  ;;  %5650 = vrot.lane.b32.xlu0 %v5463_v46, %s9161_s28  ;;  %v6722_v20 = vrot.slane %v6353_v54, 5  ;;  %8492 = vmatpush3.bf16.msra.mxu0 %v9043_v35  ;;  %v9046_v49 = vld [vmem:[%s12547_s8 + $0x18] sm:$0xff]   ;;  %v5997_v55 = vshll.u32 %v11446_v3, 16  ;;  %v4976_v47 = vpop.f32.mrf.mxu1 }
 0x340   :  { %v9047_v28 = vld [vmem:[%s12547_s8 + $0xb8] sm:$0xff]   ;;  %v6407_v2 = vor.u32 %v6406_v51, %v6403_v24  ;;  %v8321_v8 = vrot.slane %v11446_v3, 9  ;;  %v6237_v61 = vrot.slane %v11457_v50, 5  ;;  %8493 = vmatprep.subr.bf16.mxu0 %v9044_v16  ;;  %v8471_v7 = vpack.c.bf16 %v5058_v26, %v5058_v26 }
 0x341   :  { %v5339_v54 = vsel %vm11163_vm7, %v5201_v21, %v5338_v62  ;;  %v5342_v35 = vsel %vm10764_vm6, %v5202_v4, %v5341_v9  ;;  %v6723_v46 = vsel %vm9550_vm14, %v8334_v19, %v6722_v20  ;;  %8550 = vmatpush3.bf16.msra.mxu1 %v9047_v28  ;;  %v6412_v3 = vrot.slane %v6410_v52, 5  ;;  %v12661_v39 = vld [vmem:[#allocation32_spill] sm:$0xff]  ;;  %v11506_v52 = vld [vmem:[#allocation3 + $0x28] sm:$0xf]  ;;  %v4978_v28 = vpop.f32.mrf.mxu1 }
 0x342   :  { %5340 = vst [vmem:[#allocation3 + $0x68] sm:$0xf] %v5339_v54  ;;  %5343 = vst [vmem:[#allocation3 + $0x6c] sm:$0x1] %v5342_v35  ;;  %v6408_v24 = vrot.slane %v6407_v2, 4  ;;  %v6238_v16 = vsel %vm9550_vm14, %v8321_v8, %v6237_v61  ;;  %v4973_v62 = vadd.f32 %v11426_v22, %v12661_v39  ;;  %v11502_v20 = vrot.slane %v5994_v25, 4 }
 0x343   :  { %6800 = vst.msk [vmem:[#allocation5 + $0x10] sm:$0xf] %vm177_vm2, %v6723_v46  ;;  %v11497_v51 = vld [vmem:[#allocation3 + $0x1c] sm:$0x1]  ;;  %v11499_v9 = vld [vmem:[#allocation3 + $0x60] sm:$0xf]  ;;  %6293 = vrot.lane.b32.xlu1 %v6238_v16, %s9161_s28  ;;  %v4975_v2 = vadd.f32 %v4974_v11, %v11259_v15  ;;  %8494 = vmatpush3.bf16.msra.mxu0 %v9046_v49 }
 0x344   :  { %12662 = vst [vmem:[#allocation31_spill] sm:$0xff] %v11499_v9  ;;  %12663 = vst [vmem:[#allocation32_spill] sm:$0xff] %v11502_v20  ;;  %v5204_v19 = vshrl.u32 %v8471_v7, 16  ;;  %v5344_v8 = vld [vmem:[#allocation3 + $0x70] sm:$0xf]  ;;  %v6413_v22 = vsel %vm9568_vm15, %v6408_v24, %v6412_v3  ;;  %v6003_v21 = vshll.u32 %v11457_v50, 16  ;;  %v11514_v25 = vadd.f32 %v11119_v34, %v4973_v62 }
 0x345   :  { %5416 = vst.msk [vmem:[#allocation5 + $0xc8] sm:$0xf] %vm177_vm2, %v11499_v9  ;;  %v5465_v4 = vshrl.u32 %v11267_v40, 16  ;;  %v11517_v61 = vld [vmem:[#allocation3 + $0x60] sm:$0xf]  ;;  %v5207_v11 = vshll.u32 %v8471_v7, 16  ;;  %6624 = vrot.lane.b32.xlu0 %v6413_v22, %s9161_s28  ;;  %v5028_v49 = vadd.f32 %v11124_v12, %v4975_v2 }
 0x346   :  { %12664 = vst [vmem:[#allocation34_spill] sm:$0xff] %v11514_v25  ;;  %v5206_v15 = vrot.slane %v5204_v19, 7  ;;  %v5347_v54 = vld [vmem:[#allocation3 + $0x74] sm:$0x1]  ;;  %v5468_v35 = vshll.u32 %v11267_v40, 16  ;;  %v11524_v50 = vrot.slane %v5997_v55, 5 }
 0x347   :  { %6392 = vst.msk [vmem:[#allocation5 + $0xac] sm:$0xf] %vm177_vm2, %v11517_v61  ;;  %v6008_v46 = vshrl.u32 %v11506_v52, 16  ;;  %v5467_v24 = vrot.slane %v5465_v4, 4  ;;  %v5474_v3 = vshll.u32 %v11497_v51, 16  ;;  %v9048_v7 = vld [vmem:[%s12547_s8 + $0x50] sm:$0xff]  }
 0x348   :  { %12665 = vst [vmem:[#allocation35_spill] sm:$0xff] %v11524_v50  ;;  %v9049_v16 = vld [vmem:[%s12547_s8 + $0xf0] sm:$0xff]   ;;  %v5209_v39 = vor.u32 %v5207_v11, %v5206_v15  ;;  %v5210_v62 = vrot.slane %v5206_v15, 4  ;;  %v5060_v19 = vmax.f32 %v5028_v49, 0.0  ;;  %v5470_v2 = vrot.slane %v5468_v35, 5  ;;  %v9052_v4 = vld [vmem:[%s12547_s8 + $0x48] sm:$0xff]   ;;  %v4982_v35 = vpop.f32.mrf.mxu1  ;;  %8495 = vmatprep.subr.bf16.mxu0 %v9048_v7 }
 0x349   :  { %v9050_v55 = vld [vmem:[%s12547_s8 + $0x10] sm:$0xff]   ;;  %v11543_v26 = vrot.slane %v6003_v21, 5  ;;  %v6011_v25 = vshll.u32 %v11506_v52, 16  ;;  %v4977_v15 = vadd.f32 %v4976_v47, %v11089_v0  ;;  %v4979_v11 = vadd.f32 %v4978_v28, %v11263_v37  ;;  %v11548_v49 = vld [vmem:[#allocation3 + $0x2c] sm:$0x1]  ;;  %8551 = vmatprep.subr.bf16.mxu1 %v9049_v16  ;;  %5895 = vrot.lane.b32.xlu0 %v11506_v52, %s9161_s28  ;;  %v12716_v44 = vld [vmem:[#allocation28_spill] sm:$0xff] }
 0x34a   :  { %v9051_v22 = vld [vmem:[%s12547_s8 + $0xb0] sm:$0xff]   ;;  %v9053_v50 = vld [vmem:[%s12547_s8 + $0xe8] sm:$0xff]   ;;  %v5345_v20 = vsel %vm11163_vm7, %v5209_v39, %v5344_v8  ;;  %v5348_v21 = vsel %vm10764_vm6, %v5210_v62, %v5347_v54  ;;  %v5471_v0 = vor.u32 %v5470_v2, %v5467_v24  ;;  %v11561_v47 = vrot.slane %v6008_v46, 4  ;;  %v11568_v16 = vld [vmem:[#allocation3 + $0x1c] sm:$0x1]  ;;  %8496 = vmatpush3.bf16.msra.mxu0 %v9050_v55 }
 0x34b   :  { %12666 = vst [vmem:[#allocation36_spill] sm:$0xff] %v11543_v26  ;;  %v8472_v26 = vpack.c.bf16 %v5060_v19, %v5060_v19  ;;  %v11559_v37 = vld [vmem:[#allocation3 + $0x68] sm:$0xf]  ;;  %5346 = vst [vmem:[#allocation3 + $0x70] sm:$0xf] %v5345_v20  ;;  %v11564_v28 = vadd.f32 %v11119_v34, %v4977_v15  ;;  %v5030_v7 = vadd.f32 %v11124_v12, %v4979_v11  ;;  %v8322_v8 = vrot.slane %v11506_v52, 9 }
 0x34c   :  { %12667 = vst [vmem:[#allocation37_spill] sm:$0xff] %v11559_v37  ;;  %5349 = vst [vmem:[#allocation3 + $0x74] sm:$0x1] %v5348_v21  ;;  %v11572_v54 = vld [vmem:[#allocation3 + $0x68] sm:$0xf]  ;;  %8552 = vmatpush3.bf16.msra.mxu1 %v9051_v22  ;;  %v5472_v24 = vrot.slane %v5471_v0, 4  ;;  %8497 = vmatprep.subr.bf16.mxu0 %v9052_v4  ;;  %v4984_v22 = vpop.f32.mrf.mxu1 }
 0x34d   :  { %12668 = vst [vmem:[#allocation38_spill] sm:$0xff] %v11561_v47  ;;  %12669 = vst [vmem:[#allocation39_spill] sm:$0xff] %v11564_v28  ;;  %v5212_v20 = vshrl.u32 %v8472_v26, 16  ;;  %v5476_v46 = vrot.slane %v5474_v3, 5  ;;  %v6241_v39 = vrot.slane %v11548_v49, 5  ;;  %8553 = vmatprep.subr.bf16.mxu1 %v9053_v50  ;;  %v9054_v52 = vld [vmem:[%s12547_s8 + $0x8] sm:$0xff]  }
 0x34e   :  { %5417 = vst.msk [vmem:[#allocation5 + $0xdc] sm:$0xf] %vm177_vm2, %v11559_v37  ;;  %6393 = vst.msk [vmem:[#allocation5 + $0xc0] sm:$0xf] %vm177_vm2, %v11572_v54  ;;  %v9055_v62 = vld [vmem:[%s12547_s8 + $0xa8] sm:$0xff]   ;;  %v5215_v19 = vshll.u32 %v8472_v26, 16  ;;  %8498 = vmatpush3.bf16.msra.mxu0 %v9054_v52 }
 0x34f   :  { %v11583_v2 = vrot.slane %v6011_v25, 5  ;;  %v5062_v55 = vmax.f32 %v5030_v7, 0.0  ;;  %v6415_v3 = vshrl.u32 %v11283_v32, 16  ;;  %v9056_v4 = vld [vmem:[%s12547_s8 + $0x40] sm:$0xff]   ;;  %v5214_v15 = vrot.slane %v5212_v20, 7 }
 0x350   :  { %v9057_v50 = vld [vmem:[%s12547_s8 + $0xe0] sm:$0xff]   ;;  %v5350_v11 = vld [vmem:[#allocation3 + $0x78] sm:$0xf]  ;;  %v5477_v21 = vsel %vm9568_vm15, %v5472_v24, %v5476_v46  ;;  %v6242_v26 = vsel %vm9550_vm14, %v8322_v8, %v6241_v39  ;;  %v6418_v25 = vshll.u32 %v11283_v32, 16  ;;  %v5353_v0 = vld [vmem:[#allocation3 + $0x7c] sm:$0x1]  ;;  %8554 = vmatpush3.bf16.msra.mxu1 %v9055_v62  ;;  %8499 = vmatprep.subr.bf16.mxu0 %v9056_v4 }
 0x351   :  { %12670 = vst [vmem:[#allocation40_spill] sm:$0xff] %v11583_v2  ;;  %5652 = vrot.lane.b32.xlu1 %v5477_v21, %s9161_s28  ;;  %v8473_v7 = vpack.c.bf16 %v5062_v55, %v5062_v55  ;;  %6295 = vrot.lane.b32.xlu0 %v6242_v26, %s9161_s28  ;;  %v6417_v28 = vrot.slane %v6415_v3, 4  ;;  %v6424_v2 = vshll.u32 %v11568_v16, 16  ;;  %v8335_v20 = vrot.slane %v11283_v32, 9  ;;  %v9058_v8 = vld [vmem:[%s12547_s8] sm:$0xff]  }
 0x352   :  { %v5217_v47 = vor.u32 %v5215_v19, %v5214_v15  ;;  %v5218_v40 = vrot.slane %v5214_v15, 4  ;;  %v6420_v36 = vrot.slane %v6418_v25, 5  ;;  %v6726_v24 = vrot.slane %v11568_v16, 5  ;;  %v9059_v46 = vld [vmem:[%s12547_s8 + $0xa0] sm:$0xff]   ;;  %v4986_v19 = vpop.f32.mrf.mxu1  ;;  %8555 = vmatprep.subr.bf16.mxu1 %v9057_v50  ;;  %v9063_v16 = vld [vmem:[%s12547_s8 + $0xd8] sm:$0xff]   ;;  %8500 = vmatpush3.bf16.msra.mxu0 %v9058_v8 }
 0x353   :  { %v5220_v39 = vshrl.u32 %v8473_v7, 16  ;;  %v5223_v55 = vshll.u32 %v8473_v7, 16  ;;  %v6017_v3 = vshll.u32 %v11548_v49, 16  ;;  %v4983_v32 = vadd.f32 %v4982_v35, %v11102_v58  ;;  %v5356_v15 = vld [vmem:[#allocation3 + $0x80] sm:$0xf] }
 0x354   :  { %v5351_v52 = vsel %vm11163_vm7, %v5217_v47, %v5350_v11  ;;  %v5354_v62 = vsel %vm10764_vm6, %v5218_v40, %v5353_v0  ;;  %v5359_v21 = vld [vmem:[#allocation3 + $0x84] sm:$0x1]  ;;  %v6421_v26 = vor.u32 %v6420_v36, %v6417_v28  ;;  %v6727_v49 = vsel %vm9550_vm14, %v8335_v20, %v6726_v24  ;;  %v11621_v35 = vld [vmem:[#allocation3 + $0x70] sm:$0xf]  ;;  %8556 = vmatpush3.bf16.msra.mxu1 %v9059_v46 }
 0x355   :  { %v11619_v58 = vld [vmem:[#allocation3 + $0x24] sm:$0x1]  ;;  %12671 = vst [vmem:[#allocation41_spill] sm:$0xff] %v11621_v35  ;;  %5352 = vst [vmem:[#allocation3 + $0x78] sm:$0xf] %v5351_v52  ;;  %v5222_v4 = vrot.slane %v5220_v39, 7  ;;  %v11625_v47 = vadd.f32 %v11119_v34, %v4983_v32  ;;  %v4985_v40 = vadd.f32 %v4984_v22, %v11271_v5  ;;  %v4988_v32 = vpop.f32.mrf.mxu1  ;;  %8557 = vmatprep.subr.bf16.mxu1 %v9063_v16 }
 0x356   :  { %5355 = vst [vmem:[#allocation3 + $0x7c] sm:$0x1] %v5354_v62  ;;  %6801 = vst.msk [vmem:[#allocation5 + $0x24] sm:$0xf] %vm177_vm2, %v6727_v49  ;;  %v5479_v50 = vshrl.u32 %v11293_v30, 16  ;;  %v6422_v25 = vrot.slane %v6421_v26, 4 }
 0x357   :  { %12672 = vst [vmem:[#allocation42_spill] sm:$0xff] %v11625_v47  ;;  %v11629_v36 = vld [vmem:[#allocation3 + $0x30] sm:$0xf]  ;;  %5418 = vst.msk [vmem:[#allocation5 + $0xf0] sm:$0xf] %vm177_vm2, %v11621_v35  ;;  %v6426_v0 = vrot.slane %v6424_v2, 5  ;;  %v5225_v22 = vor.u32 %v5223_v55, %v5222_v4  ;;  %v5032_v24 = vadd.f32 %v11124_v12, %v4985_v40  ;;  %v4987_v40 = vadd.f32 %v4986_v19, %v11114_v6 }
 0x358   :  { %v11633_v28 = vld [vmem:[#allocation3 + $0x70] sm:$0xf]  ;;  %v5482_v7 = vshll.u32 %v11293_v30, 16  ;;  %v9064_v5 = vld [vmem:[%s12547_s8 + $0x98] sm:$0xff]   ;;  %v5226_v20 = vrot.slane %v5222_v4, 4  ;;  %v5488_v39 = vshll.u32 %v11619_v58, 16 }
 0x359   :  { %6394 = vst.msk [vmem:[#allocation5 + $0xd4] sm:$0xf] %vm177_vm2, %v11633_v28  ;;  %v9065_v2 = vld [vmem:[%s12547_s8 + $0xd0] sm:$0xff]   ;;  %v11647_v52 = vrot.slane %v6017_v3, 5  ;;  %v6427_v8 = vsel %vm9568_vm15, %v6422_v25, %v6426_v0  ;;  %v5481_v46 = vrot.slane %v5479_v50, 4  ;;  %v5357_v55 = vsel %vm11163_vm7, %v5225_v22, %v5356_v15  ;;  %8558 = vmatpush3.bf16.msra.mxu1 %v9064_v5 }
 0x35a   :  { %v5484_v62 = vrot.slane %v5482_v7, 5  ;;  %v5360_v26 = vsel %vm10764_vm6, %v5226_v20, %v5359_v21  ;;  %6626 = vrot.lane.b32.xlu1 %v6427_v8, %s9161_s28  ;;  %v5064_v16 = vmax.f32 %v5032_v24, 0.0  ;;  %v6022_v49 = vshrl.u32 %v11629_v36, 16  ;;  %5358 = vst [vmem:[#allocation3 + $0x80] sm:$0xf] %v5357_v55  ;;  %v9066_v15 = vld [vmem:[%s12547_s8 + $0x90] sm:$0xff]   ;;  %8559 = vmatprep.subr.bf16.mxu1 %v9065_v2 }
 0x35b   :  { %12673 = vst [vmem:[#allocation43_spill] sm:$0xff] %v11647_v52  ;;  %5361 = vst [vmem:[#allocation3 + $0x84] sm:$0x1] %v5360_v26  ;;  %v4989_v50 = vadd.f32 %v4988_v32, %v11274_v27  ;;  %v5490_v25 = vrot.slane %v5488_v39, 5  ;;  %v6357_v0 = vld [vmem:[#allocation3 + $0x24] sm:$0x1]  ;;  %v11670_v19 = vadd.f32 %v11119_v34, %v4987_v40 }
 0x35c   :  { %v5485_v3 = vor.u32 %v5484_v62, %v5481_v46  ;;  %v8474_v21 = vpack.c.bf16 %v5064_v16, %v5064_v16  ;;  %v6429_v7 = vshrl.u32 %v11316_v31, 16  ;;  %v6432_v22 = vshll.u32 %v11316_v31, 16  ;;  %v9067_v20 = vld [vmem:[%s12547_s8 + $0xc8] sm:$0xff]   ;;  %v11673_v24 = vld [vmem:[#allocation3 + $0x78] sm:$0xf] }
 0x35d   :  { %v6025_v27 = vshll.u32 %v11629_v36, 16  ;;  %12674 = vst [vmem:[#allocation44_spill] sm:$0xff] %v11670_v19  ;;  %v5034_v5 = vadd.f32 %v11124_v12, %v4989_v50  ;;  %12675 = vst [vmem:[#allocation45_spill] sm:$0xff] %v11673_v24  ;;  %v11675_v32 = vrot.slane %v6022_v49, 4  ;;  %v5850_v46 = vld [vmem:[#allocation3 + $0x34] sm:$0x1]  ;;  %8560 = vmatpush3.bf16.msra.mxu1 %v9066_v15 }
 0x35e   :  { %v5486_v6 = vrot.slane %v5485_v3, 4  ;;  %v5228_v39 = vshrl.u32 %v8474_v21, 16  ;;  %5897 = vrot.lane.b32.xlu1 %v11629_v36, %s9161_s28  ;;  %v6431_v2 = vrot.slane %v6429_v7, 4  ;;  %v6434_v8 = vrot.slane %v6432_v22, 5  ;;  %5419 = vst.msk [vmem:[#allocation5 + $0x104] sm:$0xf] %vm177_vm2, %v11673_v24  ;;  %8561 = vmatprep.subr.bf16.mxu1 %v9067_v20 }
 0x35f   :  { %v5231_v62 = vshll.u32 %v8474_v21, 16  ;;  %v5362_v55 = vld [vmem:[#allocation3 + $0x88] sm:$0xf]  ;;  %v5365_v34 = vld [vmem:[#allocation3 + $0x8c] sm:$0x1]  ;;  %v5066_v26 = vmax.f32 %v5034_v5, 0.0 }
 0x360   :  { %v5491_v12 = vsel %vm9568_vm15, %v5486_v6, %v5490_v25  ;;  %v6438_v16 = vshll.u32 %v6357_v0, 16  ;;  %v9068_v49 = vld [vmem:[%s12547_s8 + $0x88] sm:$0xff]   ;;  %v5230_v3 = vrot.slane %v5228_v39, 7  ;;  %v6435_v40 = vor.u32 %v6434_v8, %v6431_v2  ;;  %v11688_v21 = vld [vmem:[#allocation3 + $0x78] sm:$0xf]  ;;  %v9071_v25 = vld [vmem:[%s12547_s8 + $0xc0] sm:$0xff]  }
 0x361   :  { %5654 = vrot.lane.b32.xlu0 %v5491_v12, %s9161_s28  ;;  %v8336_v50 = vrot.slane %v11316_v31, 9  ;;  %v6730_v7 = vrot.slane %v6357_v0, 5  ;;  %v8475_v22 = vpack.c.bf16 %v5066_v26, %v5066_v26  ;;  %v6031_v6 = vshll.u32 %v5850_v46, 16  ;;  %v11694_v4 = vld [vmem:[#allocation3 + $0x38] sm:$0xf]  ;;  %8562 = vmatpush3.bf16.msra.mxu1 %v9068_v49 }
 0x362   :  { %v6440_v15 = vrot.slane %v6438_v16, 5  ;;  %v8323_v5 = vrot.slane %v11629_v36, 9  ;;  %6395 = vst.msk [vmem:[#allocation5 + $0xe8] sm:$0xf] %vm177_vm2, %v11688_v21  ;;  %v5233_v39 = vor.u32 %v5231_v62, %v5230_v3  ;;  %v5234_v31 = vrot.slane %v5230_v3, 4  ;;  %v9072_v62 = vld [vmem:[%s12547_s8 + $0x80] sm:$0xff]   ;;  %8563 = vmatprep.subr.bf16.mxu1 %v9071_v25 }
 0x363   :  { %v6436_v0 = vrot.slane %v6435_v40, 4  ;;  %v6731_v20 = vsel %vm9550_vm14, %v8336_v50, %v6730_v7  ;;  %v11700_v2 = vld [vmem:[#allocation3 + $0x2c] sm:$0x1]  ;;  %v11702_v8 = vld [vmem:[#allocation3 + $0x80] sm:$0xf]  ;;  %v11704_v12 = vrot.slane %v6025_v27, 5 }
 0x364   :  { %12676 = vst [vmem:[#allocation46_spill] sm:$0xff] %v11702_v8  ;;  %v5236_v26 = vshrl.u32 %v8475_v22, 16  ;;  %v5239_v16 = vshll.u32 %v8475_v22, 16  ;;  %6802 = vst.msk [vmem:[#allocation5 + $0x38] sm:$0xf] %vm177_vm2, %v6731_v20  ;;  %v6245_v36 = vrot.slane %v5850_v46, 5  ;;  %v5363_v3 = vsel %vm11163_vm7, %v5233_v39, %v5362_v55 }
 0x365   :  { %5420 = vst.msk [vmem:[#allocation5 + $0x118] sm:$0xf] %vm177_vm2, %v11702_v8  ;;  %v5366_v27 = vsel %vm10764_vm6, %v5234_v31, %v5365_v34  ;;  %v5368_v40 = vld [vmem:[#allocation3 + $0x90] sm:$0xf]  ;;  %v5371_v50 = vld [vmem:[#allocation3 + $0x94] sm:$0x1]  ;;  %v6441_v7 = vsel %vm9568_vm15, %v6436_v0, %v6440_v15  ;;  %8564 = vmatpush3.bf16.msra.mxu1 %v9072_v62 }
 0x366   :  { %v6036_v46 = vshrl.u32 %v11694_v4, 16  ;;  %v11719_v22 = vld [vmem:[#allocation3 + $0x80] sm:$0xf]  ;;  %5364 = vst [vmem:[#allocation3 + $0x88] sm:$0xf] %v5363_v3  ;;  %v5238_v49 = vrot.slane %v5236_v26, 7  ;;  %6628 = vrot.lane.b32.xlu0 %v6441_v7, %s9161_s28  ;;  %v6246_v55 = vsel %vm9550_vm14, %v8323_v5, %v6245_v36 }
 0x367   :  { %5367 = vst [vmem:[#allocation3 + $0x8c] sm:$0x1] %v5366_v27  ;;  %v6039_v34 = vshll.u32 %v11694_v4, 16  ;;  %v5493_v39 = vshrl.u32 %v11322_v63, 16  ;;  %v5852_v31 = vld [vmem:[#allocation3 + $0x3c] sm:$0x1]  ;;  %6297 = vrot.lane.b32.xlu1 %v6246_v55, %s9161_s28 }
 0x368   :  { %6396 = vst.msk [vmem:[#allocation5 + $0xfc] sm:$0xf] %vm177_vm2, %v11719_v22  ;;  %v11728_v15 = vrot.slane %v6031_v6, 5  ;;  %v11731_v25 = vrot.slane %v6036_v46, 4  ;;  %v5496_v0 = vshll.u32 %v11322_v63, 16  ;;  %v5502_v20 = vshll.u32 %v11700_v2, 16 }
 0x369   :  { %v5241_v26 = vor.u32 %v5239_v16, %v5238_v49  ;;  %v5242_v5 = vrot.slane %v5238_v49, 4  ;;  %v5495_v36 = vrot.slane %v5493_v39, 4  ;;  %v6359_v27 = vld [vmem:[#allocation3 + $0x2c] sm:$0x1]  ;;  %v11736_v7 = vrot.slane %v6039_v34, 5 }
 0x36a   :  { %12677 = vst [vmem:[#allocation47_spill] sm:$0xff] %v11728_v15  ;;  %v5498_v11 = vrot.slane %v5496_v0, 5  ;;  %v6045_v6 = vshll.u32 %v5852_v31, 16  ;;  %v8324_v19 = vrot.slane %v11694_v4, 9  ;;  %5899 = vrot.lane.b32.xlu0 %v11694_v4, %s9161_s28  ;;  %v6249_v16 = vrot.slane %v5852_v31, 5  ;;  %v9078_v31 = vld [vmem:[%s12547_s8 + $0x118] sm:$0xff]  }
 0x36b   :  { %v5369_v46 = vsel %vm11163_vm7, %v5241_v26, %v5368_v40  ;;  %v5372_v55 = vsel %vm10764_vm6, %v5242_v5, %v5371_v50  ;;  %v6443_v49 = vshrl.u32 %v11329_v29, 16  ;;  %v11746_v39 = vld [vmem:[#allocation3 + $0x34] sm:$0x1]  ;;  %v11748_v62 = vld [vmem:[#allocation3 + $0x40] sm:$0xf]  ;;  %v5504_v0 = vrot.slane %v5502_v20, 5  ;;  %8659 = vmatprep.subr.bf16.mxu0 %v9078_v31 }
 0x36c   :  { %12678 = vst [vmem:[#allocation48_spill] sm:$0xff] %v11746_v39  ;;  %5370 = vst [vmem:[#allocation3 + $0x90] sm:$0xf] %v5369_v46  ;;  %v5499_v34 = vor.u32 %v5498_v11, %v5495_v36  ;;  %v6446_v48 = vshll.u32 %v11329_v29, 16  ;;  %v6452_v40 = vshll.u32 %v6359_v27, 16  ;;  %v11751_v26 = vrot.slane %v6045_v6, 5 }
 0x36d   :  { %5373 = vst [vmem:[#allocation3 + $0x94] sm:$0x1] %v5372_v55  ;;  %v6445_v50 = vrot.slane %v6443_v49, 4  ;;  %v8337_v5 = vrot.slane %v11329_v29, 9  ;;  %v6734_v4 = vrot.slane %v6359_v27, 5  ;;  %v6250_v46 = vsel %vm9550_vm14, %v8324_v19, %v6249_v16 }
 0x36e   :  { %12679 = vst [vmem:[#allocation49_spill] sm:$0xff] %v11751_v26  ;;  %v5500_v3 = vrot.slane %v5499_v34, 4  ;;  %v6448_v55 = vrot.slane %v6446_v48, 5  ;;  %v5507_v11 = vshrl.u32 %v11355_v14, 16  ;;  %6299 = vrot.lane.b32.xlu0 %v6250_v46, %s9161_s28  ;;  %v6454_v20 = vrot.slane %v6452_v40, 5 }
 0x36f   :  { %v6735_v36 = vsel %vm9550_vm14, %v8337_v5, %v6734_v4  ;;  %v5510_v29 = vshll.u32 %v11355_v14, 16  ;;  %v5516_v27 = vshll.u32 %v11746_v39, 16  ;;  %v11765_v6 = vld [vmem:[#allocation3 + $0x88] sm:$0xf]  ;;  %v6050_v34 = vshrl.u32 %v11748_v62, 16 }
 0x370   :  { %12680 = vst [vmem:[#allocation50_spill] sm:$0xff] %v11765_v6  ;;  %v5505_v49 = vsel %vm9568_vm15, %v5500_v3, %v5504_v0  ;;  %v6449_v19 = vor.u32 %v6448_v55, %v6445_v50  ;;  %6803 = vst.msk [vmem:[#allocation5 + $0x4c] sm:$0xf] %vm177_vm2, %v6735_v36  ;;  %v5509_v16 = vrot.slane %v5507_v11, 4  ;;  %v6361_v48 = vld [vmem:[#allocation3 + $0x34] sm:$0x1] }
 0x371   :  { %5421 = vst.msk [vmem:[#allocation5 + $0x12c] sm:$0xf] %vm177_vm2, %v11765_v6  ;;  %5656 = vrot.lane.b32.xlu1 %v5505_v49, %s9161_s28  ;;  %v5512_v40 = vrot.slane %v5510_v29, 5  ;;  %v6053_v4 = vshll.u32 %v11748_v62, 16  ;;  %v6457_v31 = vshrl.u32 %v11369_v60, 16  ;;  %v5518_v50 = vrot.slane %v5516_v27, 5 }
 0x372   :  { %v11777_v3 = vld [vmem:[#allocation3 + $0x88] sm:$0xf]  ;;  %v6450_v0 = vrot.slane %v6449_v19, 4  ;;  %v11779_v46 = vrot.slane %v6050_v34, 4  ;;  %v6460_v55 = vshll.u32 %v11369_v60, 16  ;;  %v6466_v49 = vshll.u32 %v6361_v48, 16 }
 0x373   :  { %v5854_v11 = vld [vmem:[#allocation3 + $0x44] sm:$0x1]  ;;  %6397 = vst.msk [vmem:[#allocation5 + $0x110] sm:$0xf] %vm177_vm2, %v11777_v3  ;;  %v5513_v36 = vor.u32 %v5512_v40, %v5509_v16  ;;  %v6459_v29 = vrot.slane %v6457_v31, 4  ;;  %v8338_v5 = vrot.slane %v11369_v60, 9 }
 0x374   :  { %12681 = vst [vmem:[#allocation51_spill] sm:$0xff] %v11779_v46  ;;  %v11785_v47 = vld [vmem:[#allocation3 + $0x58] sm:$0xf]  ;;  %v6455_v26 = vsel %vm9568_vm15, %v6450_v0, %v6454_v20  ;;  %v11789_v19 = vrot.slane %v6053_v4, 5  ;;  %v6462_v27 = vrot.slane %v6460_v55, 5  ;;  %v6738_v34 = vrot.slane %v6361_v48, 5 }
 0x375   :  { %v11791_v15 = vld [vmem:[#allocation3 + $0x90] sm:$0xf]  ;;  %6630 = vrot.lane.b32.xlu1 %v6455_v26, %s9161_s28  ;;  %v5514_v46 = vrot.slane %v5513_v36, 4  ;;  %v6059_v39 = vshll.u32 %v5854_v11, 16  ;;  %v8325_v16 = vrot.slane %v11748_v62, 9  ;;  %v6253_v40 = vrot.slane %v5854_v11, 5 }
 0x376   :  { %12682 = vst [vmem:[#allocation52_spill] sm:$0xff] %v11789_v19  ;;  %6398 = vst.msk [vmem:[#allocation5 + $0x124] sm:$0xf] %vm177_vm2, %v11791_v15  ;;  %v6463_v60 = vor.u32 %v6462_v27, %v6459_v29  ;;  %v6739_v20 = vsel %vm9550_vm14, %v8338_v5, %v6738_v34  ;;  %v6064_v4 = vshrl.u32 %v11785_v47, 16  ;;  %v6067_v48 = vshll.u32 %v11785_v47, 16 }
 0x377   :  { %v11801_v31 = vld [vmem:[#allocation3 + $0x3c] sm:$0x1]  ;;  %v5519_v26 = vsel %vm9568_vm15, %v5514_v46, %v5518_v50  ;;  %v6468_v0 = vrot.slane %v6466_v49, 5  ;;  %6804 = vst.msk [vmem:[#allocation5 + $0x60] sm:$0xf] %vm177_vm2, %v6739_v20  ;;  %v11806_v55 = vrot.slane %v6059_v39, 5  ;;  %v6254_v5 = vsel %vm9550_vm14, %v8325_v16, %v6253_v40 }
 0x378   :  { %12683 = vst [vmem:[#allocation53_spill] sm:$0xff] %v11801_v31  ;;  %v5521_v11 = vshrl.u32 %v11384_v59, 16  ;;  %5658 = vrot.lane.b32.xlu0 %v5519_v26, %s9161_s28  ;;  %v6464_v36 = vrot.slane %v6463_v60, 4  ;;  %v11812_v29 = vrot.slane %v6064_v4, 4  ;;  %v5524_v27 = vshll.u32 %v11384_v59, 16 }
 0x379   :  { %12684 = vst [vmem:[#allocation54_spill] sm:$0xff] %v11806_v55  ;;  %v6365_v34 = vld [vmem:[#allocation3 + $0x44] sm:$0x1]  ;;  %5901 = vrot.lane.b32.xlu1 %v11748_v62, %s9161_s28  ;;  %v11817_v50 = vrot.slane %v6067_v48, 5  ;;  %v5530_v46 = vshll.u32 %v11801_v31, 16  ;;  %v6485_v49 = vshrl.u32 %v11419_v18, 16 }
 0x37a   :  { %12685 = vst [vmem:[#allocation55_spill] sm:$0xff] %v11812_v29  ;;  %v5523_v39 = vrot.slane %v5521_v11, 4  ;;  %v6469_v60 = vsel %vm9568_vm15, %v6464_v36, %v6468_v0  ;;  %v5526_v20 = vrot.slane %v5524_v27, 5  ;;  %v6488_v40 = vshll.u32 %v11419_v18, 16  ;;  %v6363_v4 = vld [vmem:[#allocation3 + $0x3c] sm:$0x1] }
 0x37b   :  { %12686 = vst [vmem:[#allocation56_spill] sm:$0xff] %v11817_v50  ;;  %v6487_v26 = vrot.slane %v6485_v49, 4  ;;  %v6494_v29 = vshll.u32 %v6365_v34, 16  ;;  %v8340_v62 = vrot.slane %v11419_v18, 9  ;;  %v6746_v48 = vrot.slane %v6365_v34, 5 }
 0x37c   :  { %6632 = vrot.lane.b32.xlu0 %v6469_v60, %s9161_s28  ;;  %v5527_v11 = vor.u32 %v5526_v20, %v5523_v39  ;;  %v5532_v50 = vrot.slane %v5530_v46, 5  ;;  %v6490_v55 = vrot.slane %v6488_v40, 5  ;;  %v6471_v19 = vshrl.u32 %v11396_v41, 16  ;;  %v11828_v59 = vld [vmem:[#allocation3 + $0x68] sm:$0xf] }
 0x37d   :  { %6301 = vrot.lane.b32.xlu1 %v6254_v5, %s9161_s28  ;;  %v6747_v0 = vsel %vm9550_vm14, %v8340_v62, %v6746_v48  ;;  %v6474_v36 = vshll.u32 %v11396_v41, 16  ;;  %v6480_v27 = vshll.u32 %v6363_v4, 16  ;;  %v8339_v18 = vrot.slane %v11396_v41, 9  ;;  %v11835_v34 = vld [vmem:[#allocation3 + $0x60] sm:$0xf] }
 0x37e   :  { %v5528_v49 = vrot.slane %v5527_v11, 4  ;;  %v6491_v39 = vor.u32 %v6490_v55, %v6487_v26  ;;  %6806 = vst.msk [vmem:[#allocation5 + $0x88] sm:$0xf] %vm177_vm2, %v6747_v0  ;;  %v6473_v46 = vrot.slane %v6471_v19, 4  ;;  %v6742_v60 = vrot.slane %v6363_v4, 5 }
 0x37f   :  { %v6496_v20 = vrot.slane %v6494_v29, 5  ;;  %v6476_v40 = vrot.slane %v6474_v36, 5  ;;  %v6092_v5 = vshrl.u32 %v11828_v59, 16  ;;  %v6095_v16 = vshll.u32 %v11828_v59, 16  ;;  %v11847_v19 = vld [vmem:[#allocation3 + $0x64] sm:$0x1] }
 0x380   :  { %5903 = vrot.lane.b32.xlu0 %v11785_v47, %s9161_s28  ;;  %v5533_v41 = vsel %vm9568_vm15, %v5528_v49, %v5532_v50  ;;  %v6492_v62 = vrot.slane %v6491_v39, 4  ;;  %v6743_v55 = vsel %vm9550_vm14, %v8339_v18, %v6742_v60  ;;  %v6078_v26 = vshrl.u32 %v11835_v34, 16  ;;  %12687 = vst [vmem:[#allocation57_spill] sm:$0xff] %v11847_v19  ;;  %v11860_v49 = vld [vmem:[#allocation3 + $0x5c] sm:$0x1] }
 0x381   :  { %5660 = vrot.lane.b32.xlu1 %v5533_v41, %s9161_s28  ;;  %v6477_v29 = vor.u32 %v6476_v40, %v6473_v46  ;;  %v6482_v4 = vrot.slane %v6480_v27, 5  ;;  %6805 = vst.msk [vmem:[#allocation5 + $0x74] sm:$0xf] %vm177_vm2, %v6743_v55  ;;  %v11851_v48 = vrot.slane %v6092_v5, 4  ;;  %v6081_v11 = vshll.u32 %v11835_v34, 16  ;;  %12690 = vst [vmem:[#allocation60_spill] sm:$0xff] %v11860_v49 }
 0x382   :  { %v6497_v50 = vsel %vm9568_vm15, %v6492_v62, %v6496_v20  ;;  %v11856_v0 = vrot.slane %v6095_v16, 5  ;;  %v5563_v36 = vshrl.u32 %v11499_v9, 16  ;;  %v5566_v18 = vshll.u32 %v11499_v9, 16  ;;  %v11867_v40 = vld [vmem:[#allocation3 + $0x78] sm:$0xf] }
 0x383   :  { %12688 = vst [vmem:[#allocation58_spill] sm:$0xff] %v11851_v48  ;;  %v6478_v39 = vrot.slane %v6477_v29, 4  ;;  %v11862_v46 = vrot.slane %v6078_v26, 4  ;;  %v11864_v27 = vrot.slane %v6081_v11, 5  ;;  %v5572_v60 = vshll.u32 %v11847_v19, 16 }
 0x384   :  { %12689 = vst [vmem:[#allocation59_spill] sm:$0xff] %v11856_v0  ;;  %6636 = vrot.lane.b32.xlu0 %v6497_v50, %s9161_s28  ;;  %v5565_v20 = vrot.slane %v5563_v36, 4  ;;  %v5568_v16 = vrot.slane %v5566_v18, 5  ;;  %v5549_v5 = vshrl.u32 %v11464_v10, 16  ;;  %v5552_v41 = vshll.u32 %v11464_v10, 16 }
 0x385   :  { %12691 = vst [vmem:[#allocation61_spill] sm:$0xff] %v11862_v46  ;;  %12692 = vst [vmem:[#allocation62_spill] sm:$0xff] %v11864_v27  ;;  %v11872_v62 = vld [vmem:[#allocation3 + $0x70] sm:$0xf]  ;;  %v6483_v55 = vsel %vm9568_vm15, %v6478_v39, %v6482_v4  ;;  %v5574_v26 = vrot.slane %v5572_v60, 5  ;;  %v5558_v11 = vshll.u32 %v11860_v49, 16 }
 0x386   :  { %6634 = vrot.lane.b32.xlu1 %v6483_v55, %s9161_s28  ;;  %v5569_v27 = vor.u32 %v5568_v16, %v5565_v20  ;;  %v5551_v50 = vrot.slane %v5549_v5, 4  ;;  %v5554_v36 = vrot.slane %v5552_v41, 5  ;;  %v6120_v18 = vshrl.u32 %v11867_v40, 16  ;;  %v11884_v39 = vld [vmem:[#allocation3 + $0x74] sm:$0x1] }
 0x387   :  { %v6123_v0 = vshll.u32 %v11867_v40, 16  ;;  %v6106_v48 = vshrl.u32 %v11872_v62, 16  ;;  %v6109_v4 = vshll.u32 %v11872_v62, 16  ;;  %12693 = vst [vmem:[#allocation63_spill] sm:$0xff] %v11884_v39  ;;  %v5560_v20 = vrot.slane %v5558_v11, 5 }
 0x388   :  { %5907 = vrot.lane.b32.xlu0 %v11828_v59, %s9161_s28  ;;  %v5570_v60 = vrot.slane %v5569_v27, 4  ;;  %v5555_v55 = vor.u32 %v5554_v36, %v5551_v50  ;;  %v5591_v16 = vshrl.u32 %v11621_v35, 16  ;;  %v11889_v5 = vrot.slane %v6120_v18, 4  ;;  %v11896_v49 = vld [vmem:[#allocation3 + $0x6c] sm:$0x1] }
 0x389   :  { %v11891_v41 = vrot.slane %v6123_v0, 5  ;;  %v11893_v46 = vrot.slane %v6106_v48, 4  ;;  %v5594_v29 = vshll.u32 %v11621_v35, 16  ;;  %12697 = vst [vmem:[#allocation67_spill] sm:$0xff] %v11896_v49  ;;  %v11900_v19 = vrot.slane %v6109_v4, 5 }
 0x38a   :  { %12694 = vst [vmem:[#allocation64_spill] sm:$0xff] %v11889_v5  ;;  %5905 = vrot.lane.b32.xlu1 %v11835_v34, %s9161_s28  ;;  %v5556_v10 = vrot.slane %v5555_v55, 4  ;;  %v5593_v27 = vrot.slane %v5591_v16, 4  ;;  %v5600_v11 = vshll.u32 %v11884_v39, 16  ;;  %v11903_v50 = vld [vmem:[#allocation3 + $0x88] sm:$0xf]  ;;  %v5575_v0 = vsel %vm9568_vm15, %v5570_v60, %v5574_v26 }
 0x38b   :  { %12695 = vst [vmem:[#allocation65_spill] sm:$0xff] %v11891_v41  ;;  %12696 = vst [vmem:[#allocation66_spill] sm:$0xff] %v11893_v46  ;;  %v5596_v48 = vrot.slane %v5594_v29, 5  ;;  %v5577_v36 = vshrl.u32 %v11559_v37, 16  ;;  %v5580_v18 = vshll.u32 %v11559_v37, 16  ;;  %v6148_v29 = vshrl.u32 %v11903_v50, 16 }
 0x38c   :  { %12698 = vst [vmem:[#allocation68_spill] sm:$0xff] %v11900_v19  ;;  %v11909_v46 = vld [vmem:[#allocation3 + $0x80] sm:$0xf]  ;;  %5666 = vrot.lane.b32.xlu0 %v5575_v0, %s9161_s28  ;;  %v5561_v4 = vsel %vm9568_vm15, %v5556_v10, %v5560_v20  ;;  %v5602_v55 = vrot.slane %v5600_v11, 5  ;;  %v5586_v19 = vshll.u32 %v11896_v49, 16  ;;  %v6151_v37 = vshll.u32 %v11903_v50, 16 }
 0x38d   :  { %v5597_v41 = vor.u32 %v5596_v48, %v5593_v27  ;;  %v5579_v5 = vrot.slane %v5577_v36, 4  ;;  %v5582_v26 = vrot.slane %v5580_v18, 5  ;;  %v6134_v0 = vshrl.u32 %v11909_v46, 16  ;;  %v11922_v20 = vld [vmem:[#allocation3 + $0x84] sm:$0x1] }
 0x38e   :  { %5664 = vrot.lane.b32.xlu1 %v5561_v4, %s9161_s28  ;;  %v6137_v10 = vshll.u32 %v11909_v46, 16  ;;  %12699 = vst [vmem:[#allocation69_spill] sm:$0xff] %v11922_v20  ;;  %v5588_v39 = vrot.slane %v5586_v19, 5  ;;  %v5619_v27 = vshrl.u32 %v11702_v8, 16  ;;  %v11927_v48 = vrot.slane %v6148_v29, 4 }
 0x38f   :  { %v5598_v11 = vrot.slane %v5597_v41, 4  ;;  %v5583_v16 = vor.u32 %v5582_v26, %v5579_v5  ;;  %v11929_v36 = vrot.slane %v6151_v37, 5  ;;  %v11931_v18 = vrot.slane %v6134_v0, 4  ;;  %v11934_v60 = vld [vmem:[#allocation3 + $0x7c] sm:$0x1] }
 0x390   :  { %5911 = vrot.lane.b32.xlu0 %v11867_v40, %s9161_s28  ;;  %12700 = vst [vmem:[#allocation70_spill] sm:$0xff] %v11927_v48  ;;  %v5622_v4 = vshll.u32 %v11702_v8, 16  ;;  %12703 = vst [vmem:[#allocation73_spill] sm:$0xff] %v11934_v60  ;;  %v11936_v35 = vrot.slane %v6137_v10, 5  ;;  %v5621_v5 = vrot.slane %v5619_v27, 4  ;;  %v5628_v19 = vshll.u32 %v11922_v20, 16 }
 0x391   :  { %12701 = vst [vmem:[#allocation71_spill] sm:$0xff] %v11929_v36  ;;  %12702 = vst [vmem:[#allocation72_spill] sm:$0xff] %v11931_v18  ;;  %v5584_v49 = vrot.slane %v5583_v16, 4  ;;  %v5856_v41 = vld [vmem:[#allocation3 + $0x5c] sm:$0x1]  ;;  %v5603_v37 = vsel %vm9568_vm15, %v5598_v11, %v5602_v55  ;;  %v5605_v29 = vshrl.u32 %v11673_v24, 16  ;;  %v11951_v36 = vpop.permute.xlu0 %5646 }
 0x392   :  { %12704 = vst [vmem:[#allocation74_spill] sm:$0xff] %v11936_v35  ;;  %5909 = vrot.lane.b32.xlu1 %v11872_v62, %s9161_s28  ;;  %v5624_v26 = vrot.slane %v5622_v4, 5  ;;  %v5608_v0 = vshll.u32 %v11673_v24, 16  ;;  %v11945_v18 = vld [vmem:[#allocation3 + $0x90] sm:$0xf]  ;;  %v5630_v10 = vrot.slane %v5628_v19, 5 }
 0x393   :  { %v5589_v16 = vsel %vm9568_vm15, %v5584_v49, %v5588_v39  ;;  %v5614_v35 = vshll.u32 %v11934_v60, 16  ;;  %v5607_v11 = vrot.slane %v5605_v29, 4  ;;  %v6073_v48 = vshll.u32 %v5856_v41, 16  ;;  %v6369_v39 = vld [vmem:[#allocation3 + $0x64] sm:$0x1] }
 0x394   :  { %5670 = vrot.lane.b32.xlu0 %v5603_v37, %s9161_s28  ;;  %v5625_v55 = vor.u32 %v5624_v26, %v5621_v5  ;;  %v5610_v4 = vrot.slane %v5608_v0, 5  ;;  %v8326_v8 = vrot.slane %v11785_v47, 9  ;;  %v6257_v31 = vrot.slane %v5856_v41, 5  ;;  %5695 = vst.msk [vmem:[#allocation5] sm:$0xf] %vm5694_vm5, %v11951_v36  ;;  %v12771_v17 = vld [vmem:[#allocation65_spill] sm:$0xff] }
 0x395   :  { %v6162_v49 = vshrl.u32 %v11945_v18, 16  ;;  %v5616_v20 = vrot.slane %v5614_v35, 5  ;;  %v6165_v9 = vshll.u32 %v11945_v18, 16  ;;  %v11959_v37 = vrot.slane %v6073_v48, 5 }
 0x396   :  { %5668 = vrot.lane.b32.xlu1 %v5589_v16, %s9161_s28  ;;  %v5626_v19 = vrot.slane %v5625_v55, 4  ;;  %v5611_v27 = vor.u32 %v5610_v4, %v5607_v11  ;;  %v6258_v5 = vsel %vm9550_vm14, %v8326_v8, %v6257_v31  ;;  %v6513_v26 = vshrl.u32 %v11517_v61, 16  ;;  %v11971_v16 = vld [vmem:[#allocation3 + $0x8c] sm:$0x1]  ;;  %v11974_v4 = vpop.permute.xlu0 %5662 }
 0x397   :  { %12705 = vst [vmem:[#allocation75_spill] sm:$0xff] %v11959_v37  ;;  %v6516_v47 = vshll.u32 %v11517_v61, 16  ;;  %v11969_v0 = vrot.slane %v6162_v49, 4  ;;  %v6522_v35 = vshll.u32 %v6369_v39, 16  ;;  %12707 = vst [vmem:[#allocation77_spill] sm:$0xff] %v11971_v16  ;;  %v8342_v8 = vrot.slane %v11517_v61, 9 }
 0x398   :  { %5915 = vrot.lane.b32.xlu0 %v11903_v50, %s9161_s28  ;;  %v5631_v41 = vsel %vm9568_vm15, %v5626_v19, %v5630_v10  ;;  %v5612_v29 = vrot.slane %v5611_v27, 4  ;;  %v6515_v48 = vrot.slane %v6513_v26, 4  ;;  %v6754_v31 = vrot.slane %v6369_v39, 5  ;;  %v5860_v11 = vld [vmem:[#allocation3 + $0x6c] sm:$0x1] }
 0x399   :  { %12706 = vst [vmem:[#allocation76_spill] sm:$0xff] %v11969_v0  ;;  %v6518_v55 = vrot.slane %v6516_v47, 5  ;;  %v11980_v27 = vrot.slane %v6165_v9, 5  ;;  %v5633_v49 = vshrl.u32 %v11765_v6, 16  ;;  %v5636_v19 = vshll.u32 %v11765_v6, 16 }
 0x39a   :  { %5913 = vrot.lane.b32.xlu1 %v11909_v46, %s9161_s28  ;;  %v5617_v10 = vsel %vm9568_vm15, %v5612_v29, %v5616_v20  ;;  %v5858_v26 = vld [vmem:[#allocation3 + $0x64] sm:$0x1]  ;;  %v6524_v24 = vrot.slane %v6522_v35, 5  ;;  %v6755_v61 = vsel %vm9550_vm14, %v8342_v8, %v6754_v31  ;;  %v5642_v39 = vshll.u32 %v11971_v16, 16  ;;  %v6373_v35 = vld [vmem:[#allocation3 + $0x74] sm:$0x1] }
 0x39b   :  { %12708 = vst [vmem:[#allocation78_spill] sm:$0xff] %v11980_v27  ;;  %v6519_v47 = vor.u32 %v6518_v55, %v6515_v48  ;;  %6808 = vst.msk [vmem:[#allocation5 + $0xb0] sm:$0xf] %vm177_vm2, %v6755_v61  ;;  %v5635_v0 = vrot.slane %v5633_v49, 4  ;;  %v5638_v20 = vrot.slane %v5636_v19, 5  ;;  %v6101_v9 = vshll.u32 %v5860_v11, 16 }
 0x39c   :  { %5674 = vrot.lane.b32.xlu0 %v5631_v41, %s9161_s28  ;;  %v8328_v29 = vrot.slane %v11828_v59, 9  ;;  %v6265_v60 = vrot.slane %v5860_v11, 5  ;;  %v6087_v48 = vshll.u32 %v5858_v26, 16  ;;  %v5644_v8 = vrot.slane %v5642_v39, 5  ;;  %v12000_v11 = vpop.permute.xlu0 %5887  ;;  %v6371_v61 = vld [vmem:[#allocation3 + $0x6c] sm:$0x1]  ;;  %v6639_v39 = vpop.permute.xlu1 %6638 }
 0x39d   :  { %v6520_v27 = vrot.slane %v6519_v47, 4  ;;  %v5639_v55 = vor.u32 %v5638_v20, %v5635_v0  ;;  %v8327_v31 = vrot.slane %v11835_v34, 9  ;;  %v6261_v41 = vrot.slane %v5858_v26, 5  ;;  %v5862_v37 = vld [vmem:[#allocation3 + $0x74] sm:$0x1] }
 0x39e   :  { %5672 = vrot.lane.b32.xlu1 %v5617_v10, %s9161_s28  ;;  %v11995_v19 = vrot.slane %v6101_v9, 5  ;;  %v6266_v59 = vsel %vm9550_vm14, %v8328_v29, %v6265_v60  ;;  %v6541_v47 = vshrl.u32 %v11633_v28, 16  ;;  %v12003_v0 = vrot.slane %v6087_v48, 5  ;;  %v5864_v9 = vld [vmem:[#allocation3 + $0x7c] sm:$0x1] }
 0x39f   :  { %v6525_v49 = vsel %vm9568_vm15, %v6520_v27, %v6524_v24  ;;  %v5640_v10 = vrot.slane %v5639_v55, 4  ;;  %v6544_v34 = vshll.u32 %v11633_v28, 16  ;;  %v6550_v26 = vshll.u32 %v6373_v35, 16  ;;  %5703 = vst.msk [vmem:[#allocation5 + $0xa0] sm:$0xf] %vm5694_vm5, %v11974_v4 }
 0x3a0   :  { %12709 = vst [vmem:[#allocation79_spill] sm:$0xff] %v11995_v19  ;;  %6303 = vrot.lane.b32.xlu0 %v6258_v5, %s9161_s28  ;;  %12710 = vst [vmem:[#allocation80_spill] sm:$0xff] %v12003_v0  ;;  %v6543_v24 = vrot.slane %v6541_v47, 4  ;;  %v8344_v27 = vrot.slane %v11633_v28, 9  ;;  %v6762_v20 = vrot.slane %v6373_v35, 5  ;;  %v6527_v60 = vshrl.u32 %v11572_v54, 16  ;;  %v12021_v52 = vpop.permute.xlu0 %6287 }
 0x3a1   :  { %v5645_v5 = vsel %vm9568_vm15, %v5640_v10, %v5644_v8  ;;  %v6262_v29 = vsel %vm9550_vm14, %v8327_v31, %v6261_v41  ;;  %v6546_v48 = vrot.slane %v6544_v34, 5  ;;  %v6530_v55 = vshll.u32 %v11572_v54, 16  ;;  %6679 = vst.msk [vmem:[#allocation5 + $0x98] sm:$0xf] %vm5694_vm5, %v6639_v39 }
 0x3a2   :  { %5917 = vrot.lane.b32.xlu1 %v11945_v18, %s9161_s28  ;;  %v6763_v28 = vsel %vm9550_vm14, %v8344_v27, %v6762_v20  ;;  %v6529_v35 = vrot.slane %v6527_v60, 4  ;;  %v6536_v47 = vshll.u32 %v6371_v61, 16  ;;  %v8343_v0 = vrot.slane %v11572_v54, 9  ;;  %v12026_v60 = vpop.permute.xlu1 %5889 }
 0x3a3   :  { %v6547_v19 = vor.u32 %v6546_v48, %v6543_v24  ;;  %6810 = vst.msk [vmem:[#allocation5 + $0xd8] sm:$0xf] %vm177_vm2, %v6763_v28  ;;  %v6532_v8 = vrot.slane %v6530_v55, 5  ;;  %v6758_v10 = vrot.slane %v6371_v61, 5  ;;  %v6129_v16 = vshll.u32 %v5864_v9, 16 }
 0x3a4   :  { %6640 = vrot.lane.b32.xlu0 %v6525_v49, %s9161_s28  ;;  %v6552_v31 = vrot.slane %v6550_v26, 5  ;;  %v8330_v41 = vrot.slane %v11867_v40, 9  ;;  %v6273_v34 = vrot.slane %v5864_v9, 5  ;;  %v6115_v6 = vshll.u32 %v5862_v37, 16  ;;  %v6377_v24 = vld [vmem:[#allocation3 + $0x84] sm:$0x1] }
 0x3a5   :  { %v6548_v27 = vrot.slane %v6547_v19, 4  ;;  %v6533_v20 = vor.u32 %v6532_v8, %v6529_v35  ;;  %v6538_v54 = vrot.slane %v6536_v47, 5  ;;  %v6759_v49 = vsel %vm9550_vm14, %v8343_v0, %v6758_v10  ;;  %v6375_v48 = vld [vmem:[#allocation3 + $0x7c] sm:$0x1]  ;;  %v5868_v47 = vld [vmem:[#allocation3 + $0x8c] sm:$0x1] }
 0x3a6   :  { %5676 = vrot.lane.b32.xlu1 %v5645_v5, %s9161_s28  ;;  %6809 = vst.msk [vmem:[#allocation5 + $0xc4] sm:$0xf] %vm177_vm2, %v6759_v49  ;;  %v12029_v26 = vrot.slane %v6129_v16, 5  ;;  %v6274_v40 = vsel %vm9550_vm14, %v8330_v41, %v6273_v34  ;;  %v8329_v61 = vrot.slane %v11872_v62, 9  ;;  %v6269_v9 = vrot.slane %v5862_v37, 5 }
 0x3a7   :  { %v6534_v19 = vrot.slane %v6533_v20, 4  ;;  %v12035_v5 = vrot.slane %v6115_v6, 5  ;;  %v6569_v0 = vshrl.u32 %v11719_v22, 16  ;;  %v6553_v55 = vsel %vm9568_vm15, %v6548_v27, %v6552_v31  ;;  %v5866_v6 = vld [vmem:[#allocation3 + $0x84] sm:$0x1]  ;;  %v12054_v31 = vpop.permute.xlu0 %5891  ;;  %v12060_v27 = vpop.permute.xlu1 %6289 }
 0x3a8   :  { %6307 = vrot.lane.b32.xlu0 %v6266_v59, %s9161_s28  ;;  %v6572_v16 = vshll.u32 %v11719_v22, 16  ;;  %v6578_v28 = vshll.u32 %v6377_v24, 16  ;;  %v8346_v62 = vrot.slane %v11719_v22, 9  ;;  %v6270_v37 = vsel %vm9550_vm14, %v8329_v61, %v6269_v9 }
 0x3a9   :  { %v6571_v59 = vrot.slane %v6569_v0, 4  ;;  %v6770_v35 = vrot.slane %v6377_v24, 5  ;;  %v6555_v36 = vshrl.u32 %v11688_v21, 16  ;;  %v6539_v8 = vsel %vm9568_vm15, %v6534_v19, %v6538_v54 }
 0x3aa   :  { %6305 = vrot.lane.b32.xlu1 %v6262_v29, %s9161_s28  ;;  %v6574_v22 = vrot.slane %v6572_v16, 5  ;;  %v6558_v10 = vshll.u32 %v11688_v21, 16  ;;  %v6564_v4 = vshll.u32 %v6375_v48, 16  ;;  %v8345_v41 = vrot.slane %v11688_v21, 9 }
 0x3ab   :  { %v6771_v39 = vsel %vm9550_vm14, %v8346_v62, %v6770_v35  ;;  %v6557_v29 = vrot.slane %v6555_v36, 4  ;;  %v6766_v34 = vrot.slane %v6375_v48, 5  ;;  %v6580_v49 = vrot.slane %v6578_v28, 5  ;;  %v6381_v28 = vld [vmem:[#allocation3 + $0x94] sm:$0x1]  ;;  %v12711_v36 = vld [vmem:[#allocation24_spill] sm:$0xff] }
 0x3ac   :  { %6644 = vrot.lane.b32.xlu0 %v6553_v55, %s9161_s28  ;;  %v6575_v20 = vor.u32 %v6574_v22, %v6571_v59  ;;  %6812 = vst.msk [vmem:[#allocation5 + $0x100] sm:$0xf] %vm177_vm2, %v6771_v39  ;;  %v6560_v54 = vrot.slane %v6558_v10, 5  ;;  %v6157_v24 = vshll.u32 %v5868_v47, 16  ;;  %v8332_v9 = vrot.slane %v11903_v50, 9 }
 0x3ad   :  { %v6767_v61 = vsel %vm9550_vm14, %v8345_v41, %v6766_v34  ;;  %v6281_v19 = vrot.slane %v5868_v47, 5  ;;  %v6143_v0 = vshll.u32 %v5866_v6, 16  ;;  %v6566_v48 = vrot.slane %v6564_v4, 5  ;;  %v6379_v4 = vld [vmem:[#allocation3 + $0x8c] sm:$0x1]  ;;  %v5649_v34 = vpop.permute.xlu1 %5648 }
 0x3ae   :  { %6642 = vrot.lane.b32.xlu1 %v6539_v8, %s9161_s28  ;;  %v6576_v55 = vrot.slane %v6575_v20, 4  ;;  %v6561_v21 = vor.u32 %v6560_v54, %v6557_v29  ;;  %6811 = vst.msk [vmem:[#allocation5 + $0xec] sm:$0xf] %vm177_vm2, %v6767_v61  ;;  %v8331_v16 = vrot.slane %v11909_v46, 9  ;;  %v12070_v62 = vrot.slane %v6157_v24, 5  ;;  %v12079_v46 = vpop.permute.xlu0 %6291 }
 0x3af   :  { %v6282_v59 = vsel %vm9550_vm14, %v8332_v9, %v6281_v19  ;;  %v6277_v35 = vrot.slane %v5866_v6, 5  ;;  %v8302_v50 = vrot.slane %v12711_v36, 9  ;;  %v12075_v8 = vrot.slane %v6143_v0, 5  ;;  %5696 = vst.msk [vmem:[#allocation5 + $0x14] sm:$0xf] %vm5694_vm5, %v5649_v34 }
 0x3b0   :  { %6311 = vrot.lane.b32.xlu0 %v6274_v40, %s9161_s28  ;;  %v6562_v47 = vrot.slane %v6561_v21, 4  ;;  %v6597_v22 = vshrl.u32 %v11791_v15, 16  ;;  %v6600_v10 = vshll.u32 %v11791_v15, 16  ;;  %v6581_v40 = vsel %vm9568_vm15, %v6576_v55, %v6580_v49  ;;  %v12103_v21 = vld [vmem:[#allocation3 + $0x94] sm:$0x1] }
 0x3b1   :  { %v12712_v39 = vrot.slane %v12640_v42, 5  ;;  %v6606_v29 = vshll.u32 %v6381_v28, 16  ;;  %v8348_v41 = vrot.slane %v11791_v15, 9  ;;  %v6278_v20 = vsel %vm9550_vm14, %v8331_v16, %v6277_v35 }
 0x3b2   :  { %6309 = vrot.lane.b32.xlu1 %v6270_v37, %s9161_s28  ;;  %v6599_v54 = vrot.slane %v6597_v22, 4  ;;  %v6602_v24 = vrot.slane %v6600_v10, 5  ;;  %v6778_v37 = vrot.slane %v6381_v28, 5  ;;  %v6567_v42 = vsel %vm9568_vm15, %v6562_v47, %v6566_v48  ;;  %v247_v47 = vld [vmem:[#allocation3 + $0x98] sm:$0x1]  ;;  %v5651_v22 = vpop.permute.xlu0 %5650 }
 0x3b3   :  { %v5746_v6 = vsel %vm9550_vm14, %v8302_v50, %v12712_v39  ;;  %v6583_v15 = vshrl.u32 %v11777_v3, 16  ;;  %v6586_v49 = vshll.u32 %v11777_v3, 16  ;;  %v6592_v61 = vshll.u32 %v6379_v4, 16  ;;  %5697 = vst.msk [vmem:[#allocation5 + $0x28] sm:$0xf] %vm5694_vm5, %v5651_v22 }
 0x3b4   :  { %5823 = vst.msk [vmem:[#allocation5 + $0x4] sm:$0xf] %vm177_vm2, %v5746_v6  ;;  %6648 = vrot.lane.b32.xlu0 %v6581_v40, %s9161_s28  ;;  %v6603_v9 = vor.u32 %v6602_v24, %v6599_v54  ;;  %v6779_v19 = vsel %vm9550_vm14, %v8348_v41, %v6778_v37  ;;  %v8347_v0 = vrot.slane %v11777_v3, 9  ;;  %v6774_v55 = vrot.slane %v6379_v4, 5  ;;  %v308_v6 = vld [vmem:[#allocation3 + $0x9c] sm:$0x1] }
 0x3b5   :  { %5935 = vst.msk [vmem:[#allocation5 + $0x4] sm:$0xf] %vm5694_vm5, %v12000_v11  ;;  %v6608_v48 = vrot.slane %v6606_v29, 5  ;;  %v6585_v11 = vrot.slane %v6583_v15, 4  ;;  %v6588_v16 = vrot.slane %v6586_v49, 5  ;;  %v8303_v28 = vrot.slane %v11199_v13, 9  ;;  %v5894_v29 = vpop.permute.xlu1 %5893 }
 0x3b6   :  { %6646 = vrot.lane.b32.xlu1 %v6567_v42, %s9161_s28  ;;  %6814 = vst.msk [vmem:[#allocation5 + $0x128] sm:$0xf] %vm177_vm2, %v6779_v19  ;;  %v6604_v35 = vrot.slane %v6603_v9, 4  ;;  %v6594_v36 = vrot.slane %v6592_v61, 5  ;;  %v6775_v50 = vsel %vm9550_vm14, %v8347_v0, %v6774_v55  ;;  %v5958_v3 = vor.u32 %v11336_v45, %v11334_v53  ;;  %v12715_v37 = vld [vmem:[#allocation29_spill] sm:$0xff]  ;;  %v12719_v61 = vld [vmem:[#allocation32_spill] sm:$0xff] }
 0x3b7   :  { %v6589_v10 = vor.u32 %v6588_v16, %v6585_v11  ;;  %6813 = vst.msk [vmem:[#allocation5 + $0x114] sm:$0xf] %vm177_vm2, %v6775_v50  ;;  %v12713_v4 = vrot.slane %v11371_v57, 5  ;;  %v8333_v40 = vrot.slane %v11945_v18, 9  ;;  %v6285_v39 = vrot.slane %v12103_v21, 5  ;;  %v12718_v15 = vld [vmem:[#allocation21_spill] sm:$0xff] }
 0x3b8   :  { %6315 = vrot.lane.b32.xlu0 %v6282_v59, %s9161_s28  ;;  %v6609_v53 = vsel %vm9568_vm15, %v6604_v35, %v6608_v48  ;;  %v5959_v45 = vrot.slane %v5958_v3, 4  ;;  %v6171_v59 = vshll.u32 %v12103_v21, 16  ;;  %v5972_v57 = vor.u32 %v11357_v23, %v11348_v33  ;;  %v12720_v9 = vld [vmem:[#allocation35_spill] sm:$0xff]  ;;  %v6625_v48 = vpop.permute.xlu0 %6624  ;;  %v12722_v16 = vld [vmem:[#allocation38_spill] sm:$0xff] }
 0x3b9   :  { %v5750_v13 = vsel %vm9550_vm14, %v8303_v28, %v12713_v4  ;;  %v6590_v18 = vrot.slane %v6589_v10, 4  ;;  %v6286_v41 = vsel %vm9550_vm14, %v8333_v40, %v6285_v39  ;;  %v8304_v34 = vrot.slane %v11228_v38, 9  ;;  %v12723_v28 = vld [vmem:[#allocation40_spill] sm:$0xff]  ;;  %6672 = vst.msk [vmem:[#allocation5 + $0xc] sm:$0xf] %vm5694_vm5, %v6625_v48 }
 0x3ba   :  { %5824 = vst.msk [vmem:[#allocation5 + $0x18] sm:$0xf] %vm177_vm2, %v5750_v13  ;;  %6313 = vrot.lane.b32.xlu1 %v6278_v20, %s9161_s28  ;;  %v248_v54 = vsel %vm10764_vm6, 0, %v247_v47  ;;  %v5964_v24 = vsel %vm9568_vm15, %v5959_v45, %v11363_v1  ;;  %v5973_v33 = vrot.slane %v5972_v57, 4  ;;  %v309_v20 = vsel %vm10788_vm4, 0, %v308_v6  ;;  %v12725_v47 = vld [vmem:[#allocation9_spill] sm:$0xff] }
 0x3bb   :  { %5936 = vst.msk [vmem:[#allocation5 + $0x18] sm:$0xf] %vm5694_vm5, %v12026_v60  ;;  %249 = vst [vmem:[#allocation3 + $0x98] sm:$0x1] %v248_v54  ;;  %v5986_v60 = vor.u32 %v12715_v37, %v11414_v43  ;;  %v6595_v38 = vsel %vm9568_vm15, %v6590_v18, %v6594_v36  ;;  %v12717_v42 = vrot.slane %v12716_v44, 5  ;;  %v8305_v49 = vrot.slane %v12718_v15, 9 }
 0x3bc   :  { %6652 = vrot.lane.b32.xlu0 %v6609_v53, %s9161_s28  ;;  %6191 = vst.msk [vmem:[#allocation5 + $0x8] sm:$0xf] %vm177_vm2, %v5964_v24  ;;  %310 = vst [vmem:[#allocation3 + $0x9c] sm:$0x1] %v309_v20  ;;  %v6000_v19 = vor.u32 %v12720_v9, %v12719_v61  ;;  %v12721_v43 = vld [vmem:[#allocation22_spill] sm:$0xff]  ;;  %v8306_v11 = vrot.slane %v11293_v30, 9  ;;  %v6014_v35 = vor.u32 %v12723_v28, %v12722_v16  ;;  %v5896_v6 = vpop.permute.xlu0 %5895 }
 0x3bd   :  { %v5754_v1 = vsel %vm9550_vm14, %v8304_v34, %v12717_v42  ;;  %6335 = vst.msk [vmem:[#allocation5 + $0x8] sm:$0xf] %vm5694_vm5, %v12021_v52  ;;  %v5978_v0 = vsel %vm9568_vm15, %v5973_v33, %v12721_v43  ;;  %v5987_v55 = vrot.slane %v5986_v60, 4  ;;  %v12724_v52 = vrot.slane %v11497_v51, 5  ;;  %v6294_v51 = vpop.permute.xlu1 %6293  ;;  %v12729_v53 = vld [vmem:[#allocation43_spill] sm:$0xff]  ;;  %v12736_v20 = vld [vmem:[#allocation26_spill] sm:$0xff] }
 0x3be   :  { %5825 = vst.msk [vmem:[#allocation5 + $0x2c] sm:$0xf] %vm177_vm2, %v5754_v1  ;;  %6650 = vrot.lane.b32.xlu1 %v6595_v38, %s9161_s28  ;;  %6192 = vst.msk [vmem:[#allocation5 + $0x1c] sm:$0xf] %vm177_vm2, %v5978_v0  ;;  %v6001_v50 = vrot.slane %v6000_v19, 4  ;;  %v8307_v30 = vrot.slane %v11322_v63, 9  ;;  %v6028_v3 = vor.u32 %v11704_v12, %v11675_v32  ;;  %v6042_v40 = vor.u32 %v11736_v7, %v11731_v25 }
 0x3bf   :  { %5937 = vst.msk [vmem:[#allocation5 + $0x2c] sm:$0xf] %vm5694_vm5, %v12054_v31  ;;  %v5758_v36 = vsel %vm9550_vm14, %v8305_v49, %v12724_v52  ;;  %6336 = vst.msk [vmem:[#allocation5 + $0x1c] sm:$0xf] %vm5694_vm5, %v12060_v27  ;;  %v5992_v31 = vsel %vm9568_vm15, %v5987_v55, %v12725_v47  ;;  %v12726_v22 = vrot.slane %v11619_v58, 5  ;;  %v6015_v4 = vrot.slane %v6014_v35, 4 }
 0x3c0   :  { %5826 = vst.msk [vmem:[#allocation5 + $0x40] sm:$0xf] %vm177_vm2, %v5758_v36  ;;  %v8308_v63 = vrot.slane %v11355_v14, 9  ;;  %6193 = vst.msk [vmem:[#allocation5 + $0x30] sm:$0xf] %vm177_vm2, %v5992_v31  ;;  %v12727_v32 = vld [vmem:[#allocation36_spill] sm:$0xff] }
 0x3c1   :  { %v5762_v10 = vsel %vm9550_vm14, %v8306_v11, %v12726_v22  ;;  %5938 = vst.msk [vmem:[#allocation5 + $0x40] sm:$0xf] %vm5694_vm5, %v5894_v29  ;;  %v6006_v12 = vsel %vm9568_vm15, %v6001_v50, %v12727_v32  ;;  %v12728_v27 = vrot.slane %v11700_v2, 5  ;;  %v6029_v13 = vrot.slane %v6028_v3, 4  ;;  %6337 = vst.msk [vmem:[#allocation5 + $0x30] sm:$0xf] %vm5694_vm5, %v12079_v46 }
 0x3c2   :  { %5827 = vst.msk [vmem:[#allocation5 + $0x54] sm:$0xf] %vm177_vm2, %v5762_v10  ;;  %6194 = vst.msk [vmem:[#allocation5 + $0x44] sm:$0xf] %vm177_vm2, %v6006_v12  ;;  %v9060_v14 = vld [vmem:[#allocation5] ss:$20 sps:$4 sm:$0xff]   ;;  %v6020_v45 = vsel %vm9568_vm15, %v6015_v4, %v12729_v53  ;;  %6317 = vrot.lane.b32.xlu1 %v6286_v41, %s9161_s28 }
 0x3c3   :  { %v5766_v58 = vsel %vm9550_vm14, %v8307_v30, %v12728_v27  ;;  %v9062_v39 = vld [vmem:[#allocation5 + $0x4] ss:$20 sps:$4 sm:$0xff]   ;;  %6338 = vst.msk [vmem:[#allocation5 + $0x44] sm:$0xf] %vm5694_vm5, %v6294_v51  ;;  %5939 = vst.msk [vmem:[#allocation5 + $0x54] sm:$0xf] %vm5694_vm5, %v5896_v6  ;;  %v5653_v51 = vpop.permute.xlu1 %5652  ;;  %v6296_v22 = vpop.permute.xlu0 %6295 }
 0x3c4   :  { %5828 = vst.msk [vmem:[#allocation5 + $0x68] sm:$0xf] %vm177_vm2, %v5766_v58  ;;  %v12730_v2 = vld [vmem:[#allocation48_spill] sm:$0xff]  ;;  %v12732_v25 = vld [vmem:[#allocation23_spill] sm:$0xff]  ;;  %6195 = vst.msk [vmem:[#allocation5 + $0x58] sm:$0xf] %vm177_vm2, %v6020_v45  ;;  %7415 = vmatprep.mubr.bf16.mxu0 %v9062_v39 }
 0x3c5   :  { %v12731_v57 = vrot.slane %v12730_v2, 5  ;;  %v8309_v7 = vrot.slane %v12732_v25, 9  ;;  %v12733_v18 = vld [vmem:[#allocation51_spill] sm:$0xff]  ;;  %v12734_v46 = vld [vmem:[#allocation52_spill] sm:$0xff]  ;;  %v6043_v23 = vrot.slane %v6042_v40, 4  ;;  %v8310_v37 = vrot.slane %v12736_v20, 9  ;;  %7416 = vmatmul.mubr.bf16.vlgmr.msra.gmra.mxu0 %v9060_v14 }
 0x3c6   :  { %v6056_v34 = vor.u32 %v12734_v46, %v12733_v18  ;;  %v6382_v54 = vld [vmem:[#allocation3 + $0x98] sm:$0xf]  ;;  %v9084_v41 = vld [vmem:[%s12547_s8 + $0x110] sm:$0xff]   ;;  %v6383_v44 = vld [vmem:[#allocation3 + $0x9c] sm:$0x1] }
 0x3c7   :  { %v5770_v29 = vsel %vm9550_vm14, %v8308_v63, %v12731_v57  ;;  %v12735_v24 = vld [vmem:[#allocation47_spill] sm:$0xff]  ;;  %v6611_v42 = vshrl.u32 %v6382_v54, 16  ;;  %v6614_v1 = vshll.u32 %v6382_v54, 16  ;;  %v8349_v15 = vrot.slane %v6382_v54, 9  ;;  %6399 = vst.msk [vmem:[#allocation5 + $0x138] sm:$0xf] %vm177_vm2, %v6382_v54 }
 0x3c8   :  { %v6034_v33 = vsel %vm9568_vm15, %v6029_v13, %v12735_v24  ;;  %5829 = vst.msk [vmem:[#allocation5 + $0x7c] sm:$0xf] %vm177_vm2, %v5770_v29  ;;  %v12737_v60 = vld [vmem:[#allocation31_spill] sm:$0xff]  ;;  %v12738_v49 = vld [vmem:[#allocation53_spill] sm:$0xff]  ;;  %v6620_v19 = vshll.u32 %v6383_v44, 16  ;;  %v6782_v43 = vrot.slane %v6383_v44, 5 }
 0x3c9   :  { %v8312_v38 = vrot.slane %v12737_v60, 9  ;;  %6196 = vst.msk [vmem:[#allocation5 + $0x6c] sm:$0xf] %vm177_vm2, %v6034_v33  ;;  %v12739_v61 = vrot.slane %v12738_v49, 5  ;;  %v12740_v0 = vld [vmem:[#allocation49_spill] sm:$0xff]  ;;  %v6057_v48 = vrot.slane %v6056_v34, 4 }
 0x3ca   :  { %v6048_v55 = vsel %vm9568_vm15, %v6043_v23, %v12740_v0  ;;  %v6613_v11 = vrot.slane %v6611_v42, 4  ;;  %v6616_v16 = vrot.slane %v6614_v1, 5  ;;  %v9137_v28 = vld [vmem:[%s12547_s8 + $0x118] sm:$0xff]   ;;  %v12743_v50 = vld [vmem:[#allocation57_spill] sm:$0xff]  ;;  %v6622_v47 = vrot.slane %v6620_v19, 5  ;;  %v12745_v10 = vld [vmem:[#allocation54_spill] sm:$0xff] }
 0x3cb   :  { %v5774_v9 = vsel %vm9550_vm14, %v8309_v7, %v12739_v61  ;;  %6197 = vst.msk [vmem:[#allocation5 + $0x80] sm:$0xf] %vm177_vm2, %v6048_v55  ;;  %8660 = vmatpush3.bf16.msra.mxu0 %v9137_v28  ;;  %v12741_v35 = vld [vmem:[#allocation27_spill] sm:$0xff]  ;;  %v12744_v30 = vrot.slane %v12743_v50, 5  ;;  %v6783_v31 = vsel %vm9550_vm14, %v8349_v15, %v6782_v43  ;;  %v6062_v4 = vsel %vm9568_vm15, %v6057_v48, %v12745_v10  ;;  %v12746_v63 = vld [vmem:[#allocation10_spill] sm:$0xff]  ;;  %v12747_v58 = vld [vmem:[#allocation41_spill] sm:$0xff] }
 0x3cc   :  { %5830 = vst.msk [vmem:[#allocation5 + $0x90] sm:$0xf] %vm177_vm2, %v5774_v9  ;;  %v12742_v52 = vrot.slane %v12741_v35, 5  ;;  %v8311_v32 = vrot.slane %v12746_v63, 9  ;;  %8661 = vmatprep.subr.bf16.mxu0 %v9084_v41  ;;  %v9094_v12 = vld [vmem:[%s12547_s8 + $0x108] sm:$0xff]   ;;  %v6617_v27 = vor.u32 %v6616_v16, %v6613_v11  ;;  %v8314_v13 = vrot.slane %v12747_v58, 9 }
 0x3cd   :  { %v5786_v3 = vsel %vm9550_vm14, %v8312_v38, %v12744_v30  ;;  %6815 = vst.msk [vmem:[#allocation5 + $0x13c] sm:$0xf] %vm177_vm2, %v6783_v31  ;;  %6198 = vst.msk [vmem:[#allocation5 + $0x94] sm:$0xf] %vm177_vm2, %v6062_v4  ;;  %v12748_v40 = vld [vmem:[#allocation37_spill] sm:$0xff]  ;;  %v12749_v39 = vld [vmem:[#allocation46_spill] sm:$0xff] }
 0x3ce   :  { %v5778_v36 = vsel %vm9550_vm14, %v8310_v37, %v12742_v52  ;;  %5833 = vst.msk [vmem:[#allocation5 + $0xcc] sm:$0xf] %vm177_vm2, %v5786_v3  ;;  %v8313_v14 = vrot.slane %v12748_v40, 9  ;;  %v8316_v6 = vrot.slane %v12749_v39, 9  ;;  %v12750_v53 = vld [vmem:[#allocation60_spill] sm:$0xff]  ;;  %v12752_v57 = vld [vmem:[#allocation45_spill] sm:$0xff] }
 0x3cf   :  { %5831 = vst.msk [vmem:[#allocation5 + $0xa4] sm:$0xf] %vm177_vm2, %v5778_v36  ;;  %v12751_v45 = vrot.slane %v12750_v53, 5  ;;  %v8315_v29 = vrot.slane %v12752_v57, 9  ;;  %v12753_v25 = vld [vmem:[#allocation55_spill] sm:$0xff]  ;;  %v12754_v7 = vld [vmem:[#allocation56_spill] sm:$0xff]  ;;  %8662 = vmatpush3.bf16.msra.mxu0 %v9084_v41  ;;  %v6627_v53 = vpop.permute.xlu1 %6626 }
 0x3d0   :  { %5698 = vst.msk [vmem:[#allocation5 + $0x3c] sm:$0xf] %vm5694_vm5, %v5653_v51  ;;  %6339 = vst.msk [vmem:[#allocation5 + $0x58] sm:$0xf] %vm5694_vm5, %v6296_v22  ;;  %v6070_v18 = vor.u32 %v12754_v7, %v12753_v25  ;;  %v12755_v46 = vld [vmem:[#allocation50_spill] sm:$0xff]  ;;  %v6618_v54 = vrot.slane %v6617_v27, 4  ;;  %8663 = vmatprep.subr.bf16.mxu0 %v9094_v12 }
 0x3d1   :  { %v5782_v2 = vsel %vm9550_vm14, %v8311_v32, %v12751_v45  ;;  %v8317_v34 = vrot.slane %v12755_v46, 9  ;;  %v12756_v24 = vld [vmem:[#allocation63_spill] sm:$0xff]  ;;  %v12760_v38 = vld [vmem:[#allocation69_spill] sm:$0xff]  ;;  %v12766_v43 = vld [vmem:[#allocation58_spill] sm:$0xff]  ;;  %6673 = vst.msk [vmem:[#allocation5 + $0x20] sm:$0xf] %vm5694_vm5, %v6627_v53 }
 0x3d2   :  { %5832 = vst.msk [vmem:[#allocation5 + $0xb8] sm:$0xf] %vm177_vm2, %v5782_v2  ;;  %v12757_v33 = vrot.slane %v12756_v24, 5  ;;  %v12758_v20 = vld [vmem:[#allocation67_spill] sm:$0xff]  ;;  %v12761_v44 = vrot.slane %v12760_v38, 5  ;;  %v12762_v41 = vld [vmem:[#allocation73_spill] sm:$0xff]  ;;  %v6623_v11 = vsel %vm9568_vm15, %v6618_v54, %v6622_v47 }
 0x3d3   :  { %v12759_v37 = vrot.slane %v12758_v20, 5  ;;  %v12763_v1 = vrot.slane %v12762_v41, 5  ;;  %v6071_v49 = vrot.slane %v6070_v18, 4  ;;  %v12764_v61 = vld [vmem:[#allocation77_spill] sm:$0xff]  ;;  %v12767_v0 = vld [vmem:[#allocation59_spill] sm:$0xff]  ;;  %v12769_v28 = vld [vmem:[#allocation62_spill] sm:$0xff]  ;;  %6654 = vrot.lane.b32.xlu1 %v6623_v11, %s9161_s28  ;;  %8664 = vmatpush3.bf16.msra.mxu0 %v9094_v12 }
 0x3d4   :  { %v5794_v23 = vsel %vm9550_vm14, %v8314_v13, %v12757_v33  ;;  %v5802_v42 = vsel %vm9550_vm14, %v8316_v6, %v12761_v44  ;;  %v12765_v9 = vrot.slane %v12764_v61, 5  ;;  %v6098_v55 = vor.u32 %v12767_v0, %v12766_v43  ;;  %v9101_v48 = vld [vmem:[%s12547_s8 + $0x100] sm:$0xff]   ;;  %v12772_v50 = vld [vmem:[#allocation66_spill] sm:$0xff]  ;;  %v12774_v31 = vld [vmem:[#allocation75_spill] sm:$0xff] }
 0x3d5   :  { %v5790_v60 = vsel %vm9550_vm14, %v8313_v14, %v12759_v37  ;;  %5835 = vst.msk [vmem:[#allocation5 + $0xf4] sm:$0xf] %vm177_vm2, %v5794_v23  ;;  %5837 = vst.msk [vmem:[#allocation5 + $0x11c] sm:$0xf] %vm177_vm2, %v5802_v42  ;;  %v5798_v15 = vsel %vm9550_vm14, %v8315_v29, %v12763_v1  ;;  %v12768_v16 = vld [vmem:[#allocation61_spill] sm:$0xff]  ;;  %v12770_v52 = vld [vmem:[#allocation64_spill] sm:$0xff]  ;;  %v6076_v51 = vsel %vm9568_vm15, %v6071_v49, %v12774_v31  ;;  %8665 = vmatprep.subr.bf16.mxu0 %v9101_v48 }
 0x3d6   :  { %5834 = vst.msk [vmem:[#allocation5 + $0xe0] sm:$0xf] %vm177_vm2, %v5790_v60  ;;  %v5806_v19 = vsel %vm9550_vm14, %v8317_v34, %v12765_v9  ;;  %5836 = vst.msk [vmem:[#allocation5 + $0x108] sm:$0xf] %vm177_vm2, %v5798_v15  ;;  %v6084_v35 = vor.u32 %v12769_v28, %v12768_v16  ;;  %v6126_v36 = vor.u32 %v12771_v17, %v12770_v52  ;;  %v12773_v30 = vld [vmem:[#allocation68_spill] sm:$0xff]  ;;  %v6099_v47 = vrot.slane %v6098_v55, 4 }
 0x3d7   :  { %5838 = vst.msk [vmem:[#allocation5 + $0x130] sm:$0xf] %vm177_vm2, %v5806_v19  ;;  %v6112_v3 = vor.u32 %v12773_v30, %v12772_v50  ;;  %v12775_v22 = vld [vmem:[#allocation70_spill] sm:$0xff]  ;;  %v12776_v10 = vld [vmem:[#allocation71_spill] sm:$0xff]  ;;  %v12777_v63 = vld [vmem:[#allocation72_spill] sm:$0xff]  ;;  %v6173_v33 = vrot.slane %v6171_v59, 5  ;;  %8666 = vmatpush3.bf16.msra.mxu0 %v9101_v48 }
 0x3d8   :  { %v6154_v4 = vor.u32 %v12776_v10, %v12775_v22  ;;  %v12778_v32 = vld [vmem:[#allocation74_spill] sm:$0xff]  ;;  %6199 = vst.msk [vmem:[#allocation5 + $0xa8] sm:$0xf] %vm177_vm2, %v6076_v51  ;;  %v6085_v58 = vrot.slane %v6084_v35, 4  ;;  %v6127_v13 = vrot.slane %v6126_v36, 4  ;;  %v12779_v14 = vld [vmem:[#allocation76_spill] sm:$0xff] }
 0x3d9   :  { %v6140_v27 = vor.u32 %v12778_v32, %v12777_v63  ;;  %v6113_v40 = vrot.slane %v6112_v3, 4  ;;  %v12780_v39 = vld [vmem:[#allocation78_spill] sm:$0xff]  ;;  %v6825_v2 = vld [vmem:[#allocation5 + $0x3c] sm:$0xff]  ;;  %v12781_v29 = vld [vmem:[#allocation79_spill] sm:$0xff] }
 0x3da   :  { %v6168_v6 = vor.u32 %v12780_v39, %v12779_v14  ;;  %v6822_v45 = vld [vmem:[#allocation5 + $0x28] sm:$0xff]  ;;  %v6104_v25 = vsel %vm9568_vm15, %v6099_v47, %v12781_v29  ;;  %v6155_v7 = vrot.slane %v6154_v4, 4  ;;  %v12782_v46 = vld [vmem:[#allocation80_spill] sm:$0xff]  ;;  %v6132_v54 = vsel %vm9568_vm15, %v6127_v13, %v12029_v26  ;;  %v9079_v0 = vld [vmem:[#allocation5 + $0x30] ss:$20 sps:$4 sm:$0xff]  }
 0x3db   :  { %v9069_v57 = vld [vmem:[#allocation5 + $0x2c] ss:$20 sps:$4 sm:$0xff]   ;;  %v6141_v18 = vrot.slane %v6140_v27, 4  ;;  %v8356_v12 = vcombine.low %v6822_v45, %v6825_v2  ;;  %6201 = vst.msk [vmem:[#allocation5 + $0xd0] sm:$0xf] %vm177_vm2, %v6104_v25  ;;  %v6090_v34 = vsel %vm9568_vm15, %v6085_v58, %v12782_v46  ;;  %v6118_v24 = vsel %vm9568_vm15, %v6113_v40, %v12035_v5  ;;  %v5898_v5 = vpop.permute.xlu1 %5897 }
 0x3dc   :  { %7423 = vmatprep.mubr.bf16.mxu0 %v9069_v57  ;;  %6200 = vst.msk [vmem:[#allocation5 + $0xbc] sm:$0xf] %vm177_vm2, %v6090_v34  ;;  %6203 = vst.msk [vmem:[#allocation5 + $0xf8] sm:$0xf] %vm177_vm2, %v6132_v54  ;;  %v6160_v23 = vsel %vm9568_vm15, %v6155_v7, %v12070_v62  ;;  %v6169_v20 = vrot.slane %v6168_v6, 4  ;;  %v5655_v62 = vpop.permute.xlu0 %5654 }
 0x3dd   :  { %6202 = vst.msk [vmem:[#allocation5 + $0xe4] sm:$0xf] %vm177_vm2, %v6118_v24  ;;  %v6146_v26 = vsel %vm9568_vm15, %v6141_v18, %v12075_v8  ;;  %7424 = vmatmul.mubr.bf16.gmra.mxu0 %v8356_v12  ;;  %6205 = vst.msk [vmem:[#allocation5 + $0x120] sm:$0xf] %vm177_vm2, %v6160_v23  ;;  %v9073_v59 = vld [vmem:[#allocation5 + $0x8] ss:$20 sps:$4 sm:$0xff]  }
 0x3de   :  { %6204 = vst.msk [vmem:[#allocation5 + $0x10c] sm:$0xf] %vm177_vm2, %v6146_v26  ;;  %v6174_v21 = vsel %vm9568_vm15, %v6169_v20, %v6173_v33  ;;  %v9075_v8 = vld [vmem:[#allocation5 + $0xc] ss:$20 sps:$4 sm:$0xff]   ;;  %v9105_v26 = vld [vmem:[#allocation5 + $0x10] ss:$20 sps:$4 sm:$0xff]  }
 0x3df   :  { %5940 = vst.msk [vmem:[#allocation5 + $0x68] sm:$0xf] %vm5694_vm5, %v5898_v5  ;;  %5699 = vst.msk [vmem:[#allocation5 + $0x50] sm:$0xf] %vm5694_vm5, %v5655_v62  ;;  %7512 = vmatprep.mubr.bf16.mxu1 %v9075_v8  ;;  %v6298_v60 = vpop.permute.xlu1 %6297  ;;  %v9109_v8 = vld [vmem:[#allocation5 + $0x38] ss:$20 sps:$4 sm:$0xff]  }
 0x3e0   :  { %6206 = vst.msk [vmem:[#allocation5 + $0x134] sm:$0xf] %vm177_vm2, %v6174_v21  ;;  %v6629_v37 = vpop.permute.xlu0 %6628  ;;  %7513 = vmatmul.mubr.bf16.vlgmr.msra.gmra.mxu1 %v9073_v59 }
 0x3e1   :  { %6674 = vst.msk [vmem:[#allocation5 + $0x34] sm:$0xf] %vm5694_vm5, %v6629_v37  ;;  %6340 = vst.msk [vmem:[#allocation5 + $0x6c] sm:$0xf] %vm5694_vm5, %v6298_v60  ;;  %v9110_v60 = vld [vmem:[#allocation5 + $0x60] ss:$20 sps:$4 sm:$0xff]  }
 0x3e3   :  { %v5657_v44 = vpop.permute.xlu1 %5656 }
 0x3e4   :  { %v5900_v38 = vpop.permute.xlu0 %5899  ;;  %5700 = vst.msk [vmem:[#allocation5 + $0x64] sm:$0xf] %vm5694_vm5, %v5657_v44 }
 0x3e5   :  { %5941 = vst.msk [vmem:[#allocation5 + $0x7c] sm:$0xf] %vm5694_vm5, %v5900_v38 }
 0x3e6   :  { %v6828_v15 = vld [vmem:[#allocation5 + $0x50] sm:$0xff] }
 0x3e7   :  { %v6631_v42 = vpop.permute.xlu1 %6630  ;;  %v9076_v61 = vld [vmem:[#allocation5 + $0x54] ss:$20 sps:$4 sm:$0xff]  }
 0x3e8   :  { %v6300_v56 = vpop.permute.xlu0 %6299  ;;  %6675 = vst.msk [vmem:[#allocation5 + $0x48] sm:$0xf] %vm5694_vm5, %v6631_v42  ;;  %7431 = vmatprep.mubr.bf16.mxu0 %v9076_v61  ;;  %v9085_v51 = vld [vmem:[#allocation5 + $0x58] ss:$20 sps:$4 sm:$0xff]  }
 0x3e9   :  { %6341 = vst.msk [vmem:[#allocation5 + $0x80] sm:$0xf] %vm5694_vm5, %v6300_v56 }
 0x3eb   :  { %v5902_v1 = vpop.permute.xlu1 %5901  ;;  %v6831_v49 = vld [vmem:[#allocation5 + $0x64] sm:$0xff] }
 0x3ec   :  { %v5659_v41 = vpop.permute.xlu0 %5658  ;;  %5942 = vst.msk [vmem:[#allocation5 + $0x90] sm:$0xf] %vm5694_vm5, %v5902_v1  ;;  %v8361_v9 = vcombine.low %v6828_v15, %v6831_v49  ;;  %v9114_v1 = vld [vmem:[#allocation5 + $0x88] ss:$20 sps:$4 sm:$0xff]   ;;  %v9115_v15 = vld [vmem:[#allocation5 + $0xb0] ss:$20 sps:$4 sm:$0xff]  }
 0x3ed   :  { %5701 = vst.msk [vmem:[#allocation5 + $0x78] sm:$0xf] %vm5694_vm5, %v5659_v41 }
 0x3ee   :  { %7432 = vmatmul.mubr.bf16.gmra.mxu0 %v8361_v9 }
 0x3ef   :  { %v6302_v43 = vpop.permute.xlu1 %6301  ;;  %v9081_v55 = vld [vmem:[#allocation5 + $0x34] ss:$20 sps:$4 sm:$0xff]  }
 0x3f0   :  { %v6633_v19 = vpop.permute.xlu0 %6632  ;;  %6342 = vst.msk [vmem:[#allocation5 + $0x94] sm:$0xf] %vm5694_vm5, %v6302_v43  ;;  %7520 = vmatprep.mubr.bf16.mxu1 %v9081_v55  ;;  %v9120_v43 = vld [vmem:[#allocation5 + $0x100] ss:$20 sps:$4 sm:$0xff]   ;;  %v9124_v55 = vld [vmem:[#allocation5 + $0x128] ss:$20 sps:$4 sm:$0xff]  }
 0x3f1   :  { %6676 = vst.msk [vmem:[#allocation5 + $0x5c] sm:$0xf] %vm5694_vm5, %v6633_v19  ;;  %7521 = vmatmul.mubr.bf16.gmra.mxu1 %v9079_v0  ;;  %v9119_v19 = vld [vmem:[#allocation5 + $0xd8] ss:$20 sps:$4 sm:$0xff]  }
 0x3f3   :  { %v5661_v11 = vpop.permute.xlu1 %5660  ;;  %v9082_v36 = vld [vmem:[#allocation5 + $0x7c] ss:$20 sps:$4 sm:$0xff]  }
 0x3f4   :  { %v5904_v48 = vpop.permute.xlu0 %5903  ;;  %5702 = vst.msk [vmem:[#allocation5 + $0x8c] sm:$0xf] %vm5694_vm5, %v5661_v11  ;;  %v6834_v52 = vld [vmem:[#allocation5 + $0x78] sm:$0xff]  ;;  %7439 = vmatprep.mubr.bf16.mxu0 %v9082_v36  ;;  %v9130_v36 = vld [vmem:[%s12549_s10 + $0x10] sm:$0xff]  }
 0x3f5   :  { %5943 = vst.msk [vmem:[#allocation5 + $0xa4] sm:$0xf] %vm5694_vm5, %v5904_v48 }
 0x3f7   :  { %v9088_v13 = vld [vmem:[#allocation5 + $0x80] ss:$20 sps:$4 sm:$0xff]  }
 0x3f8   :  { %v6637_v16 = vpop.permute.xlu0 %6636  ;;  %v6635_v28 = vpop.permute.xlu1 %6634 }
 0x3f9   :  { %6678 = vst.msk [vmem:[#allocation5 + $0x84] sm:$0xf] %vm5694_vm5, %v6637_v16  ;;  %6677 = vst.msk [vmem:[#allocation5 + $0x70] sm:$0xf] %vm5694_vm5, %v6635_v28  ;;  %v9125_v16 = vld [vmem:[%s12549_s10 + $0x38] sm:$0xff]   ;;  %v9126_v28 = vld [vmem:[%s12549_s10 + $0x30] sm:$0xff]  }
 0x3fa   :  { %8683 = vmatprep.subr.bf16.mxu0 %v9125_v16 }
 0x3fb   :  { %v6837_v17 = vld [vmem:[#allocation5 + $0x8c] sm:$0xff] }
 0x3fc   :  { %v5908_v35 = vpop.permute.xlu0 %5907  ;;  %v5906_v50 = vpop.permute.xlu1 %5905  ;;  %v8366_v30 = vcombine.low %v6834_v52, %v6837_v17  ;;  %v9128_v52 = vld [vmem:[%s12549_s10 + $0x20] sm:$0xff]   ;;  %v9129_v17 = vld [vmem:[%s12549_s10 + $0x18] sm:$0xff]  }
 0x3fd   :  { %5945 = vst.msk [vmem:[#allocation5 + $0xcc] sm:$0xf] %vm5694_vm5, %v5908_v35  ;;  %5944 = vst.msk [vmem:[#allocation5 + $0xb8] sm:$0xf] %vm5694_vm5, %v5906_v50  ;;  %v9127_v35 = vld [vmem:[%s12549_s10 + $0x28] sm:$0xff]  }
 0x3fe   :  { %7440 = vmatmul.mubr.bf16.gmra.mxu0 %v8366_v30  ;;  %v9131_v50 = vld [vmem:[%s12549_s10 + $0x8] sm:$0xff]   ;;  %v9132_v30 = vld [vmem:[%s12549_s10] sm:$0xff]  }
 0x400   :  { %v5667_v3 = vpop.permute.xlu0 %5666  ;;  %v5665_v31 = vpop.permute.xlu1 %5664  ;;  %v9087_v47 = vld [vmem:[#allocation5 + $0x5c] ss:$20 sps:$4 sm:$0xff]   ;;  %v9090_v10 = vld [vmem:[#allocation5 + $0x84] ss:$20 sps:$4 sm:$0xff]  }
 0x401   :  { %5705 = vst.msk [vmem:[#allocation5 + $0xc8] sm:$0xf] %vm5694_vm5, %v5667_v3  ;;  %5704 = vst.msk [vmem:[#allocation5 + $0xb4] sm:$0xf] %vm5694_vm5, %v5665_v31  ;;  %7528 = vmatprep.mubr.bf16.mxu1 %v9087_v47 }
 0x402   :  { %7529 = vmatmul.mubr.bf16.gmra.mxu1 %v9085_v51 }
 0x403   :  { %7536 = vmatprep.mubr.bf16.mxu1 %v9090_v10 }
 0x404   :  { %v5912_v22 = vpop.permute.xlu0 %5911  ;;  %v5910_v4 = vpop.permute.xlu1 %5909  ;;  %v9093_v58 = vld [vmem:[#allocation5 + $0xa4] ss:$20 sps:$4 sm:$0xff]  }
 0x405   :  { %5947 = vst.msk [vmem:[#allocation5 + $0xf4] sm:$0xf] %vm5694_vm5, %v5912_v22  ;;  %5946 = vst.msk [vmem:[#allocation5 + $0xe0] sm:$0xf] %vm5694_vm5, %v5910_v4  ;;  %7447 = vmatprep.mubr.bf16.mxu0 %v9093_v58 }
 0x408   :  { %v5671_v63 = vpop.permute.xlu0 %5670  ;;  %v5669_v32 = vpop.permute.xlu1 %5668  ;;  %v9091_v27 = vld [vmem:[#allocation5 + $0xa0] ss:$20 sps:$4 sm:$0xff]  }
 0x409   :  { %5707 = vst.msk [vmem:[#allocation5 + $0xf0] sm:$0xf] %vm5694_vm5, %v5671_v63  ;;  %5706 = vst.msk [vmem:[#allocation5 + $0xdc] sm:$0xf] %vm5694_vm5, %v5669_v32  ;;  %7448 = vmatmul.mubr.bf16.gmra.mxu0 %v9091_v27 }
 0x40a   :  { %7537 = vmatmul.mubr.bf16.gmra.mxu1 %v9088_v13 }
 0x40c   :  { %v5916_v40 = vpop.permute.xlu0 %5915  ;;  %v5914_v14 = vpop.permute.xlu1 %5913  ;;  %v9097_v45 = vld [vmem:[#allocation5 + $0xcc] ss:$20 sps:$4 sm:$0xff]  }
 0x40d   :  { %5949 = vst.msk [vmem:[#allocation5 + $0x11c] sm:$0xf] %vm5694_vm5, %v5916_v40  ;;  %5948 = vst.msk [vmem:[#allocation5 + $0x108] sm:$0xf] %vm5694_vm5, %v5914_v14  ;;  %7455 = vmatprep.mubr.bf16.mxu0 %v9097_v45 }
 0x410   :  { %v5675_v39 = vpop.permute.xlu0 %5674  ;;  %v5673_v6 = vpop.permute.xlu1 %5672  ;;  %v9095_v53 = vld [vmem:[#allocation5 + $0xc8] ss:$20 sps:$4 sm:$0xff]  }
 0x411   :  { %5709 = vst.msk [vmem:[#allocation5 + $0x118] sm:$0xf] %vm5694_vm5, %v5675_v39  ;;  %5708 = vst.msk [vmem:[#allocation5 + $0x104] sm:$0xf] %vm5694_vm5, %v5673_v6  ;;  %7456 = vmatmul.mubr.bf16.gmra.mxu0 %v9095_v53 }
 0x414   :  { %v6304_v2 = vpop.permute.xlu0 %6303  ;;  %v5918_v57 = vpop.permute.xlu1 %5917  ;;  %v9100_v18 = vld [vmem:[#allocation5 + $0xf4] ss:$20 sps:$4 sm:$0xff]  }
 0x415   :  { %6343 = vst.msk [vmem:[#allocation5 + $0xa8] sm:$0xf] %vm5694_vm5, %v6304_v2  ;;  %5950 = vst.msk [vmem:[#allocation5 + $0x130] sm:$0xf] %vm5694_vm5, %v5918_v57  ;;  %7463 = vmatprep.mubr.bf16.mxu0 %v9100_v18 }
 0x418   :  { %v6641_v29 = vpop.permute.xlu0 %6640  ;;  %v5677_v25 = vpop.permute.xlu1 %5676  ;;  %v9098_v7 = vld [vmem:[#allocation5 + $0xf0] ss:$20 sps:$4 sm:$0xff]  }
 0x419   :  { %6680 = vst.msk [vmem:[#allocation5 + $0xac] sm:$0xf] %vm5694_vm5, %v6641_v29  ;;  %5710 = vst.msk [vmem:[#allocation5 + $0x12c] sm:$0xf] %vm5694_vm5, %v5677_v25  ;;  %7464 = vmatmul.mubr.bf16.gmra.mxu0 %v9098_v7 }
 0x41c   :  { %v6308_v12 = vpop.permute.xlu0 %6307  ;;  %v6306_v46 = vpop.permute.xlu1 %6305  ;;  %v9104_v33 = vld [vmem:[#allocation5 + $0x11c] ss:$20 sps:$4 sm:$0xff]  }
 0x41d   :  { %6345 = vst.msk [vmem:[#allocation5 + $0xd0] sm:$0xf] %vm5694_vm5, %v6308_v12  ;;  %6344 = vst.msk [vmem:[#allocation5 + $0xbc] sm:$0xf] %vm5694_vm5, %v6306_v46  ;;  %7471 = vmatprep.mubr.bf16.mxu0 %v9104_v33 }
 0x420   :  { %v6645_v34 = vpop.permute.xlu0 %6644  ;;  %v6643_v54 = vpop.permute.xlu1 %6642  ;;  %v9102_v24 = vld [vmem:[#allocation5 + $0x118] ss:$20 sps:$4 sm:$0xff]  }
 0x421   :  { %6682 = vst.msk [vmem:[#allocation5 + $0xd4] sm:$0xf] %vm5694_vm5, %v6645_v34  ;;  %6681 = vst.msk [vmem:[#allocation5 + $0xc0] sm:$0xf] %vm5694_vm5, %v6643_v54  ;;  %7472 = vmatmul.mubr.bf16.gmra.mxu0 %v9102_v24 }
 0x422   :  { %8667 = vmatprep.mubr.msk.bf16.mxu0 %vm2919_vm0, %v9105_v26 }
 0x424   :  { %v6312_v23 = vpop.permute.xlu0 %6311  ;;  %v6310_v20 = vpop.permute.xlu1 %6309  ;;  %v9106_v62 = vld [vmem:[#allocation5 + $0xa8] ss:$20 sps:$4 sm:$0xff]  }
 0x425   :  { %6347 = vst.msk [vmem:[#allocation5 + $0xf8] sm:$0xf] %vm5694_vm5, %v6312_v23  ;;  %6346 = vst.msk [vmem:[#allocation5 + $0xe4] sm:$0xf] %vm5694_vm5, %v6310_v20 }
 0x428   :  { %v6649_v5 = vpop.permute.xlu0 %6648  ;;  %v6647_v21 = vpop.permute.xlu1 %6646  ;;  %v9108_v59 = vld [vmem:[#allocation5 + $0xac] ss:$20 sps:$4 sm:$0xff]  }
 0x429   :  { %6684 = vst.msk [vmem:[#allocation5 + $0xfc] sm:$0xf] %vm5694_vm5, %v6649_v5  ;;  %6683 = vst.msk [vmem:[#allocation5 + $0xe8] sm:$0xf] %vm5694_vm5, %v6647_v21  ;;  %7544 = vmatprep.mubr.bf16.mxu1 %v9108_v59  ;;  %8668 = vmatmul.mubr.msk.bf16.vlgmr.msra.gmra.mxu0 %vm2919_vm0, %v9109_v8 }
 0x42a   :  { %7545 = vmatmul.mubr.bf16.gmra.mxu1 %v9106_v62  ;;  %8671 = vmatprep.mubr.msk.bf16.mxu0 %vm2919_vm0, %v9110_v60 }
 0x42b   :  { %8684 = vmatpush3.bf16.msra.mxu0 %v9125_v16 }
 0x42c   :  { %v6316_v37 = vpop.permute.xlu0 %6315  ;;  %v6314_v38 = vpop.permute.xlu1 %6313  ;;  %v9111_v42 = vld [vmem:[#allocation5 + $0xd0] ss:$20 sps:$4 sm:$0xff]   ;;  %8685 = vmatprep.subr.bf16.mxu0 %v9126_v28 }
 0x42d   :  { %6349 = vst.msk [vmem:[#allocation5 + $0x120] sm:$0xf] %vm5694_vm5, %v6316_v37  ;;  %6348 = vst.msk [vmem:[#allocation5 + $0x10c] sm:$0xf] %vm5694_vm5, %v6314_v38 }
 0x42f   :  { %8686 = vmatpush3.bf16.msra.mxu0 %v9126_v28 }
 0x430   :  { %v6653_v56 = vpop.permute.xlu0 %6652  ;;  %v6651_v44 = vpop.permute.xlu1 %6650  ;;  %v9113_v41 = vld [vmem:[#allocation5 + $0xd4] ss:$20 sps:$4 sm:$0xff]   ;;  %8687 = vmatprep.subr.bf16.mxu0 %v9127_v35 }
 0x431   :  { %6686 = vst.msk [vmem:[#allocation5 + $0x124] sm:$0xf] %vm5694_vm5, %v6653_v56  ;;  %6685 = vst.msk [vmem:[#allocation5 + $0x110] sm:$0xf] %vm5694_vm5, %v6651_v44  ;;  %7552 = vmatprep.mubr.bf16.mxu1 %v9113_v41  ;;  %8672 = vmatmul.mubr.msk.bf16.gmra.mxu0 %vm2919_vm0, %v9114_v1 }
 0x432   :  { %7553 = vmatmul.mubr.bf16.gmra.mxu1 %v9111_v42  ;;  %8675 = vmatprep.mubr.msk.bf16.mxu0 %vm2919_vm0, %v9115_v15 }
 0x433   :  { %8688 = vmatpush3.bf16.msra.mxu0 %v9127_v35 }
 0x434   :  { %v6318_v49 = vpop.permute.xlu1 %6317  ;;  %v9116_v61 = vld [vmem:[#allocation5 + $0xf8] ss:$20 sps:$4 sm:$0xff]   ;;  %8689 = vmatprep.subr.bf16.mxu0 %v9128_v52 }
 0x435   :  { %6350 = vst.msk [vmem:[#allocation5 + $0x134] sm:$0xf] %vm5694_vm5, %v6318_v49 }
 0x437   :  { %8690 = vmatpush3.bf16.msra.mxu0 %v9128_v52 }
 0x438   :  { %v9118_v9 = vld [vmem:[#allocation5 + $0xfc] ss:$20 sps:$4 sm:$0xff]   ;;  %8691 = vmatprep.subr.bf16.mxu0 %v9129_v17 }
 0x439   :  { %7560 = vmatprep.mubr.bf16.mxu1 %v9118_v9  ;;  %8676 = vmatmul.mubr.msk.bf16.gmra.mxu0 %vm2919_vm0, %v9119_v19 }
 0x43a   :  { %7561 = vmatmul.mubr.bf16.gmra.mxu1 %v9116_v61  ;;  %8679 = vmatprep.mubr.msk.bf16.mxu0 %vm2919_vm0, %v9120_v43  ;;  %v12471_v61 = vld [vmem:[%s12548_s9] ss:$0 sm:$0xff] }
 0x43b   :  { %8692 = vmatpush3.bf16.msra.mxu0 %v9129_v17 }
 0x43c   :  { %v9121_v48 = vld [vmem:[#allocation5 + $0x120] ss:$20 sps:$4 sm:$0xff]   ;;  %8693 = vmatprep.subr.bf16.mxu0 %v9130_v36 }
 0x43f   :  { %8694 = vmatpush3.bf16.msra.mxu0 %v9130_v36 }
 0x440   :  { %8695 = vmatprep.subr.bf16.mxu0 %v9131_v50 }
 0x441   :  { %8680 = vmatmul.mubr.msk.bf16.gmra.mxu0 %vm2919_vm0, %v9124_v55 }
 0x443   :  { %8696 = vmatpush3.bf16.msra.mxu0 %v9131_v50 }
 0x444   :  { %8697 = vmatprep.subr.bf16.mxu0 %v9132_v30 }
 0x445   :  { %v6655_v0 = vpop.permute.xlu1 %6654 }
 0x446   :  { %6687 = vst.msk [vmem:[#allocation5 + $0x138] sm:$0xf] %vm5694_vm5, %v6655_v0 }
 0x447   :  { %8698 = vmatpush3.bf16.msra.mxu0 %v9132_v30 }
 0x44d   :  { %v9123_v11 = vld [vmem:[#allocation5 + $0x124] ss:$20 sps:$4 sm:$0xff]  }
 0x44e   :  { %7568 = vmatprep.mubr.bf16.mxu1 %v9123_v11 }
 0x44f   :  { %7569 = vmatmul.mubr.bf16.gmra.mxu1 %v9121_v48 }
 0x485   :  { %v8501_v3 = vpop.f32.mrf.mxu0 }
 0x487   :  { %v8502_v31 = vpop.f32.mrf.mxu0 }
 0x488   :  { %v8503_v15 = vadd.f32 %v8502_v31, %v8501_v3 }
 0x489   :  { %v8504_v51 = vpop.f32.mrf.mxu0 }
 0x48a   :  { %v7418_v11 = vadd.f32 %v8503_v15, %v12471_v61 }
 0x48b   :  { %v8505_v47 = vpop.f32.mrf.mxu0 }
 0x48c   :  { %v8506_v16 = vadd.f32 %v8505_v47, %v8504_v51 }
 0x48e   :  { %v7421_v51 = vadd.f32 %v8506_v16, %v12471_v61 }
 0x49d   :  { %v8507_v22 = vpop.f32.mrf.mxu0 }
 0x49f   :  { %v8508_v10 = vpop.f32.mrf.mxu0 }
 0x4a0   :  { %v8565_v27 = vpop.f32.mrf.mxu1  ;;  %v8509_v42 = vadd.f32 %v8508_v10, %v8507_v22  ;;  %v12783_v22 = vld [vmem:[#allocation33_spill] sm:$0xff] }
 0x4a1   :  { %v8510_v4 = vpop.f32.mrf.mxu0  ;;  %v5035_v10 = vmax.f32 %v12783_v22, 0.0  ;;  %v12787_v22 = vld [vmem:[#allocation16_spill] sm:$0xff] }
 0x4a2   :  { %v8566_v13 = vpop.f32.mrf.mxu1  ;;  %v7426_v19 = vadd.f32 %v8509_v42, %v12471_v61 }
 0x4a3   :  { %v8511_v63 = vpop.f32.mrf.mxu0  ;;  %v8567_v0 = vadd.f32 %v8566_v13, %v8565_v27  ;;  %v12784_v13 = vld [vmem:[#allocation14_spill] sm:$0xff] }
 0x4a4   :  { %v8568_v14 = vpop.f32.mrf.mxu1  ;;  %v8512_v43 = vadd.f32 %v8511_v63, %v8510_v4 }
 0x4a5   :  { %v7515_v31 = vadd.f32 %v8567_v0, %v7418_v11 }
 0x4a6   :  { %v8569_v6 = vpop.f32.mrf.mxu1  ;;  %v7429_v50 = vadd.f32 %v8512_v43, %v12471_v61 }
 0x4a7   :  { %v8570_v30 = vadd.f32 %v8569_v6, %v8568_v14 }
 0x4ae   :  { %v12430_v32 = vpop.f32.mrf.mxu0 }
 0x4b0   :  { %v12432_v58 = vpop.f32.mrf.mxu0 }
 0x4b1   :  { %v8571_v45 = vpop.f32.mrf.mxu1 }
 0x4b2   :  { %v12434_v40 = vpop.f32.mrf.mxu0 }
 0x4b3   :  { %v8572_v57 = vpop.f32.mrf.mxu1 }
 0x4b4   :  { %v12436_v39 = vpop.f32.mrf.mxu0  ;;  %v8573_v49 = vadd.f32 %v8572_v57, %v8571_v45  ;;  %v5037_v45 = vmax.f32 %v12784_v13, 0.0 }
 0x4b5   :  { %v8574_v25 = vpop.f32.mrf.mxu1  ;;  %v8518_v0 = vadd.f32 %v12436_v39, %v12434_v40 }
 0x4b6   :  { %v7523_v35 = vadd.f32 %v8573_v49, %v7426_v19  ;;  %v7518_v49 = vadd.f32 %v8570_v30, %v7421_v51  ;;  %v12786_v19 = vld [vmem:[#allocation17_spill] sm:$0xff] }
 0x4b7   :  { %v8575_v18 = vpop.f32.mrf.mxu1  ;;  %v5041_v43 = vmax.f32 %v12786_v19, 0.0 }
 0x4b8   :  { %v8576_v28 = vadd.f32 %v8575_v18, %v8574_v25  ;;  %v8515_v25 = vadd.f32 %v12432_v58, %v12430_v32 }
 0x4ba   :  { %v7526_v57 = vadd.f32 %v8576_v28, %v7429_v50 }
 0x4be   :  { %v8519_v53 = vpop.f32.mrf.mxu0 }
 0x4c0   :  { %v8520_v2 = vpop.f32.mrf.mxu0 }
 0x4c1   :  { %v8521_v52 = vadd.f32 %v8520_v2, %v8519_v53  ;;  %v12785_v53 = vld [vmem:[#allocation15_spill] sm:$0xff] }
 0x4c2   :  { %v8522_v29 = vpop.f32.mrf.mxu0  ;;  %v8577_v46 = vpop.f32.mrf.mxu1  ;;  %v5039_v2 = vmax.f32 %v12785_v53, 0.0 }
 0x4c3   :  { %v7442_v14 = vadd.f32 %v8521_v52, %v12471_v61 }
 0x4c4   :  { %v8523_v7 = vpop.f32.mrf.mxu0  ;;  %v8578_v24 = vpop.f32.mrf.mxu1 }
 0x4c5   :  { %v8524_v6 = vadd.f32 %v8523_v7, %v8522_v29  ;;  %v8579_v11 = vadd.f32 %v8578_v24, %v8577_v46  ;;  %v7434_v29 = vadd.f32 %v8515_v25, %v12471_v61 }
 0x4c6   :  { %v12448_v26 = vpop.f32.mrf.mxu1 }
 0x4c7   :  { %v7445_v7 = vadd.f32 %v8524_v6, %v12471_v61  ;;  %v7531_v13 = vadd.f32 %v8579_v11, %v7434_v29 }
 0x4c8   :  { %v8581_v21 = vpop.f32.mrf.mxu1 }
 0x4c9   :  { %v12438_v12 = vpop.f32.mrf.mxu0  ;;  %v8582_v50 = vadd.f32 %v8581_v21, %v12448_v26 }
 0x4ca   :  { %v8583_v8 = vpop.f32.mrf.mxu1 }
 0x4cb   :  { %v12440_v34 = vpop.f32.mrf.mxu0 }
 0x4cc   :  { %v8584_v38 = vpop.f32.mrf.mxu1 }
 0x4cd   :  { %v12442_v54 = vpop.f32.mrf.mxu0  ;;  %v8585_v4 = vadd.f32 %v8584_v38, %v8583_v8 }
 0x4ce   :  { %v8586_v41 = vpop.f32.mrf.mxu1 }
 0x4cf   :  { %v12444_v33 = vpop.f32.mrf.mxu0 }
 0x4d0   :  { %v8587_v55 = vpop.f32.mrf.mxu1 }
 0x4d1   :  { %v12446_v23 = vpop.f32.mrf.mxu0 }
 0x4d3   :  { %v12450_v20 = vpop.f32.mrf.mxu0 }
 0x4d4   :  { %v8533_v30 = vadd.f32 %v12450_v20, %v12446_v23  ;;  %v8527_v23 = vadd.f32 %v12440_v34, %v12438_v12 }
 0x4d5   :  { %v12452_v5 = vpop.f32.mrf.mxu0 }
 0x4d6   :  { %v7458_v20 = vadd.f32 %v8533_v30, %v12471_v61 }
 0x4d7   :  { %v12454_v62 = vpop.f32.mrf.mxu0 }
 0x4d8   :  { %v8536_v53 = vadd.f32 %v12454_v62, %v12452_v5 }
 0x4d9   :  { %v12456_v59 = vpop.f32.mrf.mxu0 }
 0x4db   :  { %v12458_v37 = vpop.f32.mrf.mxu0 }
 0x4dd   :  { %v12460_v60 = vpop.f32.mrf.mxu0 }
 0x4df   :  { %v12462_v56 = vpop.f32.mrf.mxu0 }
 0x4e1   :  { %v12464_v44 = vpop.f32.mrf.mxu0 }
 0x4e3   :  { %v12466_v1 = vpop.f32.mrf.mxu0 }
 0x4e5   :  { %v12473_v9 = vpop.f32.mrf.mxu0 }
 0x4e7   :  { %v12476_v48 = vpop.f32.mrf.mxu0 }
 0x4e9   :  { %v8669_v36 = vpop.f32.mrf.mxu0 }
 0x4ea   :  { %v12479_v17 = vpop.f32.mrf.mxu1  ;;  %v7620_v3 = vadd.f32 %v8669_v36, %v7523_v35  ;;  %v7539_v35 = vadd.f32 %v8585_v4, %v7442_v14  ;;  %v8588_v36 = vadd.f32 %v8587_v55, %v8586_v41  ;;  %v5043_v41 = vmax.f32 %v12787_v22, 0.0  ;;  %v12788_v55 = vld [vmem:[#allocation18_spill] sm:$0xff] }
 0x4eb   :  { %v7611_v27 = vpop.f32.mrf.mxu0  ;;  %v7437_v4 = vadd.f32 %v8518_v0, %v12471_v61 }
 0x4ec   :  { %v8590_v63 = vpop.f32.mrf.mxu1  ;;  %v7612_v47 = vadd.f32 %v7611_v27, %v7515_v31  ;;  %v7676_v15 = vmax.f32 %v7620_v3, 0.0 }
 0x4ed   :  { %v8670_v42 = vpop.f32.mrf.mxu0  ;;  %v8591_v19 = vadd.f32 %v8590_v63, %v12479_v17 }
 0x4ee   :  { %v8592_v18 = vpop.f32.mrf.mxu1  ;;  %v7674_v8 = vmax.f32 %v7612_v47, 0.0  ;;  %v7623_v38 = vadd.f32 %v8670_v42, %v7526_v57  ;;  %v7692_v40 = vadd.f32 %v7676_v15, %v5039_v2  ;;  %v7542_v57 = vadd.f32 %v8588_v36, %v7445_v7 }
 0x4ef   :  { %v7614_v28 = vpop.f32.mrf.mxu0  ;;  %v7534_v15 = vadd.f32 %v8582_v50, %v7437_v4  ;;  %v7450_v36 = vadd.f32 %v8527_v23, %v12471_v61  ;;  %v8539_v50 = vadd.f32 %v12458_v37, %v12456_v59  ;;  %v8542_v59 = vadd.f32 %v12462_v56, %v12460_v60 }
 0x4f0   :  { %v8593_v16 = vpop.f32.mrf.mxu1  ;;  %v7690_v32 = vadd.f32 %v7674_v8, %v5035_v10  ;;  %v7677_v58 = vmax.f32 %v7623_v38, 0.0  ;;  %v7615_v52 = vadd.f32 %v7614_v28, %v7518_v49  ;;  %v5047_v10 = vmax.f32 %v12788_v55, 0.0  ;;  %v12789_v38 = vld [vmem:[#allocation19_spill] sm:$0xff] }
 0x4f1   :  { %v8673_v31 = vpop.f32.mrf.mxu0  ;;  %v5049_v49 = vmax.f32 %v12789_v38, 0.0  ;;  %v12790_v28 = vld [vmem:[#allocation11_spill] sm:$0xff]  ;;  %v7469_v60 = vadd.f32 %v8542_v59, %v12471_v61 }
 0x4f2   :  { %v8595_v3 = vpop.f32.mrf.mxu1  ;;  %v7693_v39 = vadd.f32 %v7677_v58, %v5041_v43  ;;  %v7675_v46 = vmax.f32 %v7615_v52, 0.0  ;;  %v7636_v24 = vadd.f32 %v8673_v31, %v7539_v35  ;;  %v5045_v35 = vmax.f32 %v12790_v28, 0.0 }
 0x4f3   :  { %v7627_v51 = vpop.f32.mrf.mxu0  ;;  %v8594_v58 = vadd.f32 %v8593_v16, %v8592_v18 }
 0x4f4   :  { %v8596_v27 = vpop.f32.mrf.mxu1  ;;  %v7707_v47 = vpack.c.bf16 %v7693_v39, %v7692_v40  ;;  %v7691_v26 = vadd.f32 %v7675_v46, %v5037_v45  ;;  %v7628_v2 = vadd.f32 %v7627_v51, %v7531_v13  ;;  %v7680_v6 = vmax.f32 %v7636_v24, 0.0  ;;  %v12791_v51 = vld [vmem:[#allocation25_spill] sm:$0xff] }
 0x4f5   :  { %v8597_v21 = vadd.f32 %v8596_v27, %v8595_v3  ;;  %v8674_v14 = vpop.f32.mrf.mxu0  ;;  %v8530_v45 = vadd.f32 %v12444_v33, %v12442_v54  ;;  %v7547_v3 = vadd.f32 %v8591_v19, %v7450_v36 }
 0x4f6   :  { %v8598_v25 = vpop.f32.mrf.mxu1  ;;  %v7639_v42 = vadd.f32 %v8674_v14, %v7542_v57  ;;  %v7706_v8 = vpack.c.bf16 %v7691_v26, %v7690_v32  ;;  %v7678_v0 = vmax.f32 %v7628_v2, 0.0  ;;  %v7461_v32 = vadd.f32 %v8536_v53, %v12471_v61  ;;  %v12792_v26 = vld [vmem:[#allocation30_spill] sm:$0xff]  ;;  %v12793_v2 = vld [vmem:[#allocation20_spill] sm:$0xff] }
 0x4f7   :  { %v7630_v34 = vpop.f32.mrf.mxu0  ;;  %v7555_v43 = vadd.f32 %v8597_v21, %v7458_v20  ;;  %v7696_v54 = vadd.f32 %v7680_v6, %v5047_v10  ;;  %v7453_v7 = vadd.f32 %v8530_v45, %v12471_v61  ;;  %v5057_v21 = vmax.f32 %v12792_v26, 0.0  ;;  %v12794_v14 = vld [vmem:[#allocation12_spill] sm:$0xff] }
 0x4f8   :  { %v8599_v12 = vpop.f32.mrf.mxu1  ;;  %v7681_v11 = vmax.f32 %v7639_v42, 0.0  ;;  %v7631_v62 = vadd.f32 %v7630_v34, %v7534_v15  ;;  %8699 = vmatprep.mubr.bf16.mxu0 %v7706_v8  ;;  %v7694_v40 = vadd.f32 %v7678_v0, %v5043_v41  ;;  %v7466_v57 = vadd.f32 %v8539_v50, %v12471_v61 }
 0x4f9   :  { %v8600_v5 = vadd.f32 %v8599_v12, %v8598_v25  ;;  %v8677_v29 = vpop.f32.mrf.mxu0  ;;  %8700 = vmatmul.mubr.bf16.vlgmr.msra.gmra.mxu0 %v7707_v47  ;;  %v7550_v27 = vadd.f32 %v8594_v58, %v7453_v7  ;;  %v5055_v47 = vmax.f32 %v12791_v51, 0.0  ;;  %v5051_v25 = vmax.f32 %v12793_v2, 0.0  ;;  %v12795_v58 = vld [vmem:[#allocation34_spill] sm:$0xff] }
 0x4fa   :  { %v8601_v52 = vpop.f32.mrf.mxu1  ;;  %v7697_v33 = vadd.f32 %v7681_v11, %v5049_v49  ;;  %v7679_v17 = vmax.f32 %v7631_v62, 0.0  ;;  %v7652_v63 = vadd.f32 %v8677_v29, %v7555_v43  ;;  %v5053_v6 = vmax.f32 %v12794_v14, 0.0  ;;  %v12796_v29 = vld [vmem:[#allocation39_spill] sm:$0xff] }
 0x4fb   :  { %v7643_v31 = vpop.f32.mrf.mxu0  ;;  %v7558_v24 = vadd.f32 %v8600_v5, %v7461_v32  ;;  %v8545_v11 = vadd.f32 %v12466_v1, %v12464_v44 }
 0x4fc   :  { %v8602_v30 = vpop.f32.mrf.mxu1  ;;  %v7709_v39 = vpack.c.bf16 %v7697_v33, %v7696_v54  ;;  %v7695_v46 = vadd.f32 %v7679_v17, %v5045_v35  ;;  %v7684_v18 = vmax.f32 %v7652_v63, 0.0  ;;  %v7644_v16 = vadd.f32 %v7643_v31, %v7547_v3 }
 0x4fd   :  { %v8678_v55 = vpop.f32.mrf.mxu0  ;;  %v8603_v10 = vadd.f32 %v8602_v30, %v8601_v52  ;;  %v5059_v52 = vmax.f32 %v12795_v58, 0.0  ;;  %v5061_v54 = vmax.f32 %v12796_v29, 0.0  ;;  %v7474_v17 = vadd.f32 %v8545_v11, %v12471_v61 }
 0x4fe   :  { %v8604_v22 = vpop.f32.mrf.mxu1  ;;  %v7655_v4 = vadd.f32 %v8678_v55, %v7558_v24  ;;  %v7708_v13 = vpack.c.bf16 %v7695_v46, %v7694_v40  ;;  %v7682_v23 = vmax.f32 %v7644_v16, 0.0  ;;  %v7700_v42 = vadd.f32 %v7684_v18, %v5055_v47  ;;  %v12797_v55 = vld [vmem:[#allocation42_spill] sm:$0xff] }
 0x4ff   :  { %v7646_v41 = vpop.f32.mrf.mxu0  ;;  %v7563_v45 = vadd.f32 %v8603_v10, %v7466_v57  ;;  %v8548_v63 = vadd.f32 %v12476_v48, %v12473_v9  ;;  %v5063_v10 = vmax.f32 %v12797_v55, 0.0 }
 0x500   :  { %v8605_v37 = vpop.f32.mrf.mxu1  ;;  %v7685_v20 = vmax.f32 %v7655_v4, 0.0  ;;  %v7647_v53 = vadd.f32 %v7646_v41, %v7550_v27  ;;  %8703 = vmatprep.mubr.bf16.mxu0 %v7708_v13  ;;  %v7698_v19 = vadd.f32 %v7682_v23, %v5051_v25  ;;  %v12798_v4 = vld [vmem:[#allocation44_spill] sm:$0xff] }
 0x501   :  { %v8681_v15 = vpop.f32.mrf.mxu0  ;;  %8704 = vmatmul.mubr.bf16.gmra.mxu0 %v7709_v39  ;;  %v8606_v38 = vadd.f32 %v8605_v37, %v8604_v22  ;;  %v7477_v40 = vadd.f32 %v8548_v63, %v12471_v61  ;;  %v5065_v9 = vmax.f32 %v12798_v4, 0.0  ;;  %v8435_v61 = vld [vmem:[%s12550_s11] ss:$0 sm:$0xff]  ;;  %s9165_s11 = smov [#allocation6]  }
 0x502   :  { %v7701_v8 = vadd.f32 %v7685_v20, %v5057_v21  ;;  %v7683_v49 = vmax.f32 %v7647_v53, 0.0  ;;  %s7939_s4 = sshll.u32 %s9165_s11, 4  ;;  %s7940_s4 = int_to_ptr.vmem [resolvable:$true] %s7939_s4 }
 0x503   :  { %v7659_v56 = vpop.f32.mrf.mxu0  ;;  %v7566_v5 = vadd.f32 %v8606_v38, %v7469_v60  ;;  %s9138_s30 = scalar_lea.vmem %s7940_s4, 32  ;;  %p9143_p1 = scmp.lt.s32.totalorder %s7940_s4, %s7940_s4 }
 0x504   :  { %v7711_v12 = vpack.c.bf16 %v7701_v8, %v7700_v42  ;;  %v7699_v34 = vadd.f32 %v7683_v49, %v5053_v6  ;;  %v7660_v43 = vadd.f32 %v7659_v56, %v7563_v45  ;;  %p9139_p0 = scmp.ne.s32.totalorder %s7940_s4, %s9138_s30  ;;  %p9144_p2 = scmp.lt.s32.totalorder %s9138_s30, %s9138_s30 }
 0x505   :  { %v8682_v0 = vpop.f32.mrf.mxu0 }
 0x506   :  { %v7710_v62 = vpack.c.bf16 %v7699_v34, %v7698_v19  ;;  %v7686_v36 = vmax.f32 %v7660_v43, 0.0  ;;  %p9145_p3 = por %p9144_p2, %p9143_p1 }
 0x507   :  { %v7662_v35 = vpop.f32.mrf.mxu0 }
 0x508   :  { %v7663_v32 = vadd.f32 %v7662_v35, %v7566_v5  ;;  %8707 = vmatprep.mubr.bf16.mxu0 %v7710_v62  ;;  %v7702_v30 = vadd.f32 %v7686_v36, %v5059_v52  ;;  %p9146_p4 = pnand %p9145_p3, %p9139_p0 }
 0x509   :  { %8708 = vmatmul.mubr.bf16.gmra.mxu0 %v7711_v12 }
 0x50a   :  { %v7687_v44 = vmax.f32 %v7663_v32, 0.0 }
 0x50c   :  { %v7703_v3 = vadd.f32 %v7687_v44, %v5061_v54 }
 0x50e   :  { %v7712_v24 = vpack.c.bf16 %v7703_v3, %v7702_v30 }
 0x50f   :  { %v8607_v28 = vpop.f32.mrf.mxu1 }
 0x510   :  { %8711 = vmatprep.mubr.bf16.mxu0 %v7712_v24 }
 0x511   :  { %v8608_v33 = vpop.f32.mrf.mxu1 }
 0x512   :  { %v8609_v7 = vadd.f32 %v8608_v33, %v8607_v28 }
 0x513   :  { %v8610_v1 = vpop.f32.mrf.mxu1 }
 0x514   :  { %v7571_v50 = vadd.f32 %v8609_v7, %v7474_v17 }
 0x515   :  { %v8611_v31 = vpop.f32.mrf.mxu1 }
 0x516   :  { %v7668_v39 = vadd.f32 %v8681_v15, %v7571_v50  ;;  %v8612_v46 = vadd.f32 %v8611_v31, %v8610_v1 }
 0x518   :  { %v7574_v18 = vadd.f32 %v8612_v46, %v7477_v40  ;;  %v7688_v16 = vmax.f32 %v7668_v39, 0.0 }
 0x51a   :  { %v7671_v22 = vadd.f32 %v8682_v0, %v7574_v18  ;;  %v7704_v27 = vadd.f32 %v7688_v16, %v5063_v10 }
 0x51c   :  { %v7689_v48 = vmax.f32 %v7671_v22, 0.0 }
 0x51e   :  { %v7705_v13 = vadd.f32 %v7689_v48, %v5065_v9 }
 0x520   :  { %v7713_v51 = vpack.c.bf16 %v7705_v13, %v7704_v27 }
 0x522   :  { %8712 = vmatmul.mubr.bf16.gmra.mxu0 %v7713_v51 }
 0x5b9   :  { %v8701_v47 = vpop.f32.mrf.mxu0 }
 0x5ba   :  { %v7828_v57 = vadd.f32 %v8701_v47, %v8435_v61 }
 0x5bb   :  { %v7819_v26 = vpop.f32.mrf.mxu0 }
 0x5bc   :  { %v7820_v59 = vadd.f32 %v8435_v61, %v7819_v26  ;;  %v7884_v14 = vmax.f32 %v7828_v57, 0.0 }
 0x5bd   :  { %v8702_v21 = vpop.f32.mrf.mxu0 }
 0x5be   :  { %v7882_v20 = vmax.f32 %v7820_v59, 0.0  ;;  %v7831_v6 = vadd.f32 %v8702_v21, %v8435_v61 }
 0x5bf   :  { %v7822_v37 = vpop.f32.mrf.mxu0 }
 0x5c0   :  { %v7823_v41 = vadd.f32 %v8435_v61, %v7822_v37  ;;  %v7885_v38 = vmax.f32 %v7831_v6, 0.0 }
 0x5c1   :  { %v8705_v23 = vpop.f32.mrf.mxu0 }
 0x5c2   :  { %v7883_v53 = vmax.f32 %v7823_v41, 0.0  ;;  %v7844_v62 = vadd.f32 %v8705_v23, %v8435_v61 }
 0x5c3   :  { %v7835_v2 = vpop.f32.mrf.mxu0 }
 0x5c4   :  { %v7898_v25 = vadd.f32 %v7883_v53, %v7882_v20  ;;  %v7836_v49 = vadd.f32 %v8435_v61, %v7835_v2  ;;  %v7888_v32 = vmax.f32 %v7844_v62, 0.0 }
 0x5c5   :  { %v8706_v42 = vpop.f32.mrf.mxu0 }
 0x5c6   :  { %v7899_v15 = vadd.f32 %v7898_v25, %v7884_v14  ;;  %v7886_v12 = vmax.f32 %v7836_v49, 0.0  ;;  %v7847_v58 = vadd.f32 %v8706_v42, %v8435_v61 }
 0x5c7   :  { %v7838_v8 = vpop.f32.mrf.mxu0 }
 0x5c8   :  { %v7900_v60 = vadd.f32 %v7899_v15, %v7885_v38  ;;  %v7839_v56 = vadd.f32 %v8435_v61, %v7838_v8  ;;  %v7889_v17 = vmax.f32 %v7847_v58, 0.0 }
 0x5c9   :  { %v8709_v45 = vpop.f32.mrf.mxu0 }
 0x5ca   :  { %v7901_v43 = vadd.f32 %v7900_v60, %v7886_v12  ;;  %v7887_v0 = vmax.f32 %v7839_v56, 0.0  ;;  %v7860_v52 = vadd.f32 %v8709_v45, %v8435_v61 }
 0x5cb   :  { %v7851_v19 = vpop.f32.mrf.mxu0 }
 0x5cc   :  { %v7852_v28 = vadd.f32 %v8435_v61, %v7851_v19  ;;  %v7902_v35 = vadd.f32 %v7901_v43, %v7887_v0  ;;  %v7892_v63 = vmax.f32 %v7860_v52, 0.0 }
 0x5cd   :  { %v8710_v34 = vpop.f32.mrf.mxu0 }
 0x5ce   :  { %v7890_v29 = vmax.f32 %v7852_v28, 0.0  ;;  %v7903_v54 = vadd.f32 %v7902_v35, %v7888_v32  ;;  %v7863_v7 = vadd.f32 %v8710_v34, %v8435_v61 }
 0x5cf   :  { %v7854_v11 = vpop.f32.mrf.mxu0 }
 0x5d0   :  { %v7855_v5 = vadd.f32 %v8435_v61, %v7854_v11  ;;  %v7904_v1 = vadd.f32 %v7903_v54, %v7889_v17  ;;  %v7893_v3 = vmax.f32 %v7863_v7, 0.0 }
 0x5d2   :  { %v7891_v36 = vmax.f32 %v7855_v5, 0.0  ;;  %v7905_v39 = vrot.slane %v7904_v1, 4 }
 0x5d4   :  { %v7911_v33 = vadd.f32 %v7891_v36, %v7890_v29  ;;  %v7906_v55 = vadd.f32 %v7905_v39, %v7904_v1 }
 0x5d6   :  { %v7912_v50 = vadd.f32 %v7911_v33, %v7892_v63  ;;  %v7907_v47 = vrot.slane %v7906_v55, 2 }
 0x5d8   :  { %v7913_v24 = vadd.f32 %v7912_v50, %v7893_v3  ;;  %v7908_v59 = vadd.f32 %v7907_v47, %v7906_v55 }
 0x5da   :  { %v7909_v41 = vrot.slane %v7908_v59, 1 }
 0x5dc   :  { %v7910_v20 = vadd.f32 %v7909_v41, %v7908_v59 }
 0x5e2   :  { %v8713_v44 = vpop.f32.mrf.mxu0 }
 0x5e3   :  { %v7876_v16 = vadd.f32 %v8713_v44, %v8435_v61 }
 0x5e4   :  { %v7867_v30 = vpop.f32.mrf.mxu0 }
 0x5e5   :  { %v7868_v31 = vadd.f32 %v8435_v61, %v7867_v30  ;;  %v7896_v48 = vmax.f32 %v7876_v16, 0.0 }
 0x5e6   :  { %v8714_v40 = vpop.f32.mrf.mxu0 }
 0x5e7   :  { %v7894_v46 = vmax.f32 %v7868_v31, 0.0  ;;  %v7879_v4 = vadd.f32 %v8714_v40, %v8435_v61 }
 0x5e8   :  { %v7870_v18 = vpop.f32.mrf.mxu0 }
 0x5e9   :  { %v7871_v22 = vadd.f32 %v8435_v61, %v7870_v18  ;;  %v7914_v10 = vadd.f32 %v7913_v24, %v7894_v46  ;;  %v7897_v13 = vmax.f32 %v7879_v4, 0.0  ;;  %v7925_v61 = vmul.f32 0.015625, %v7910_v20 }
 0x5eb   :  { %v7895_v9 = vmax.f32 %v7871_v22, 0.0 }
 0x5ed   :  { %v7915_v27 = vadd.f32 %v7914_v10, %v7895_v9 }
 0x5ef   :  { %v7916_v51 = vadd.f32 %v7915_v27, %v7896_v48 }
 0x5f1   :  { %v7917_v26 = vadd.f32 %v7916_v51, %v7897_v13 }
 0x5f3   :  { %v7918_v21 = vrot.slane %v7917_v26, 4 }
 0x5f5   :  { %v7919_v37 = vadd.f32 %v7918_v21, %v7917_v26 }
 0x5f7   :  { %v7920_v57 = vrot.slane %v7919_v37, 2 }
 0x5f9   :  { %v7921_v23 = vadd.f32 %v7920_v57, %v7919_v37 }
 0x5fb   :  { %v7922_v53 = vrot.slane %v7921_v23, 1 }
 0x5fd   :  { %v7923_v2 = vadd.f32 %v7922_v53, %v7921_v23 }
 0x5ff   :  { %v7926_v25 = vmul.f32 0.015625, %v7923_v2 }
 0x601   :  { %v7930_v14 = vsel %vm7929_vm8, %v7926_v25, %v7925_v61 }
 0x602   :  { %7932 = vst [vmem:[#allocation6] sm:$0x3] %v7930_v14 }
 0x603   :  { %9149 = shalt.err (!%p9146_p4)
}
 0x604   :  { %7942 = dma.vmem_to_hbm [thread:$0]  %s7940_s4, 32, %s12551_s12, [#allocation7]  }
 0x605   :  { %9158 = dma.done.wait [#allocation7], 32  }
 0x606   :  { %9159 = vsyncadd [#allocation7], 4294967264 }
 0x607   :  { %7946 = vsyncpa [#allocation7], 1 }

</bundles_post_ra>
